<compile_context>
chip_gen: v7x
topology: tpu7x:2x2x1
jax: 0.10.0
libtpu: 0.0.40
codegen_flags: <defaults>
</compile_context>

<pallas_src>
import functools

import jax
import jax.numpy as jnp
from jax.experimental import pallas as pl
from jax.experimental.pallas import tpu as pltpu

LANE = 128   # lane width (channel padding target)
WL = 8       # left halo pad along W (one full sublane tile)


def _round_up(x, m):
    return (x + m - 1) // m * m


def _vmem_capacity_bytes():
    try:
        info = pltpu.get_tpu_info()
        cap = getattr(info, "vmem_capacity_bytes", None)
        if cap:
            return int(cap)
    except Exception:
        pass
    return 64 * 1024 * 1024   # conservative default (v7x per-TC VMEM)


def _make_kernel(H, W, Cpi, Cpo, has_downsample):
    """Fused BasicBlock forward for one batch-block of NB images.

    xp_ref :  (NB, H+2, Wp, Cpi) bf16  zero-padded input (8-col left halo, channel pad)
    w1_ref :  (9, Cpi, Cpo)      bf16  conv1 weights (BN1 scale folded), tap-major
    b1_ref :  (1, Cpo)           f32   BN1 bias
    w2_ref :  (9, Cpo, Cpo)      bf16  conv2 weights (BN2 scale folded)
    wd_ref :  (Cpi, Cpo)         bf16  1x1 downsample weights (BNd scale folded)
    b2d_ref:  (1, Cpo)           f32   BN2 bias (+ downsample-BN bias, pre-summed)
    o_ref  :  (NB, H, W, Cpo)    bf16  output block (lane-padded channels)
    acc_ref:  (NB*H*W, Cpo)      f32   VMEM matmul accumulator (reused by both convs)
    ypad_ref: (NB, H+2, Wp, Cpo) bf16  VMEM staging of conv1 activation with halo
    """
    Hp = H + 2

    def kernel(xp_ref, w1_ref, b1_ref, w2_ref, wd_ref, b2d_ref,
               o_ref, acc_ref, ypad_ref):
        NB = xp_ref.shape[0]
        M = NB * H * W

        # ---- conv1 (3x3, stride 1): taps grouped by dy -> one acc RMW per group ----
        for dy in range(3):
            row = None
            for dx in range(3):
                patch = xp_ref[:, dy:dy + H, WL - 1 + dx:WL - 1 + dx + W, :]
                d = jnp.dot(patch.reshape(M, Cpi), w1_ref[3 * dy + dx],
                            preferred_element_type=jnp.float32)
                row = d if row is None else row + d
            if dy == 0:
                acc_ref[...] = row
            else:
                acc_ref[...] += row

        # ---- BN1 bias (scale folded into w1) + ReLU, stage with halo for conv2 ----
        y1 = jnp.maximum(acc_ref[...] + b1_ref[...], 0.0).astype(jnp.bfloat16)

        # zero only the halo ring conv2 actually reads (cheap; megacore-safe: every step)
        zc = jnp.zeros((NB, H, 1, Cpo), jnp.bfloat16)
        ypad_ref[:, 1:1 + H, WL - 1:WL, :] = zc
        ypad_ref[:, 1:1 + H, WL + W:WL + W + 1, :] = zc
        zr = jnp.zeros((NB, 1, W + 2, Cpo), jnp.bfloat16)
        ypad_ref[:, 0:1, WL - 1:WL + W + 1, :] = zr
        ypad_ref[:, Hp - 1:Hp, WL - 1:WL + W + 1, :] = zr
        # interior store starts at the 8-aligned column WL -> unmasked, tile-aligned
        ypad_ref[:, 1:1 + H, WL:WL + W, :] = y1.reshape(NB, H, W, Cpo)

        # ---- conv2 (3x3) + residual path folded into the last row group ----
        for dy in range(3):
            row = None
            for dx in range(3):
                patch = ypad_ref[:, dy:dy + H, WL - 1 + dx:WL - 1 + dx + W, :]
                d = jnp.dot(patch.reshape(M, Cpo), w2_ref[3 * dy + dx],
                            preferred_element_type=jnp.float32)
                row = d if row is None else row + d
            if dy == 2:
                xc = xp_ref[:, 1:1 + H, WL:WL + W, :].reshape(M, Cpi)
                if has_downsample:
                    # 1x1 downsample conv (BNd scale folded into wd)
                    row = row + jnp.dot(xc, wd_ref[...],
                                        preferred_element_type=jnp.float32)
                else:
                    row = row + xc.astype(jnp.float32)   # identity residual
            if dy == 0:
                acc_ref[...] = row
            else:
                acc_ref[...] += row

        # ---- (BN2 [+ BNd]) bias + residual ReLU, lane-padded bf16 output ----
        out = jnp.maximum(acc_ref[...] + b2d_ref[...], 0.0)
        o_ref[...] = out.reshape(NB, H, W, Cpo).astype(o_ref.dtype)

    return kernel


def prepare_params(p, cin, cout, has_downsample):
    """One-time weight prep: fold BN scale, pad channels to lane width, cast to bf16."""
    Cpi = _round_up(cin, LANE)
    Cpo = _round_up(cout, LANE)

    w1 = p["w1"] * p["s1"].reshape(1, 1, 1, cout)                          # (3,3,Cin,Cout)
    w1 = jnp.pad(w1, ((0, 0), (0, 0), (0, Cpi - cin), (0, Cpo - cout)))
    w1 = w1.reshape(9, Cpi, Cpo).astype(jnp.bfloat16)

    w2 = p["w2"] * p["s2"].reshape(1, 1, 1, cout)                          # (3,3,Cout,Cout)
    w2 = jnp.pad(w2, ((0, 0), (0, 0), (0, Cpo - cout), (0, Cpo - cout)))
    w2 = w2.reshape(9, Cpo, Cpo).astype(jnp.bfloat16)

    b1 = jnp.pad(p["b1"].reshape(1, cout), ((0, 0), (0, Cpo - cout))).astype(jnp.float32)

    if has_downsample:
        wd = p["wd"] * p["sd"].reshape(1, cout)                            # (Cin,Cout)
        wd = jnp.pad(wd, ((0, Cpi - cin), (0, Cpo - cout))).astype(jnp.bfloat16)
        b2d = jnp.pad((p["b2"] + p["bd"]).reshape(1, cout),
                      ((0, 0), (0, Cpo - cout))).astype(jnp.float32)
    else:
        wd = jnp.zeros((Cpi, Cpo), jnp.bfloat16)                           # unused dummy
        b2d = jnp.pad(p["b2"].reshape(1, cout),
                      ((0, 0), (0, Cpo - cout))).astype(jnp.float32)

    return dict(w1=w1, b1=b1, w2=w2, wd=wd, b2d=b2d, Cpi=Cpi, Cpo=Cpo)


def basic_block_pallas(x_nhwc, prep, has_downsample=True):
    N, H, W, Cin = x_nhwc.shape
    Cpi, Cpo = prep["Cpi"], prep["Cpo"]
    if not has_downsample:
        assert Cpi == Cpo, "identity residual requires in_channels == out_channels"
    # TODO(synk): stride > 1 is not implemented (stride-1 BasicBlock only).

    # 8-aligned W halo: 8 cols of left pad, total padded width a multiple of 8
    Wp = WL + _round_up(W + 1, 8)
    xp = jnp.pad(x_nhwc,
                 ((0, 0), (1, 1), (WL, Wp - WL - W), (0, Cpi - Cin))).astype(jnp.bfloat16)

    # --- VMEM accounting: data blocks + double-buffered weight blocks ---
    weight_bytes = sum(int(prep[k].size) * prep[k].dtype.itemsize
                       for k in ("w1", "w2", "wd", "b1", "b2d"))
    per_img = (2 * (H + 2) * Wp * Cpi * 2      # xp block (bf16, double-buffered)
               + 2 * H * W * Cpo * 2           # out block (bf16, double-buffered)
               + H * W * Cpo * 4               # acc scratch (f32)
               + (H + 2) * Wp * Cpo * 2)       # ypad scratch (bf16)
    vmem_cap = _vmem_capacity_bytes()
    data_budget = max(per_img, min(vmem_cap // 2, 32 << 20) - 2 * weight_bytes)

    NB = max(1, min(N, data_budget // per_img))
    NB = min(NB, max(1, N // min(N, 4)))       # keep >= ~4 grid steps when possible
    while N % NB:
        NB -= 1
    NB = int(NB)
    grid = (N // NB,)

    vmem_need = NB * per_img + 2 * weight_bytes + (4 << 20)
    vmem_limit = int(min(vmem_cap * 7 // 8, max(vmem_need, 32 << 20)))

    flops = 2 * N * H * W * (9 * Cpi * Cpo + 9 * Cpo * Cpo
                             + (Cpi * Cpo if has_downsample else 0))
    bytes_accessed = int(xp.size) * 2 + N * H * W * Cpo * 2 + weight_bytes
    cost = pl.CostEstimate(flops=flops, transcendentals=0,
                           bytes_accessed=bytes_accessed)

    kernel = _make_kernel(H, W, Cpi, Cpo, has_downsample)

    out = pl.pallas_call(
        kernel,
        out_shape=jax.ShapeDtypeStruct((N, H, W, Cpo), jnp.bfloat16),
        grid=grid,
        in_specs=[
            pl.BlockSpec((NB, H + 2, Wp, Cpi), lambda b: (b, 0, 0, 0)),
            pl.BlockSpec((9, Cpi, Cpo), lambda b: (0, 0, 0)),
            pl.BlockSpec((1, Cpo), lambda b: (0, 0)),
            pl.BlockSpec((9, Cpo, Cpo), lambda b: (0, 0, 0)),
            pl.BlockSpec((Cpi, Cpo), lambda b: (0, 0)),
            pl.BlockSpec((1, Cpo), lambda b: (0, 0)),
        ],
        out_specs=pl.BlockSpec((NB, H, W, Cpo), lambda b: (b, 0, 0, 0)),
        scratch_shapes=[
            pltpu.VMEM((NB * H * W, Cpo), jnp.float32),            # conv accumulator
            pltpu.VMEM((NB, H + 2, Wp, Cpo), jnp.bfloat16),        # conv1 act + halo
        ],
        compiler_params=pltpu.CompilerParams(
            dimension_semantics=("parallel",),
            vmem_limit_bytes=vmem_limit),
        cost_estimate=cost,
    )(xp, prep["w1"], prep["b1"], prep["w2"], prep["wd"], prep["b2d"])

    # lane-padded bf16 output; the next block (or the caller) trims channels if needed
    return out


# ----------------------------- glue / reference -----------------------------

def fold_bn(gamma, beta, mean, var, eps=1e-5):
    scale = gamma / jnp.sqrt(var + eps)
    bias = beta - mean * scale
    return scale.reshape(1, -1), bias.reshape(1, -1)


def make_params(key, cin, cout):
    ks = jax.random.split(key, 16)
    w1 = jax.random.normal(ks[0], (3, 3, cin, cout), jnp.float32) * 0.1
    w2 = jax.random.normal(ks[1], (3, 3, cout, cout), jnp.float32) * 0.1
    wd = jax.random.normal(ks[2], (cin, cout), jnp.float32) * 0.1

    def bn_stats(k0, k1, k2, k3, c):
        gamma = jax.random.uniform(k0, (c,), jnp.float32, 0.5, 1.5)
        beta = jax.random.normal(k1, (c,), jnp.float32) * 0.1
        mean = jax.random.normal(k2, (c,), jnp.float32) * 0.1
        var = jax.random.uniform(k3, (c,), jnp.float32, 0.5, 1.5)
        return fold_bn(gamma, beta, mean, var)

    s1, b1 = bn_stats(ks[3], ks[4], ks[5], ks[6], cout)
    s2, b2 = bn_stats(ks[7], ks[8], ks[9], ks[10], cout)
    sd, bd = bn_stats(ks[11], ks[12], ks[13], ks[14], cout)
    return dict(w1=w1, s1=s1, b1=b1, w2=w2, s2=s2, b2=b2, wd=wd, sd=sd, bd=bd)


def conv2d_nhwc(x, w):
    return jax.lax.conv_general_dilated(
        x, w, window_strides=(1, 1), padding=[(1, 1), (1, 1)],
        dimension_numbers=("NHWC", "HWIO", "NHWC"))


def ref_basic_block(x_nhwc, p, has_downsample):
    y = conv2d_nhwc(x_nhwc, p["w1"]) * p["s1"] + p["b1"]
    y = jnp.maximum(y, 0.0)
    y = conv2d_nhwc(y, p["w2"]) * p["s2"] + p["b2"]
    if has_downsample:
        idn = jnp.einsum("nhwc,cd->nhwd", x_nhwc, p["wd"]) * p["sd"] + p["bd"]
    else:
        idn = x_nhwc
    return jnp.maximum(y + idn, 0.0)


def _run_case(key, N, H, W, cin, cout, has_downsample):
    kx, kp = jax.random.split(key)
    x_nchw = jax.random.normal(kx, (N, cin, H, W), jnp.float32)
    x_nhwc = jnp.transpose(x_nchw, (0, 2, 3, 1))
    params = make_params(kp, cin, cout)

    prep = prepare_params(params, cin, cout, has_downsample)          # hoisted, one-time
    fwd = jax.jit(functools.partial(basic_block_pallas, prep=prep,
                                    has_downsample=has_downsample))
    out_pad = jax.block_until_ready(fwd(x_nhwc))                      # (N,H,W,Cpo) bf16

    out_nhwc = out_pad[..., :cout].astype(jnp.float32)                # trim for checking
    out_nchw = jnp.transpose(out_nhwc, (0, 3, 1, 2))                  # PyTorch layout
    assert out_nchw.shape == (N, cout, H, W)

    ref = ref_basic_block(x_nhwc, params, has_downsample)
    max_err = float(jnp.max(jnp.abs(out_nhwc - ref)))
    # bf16 MXU inputs + bf16 output -> loosened tolerance vs f32 reference
    assert jnp.allclose(out_nhwc, ref, rtol=3e-2, atol=3e-2), \
        f"Pallas kernel mismatch vs reference (max abs err {max_err})"
    return max_err


if __name__ == "__main__":
    key = jax.random.PRNGKey(0)
    k1, k2 = jax.random.split(key)

    # downsampled block (channel expansion via 1x1 conv + BN on the residual)
    _run_case(k1, N=2, H=16, W=16, cin=4, cout=8, has_downsample=True)
    # identity-residual block (in_channels == out_channels, no downsample)
    _run_case(k2, N=2, H=16, W=16, cin=4, cout=4, has_downsample=False)

    print("KERNEL_OK")
</pallas_src>

<mosaic_0001>
module attributes {stable_mosaic.version = 11 : i64} {
  func.func @kernel(%arg0: i32, %arg1: memref<1x18x32x128xbf16, #tpu.memory_space<vmem>>, %arg2: memref<9x128x128xbf16, #tpu.memory_space<vmem>>, %arg3: memref<1x128xf32, #tpu.memory_space<vmem>>, %arg4: memref<9x128x128xbf16, #tpu.memory_space<vmem>>, %arg5: memref<128x128xbf16, #tpu.memory_space<vmem>>, %arg6: memref<1x128xf32, #tpu.memory_space<vmem>>, %arg7: memref<1x16x16x128xbf16, #tpu.memory_space<vmem>>, %arg8: memref<256x128xf32, #tpu.memory_space<vmem>>, %arg9: memref<1x18x32x128xbf16, #tpu.memory_space<vmem>>) attributes {dimension_semantics = [#tpu.dimension_semantics<parallel>], iteration_bounds = array<i64: 2>, scalar_prefetch = 0 : i64, scratch_operands = 2 : i64, tpu.core_type = #tpu.core_type<tc>, window_params = [{transform_indices = @transform_0, window_bounds = array<i64: 1, 18, 32, 128>}, {pipeline_mode = #tpu.pipeline_mode<synchronous>, transform_indices = @transform_1, window_bounds = array<i64: 9, 128, 128>}, {pipeline_mode = #tpu.pipeline_mode<synchronous>, transform_indices = @transform_2, window_bounds = array<i64: 1, 128>}, {pipeline_mode = #tpu.pipeline_mode<synchronous>, transform_indices = @transform_3, window_bounds = array<i64: 9, 128, 128>}, {pipeline_mode = #tpu.pipeline_mode<synchronous>, transform_indices = @transform_4, window_bounds = array<i64: 128, 128>}, {pipeline_mode = #tpu.pipeline_mode<synchronous>, transform_indices = @transform_5, window_bounds = array<i64: 1, 128>}, {transform_indices = @transform_6, window_bounds = array<i64: 1, 16, 16, 128>}]} {
    %c0 = arith.constant 0 : index
    %c0_0 = arith.constant 0 : index
    %c7 = arith.constant 7 : index
    %c0_1 = arith.constant 0 : index
    %0 = vector.load %arg1[%c0, %c0_0, %c7, %c0_1] : memref<1x18x32x128xbf16, #tpu.memory_space<vmem>>, vector<1x16x16x128xbf16>
    %1 = vector.shape_cast %0 : vector<1x16x16x128xbf16> to vector<256x128xbf16>
    %c0_2 = arith.constant 0 : index
    %c0_3 = arith.constant 0 : index
    %c0_4 = arith.constant 0 : index
    %2 = vector.load %arg2[%c0_2, %c0_3, %c0_4] : memref<9x128x128xbf16, #tpu.memory_space<vmem>>, vector<1x128x128xbf16>
    %3 = vector.shape_cast %2 : vector<1x128x128xbf16> to vector<128x128xbf16>
    %cst = arith.constant dense<0.000000e+00> : vector<256x128xf32>
    %4 = tpu.matmul %1, %3, %cst {dimension_numbers = #tpu.dot_dimension_numbers<[1], [0], [0], [1], [0, 0, 1, 1], [], []>} : vector<256x128xbf16>, vector<128x128xbf16>, vector<256x128xf32> -> vector<256x128xf32>
    %c0_5 = arith.constant 0 : index
    %c0_6 = arith.constant 0 : index
    %c8 = arith.constant 8 : index
    %c0_7 = arith.constant 0 : index
    %5 = vector.load %arg1[%c0_5, %c0_6, %c8, %c0_7] : memref<1x18x32x128xbf16, #tpu.memory_space<vmem>>, vector<1x16x16x128xbf16>
    %6 = vector.shape_cast %5 : vector<1x16x16x128xbf16> to vector<256x128xbf16>
    %c1 = arith.constant 1 : index
    %c0_8 = arith.constant 0 : index
    %c0_9 = arith.constant 0 : index
    %7 = vector.load %arg2[%c1, %c0_8, %c0_9] : memref<9x128x128xbf16, #tpu.memory_space<vmem>>, vector<1x128x128xbf16>
    %8 = vector.shape_cast %7 : vector<1x128x128xbf16> to vector<128x128xbf16>
    %cst_10 = arith.constant dense<0.000000e+00> : vector<256x128xf32>
    %9 = tpu.matmul %6, %8, %cst_10 {dimension_numbers = #tpu.dot_dimension_numbers<[1], [0], [0], [1], [0, 0, 1, 1], [], []>} : vector<256x128xbf16>, vector<128x128xbf16>, vector<256x128xf32> -> vector<256x128xf32>
    %10 = arith.addf %4, %9 : vector<256x128xf32>
    %c0_11 = arith.constant 0 : index
    %c0_12 = arith.constant 0 : index
    %c9 = arith.constant 9 : index
    %c0_13 = arith.constant 0 : index
    %11 = vector.load %arg1[%c0_11, %c0_12, %c9, %c0_13] : memref<1x18x32x128xbf16, #tpu.memory_space<vmem>>, vector<1x16x16x128xbf16>
    %12 = vector.shape_cast %11 : vector<1x16x16x128xbf16> to vector<256x128xbf16>
    %c2 = arith.constant 2 : index
    %c0_14 = arith.constant 0 : index
    %c0_15 = arith.constant 0 : index
    %13 = vector.load %arg2[%c2, %c0_14, %c0_15] : memref<9x128x128xbf16, #tpu.memory_space<vmem>>, vector<1x128x128xbf16>
    %14 = vector.shape_cast %13 : vector<1x128x128xbf16> to vector<128x128xbf16>
    %cst_16 = arith.constant dense<0.000000e+00> : vector<256x128xf32>
    %15 = tpu.matmul %12, %14, %cst_16 {dimension_numbers = #tpu.dot_dimension_numbers<[1], [0], [0], [1], [0, 0, 1, 1], [], []>} : vector<256x128xbf16>, vector<128x128xbf16>, vector<256x128xf32> -> vector<256x128xf32>
    %16 = arith.addf %10, %15 : vector<256x128xf32>
    %c0_17 = arith.constant 0 : index
    %c0_18 = arith.constant 0 : index
    %17 = vector.load %arg8[%c0_17, %c0_18] : memref<256x128xf32, #tpu.memory_space<vmem>>, vector<256x128xf32>
    tpu.vector_store %arg8[%c0_17, %c0_18], %16 {strides = array<i32>} : memref<256x128xf32, #tpu.memory_space<vmem>>, vector<256x128xf32>,
    %c0_19 = arith.constant 0 : index
    %c1_20 = arith.constant 1 : index
    %c7_21 = arith.constant 7 : index
    %c0_22 = arith.constant 0 : index
    %18 = vector.load %arg1[%c0_19, %c1_20, %c7_21, %c0_22] : memref<1x18x32x128xbf16, #tpu.memory_space<vmem>>, vector<1x16x16x128xbf16>
    %19 = vector.shape_cast %18 : vector<1x16x16x128xbf16> to vector<256x128xbf16>
    %c3 = arith.constant 3 : index
    %c0_23 = arith.constant 0 : index
    %c0_24 = arith.constant 0 : index
    %20 = vector.load %arg2[%c3, %c0_23, %c0_24] : memref<9x128x128xbf16, #tpu.memory_space<vmem>>, vector<1x128x128xbf16>
    %21 = vector.shape_cast %20 : vector<1x128x128xbf16> to vector<128x128xbf16>
    %cst_25 = arith.constant dense<0.000000e+00> : vector<256x128xf32>
    %22 = tpu.matmul %19, %21, %cst_25 {dimension_numbers = #tpu.dot_dimension_numbers<[1], [0], [0], [1], [0, 0, 1, 1], [], []>} : vector<256x128xbf16>, vector<128x128xbf16>, vector<256x128xf32> -> vector<256x128xf32>
    %c0_26 = arith.constant 0 : index
    %c1_27 = arith.constant 1 : index
    %c8_28 = arith.constant 8 : index
    %c0_29 = arith.constant 0 : index
    %23 = vector.load %arg1[%c0_26, %c1_27, %c8_28, %c0_29] : memref<1x18x32x128xbf16, #tpu.memory_space<vmem>>, vector<1x16x16x128xbf16>
    %24 = vector.shape_cast %23 : vector<1x16x16x128xbf16> to vector<256x128xbf16>
    %c4 = arith.constant 4 : index
    %c0_30 = arith.constant 0 : index
    %c0_31 = arith.constant 0 : index
    %25 = vector.load %arg2[%c4, %c0_30, %c0_31] : memref<9x128x128xbf16, #tpu.memory_space<vmem>>, vector<1x128x128xbf16>
    %26 = vector.shape_cast %25 : vector<1x128x128xbf16> to vector<128x128xbf16>
    %cst_32 = arith.constant dense<0.000000e+00> : vector<256x128xf32>
    %27 = tpu.matmul %24, %26, %cst_32 {dimension_numbers = #tpu.dot_dimension_numbers<[1], [0], [0], [1], [0, 0, 1, 1], [], []>} : vector<256x128xbf16>, vector<128x128xbf16>, vector<256x128xf32> -> vector<256x128xf32>
    %28 = arith.addf %22, %27 : vector<256x128xf32>
    %c0_33 = arith.constant 0 : index
    %c1_34 = arith.constant 1 : index
    %c9_35 = arith.constant 9 : index
    %c0_36 = arith.constant 0 : index
    %29 = vector.load %arg1[%c0_33, %c1_34, %c9_35, %c0_36] : memref<1x18x32x128xbf16, #tpu.memory_space<vmem>>, vector<1x16x16x128xbf16>
    %30 = vector.shape_cast %29 : vector<1x16x16x128xbf16> to vector<256x128xbf16>
    %c5 = arith.constant 5 : index
    %c0_37 = arith.constant 0 : index
    %c0_38 = arith.constant 0 : index
    %31 = vector.load %arg2[%c5, %c0_37, %c0_38] : memref<9x128x128xbf16, #tpu.memory_space<vmem>>, vector<1x128x128xbf16>
    %32 = vector.shape_cast %31 : vector<1x128x128xbf16> to vector<128x128xbf16>
    %cst_39 = arith.constant dense<0.000000e+00> : vector<256x128xf32>
    %33 = tpu.matmul %30, %32, %cst_39 {dimension_numbers = #tpu.dot_dimension_numbers<[1], [0], [0], [1], [0, 0, 1, 1], [], []>} : vector<256x128xbf16>, vector<128x128xbf16>, vector<256x128xf32> -> vector<256x128xf32>
    %34 = arith.addf %28, %33 : vector<256x128xf32>
    %c0_40 = arith.constant 0 : index
    %c0_41 = arith.constant 0 : index
    %35 = vector.load %arg8[%c0_40, %c0_41] : memref<256x128xf32, #tpu.memory_space<vmem>>, vector<256x128xf32>
    %36 = arith.addf %35, %34 : vector<256x128xf32>
    %c0_42 = arith.constant 0 : index
    %c0_43 = arith.constant 0 : index
    %37 = vector.load %arg8[%c0_42, %c0_43] : memref<256x128xf32, #tpu.memory_space<vmem>>, vector<256x128xf32>
    tpu.vector_store %arg8[%c0_42, %c0_43], %36 {strides = array<i32>} : memref<256x128xf32, #tpu.memory_space<vmem>>, vector<256x128xf32>,
    %c0_44 = arith.constant 0 : index
    %c2_45 = arith.constant 2 : index
    %c7_46 = arith.constant 7 : index
    %c0_47 = arith.constant 0 : index
    %38 = vector.load %arg1[%c0_44, %c2_45, %c7_46, %c0_47] : memref<1x18x32x128xbf16, #tpu.memory_space<vmem>>, vector<1x16x16x128xbf16>
    %39 = vector.shape_cast %38 : vector<1x16x16x128xbf16> to vector<256x128xbf16>
    %c6 = arith.constant 6 : index
    %c0_48 = arith.constant 0 : index
    %c0_49 = arith.constant 0 : index
    %40 = vector.load %arg2[%c6, %c0_48, %c0_49] : memref<9x128x128xbf16, #tpu.memory_space<vmem>>, vector<1x128x128xbf16>
    %41 = vector.shape_cast %40 : vector<1x128x128xbf16> to vector<128x128xbf16>
    %cst_50 = arith.constant dense<0.000000e+00> : vector<256x128xf32>
    %42 = tpu.matmul %39, %41, %cst_50 {dimension_numbers = #tpu.dot_dimension_numbers<[1], [0], [0], [1], [0, 0, 1, 1], [], []>} : vector<256x128xbf16>, vector<128x128xbf16>, vector<256x128xf32> -> vector<256x128xf32>
    %c0_51 = arith.constant 0 : index
    %c2_52 = arith.constant 2 : index
    %c8_53 = arith.constant 8 : index
    %c0_54 = arith.constant 0 : index
    %43 = vector.load %arg1[%c0_51, %c2_52, %c8_53, %c0_54] : memref<1x18x32x128xbf16, #tpu.memory_space<vmem>>, vector<1x16x16x128xbf16>
    %44 = vector.shape_cast %43 : vector<1x16x16x128xbf16> to vector<256x128xbf16>
    %c7_55 = arith.constant 7 : index
    %c0_56 = arith.constant 0 : index
    %c0_57 = arith.constant 0 : index
    %45 = vector.load %arg2[%c7_55, %c0_56, %c0_57] : memref<9x128x128xbf16, #tpu.memory_space<vmem>>, vector<1x128x128xbf16>
    %46 = vector.shape_cast %45 : vector<1x128x128xbf16> to vector<128x128xbf16>
    %cst_58 = arith.constant dense<0.000000e+00> : vector<256x128xf32>
    %47 = tpu.matmul %44, %46, %cst_58 {dimension_numbers = #tpu.dot_dimension_numbers<[1], [0], [0], [1], [0, 0, 1, 1], [], []>} : vector<256x128xbf16>, vector<128x128xbf16>, vector<256x128xf32> -> vector<256x128xf32>
    %48 = arith.addf %42, %47 : vector<256x128xf32>
    %c0_59 = arith.constant 0 : index
    %c2_60 = arith.constant 2 : index
    %c9_61 = arith.constant 9 : index
    %c0_62 = arith.constant 0 : index
    %49 = vector.load %arg1[%c0_59, %c2_60, %c9_61, %c0_62] : memref<1x18x32x128xbf16, #tpu.memory_space<vmem>>, vector<1x16x16x128xbf16>
    %50 = vector.shape_cast %49 : vector<1x16x16x128xbf16> to vector<256x128xbf16>
    %c8_63 = arith.constant 8 : index
    %c0_64 = arith.constant 0 : index
    %c0_65 = arith.constant 0 : index
    %51 = vector.load %arg2[%c8_63, %c0_64, %c0_65] : memref<9x128x128xbf16, #tpu.memory_space<vmem>>, vector<1x128x128xbf16>
    %52 = vector.shape_cast %51 : vector<1x128x128xbf16> to vector<128x128xbf16>
    %cst_66 = arith.constant dense<0.000000e+00> : vector<256x128xf32>
    %53 = tpu.matmul %50, %52, %cst_66 {dimension_numbers = #tpu.dot_dimension_numbers<[1], [0], [0], [1], [0, 0, 1, 1], [], []>} : vector<256x128xbf16>, vector<128x128xbf16>, vector<256x128xf32> -> vector<256x128xf32>
    %54 = arith.addf %48, %53 : vector<256x128xf32>
    %c0_67 = arith.constant 0 : index
    %c0_68 = arith.constant 0 : index
    %55 = vector.load %arg8[%c0_67, %c0_68] : memref<256x128xf32, #tpu.memory_space<vmem>>, vector<256x128xf32>
    %56 = arith.addf %55, %54 : vector<256x128xf32>
    %c0_69 = arith.constant 0 : index
    %c0_70 = arith.constant 0 : index
    %57 = vector.load %arg8[%c0_69, %c0_70] : memref<256x128xf32, #tpu.memory_space<vmem>>, vector<256x128xf32>
    tpu.vector_store %arg8[%c0_69, %c0_70], %56 {strides = array<i32>} : memref<256x128xf32, #tpu.memory_space<vmem>>, vector<256x128xf32>,
    %c0_71 = arith.constant 0 : index
    %c0_72 = arith.constant 0 : index
    %58 = vector.load %arg8[%c0_71, %c0_72] : memref<256x128xf32, #tpu.memory_space<vmem>>, vector<256x128xf32>
    %c0_73 = arith.constant 0 : index
    %c0_74 = arith.constant 0 : index
    %59 = vector.load %arg3[%c0_73, %c0_74] : memref<1x128xf32, #tpu.memory_space<vmem>>, vector<1x128xf32>
    %60 = vector.broadcast %59 : vector<1x128xf32> to vector<256x128xf32>
    %61 = arith.addf %58, %60 : vector<256x128xf32>
    %cst_75 = arith.constant 0.000000e+00 : f32
    %62 = vector.broadcast %cst_75 : f32 to vector<256x128xf32>
    %63 = arith.maximumf %61, %62 : vector<256x128xf32>
    %64 = arith.truncf %63 : vector<256x128xf32> to vector<256x128xbf16>
    %cst_76 = arith.constant 0.000000e+00 : bf16
    %65 = vector.broadcast %cst_76 : bf16 to vector<1x16x1x128xbf16>
    %c0_77 = arith.constant 0 : index
    %c1_78 = arith.constant 1 : index
    %c7_79 = arith.constant 7 : index
    %c0_80 = arith.constant 0 : index
    %66 = vector.load %arg9[%c0_77, %c1_78, %c7_79, %c0_80] : memref<1x18x32x128xbf16, #tpu.memory_space<vmem>>, vector<1x16x1x128xbf16>
    tpu.vector_store %arg9[%c0_77, %c1_78, %c7_79, %c0_80], %65 {strides = array<i32>} : memref<1x18x32x128xbf16, #tpu.memory_space<vmem>>, vector<1x16x1x128xbf16>,
    %c0_81 = arith.constant 0 : index
    %c1_82 = arith.constant 1 : index
    %c24 = arith.constant 24 : index
    %c0_83 = arith.constant 0 : index
    %67 = vector.load %arg9[%c0_81, %c1_82, %c24, %c0_83] : memref<1x18x32x128xbf16, #tpu.memory_space<vmem>>, vector<1x16x1x128xbf16>
    tpu.vector_store %arg9[%c0_81, %c1_82, %c24, %c0_83], %65 {strides = array<i32>} : memref<1x18x32x128xbf16, #tpu.memory_space<vmem>>, vector<1x16x1x128xbf16>,
    %cst_84 = arith.constant 0.000000e+00 : bf16
    %68 = vector.broadcast %cst_84 : bf16 to vector<1x1x18x128xbf16>
    %c0_85 = arith.constant 0 : index
    %c0_86 = arith.constant 0 : index
    %c7_87 = arith.constant 7 : index
    %c0_88 = arith.constant 0 : index
    %69 = vector.load %arg9[%c0_85, %c0_86, %c7_87, %c0_88] : memref<1x18x32x128xbf16, #tpu.memory_space<vmem>>, vector<1x1x18x128xbf16>
    tpu.vector_store %arg9[%c0_85, %c0_86, %c7_87, %c0_88], %68 {strides = array<i32>} : memref<1x18x32x128xbf16, #tpu.memory_space<vmem>>, vector<1x1x18x128xbf16>,
    %c0_89 = arith.constant 0 : index
    %c17 = arith.constant 17 : index
    %c7_90 = arith.constant 7 : index
    %c0_91 = arith.constant 0 : index
    %70 = vector.load %arg9[%c0_89, %c17, %c7_90, %c0_91] : memref<1x18x32x128xbf16, #tpu.memory_space<vmem>>, vector<1x1x18x128xbf16>
    tpu.vector_store %arg9[%c0_89, %c17, %c7_90, %c0_91], %68 {strides = array<i32>} : memref<1x18x32x128xbf16, #tpu.memory_space<vmem>>, vector<1x1x18x128xbf16>,
    %71 = vector.shape_cast %64 : vector<256x128xbf16> to vector<1x16x16x128xbf16>
    %c0_92 = arith.constant 0 : index
    %c1_93 = arith.constant 1 : index
    %c8_94 = arith.constant 8 : index
    %c0_95 = arith.constant 0 : index
    %72 = vector.load %arg9[%c0_92, %c1_93, %c8_94, %c0_95] : memref<1x18x32x128xbf16, #tpu.memory_space<vmem>>, vector<1x16x16x128xbf16>
    tpu.vector_store %arg9[%c0_92, %c1_93, %c8_94, %c0_95], %71 {strides = array<i32>} : memref<1x18x32x128xbf16, #tpu.memory_space<vmem>>, vector<1x16x16x128xbf16>,
    %c0_96 = arith.constant 0 : index
    %c0_97 = arith.constant 0 : index
    %c7_98 = arith.constant 7 : index
    %c0_99 = arith.constant 0 : index
    %73 = vector.load %arg9[%c0_96, %c0_97, %c7_98, %c0_99] : memref<1x18x32x128xbf16, #tpu.memory_space<vmem>>, vector<1x16x16x128xbf16>
    %74 = vector.shape_cast %73 : vector<1x16x16x128xbf16> to vector<256x128xbf16>
    %c0_100 = arith.constant 0 : index
    %c0_101 = arith.constant 0 : index
    %c0_102 = arith.constant 0 : index
    %75 = vector.load %arg4[%c0_100, %c0_101, %c0_102] : memref<9x128x128xbf16, #tpu.memory_space<vmem>>, vector<1x128x128xbf16>
    %76 = vector.shape_cast %75 : vector<1x128x128xbf16> to vector<128x128xbf16>
    %cst_103 = arith.constant dense<0.000000e+00> : vector<256x128xf32>
    %77 = tpu.matmul %74, %76, %cst_103 {dimension_numbers = #tpu.dot_dimension_numbers<[1], [0], [0], [1], [0, 0, 1, 1], [], []>} : vector<256x128xbf16>, vector<128x128xbf16>, vector<256x128xf32> -> vector<256x128xf32>
    %c0_104 = arith.constant 0 : index
    %c0_105 = arith.constant 0 : index
    %c8_106 = arith.constant 8 : index
    %c0_107 = arith.constant 0 : index
    %78 = vector.load %arg9[%c0_104, %c0_105, %c8_106, %c0_107] : memref<1x18x32x128xbf16, #tpu.memory_space<vmem>>, vector<1x16x16x128xbf16>
    %79 = vector.shape_cast %78 : vector<1x16x16x128xbf16> to vector<256x128xbf16>
    %c1_108 = arith.constant 1 : index
    %c0_109 = arith.constant 0 : index
    %c0_110 = arith.constant 0 : index
    %80 = vector.load %arg4[%c1_108, %c0_109, %c0_110] : memref<9x128x128xbf16, #tpu.memory_space<vmem>>, vector<1x128x128xbf16>
    %81 = vector.shape_cast %80 : vector<1x128x128xbf16> to vector<128x128xbf16>
    %cst_111 = arith.constant dense<0.000000e+00> : vector<256x128xf32>
    %82 = tpu.matmul %79, %81, %cst_111 {dimension_numbers = #tpu.dot_dimension_numbers<[1], [0], [0], [1], [0, 0, 1, 1], [], []>} : vector<256x128xbf16>, vector<128x128xbf16>, vector<256x128xf32> -> vector<256x128xf32>
    %83 = arith.addf %77, %82 : vector<256x128xf32>
    %c0_112 = arith.constant 0 : index
    %c0_113 = arith.constant 0 : index
    %c9_114 = arith.constant 9 : index
    %c0_115 = arith.constant 0 : index
    %84 = vector.load %arg9[%c0_112, %c0_113, %c9_114, %c0_115] : memref<1x18x32x128xbf16, #tpu.memory_space<vmem>>, vector<1x16x16x128xbf16>
    %85 = vector.shape_cast %84 : vector<1x16x16x128xbf16> to vector<256x128xbf16>
    %c2_116 = arith.constant 2 : index
    %c0_117 = arith.constant 0 : index
    %c0_118 = arith.constant 0 : index
    %86 = vector.load %arg4[%c2_116, %c0_117, %c0_118] : memref<9x128x128xbf16, #tpu.memory_space<vmem>>, vector<1x128x128xbf16>
    %87 = vector.shape_cast %86 : vector<1x128x128xbf16> to vector<128x128xbf16>
    %cst_119 = arith.constant dense<0.000000e+00> : vector<256x128xf32>
    %88 = tpu.matmul %85, %87, %cst_119 {dimension_numbers = #tpu.dot_dimension_numbers<[1], [0], [0], [1], [0, 0, 1, 1], [], []>} : vector<256x128xbf16>, vector<128x128xbf16>, vector<256x128xf32> -> vector<256x128xf32>
    %89 = arith.addf %83, %88 : vector<256x128xf32>
    %c0_120 = arith.constant 0 : index
    %c0_121 = arith.constant 0 : index
    %90 = vector.load %arg8[%c0_120, %c0_121] : memref<256x128xf32, #tpu.memory_space<vmem>>, vector<256x128xf32>
    tpu.vector_store %arg8[%c0_120, %c0_121], %89 {strides = array<i32>} : memref<256x128xf32, #tpu.memory_space<vmem>>, vector<256x128xf32>,
    %c0_122 = arith.constant 0 : index
    %c1_123 = arith.constant 1 : index
    %c7_124 = arith.constant 7 : index
    %c0_125 = arith.constant 0 : index
    %91 = vector.load %arg9[%c0_122, %c1_123, %c7_124, %c0_125] : memref<1x18x32x128xbf16, #tpu.memory_space<vmem>>, vector<1x16x16x128xbf16>
    %92 = vector.shape_cast %91 : vector<1x16x16x128xbf16> to vector<256x128xbf16>
    %c3_126 = arith.constant 3 : index
    %c0_127 = arith.constant 0 : index
    %c0_128 = arith.constant 0 : index
    %93 = vector.load %arg4[%c3_126, %c0_127, %c0_128] : memref<9x128x128xbf16, #tpu.memory_space<vmem>>, vector<1x128x128xbf16>
    %94 = vector.shape_cast %93 : vector<1x128x128xbf16> to vector<128x128xbf16>
    %cst_129 = arith.constant dense<0.000000e+00> : vector<256x128xf32>
    %95 = tpu.matmul %92, %94, %cst_129 {dimension_numbers = #tpu.dot_dimension_numbers<[1], [0], [0], [1], [0, 0, 1, 1], [], []>} : vector<256x128xbf16>, vector<128x128xbf16>, vector<256x128xf32> -> vector<256x128xf32>
    %c0_130 = arith.constant 0 : index
    %c1_131 = arith.constant 1 : index
    %c8_132 = arith.constant 8 : index
    %c0_133 = arith.constant 0 : index
    %96 = vector.load %arg9[%c0_130, %c1_131, %c8_132, %c0_133] : memref<1x18x32x128xbf16, #tpu.memory_space<vmem>>, vector<1x16x16x128xbf16>
    %97 = vector.shape_cast %96 : vector<1x16x16x128xbf16> to vector<256x128xbf16>
    %c4_134 = arith.constant 4 : index
    %c0_135 = arith.constant 0 : index
    %c0_136 = arith.constant 0 : index
    %98 = vector.load %arg4[%c4_134, %c0_135, %c0_136] : memref<9x128x128xbf16, #tpu.memory_space<vmem>>, vector<1x128x128xbf16>
    %99 = vector.shape_cast %98 : vector<1x128x128xbf16> to vector<128x128xbf16>
    %cst_137 = arith.constant dense<0.000000e+00> : vector<256x128xf32>
    %100 = tpu.matmul %97, %99, %cst_137 {dimension_numbers = #tpu.dot_dimension_numbers<[1], [0], [0], [1], [0, 0, 1, 1], [], []>} : vector<256x128xbf16>, vector<128x128xbf16>, vector<256x128xf32> -> vector<256x128xf32>
    %101 = arith.addf %95, %100 : vector<256x128xf32>
    %c0_138 = arith.constant 0 : index
    %c1_139 = arith.constant 1 : index
    %c9_140 = arith.constant 9 : index
    %c0_141 = arith.constant 0 : index
    %102 = vector.load %arg9[%c0_138, %c1_139, %c9_140, %c0_141] : memref<1x18x32x128xbf16, #tpu.memory_space<vmem>>, vector<1x16x16x128xbf16>
    %103 = vector.shape_cast %102 : vector<1x16x16x128xbf16> to vector<256x128xbf16>
    %c5_142 = arith.constant 5 : index
    %c0_143 = arith.constant 0 : index
    %c0_144 = arith.constant 0 : index
    %104 = vector.load %arg4[%c5_142, %c0_143, %c0_144] : memref<9x128x128xbf16, #tpu.memory_space<vmem>>, vector<1x128x128xbf16>
    %105 = vector.shape_cast %104 : vector<1x128x128xbf16> to vector<128x128xbf16>
    %cst_145 = arith.constant dense<0.000000e+00> : vector<256x128xf32>
    %106 = tpu.matmul %103, %105, %cst_145 {dimension_numbers = #tpu.dot_dimension_numbers<[1], [0], [0], [1], [0, 0, 1, 1], [], []>} : vector<256x128xbf16>, vector<128x128xbf16>, vector<256x128xf32> -> vector<256x128xf32>
    %107 = arith.addf %101, %106 : vector<256x128xf32>
    %c0_146 = arith.constant 0 : index
    %c0_147 = arith.constant 0 : index
    %108 = vector.load %arg8[%c0_146, %c0_147] : memref<256x128xf32, #tpu.memory_space<vmem>>, vector<256x128xf32>
    %109 = arith.addf %108, %107 : vector<256x128xf32>
    %c0_148 = arith.constant 0 : index
    %c0_149 = arith.constant 0 : index
    %110 = vector.load %arg8[%c0_148, %c0_149] : memref<256x128xf32, #tpu.memory_space<vmem>>, vector<256x128xf32>
    tpu.vector_store %arg8[%c0_148, %c0_149], %109 {strides = array<i32>} : memref<256x128xf32, #tpu.memory_space<vmem>>, vector<256x128xf32>,
    %c0_150 = arith.constant 0 : index
    %c2_151 = arith.constant 2 : index
    %c7_152 = arith.constant 7 : index
    %c0_153 = arith.constant 0 : index
    %111 = vector.load %arg9[%c0_150, %c2_151, %c7_152, %c0_153] : memref<1x18x32x128xbf16, #tpu.memory_space<vmem>>, vector<1x16x16x128xbf16>
    %112 = vector.shape_cast %111 : vector<1x16x16x128xbf16> to vector<256x128xbf16>
    %c6_154 = arith.constant 6 : index
    %c0_155 = arith.constant 0 : index
    %c0_156 = arith.constant 0 : index
    %113 = vector.load %arg4[%c6_154, %c0_155, %c0_156] : memref<9x128x128xbf16, #tpu.memory_space<vmem>>, vector<1x128x128xbf16>
    %114 = vector.shape_cast %113 : vector<1x128x128xbf16> to vector<128x128xbf16>
    %cst_157 = arith.constant dense<0.000000e+00> : vector<256x128xf32>
    %115 = tpu.matmul %112, %114, %cst_157 {dimension_numbers = #tpu.dot_dimension_numbers<[1], [0], [0], [1], [0, 0, 1, 1], [], []>} : vector<256x128xbf16>, vector<128x128xbf16>, vector<256x128xf32> -> vector<256x128xf32>
    %c0_158 = arith.constant 0 : index
    %c2_159 = arith.constant 2 : index
    %c8_160 = arith.constant 8 : index
    %c0_161 = arith.constant 0 : index
    %116 = vector.load %arg9[%c0_158, %c2_159, %c8_160, %c0_161] : memref<1x18x32x128xbf16, #tpu.memory_space<vmem>>, vector<1x16x16x128xbf16>
    %117 = vector.shape_cast %116 : vector<1x16x16x128xbf16> to vector<256x128xbf16>
    %c7_162 = arith.constant 7 : index
    %c0_163 = arith.constant 0 : index
    %c0_164 = arith.constant 0 : index
    %118 = vector.load %arg4[%c7_162, %c0_163, %c0_164] : memref<9x128x128xbf16, #tpu.memory_space<vmem>>, vector<1x128x128xbf16>
    %119 = vector.shape_cast %118 : vector<1x128x128xbf16> to vector<128x128xbf16>
    %cst_165 = arith.constant dense<0.000000e+00> : vector<256x128xf32>
    %120 = tpu.matmul %117, %119, %cst_165 {dimension_numbers = #tpu.dot_dimension_numbers<[1], [0], [0], [1], [0, 0, 1, 1], [], []>} : vector<256x128xbf16>, vector<128x128xbf16>, vector<256x128xf32> -> vector<256x128xf32>
    %121 = arith.addf %115, %120 : vector<256x128xf32>
    %c0_166 = arith.constant 0 : index
    %c2_167 = arith.constant 2 : index
    %c9_168 = arith.constant 9 : index
    %c0_169 = arith.constant 0 : index
    %122 = vector.load %arg9[%c0_166, %c2_167, %c9_168, %c0_169] : memref<1x18x32x128xbf16, #tpu.memory_space<vmem>>, vector<1x16x16x128xbf16>
    %123 = vector.shape_cast %122 : vector<1x16x16x128xbf16> to vector<256x128xbf16>
    %c8_170 = arith.constant 8 : index
    %c0_171 = arith.constant 0 : index
    %c0_172 = arith.constant 0 : index
    %124 = vector.load %arg4[%c8_170, %c0_171, %c0_172] : memref<9x128x128xbf16, #tpu.memory_space<vmem>>, vector<1x128x128xbf16>
    %125 = vector.shape_cast %124 : vector<1x128x128xbf16> to vector<128x128xbf16>
    %cst_173 = arith.constant dense<0.000000e+00> : vector<256x128xf32>
    %126 = tpu.matmul %123, %125, %cst_173 {dimension_numbers = #tpu.dot_dimension_numbers<[1], [0], [0], [1], [0, 0, 1, 1], [], []>} : vector<256x128xbf16>, vector<128x128xbf16>, vector<256x128xf32> -> vector<256x128xf32>
    %127 = arith.addf %121, %126 : vector<256x128xf32>
    %c0_174 = arith.constant 0 : index
    %c1_175 = arith.constant 1 : index
    %c8_176 = arith.constant 8 : index
    %c0_177 = arith.constant 0 : index
    %128 = vector.load %arg1[%c0_174, %c1_175, %c8_176, %c0_177] : memref<1x18x32x128xbf16, #tpu.memory_space<vmem>>, vector<1x16x16x128xbf16>
    %129 = vector.shape_cast %128 : vector<1x16x16x128xbf16> to vector<256x128xbf16>
    %c0_178 = arith.constant 0 : index
    %c0_179 = arith.constant 0 : index
    %130 = vector.load %arg5[%c0_178, %c0_179] : memref<128x128xbf16, #tpu.memory_space<vmem>>, vector<128x128xbf16>
    %cst_180 = arith.constant dense<0.000000e+00> : vector<256x128xf32>
    %131 = tpu.matmul %129, %130, %cst_180 {dimension_numbers = #tpu.dot_dimension_numbers<[1], [0], [0], [1], [0, 0, 1, 1], [], []>} : vector<256x128xbf16>, vector<128x128xbf16>, vector<256x128xf32> -> vector<256x128xf32>
    %132 = arith.addf %127, %131 : vector<256x128xf32>
    %c0_181 = arith.constant 0 : index
    %c0_182 = arith.constant 0 : index
    %133 = vector.load %arg8[%c0_181, %c0_182] : memref<256x128xf32, #tpu.memory_space<vmem>>, vector<256x128xf32>
    %134 = arith.addf %133, %132 : vector<256x128xf32>
    %c0_183 = arith.constant 0 : index
    %c0_184 = arith.constant 0 : index
    %135 = vector.load %arg8[%c0_183, %c0_184] : memref<256x128xf32, #tpu.memory_space<vmem>>, vector<256x128xf32>
    tpu.vector_store %arg8[%c0_183, %c0_184], %134 {strides = array<i32>} : memref<256x128xf32, #tpu.memory_space<vmem>>, vector<256x128xf32>,
    %c0_185 = arith.constant 0 : index
    %c0_186 = arith.constant 0 : index
    %136 = vector.load %arg8[%c0_185, %c0_186] : memref<256x128xf32, #tpu.memory_space<vmem>>, vector<256x128xf32>
    %c0_187 = arith.constant 0 : index
    %c0_188 = arith.constant 0 : index
    %137 = vector.load %arg6[%c0_187, %c0_188] : memref<1x128xf32, #tpu.memory_space<vmem>>, vector<1x128xf32>
    %138 = vector.broadcast %137 : vector<1x128xf32> to vector<256x128xf32>
    %139 = arith.addf %136, %138 : vector<256x128xf32>
    %cst_189 = arith.constant 0.000000e+00 : f32
    %140 = vector.broadcast %cst_189 : f32 to vector<256x128xf32>
    %141 = arith.maximumf %139, %140 : vector<256x128xf32>
    %142 = vector.shape_cast %141 : vector<256x128xf32> to vector<1x16x16x128xf32>
    %143 = arith.truncf %142 : vector<1x16x16x128xf32> to vector<1x16x16x128xbf16>
    %c0_190 = arith.constant 0 : index
    %c0_191 = arith.constant 0 : index
    %c0_192 = arith.constant 0 : index
    %c0_193 = arith.constant 0 : index
    %144 = vector.load %arg7[%c0_190, %c0_191, %c0_192, %c0_193] : memref<1x16x16x128xbf16, #tpu.memory_space<vmem>>, vector<1x16x16x128xbf16>
    tpu.vector_store %arg7[%c0_190, %c0_191, %c0_192, %c0_193], %143 {strides = array<i32>} : memref<1x16x16x128xbf16, #tpu.memory_space<vmem>>, vector<1x16x16x128xbf16>,
    return
  }
  func.func @transform_0(%arg0: i32) -> (i32, i32, i32, i32) {
    %c0_i32 = arith.constant 0 : i32
    %c0_i32_0 = arith.constant 0 : i32
    %c0_i32_1 = arith.constant 0 : i32
    %c0_i32_2 = arith.constant 0 : i32
    return %arg0, %c0_i32, %c0_i32_0, %c0_i32_1 : i32, i32, i32, i32
  }
  func.func @transform_1(%arg0: i32) -> (i32, i32, i32) {
    %c0_i32 = arith.constant 0 : i32
    %c0_i32_0 = arith.constant 0 : i32
    %c0_i32_1 = arith.constant 0 : i32
    %c0_i32_2 = arith.constant 0 : i32
    return %c0_i32, %c0_i32_0, %c0_i32_1 : i32, i32, i32
  }
  func.func @transform_2(%arg0: i32) -> (i32, i32) {
    %c0_i32 = arith.constant 0 : i32
    %c0_i32_0 = arith.constant 0 : i32
    %c0_i32_1 = arith.constant 0 : i32
    return %c0_i32, %c0_i32_0 : i32, i32
  }
  func.func @transform_3(%arg0: i32) -> (i32, i32, i32) {
    %c0_i32 = arith.constant 0 : i32
    %c0_i32_0 = arith.constant 0 : i32
    %c0_i32_1 = arith.constant 0 : i32
    %c0_i32_2 = arith.constant 0 : i32
    return %c0_i32, %c0_i32_0, %c0_i32_1 : i32, i32, i32
  }
  func.func @transform_4(%arg0: i32) -> (i32, i32) {
    %c0_i32 = arith.constant 0 : i32
    %c0_i32_0 = arith.constant 0 : i32
    %c0_i32_1 = arith.constant 0 : i32
    return %c0_i32, %c0_i32_0 : i32, i32
  }
  func.func @transform_5(%arg0: i32) -> (i32, i32) {
    %c0_i32 = arith.constant 0 : i32
    %c0_i32_0 = arith.constant 0 : i32
    %c0_i32_1 = arith.constant 0 : i32
    return %c0_i32, %c0_i32_0 : i32, i32
  }
  func.func @transform_6(%arg0: i32) -> (i32, i32, i32, i32) {
    %c0_i32 = arith.constant 0 : i32
    %c0_i32_0 = arith.constant 0 : i32
    %c0_i32_1 = arith.constant 0 : i32
    %c0_i32_2 = arith.constant 0 : i32
    return %arg0, %c0_i32, %c0_i32_0, %c0_i32_1 : i32, i32, i32, i32
  }
}

</mosaic_0001>

<bundles_post_ra>
// kernel: basic_block_pallas.1
= control target key start
LH: loop header
LB: loop body
LE: loop exit
PB: predicated region body
PF: predicated region fallthrough
CT: control target
= control target key end

     0   :  { %11 = vsyncpa [#allocation5], 0  ;;  %s18176_s0 = inlined_call_operand.vmem [shape: bf16[2,18,32,128], index: 0, kind: input, shape index: {}]   ;;  %s18177_s1 = inlined_call_operand.vmem [shape: bf16[9,128,128], index: 1, kind: input, shape index: {}]   ;;  %s18178_s2 = inlined_call_operand.vmem [shape: f32[1,128], index: 2, kind: input, shape index: {}]   ;;  %s18179_s3 = inlined_call_operand.vmem [shape: bf16[9,128,128], index: 3, kind: input, shape index: {}]   ;;  %s18180_s4 = inlined_call_operand.vmem [shape: bf16[128,128], index: 4, kind: input, shape index: {}]   ;;  %s18181_s5 = inlined_call_operand.vmem [shape: f32[1,128], index: 5, kind: input, shape index: {}]   ;;  %s18182_s6 = inlined_call_operand.hbm [shape: bf16[2,16,16,128], index: 6, kind: output, shape index: {}]  }
   0x1   :  { %13 = vsyncpa [#allocation5 + $0x1], 0  ;;  %s14688_s21 = smov 0   ;;  %s14690_s22 = smov 0  }
   0x2   :  { %s14692_s23 = smov 0   ;;  %s14694_s24 = smov 0  }
   0x3 LB: > { %s14709_s25 = sadd.s32 4294967295, %s14648_s24   ;;  %s11386_s26 = sadd.s32 4294967294, %s14648_s24   ;;  %s14648_s24 = sphi %s14694_s24, %s18319_s24   ;;  %s14644_s23 = sphi %s14692_s23, %s18318_s23   ;;  %s14640_s22 = sphi %s14690_s22, %s18317_s22   ;;  %s14636_s21 = sphi %s14688_s21, %s18316_s21  }
   0x4   : > { %s14713_s27 = sadd.s32 1, %s14648_s24   ;;  %s157_s28 = sadd.s32 1, %s14644_s23 }
   0x5   : > { %s154_s29 = ssub.s32 %s14648_s24, %s14713_s27  ;;  %p167_p0 = scmp.ne.s32.totalorder %s14644_s23, %s14640_s22 }
   0x6   : > { %p155_p1 = scmp.eq.s32.totalorder %s154_s29, 0  ;;  %p168_p2 = scmp.eq.s32.totalorder %s14709_s25, 1 }
   0x7   : > { %p173_p3 = scmp.ne.s32.totalorder %s14640_s22, %s14636_s21  ;;  %p174_p4 = scmp.eq.s32.totalorder %s11386_s26, 1 }
   0x8   : > { %s14724_s30 = scalar_select %p155_p1, %s14644_s23, %s157_s28  }
   0x9   : > { %p14726_p5 = por %p168_p2, %p167_p0  ;;  %p14730_p6 = por %p174_p4, %p173_p3 }
   0xa   : > { %p11389_p7 = scmp.ge.s32.totalorder %s14648_s24, 1  ;;  %p215_p8 = scmp.lt.s32.totalorder %s14648_s24, 3 }
   0xc   : > { %p216_p9 = pnand %p11389_p7, %p215_p8 }
   0xe   : > { %219 = sbr.rel (%p216_p9) target bundleno = 1669 (0x685), region = 44 }
  0x15   : > { %v14369_v0 = vld [vmem:[%s18177_s1 + $0x40] sm:$0xff]   ;;  %p245_p10 = scmp.lt.s32.totalorder %s14709_s25, 1  ;;  %v14370_v1 = vld [vmem:[%s18177_s1 + $0x48] sm:$0xff]   ;;  %v14371_v2 = vld [vmem:[%s18177_s1 + $0x50] sm:$0xff]   ;;  %vm299_vm0 = vsmask.f32 256 }
  0x16   : > { %12855 = vmatprep.subr.bf16.mxu0 %v14369_v0  ;;  %v14372_v3 = vld [vmem:[%s18177_s1 + $0x58] sm:$0xff]   ;;  %v14373_v7 = vld [vmem:[%s18177_s1 + $0x60] sm:$0xff]   ;;  %v14374_v8 = vld [vmem:[%s18177_s1 + $0x68] sm:$0xff]   ;;  %vm300_vm1 = vsmask.f32 4368  ;;  %vm5900_vm6 = vcmask 1043459  }
  0x17   : > { %s246_s13 = scalar_select %p245_p10, %s14709_s25, 1  ;;  %12856 = vmatpush3.bf16.msra.mxu0 %v14369_v0  ;;  %v14375_v9 = vld [vmem:[%s18177_s1 + $0x70] sm:$0xff]   ;;  %v14376_v10 = vld [vmem:[%s18177_s1 + $0x78] sm:$0xff]   ;;  %v14379_v13 = vld [vmem:[%s18177_s1] sm:$0xff]   ;;  %vm1313_vm3 = vsmask.f32 3328 }
  0x18   : > { %12857 = vmatprep.subr.bf16.mxu0 %v14370_v1  ;;  %v14382_v20 = vld [vmem:[%s18177_s1 + $0x8] sm:$0xff]   ;;  %v14385_v28 = vld [vmem:[%s18177_s1 + $0x10] sm:$0xff]   ;;  %v14388_v34 = vld [vmem:[%s18177_s1 + $0x18] sm:$0xff]   ;;  %vm1314_vm4 = vsmask.f32 7440  ;;  %vm6002_vm9 = vcmask 1047555  }
  0x19   : > { %s14327_s16 = smul.u32 288, %s246_s13  ;;  %v14391_v39 = vld [vmem:[%s18177_s1 + $0x20] sm:$0xff]   ;;  %vm14823_vm2 = vmor %vm299_vm0, %vm300_vm1  ;;  %v14394_v49 = vld [vmem:[%s18177_s1 + $0x28] sm:$0xff]   ;;  %vm5901_vm7 = vsmask.f32 7950  ;;  %vm6007_vm11 = vcmask 1044480  }
  0x1a   : > { %v14397_v51 = vld [vmem:[%s18177_s1 + $0x30] sm:$0xff]   ;;  %v14400_v58 = vld [vmem:[%s18177_s1 + $0x38] sm:$0xff]   ;;  %v14883_v63 = vld [vmem:[%s18177_s1 + $0x80] sm:$0xff]   ;;  %vm5952_vm8 = vsmask.f32 4352  ;;  %vm6483_vm14 = vcmask 1043456  }
  0x1b   : > { %s14750_s19 = scalar_lea.vmem %s18176_s0, %s14327_s16  ;;  %12858 = vmatpush3.bf16.msra.mxu0 %v14370_v1  ;;  %vm15286_vm5 = vmor %vm1313_vm3, %vm1314_vm4  ;;  %vm5951_vm15 = vcmask 1044484   ;;  %s242_s13 = sand.u32 1, %s14640_s22  }
  0x1c   : > { %12859 = vmatprep.subr.bf16.mxu0 %v14371_v2  ;;  %v252_v4 = vld [vmem:[%s14750_s19 + $0x4] sm:$0xf]  ;;  %v253_v5 = vld [vmem:[%s14750_s19 + $0x8] sm:$0xf]  ;;  %v14770_v11 = vld [vmem:[%s14750_s19 + $0x14] sm:$0xf] }
  0x1d   : > { %v11424_v6 = vcombine.low %v252_v4, %v253_v5  ;;  %v14773_v12 = vld [vmem:[%s14750_s19 + $0x18] sm:$0xf]  ;;  %v14779_v14 = vld [vmem:[%s14750_s19 + $0x24] sm:$0xf]  ;;  %v14782_v15 = vld [vmem:[%s14750_s19 + $0x28] sm:$0xf] }
  0x1e   : > { %v308_v16 = vshrl.u32 %v252_v4, 16  ;;  %v11425_v17 = vcombine.low %v14770_v11, %v14773_v12  ;;  %v11426_v18 = vcombine.low %v14779_v14, %v14782_v15  ;;  %v317_v19 = vshrl.u32 %v253_v5, 16  ;;  %v14792_v23 = vld [vmem:[%s14750_s19 + $0x34] sm:$0xf]  ;;  %v14795_v24 = vld [vmem:[%s14750_s19 + $0x38] sm:$0xf]  ;;  %vm17002_vm10 = vmand %vm5900_vm6, %vm5901_vm7 }
  0x1f   : > { %12860 = vmatpush3.bf16.msra.mxu0 %v14371_v2  ;;  %12871 = vmatprep.mubr.bf16.mxu0 %v11424_v6  ;;  %v320_v22 = vshll.u32 %v253_v5, 16  ;;  %v14798_v25 = vld [vmem:[%s14750_s19 + $0x44] sm:$0xf]  ;;  %v14801_v27 = vld [vmem:[%s14750_s19 + $0x48] sm:$0xf]  ;;  %v11427_v29 = vcombine.low %v14792_v23, %v14795_v24  ;;  %v311_v30 = vshll.u32 %v252_v4, 16  ;;  %vm17006_vm12 = vmand %vm6002_vm9, %vm5901_vm7 }
  0x20   : > { %12861 = vmatprep.subr.bf16.mxu0 %v14372_v3  ;;  %v310_v21 = vrot.slane %v308_v16, 7  ;;  %v319_v26 = vrot.slane %v317_v19, 7  ;;  %v11428_v31 = vcombine.low %v14798_v25, %v14801_v27  ;;  %v14814_v35 = vld [vmem:[%s14750_s19 + $0x54] sm:$0xf]  ;;  %v251_v36 = vld [vmem:[%s14750_s19] sm:$0x8]  ;;  %vm17013_vm13 = vmand %vm6007_vm11, %vm5952_vm8 }
  0x21   : > { %v14818_v37 = vld [vmem:[%s14750_s19 + $0x58] sm:$0xf]  ;;  %v303_v41 = vshrl.u32 %v251_v36, 16  ;;  %v14828_v42 = vld [vmem:[%s14750_s19 + $0x64] sm:$0xf]  ;;  %v330_v2 = vshrl.u32 %v14770_v11, 16  ;;  %vm17038_vm0 = vmand %vm5951_vm15, %vm5952_vm8 }
  0x22   : > { %v315_v32 = vrot.slane %v310_v21, 4  ;;  %v322_v33 = vor.u32 %v320_v22, %v319_v26  ;;  %v313_v38 = vor.u32 %v311_v30, %v310_v21  ;;  %v14831_v43 = vld [vmem:[%s14750_s19 + $0x68] sm:$0xf]  ;;  %v11429_v46 = vcombine.low %v14814_v35, %v14818_v37  ;;  %v14850_v52 = vld [vmem:[%s14750_s19 + $0x74] sm:$0xf]  ;;  %s12303_s15 = sshll.u32 %s14709_s25, 11 }
  0x23   : > { %12862 = vmatpush3.bf16.msra.mxu0 %v14372_v3  ;;  %v11392_v45 = vrot.slane %v303_v41, 11  ;;  %v11430_v47 = vcombine.low %v14828_v42, %v14831_v43  ;;  %v14853_v53 = vld [vmem:[%s14750_s19 + $0x78] sm:$0xf]  ;;  %v14856_v54 = vld [vmem:[%s14750_s19 + $0x84] sm:$0xf]  ;;  %v339_v3 = vshrl.u32 %v14773_v12, 16  ;;  %s18127_s20 = scalar_lea.hbm %s18182_s6, %s12303_s15 }
  0x24   : > { %12863 = vmatprep.subr.bf16.mxu0 %v14373_v7  ;;  %v323_v44 = vsel %vm14823_vm2, %v315_v32, %v322_v33  ;;  %v14859_v55 = vld [vmem:[%s14750_s19 + $0x88] sm:$0xf]  ;;  %v11431_v56 = vcombine.low %v14850_v52, %v14853_v53  ;;  %v14869_v59 = vld [vmem:[%s14750_s19 + $0x94] sm:$0xf]  ;;  %v14872_v60 = vld [vmem:[%s14750_s19 + $0x98] sm:$0xf] }
  0x25   : > { %v314_v48 = vsel %vm14823_vm2, %v11392_v45, %v313_v38  ;;  %v11432_v57 = vcombine.low %v14856_v54, %v14859_v55  ;;  %v14875_v61 = vld [vmem:[%s14750_s19 + $0xa4] sm:$0xf]  ;;  %v14878_v62 = vld [vmem:[%s14750_s19 + $0xa8] sm:$0xf]  ;;  %v11433_v0 = vcombine.low %v14869_v59, %v14872_v60  ;;  %v14893_v4 = vld [vmem:[%s14750_s19 + $0xb4] sm:$0xf] }
  0x26   : > { %v14844_v50 = vcombine.low %v314_v48, %v323_v44  ;;  %v11434_v1 = vcombine.low %v14875_v61, %v14878_v62  ;;  %v14896_v5 = vld [vmem:[%s14750_s19 + $0xb8] sm:$0xf]  ;;  %v14898_v6 = vrot.slane %v330_v2, 7  ;;  %v333_v16 = vshll.u32 %v14770_v11, 16  ;;  %v14938_v38 = vld [vmem:[%s14750_s19 + $0xe4] sm:$0xf] }
  0x27   : > { %12864 = vmatpush3.bf16.msra.mxu0 %v14373_v7  ;;  %v352_v7 = vshrl.u32 %v14779_v14, 16  ;;  %v355_v22 = vshll.u32 %v14779_v14, 16  ;;  %v364_v26 = vshll.u32 %v14782_v15, 16  ;;  %v377_v11 = vshll.u32 %v14792_v23, 16  ;;  %v14930_v33 = vld [vmem:[%s14750_s19 + $0xd8] sm:$0xf] }
  0x28   : > { %12865 = vmatprep.subr.bf16.mxu0 %v14374_v8  ;;  %v399_v32 = vshll.u32 %v14798_v25, 16  ;;  %v405_v14 = vshrl.u32 %v14801_v27, 16  ;;  %v427_v36 = vshrl.u32 %v14818_v37, 16  ;;  %v408_v44 = vshll.u32 %v14801_v27, 16  ;;  %s18135_s25 = scalar_lea.sflag [#allocation5], %s242_s13  ;;  %s14650_s28 = smov [#allocation4]  }
  0x29   : > { %v14915_v21 = vrot.slane %v352_v7, 7  ;;  %v440_v45 = vshrl.u32 %v14828_v42, 16  ;;  %s14590_s29 = sshll.u32 %s14650_s28, 4  ;;  %s14591_s29 = int_to_ptr.vmem [resolvable:$false] %s14590_s29 }
  0x2a   : > { %s14592_s9 = scalar_lea.vmem %s14591_s29, 4096 }
  0x2b   : > { %12866 = vmatpush3.bf16.msra.mxu0 %v14374_v8  ;;  %v14902_v8 = vld [vmem:[%s14750_s19 + $0xc4] sm:$0xf]  ;;  %v14961_v2 = vor.u32 %v355_v22, %v14915_v21  ;;  %v14977_v22 = vld [vmem:[%s14750_s19 + $0xf4] sm:$0xf] }
  0x2c   : > { %12867 = vmatprep.subr.bf16.mxu0 %v14375_v9 }
  0x2f   : > { %12868 = vmatpush3.bf16.msra.mxu0 %v14375_v9  ;;  %v14905_v9 = vld [vmem:[%s14750_s19 + $0xc8] sm:$0xf] }
  0x30   : > { %12869 = vmatprep.subr.bf16.mxu0 %v14376_v10  ;;  %v11436_v19 = vcombine.low %v14902_v8, %v14905_v9 }
  0x33   : > { %12870 = vmatpush3.bf16.msra.mxu0 %v14376_v10  ;;  %v361_v10 = vshrl.u32 %v14782_v15, 16  ;;  %v14927_v15 = vld [vmem:[%s14750_s19 + $0xd4] sm:$0xf] }
  0x34   : > { %12903 = vmatprep.subr.bf16.mxu0 %v14379_v13  ;;  %v11437_v48 = vcombine.low %v14927_v15, %v14930_v33 }
  0x35   : > { %v363_v30 = vrot.slane %v361_v10, 7  ;;  %v257_v10 = vld [vmem:[%s14750_s19 + $0x20] sm:$0x8] }
  0x36   : > { %12872 = vmatmul.mubr.bf16.vlgmr.msra.gmra.mrb[0].mxu0 %v11425_v17  ;;  %v341_v17 = vrot.slane %v339_v3, 7 }
  0x37   : > { %12904 = vmatpush3.bf16.msra.mxu0 %v14379_v13  ;;  %12875 = vmatprep.mubr.bf16.mxu0 %v11426_v18  ;;  %v11435_v13 = vcombine.low %v14893_v4, %v14896_v5  ;;  %v342_v18 = vshll.u32 %v14773_v12, 16  ;;  %v383_v12 = vshrl.u32 %v14795_v24, 16 }
  0x38   : > { %12905 = vmatprep.subr.bf16.mxu0 %v14382_v20 }
  0x3b   : > { %12906 = vmatpush3.bf16.msra.mxu0 %v14382_v20  ;;  %v337_v20 = vrot.slane %v14898_v6, 4 }
  0x3c   : > { %12907 = vmatprep.subr.bf16.mxu0 %v14385_v28 }
  0x3e   : > { %12876 = vmatmul.mubr.bf16.gmra.mrb[4].mxu0 %v11427_v29  ;;  %v396_v29 = vshrl.u32 %v14798_v25, 16 }
  0x3f   : > { %12879 = vmatprep.mubr.bf16.mxu0 %v11428_v31  ;;  %12908 = vmatpush3.bf16.msra.mxu0 %v14385_v28  ;;  %v374_v28 = vshrl.u32 %v14792_v23, 16  ;;  %v386_v31 = vshll.u32 %v14795_v24, 16  ;;  %v418_v23 = vshrl.u32 %v14814_v35, 16  ;;  %v14941_v24 = vld [vmem:[%s14750_s19 + $0xe8] sm:$0xf] }
  0x40   : > { %12909 = vmatprep.subr.bf16.mxu0 %v14388_v34  ;;  %v14945_v41 = vrot.slane %v396_v29, 7  ;;  %v366_v29 = vor.u32 %v364_v26, %v363_v30  ;;  %v515_v26 = vshrl.u32 %v14872_v60, 16 }
  0x41   : > { %v14943_v25 = vrot.slane %v374_v28, 7  ;;  %v14957_v27 = vrot.slane %v418_v23, 7  ;;  %v14980_v28 = vld [vmem:[%s14750_s19 + $0xf8] sm:$0xf]  ;;  %v493_v23 = vshrl.u32 %v14859_v55, 16 }
  0x42   : > { %v11439_v30 = vcombine.low %v14977_v22, %v14980_v28 }
  0x43   : > { %12910 = vmatpush3.bf16.msra.mxu0 %v14388_v34  ;;  %v14933_v34 = vor.u32 %v333_v16, %v14898_v6 }
  0x44   : > { %12911 = vmatprep.subr.bf16.mxu0 %v14391_v39 }
  0x46   : > { %12880 = vmatmul.mubr.bf16.gmra.mrb[8].mxu0 %v11429_v46  ;;  %v449_v46 = vshrl.u32 %v14831_v43, 16 }
  0x47   : > { %12883 = vmatprep.mubr.bf16.mxu0 %v11430_v47  ;;  %12912 = vmatpush3.bf16.msra.mxu0 %v14391_v39  ;;  %v385_v39 = vrot.slane %v383_v12, 7  ;;  %v462_v47 = vshrl.u32 %v14850_v52, 16 }
  0x48   : > { %12913 = vmatprep.subr.bf16.mxu0 %v14394_v49  ;;  %v14970_v16 = vrot.slane %v449_v46, 7  ;;  %v14989_v46 = vor.u32 %v399_v32, %v14945_v41 }
  0x4b   : > { %12914 = vmatpush3.bf16.msra.mxu0 %v14394_v49  ;;  %v407_v49 = vrot.slane %v405_v14, 7  ;;  %v14983_v14 = vor.u32 %v377_v11, %v14943_v25 }
  0x4c   : > { %12915 = vmatprep.subr.bf16.mxu0 %v14397_v51 }
  0x4e   : > { %12884 = vmatmul.mubr.bf16.gmra.mrb[12].mxu0 %v11431_v56  ;;  %v430_v56 = vshll.u32 %v14818_v37, 16  ;;  %v471_v37 = vshrl.u32 %v14853_v53, 16 }
  0x4f   : > { %12887 = vmatprep.mubr.bf16.mxu0 %v11432_v57  ;;  %12916 = vmatpush3.bf16.msra.mxu0 %v14397_v51  ;;  %v421_v51 = vshll.u32 %v14814_v35, 16  ;;  %v11438_v57 = vcombine.low %v14938_v38, %v14941_v24  ;;  %v260_v35 = vld [vmem:[%s14750_s19 + $0x30] sm:$0x8] }
  0x50   : > { %12917 = vmatprep.subr.bf16.mxu0 %v14400_v58 }
  0x51   : > { %v15011_v3 = vor.u32 %v421_v51, %v14957_v27 }
  0x53   : > { %12918 = vmatpush3.bf16.msra.mxu0 %v14400_v58  ;;  %v344_v58 = vor.u32 %v342_v18, %v341_v17  ;;  %v14972_v17 = vrot.slane %v462_v47, 7  ;;  %v14991_v47 = vrot.slane %v471_v37, 7  ;;  %v528_v37 = vshrl.u32 %v14875_v61, 16 }
  0x54   : > { %12951 = vmatprep.subr.bf16.mxu0 %v14883_v63  ;;  %v559_v18 = vshrl.u32 %v14896_v5, 16 }
  0x55   : > { %v15025_v51 = vrot.slane %v528_v37, 7  ;;  %v594_v37 = vshrl.u32 %v14927_v15, 16 }
  0x56   : > { %12888 = vmatmul.mubr.bf16.gmra.mrb[16].mxu0 %v11433_v0  ;;  %v429_v0 = vrot.slane %v427_v36, 7  ;;  %v347_v36 = vshrl.u32 %v257_v10, 16 }
  0x57   : > { %12891 = vmatprep.mubr.bf16.mxu0 %v11434_v1  ;;  %v254_v1 = vld [vmem:[%s14750_s19 + $0x10] sm:$0x8] }
  0x58   : > { %v325_v12 = vshrl.u32 %v254_v1, 16  ;;  %v11394_v11 = vrot.slane %v347_v36, 11  ;;  %v15023_v36 = vor.u32 %v430_v56, %v429_v0 }
  0x5a   : > { %v11393_v10 = vrot.slane %v325_v12, 11  ;;  %v369_v12 = vshrl.u32 %v260_v35, 16  ;;  %v358_v56 = vsel %vm14823_vm2, %v11394_v11, %v14961_v2  ;;  %v581_v35 = vshrl.u32 %v14905_v9, 16 }
  0x5b   : > { %v603_v11 = vshrl.u32 %v14930_v33, 16 }
  0x5e   : > { %12892 = vmatmul.mubr.bf16.gmra.mrb[20].mxu0 %v11435_v13  ;;  %v14968_v13 = vrot.slane %v440_v45, 7  ;;  %v14986_v45 = vor.u32 %v386_v31, %v385_v39  ;;  %v359_v31 = vrot.slane %v14915_v21, 4  ;;  %v15000_v39 = vor.u32 %v408_v44, %v407_v49 }
  0x5f   : > { %12895 = vmatprep.mubr.bf16.mxu0 %v11436_v19  ;;  %v484_v19 = vshrl.u32 %v14856_v54, 16  ;;  %v15015_v21 = vrot.slane %v515_v26, 7  ;;  %v537_v44 = vshrl.u32 %v14878_v62, 16  ;;  %v550_v49 = vshrl.u32 %v14893_v4, 16 }
  0x60   : > { %v345_v26 = vsel %vm14823_vm2, %v337_v20, %v344_v58  ;;  %v572_v20 = vshrl.u32 %v14902_v8, 16  ;;  %v15047_v58 = vrot.slane %v559_v18, 7  ;;  %v14402_v18 = vld [vmem:[%s18177_s1 + $0x88] sm:$0xff]  }
  0x61   : > { %v15002_v32 = vrot.slane %v484_v19, 7  ;;  %v263_v19 = vld [vmem:[%s14750_s19 + $0x40] sm:$0x8] }
  0x62   : > { %v391_v0 = vshrl.u32 %v263_v19, 16  ;;  %v15060_v1 = vrot.slane %v572_v20, 7  ;;  %v15072_v20 = vrot.slane %v594_v37, 7  ;;  %v15074_v19 = vrot.slane %v603_v11, 7  ;;  %v272_v11 = vld [vmem:[%s14750_s19 + $0x70] sm:$0x8] }
  0x64   : > { %v11396_v6 = vrot.slane %v391_v0, 11  ;;  %v625_v0 = vshrl.u32 %v14941_v24, 16 }
  0x66   : > { %12896 = vmatmul.mubr.bf16.gmra.mrb[24].mxu0 %v11437_v48  ;;  %v15006_v48 = vrot.slane %v493_v23, 7  ;;  %v403_v23 = vrot.slane %v14945_v41, 4  ;;  %v402_v37 = vsel %vm14823_vm2, %v11396_v6, %v14989_v46  ;;  %v15100_v46 = vrot.slane %v625_v0, 7 }
  0x67   : > { %12899 = vmatprep.mubr.bf16.mxu0 %v11438_v57  ;;  %v506_v57 = vshrl.u32 %v14869_v59, 16  ;;  %v18200_v0 = vshll.u32 %v14828_v42, 16 }
  0x69   : > { %v15013_v7 = vrot.slane %v506_v57, 7  ;;  %v336_v57 = vsel %vm14823_vm2, %v11393_v10, %v14933_v34  ;;  %v15043_v34 = vrot.slane %v550_v49, 7  ;;  %v381_v10 = vrot.slane %v14943_v25, 4 }
  0x6a   : > { %v11449_v2 = vcombine.low %v336_v57, %v345_v26  ;;  %v597_v57 = vshll.u32 %v14927_v15, 16  ;;  %v269_v26 = vld [vmem:[%s14750_s19 + $0x60] sm:$0x8]  ;;  %v18199_v25 = vshll.u32 %v14831_v43, 16  ;;  %v445_v49 = vor.u32 %v18200_v0, %v14968_v13  ;;  %v1265_v15 = vld [vmem:[%s14750_s19 + $0x4] sm:$0xf] }
  0x6e   : > { %12900 = vmatmul.mubr.bf16.gmra.mrb[28].mxu0 %v11439_v30  ;;  %v15041_v30 = vrot.slane %v537_v44, 7  ;;  %v266_v44 = vld [vmem:[%s14750_s19 + $0x50] sm:$0x8] }
  0x6f   : > { %12919 = vmatprep.mubr.bf16.mxu0 %v14844_v50  ;;  %v367_v50 = vsel %vm14823_vm2, %v359_v31, %v366_v29  ;;  %v11395_v31 = vrot.slane %v369_v12, 11  ;;  %v616_v12 = vshrl.u32 %v14938_v38, 16  ;;  %v413_v41 = vshrl.u32 %v266_v44, 16  ;;  %v275_v44 = vld [vmem:[%s14750_s19 + $0x80] sm:$0x8] }
  0x70   : > { %v11450_v29 = vcombine.low %v358_v56, %v367_v50  ;;  %v454_v56 = vor.u32 %v18199_v25, %v14970_v16  ;;  %v15068_v50 = vrot.slane %v581_v35, 7  ;;  %v389_v16 = vsel %vm14823_vm2, %v381_v10, %v14986_v45 }
  0x71   : > { %v380_v43 = vsel %vm14823_vm2, %v11395_v31, %v14983_v14  ;;  %v435_v14 = vshrl.u32 %v269_v26, 16  ;;  %v638_v31 = vshrl.u32 %v14977_v22, 16  ;;  %v11397_v6 = vrot.slane %v413_v41, 11  ;;  %v14404_v41 = vld [vmem:[%s18177_s1 + $0x98] sm:$0xff]  }
  0x72   : > { %v447_v25 = vrot.slane %v14968_v13, 4  ;;  %v457_v35 = vshrl.u32 %v272_v11, 16  ;;  %v650_v45 = vshll.u32 %v14980_v28, 16  ;;  %v281_v11 = vld [vmem:[%s14750_s19 + $0xa0] sm:$0x8]  ;;  %v469_v13 = vrot.slane %v14972_v17, 4 }
  0x73   : > { %v11398_v10 = vrot.slane %v435_v14, 11  ;;  %v424_v42 = vsel %vm14823_vm2, %v11397_v6, %v15011_v3  ;;  %v18203_v14 = vshll.u32 %v14856_v54, 16  ;;  %v523_v6 = vshrl.u32 %v281_v11, 16  ;;  %v290_v11 = vld [vmem:[%s14750_s19 + $0xd0] sm:$0x8] }
  0x74   : > { %v455_v3 = vsel %vm14823_vm2, %v447_v25, %v454_v56 }
  0x75   : > { %v446_v54 = vsel %vm14823_vm2, %v11398_v10, %v445_v49  ;;  %v18207_v49 = vshll.u32 %v14875_v61, 16 }
  0x76   : > { %12920 = vmatmul.mubr.bf16.vlgmr.msra.gmra.mrb[0].mxu0 %v11449_v2  ;;  %v14403_v2 = vld [vmem:[%s18177_s1 + $0x90] sm:$0xff]  }
  0x77   : > { %12952 = vmatpush3.bf16.msra.mxu0 %v14883_v63  ;;  %12923 = vmatprep.mubr.bf16.mxu0 %v11450_v29  ;;  %v411_v63 = vsel %vm14823_vm2, %v403_v23, %v15000_v39  ;;  %v15094_v29 = vrot.slane %v616_v12, 7  ;;  %v647_v39 = vshrl.u32 %v14980_v28, 16  ;;  %v11451_v23 = vcombine.low %v380_v43, %v389_v16  ;;  %v278_v43 = vld [vmem:[%s14750_s19 + $0x90] sm:$0x8] }
  0x78   : > { %12953 = vmatprep.subr.bf16.mxu0 %v14402_v18  ;;  %v11452_v26 = vcombine.low %v402_v37, %v411_v63  ;;  %v425_v12 = vrot.slane %v14957_v27, 4  ;;  %v18201_v27 = vshll.u32 %v14850_v52, 16  ;;  %v18202_v37 = vshll.u32 %v14853_v53, 16 }
  0x79   : > { %v18204_v52 = vshll.u32 %v14859_v55, 16  ;;  %v501_v55 = vshrl.u32 %v278_v43, 16  ;;  %v533_v10 = vor.u32 %v18207_v49, %v15025_v51  ;;  %v18208_v43 = vshll.u32 %v14878_v62, 16 }
  0x7a   : > { %v467_v16 = vor.u32 %v18201_v27, %v14972_v17  ;;  %v476_v63 = vor.u32 %v18202_v37, %v14991_v47  ;;  %v284_v27 = vld [vmem:[%s14750_s19 + $0xb0] sm:$0x8]  ;;  %v433_v53 = vsel %vm14823_vm2, %v425_v12, %v15023_v36  ;;  %v11399_v17 = vrot.slane %v457_v35, 11  ;;  %v287_v36 = vld [vmem:[%s14750_s19 + $0xc0] sm:$0x8] }
  0x7b   : > { %12954 = vmatpush3.bf16.msra.mxu0 %v14402_v18  ;;  %v479_v18 = vshrl.u32 %v275_v44, 16  ;;  %v489_v44 = vor.u32 %v18203_v14, %v15002_v32  ;;  %v498_v0 = vor.u32 %v18204_v52, %v15006_v48  ;;  %v491_v47 = vrot.slane %v15002_v32, 4  ;;  %v14405_v48 = vld [vmem:[%s18177_s1 + $0xa0] sm:$0xff]  }
  0x7c   : > { %12955 = vmatprep.subr.bf16.mxu0 %v14403_v2  ;;  %v18206_v32 = vshll.u32 %v14872_v60, 16  ;;  %v11453_v12 = vcombine.low %v424_v42, %v433_v53  ;;  %v477_v25 = vsel %vm14823_vm2, %v469_v13, %v476_v63  ;;  %v11454_v37 = vcombine.low %v446_v54, %v455_v3  ;;  %v293_v3 = vld [vmem:[%s14750_s19 + $0xe0] sm:$0x8] }
  0x7d   : > { %v468_v60 = vsel %vm14823_vm2, %v11399_v17, %v467_v16  ;;  %v499_v61 = vsel %vm14823_vm2, %v491_v47, %v498_v0  ;;  %v11401_v42 = vrot.slane %v501_v55, 11  ;;  %v535_v62 = vrot.slane %v15025_v51, 4 }
  0x7e   : > { %12924 = vmatmul.mubr.bf16.gmra.mrb[4].mxu0 %v11451_v23  ;;  %v11400_v23 = vrot.slane %v479_v18, 11  ;;  %v520_v35 = vor.u32 %v18206_v32, %v15015_v21  ;;  %v513_v18 = vrot.slane %v15013_v7, 4  ;;  %v567_v21 = vshrl.u32 %v287_v36, 16 }
  0x7f   : > { %12927 = vmatprep.mubr.bf16.mxu0 %v11452_v26  ;;  %12956 = vmatpush3.bf16.msra.mxu0 %v14403_v2  ;;  %v18205_v2 = vshll.u32 %v14869_v59, 16  ;;  %v545_v26 = vshrl.u32 %v284_v27, 16  ;;  %v542_v59 = vor.u32 %v18208_v43, %v15041_v30  ;;  %v14406_v30 = vld [vmem:[%s18177_s1 + $0xa8] sm:$0xff]   ;;  %v557_v14 = vrot.slane %v15043_v34, 4 }
  0x80   : > { %12957 = vmatprep.subr.bf16.mxu0 %v14404_v41  ;;  %v490_v63 = vsel %vm14823_vm2, %v11400_v23, %v489_v44  ;;  %v18210_v52 = vshll.u32 %v14896_v5, 16  ;;  %v579_v0 = vrot.slane %v15060_v1, 4  ;;  %v18211_v51 = vshll.u32 %v14905_v9, 16 }
  0x81   : > { %v511_v56 = vor.u32 %v18205_v2, %v15013_v7  ;;  %v11402_v7 = vrot.slane %v523_v6, 11  ;;  %v11403_v16 = vrot.slane %v545_v26, 11  ;;  %v589_v53 = vshrl.u32 %v290_v11, 16  ;;  %v15240_v11 = vld [vmem:[%s18177_s1 + $0x100] sm:$0xff]  }
  0x82   : > { %v564_v44 = vor.u32 %v18210_v52, %v15047_v58  ;;  %v586_v27 = vor.u32 %v18211_v51, %v15068_v50  ;;  %v15183_v17 = vrot.slane %v638_v31, 7  ;;  %v18212_v5 = vshll.u32 %v14902_v8, 16  ;;  %v14407_v31 = vld [vmem:[%s18177_s1 + $0xb0] sm:$0xff]  }
  0x83   : > { %12958 = vmatpush3.bf16.msra.mxu0 %v14404_v41  ;;  %v18209_v41 = vshll.u32 %v14893_v4, 16  ;;  %v11455_v4 = vcombine.low %v468_v60, %v477_v25  ;;  %v11456_v47 = vcombine.low %v490_v63, %v499_v61  ;;  %v512_v54 = vsel %vm14823_vm2, %v11401_v42, %v511_v56  ;;  %v1271_v63 = vld [vmem:[%s14750_s19 + $0x24] sm:$0xf]  ;;  %v1272_v42 = vld [vmem:[%s14750_s19 + $0x28] sm:$0xf] }
  0x84   : > { %12959 = vmatprep.subr.bf16.mxu0 %v14405_v48  ;;  %v577_v58 = vor.u32 %v18212_v5, %v15060_v1  ;;  %v521_v9 = vsel %vm14823_vm2, %v513_v18, %v520_v35  ;;  %v534_v50 = vsel %vm14823_vm2, %v11402_v7, %v533_v10  ;;  %v543_v8 = vsel %vm14823_vm2, %v535_v62, %v542_v59  ;;  %v1268_v59 = vld [vmem:[%s14750_s19 + $0x14] sm:$0xf] }
  0x85   : > { %v555_v13 = vor.u32 %v18209_v41, %v15043_v34  ;;  %v11404_v34 = vrot.slane %v567_v21, 11  ;;  %v565_v23 = vsel %vm14823_vm2, %v557_v14, %v564_v44  ;;  %v611_v55 = vshrl.u32 %v293_v3, 16 }
  0x86   : > { %12928 = vmatmul.mubr.bf16.gmra.mrb[8].mxu0 %v11453_v12  ;;  %v11405_v6 = vrot.slane %v589_v53, 11  ;;  %v599_v36 = vor.u32 %v597_v57, %v15072_v20  ;;  %v601_v2 = vrot.slane %v15072_v20, 4  ;;  %v18213_v32 = vshll.u32 %v14930_v33, 16  ;;  %v296_v12 = vld [vmem:[%s14750_s19 + $0xf0] sm:$0x8]  ;;  %v14408_v33 = vld [vmem:[%s18177_s1 + $0xb8] sm:$0xff]  }
  0x87   : > { %12931 = vmatprep.mubr.bf16.mxu0 %v11454_v37  ;;  %12960 = vmatpush3.bf16.msra.mxu0 %v14405_v48  ;;  %v556_v1 = vsel %vm14823_vm2, %v11403_v16, %v555_v13  ;;  %v587_v48 = vsel %vm14823_vm2, %v579_v0, %v586_v27  ;;  %v578_v56 = vsel %vm14823_vm2, %v11404_v34, %v577_v58  ;;  %v623_v49 = vrot.slane %v15094_v29, 4 }
  0x88   : > { %12961 = vmatprep.subr.bf16.mxu0 %v14406_v30  ;;  %v608_v35 = vor.u32 %v18213_v32, %v15074_v19  ;;  %v18214_v10 = vshll.u32 %v14941_v24, 16  ;;  %v649_v57 = vrot.slane %v647_v39, 7  ;;  %v11457_v20 = vcombine.low %v512_v54, %v521_v9  ;;  %v1266_v19 = vld [vmem:[%s14750_s19 + $0x8] sm:$0xf]  ;;  %v1269_v39 = vld [vmem:[%s14750_s19 + $0x18] sm:$0xf] }
  0x89   : > { %v11458_v25 = vcombine.low %v534_v50, %v543_v8  ;;  %v15226_v18 = vcombine.low %v556_v1, %v565_v23  ;;  %v11406_v43 = vrot.slane %v611_v55, 11  ;;  %v18215_v24 = vshll.u32 %v14938_v38, 16  ;;  %v1274_v54 = vld [vmem:[%s14750_s19 + $0x34] sm:$0xf]  ;;  %v1270_v9 = vld [vmem:[%s14750_s19 + $0x1c] sm:$0x1] }
  0x8a   : > { %v630_v26 = vor.u32 %v18214_v10, %v15100_v46  ;;  %v15233_v37 = vcombine.low %v578_v56, %v587_v48  ;;  %v600_v60 = vsel %vm14823_vm2, %v11405_v6, %v599_v36  ;;  %v1317_v61 = vshrl.u32 %v1265_v15, 16  ;;  %v1273_v56 = vld [vmem:[%s14750_s19 + $0x2c] sm:$0x1] }
  0x8b   : > { %12962 = vmatpush3.bf16.msra.mxu0 %v14406_v30  ;;  %v621_v46 = vor.u32 %v18215_v24, %v15094_v29  ;;  %v1320_v21 = vshll.u32 %v1265_v15, 16  ;;  %v609_v38 = vsel %vm14823_vm2, %v601_v2, %v608_v35  ;;  %v1326_v7 = vshll.u32 %v1266_v19, 16  ;;  %v1267_v30 = vld [vmem:[%s14750_s19 + $0xc] sm:$0x1] }
  0x8c   : > { %12963 = vmatprep.subr.bf16.mxu0 %v14407_v31  ;;  %v631_v29 = vsel %vm14823_vm2, %v623_v49, %v630_v26  ;;  %v1330_v62 = vshrl.u32 %v1266_v19, 16  ;;  %v1341_v16 = vshrl.u32 %v1268_v59, 16  ;;  %v1344_v41 = vshll.u32 %v1268_v59, 16  ;;  %v1275_v26 = vld [vmem:[%s14750_s19 + $0x38] sm:$0xf] }
  0x8d   : > { %v1350_v13 = vshll.u32 %v1269_v39, 16  ;;  %v1354_v14 = vshrl.u32 %v1269_v39, 16  ;;  %v622_v52 = vsel %vm14823_vm2, %v11406_v43, %v621_v46  ;;  %v633_v44 = vshrl.u32 %v296_v12, 16  ;;  %v1278_v12 = vld [vmem:[%s14750_s19 + $0x48] sm:$0xf] }
  0x8e   : > { %12932 = vmatmul.mubr.bf16.gmra.mrb[12].mxu0 %v11455_v4  ;;  %v1365_v0 = vshrl.u32 %v1271_v63, 16  ;;  %v1368_v51 = vshll.u32 %v1271_v63, 16  ;;  %v645_v27 = vrot.slane %v15183_v17, 4  ;;  %v1319_v53 = vrot.slane %v1317_v61, 4 }
  0x8f   : > { %12935 = vmatprep.mubr.bf16.mxu0 %v11456_v47  ;;  %12964 = vmatpush3.bf16.msra.mxu0 %v14407_v31  ;;  %v1374_v3 = vshll.u32 %v1272_v42, 16  ;;  %v1378_v4 = vshrl.u32 %v1272_v42, 16  ;;  %v1322_v34 = vrot.slane %v1320_v21, 5  ;;  %v15252_v5 = vrot.slane %v1326_v7, 5 }
  0x90   : > { %12965 = vmatprep.subr.bf16.mxu0 %v14408_v33  ;;  %v1332_v58 = vrot.slane %v1330_v62, 4  ;;  %v1336_v47 = vshll.u32 %v1267_v30, 16  ;;  %v1343_v50 = vrot.slane %v1341_v16, 4  ;;  %v1346_v31 = vrot.slane %v1344_v41, 5 }
  0x91   : > { %v15256_v8 = vrot.slane %v1350_v13, 5  ;;  %v1356_v1 = vrot.slane %v1354_v14, 4  ;;  %v15259_v23 = vcombine.low %v600_v60, %v609_v38  ;;  %v18216_v55 = vshll.u32 %v14977_v22, 16 }
  0x92   : > { %v1367_v6 = vrot.slane %v1365_v0, 4  ;;  %v1370_v36 = vrot.slane %v1368_v51, 5  ;;  %v652_v2 = vor.u32 %v650_v45, %v649_v57  ;;  %v15269_v32 = vrot.slane %v1374_v3, 5  ;;  %v1277_v57 = vld [vmem:[%s14750_s19 + $0x44] sm:$0xf] }
  0x93   : > { %12966 = vmatpush3.bf16.msra.mxu0 %v14408_v33  ;;  %v15264_v48 = vor.u32 %v18216_v55, %v15183_v17  ;;  %v1380_v35 = vrot.slane %v1378_v4, 4  ;;  %v15271_v49 = vcombine.low %v622_v52, %v631_v29  ;;  %v15273_v10 = vrot.slane %v633_v44, 11  ;;  %v1276_v29 = vld [vmem:[%s14750_s19 + $0x3c] sm:$0x1]  ;;  %v1281_v55 = vld [vmem:[%s14750_s19 + $0x58] sm:$0xf] }
  0x94   : > { %12999 = vmatprep.subr.bf16.mxu0 %v15240_v11  ;;  %v15275_v22 = vrot.slane %v1336_v47, 5  ;;  %v1323_v15 = vor.u32 %v1322_v34, %v1319_v53  ;;  %v1333_v28 = vor.u32 %v1332_v58, %v15252_v5  ;;  %v1392_v45 = vshll.u32 %v1274_v54, 16  ;;  %v1279_v53 = vld [vmem:[%s14750_s19 + $0x4c] sm:$0x1]  ;;  %v1280_v47 = vld [vmem:[%s14750_s19 + $0x54] sm:$0xf] }
  0x95   : > { %v1347_v33 = vor.u32 %v1346_v31, %v1343_v50  ;;  %v1357_v19 = vor.u32 %v1356_v1, %v15256_v8  ;;  %v1371_v43 = vor.u32 %v1370_v36, %v1367_v6  ;;  %v1381_v24 = vor.u32 %v1380_v35, %v15269_v32  ;;  %v1283_v35 = vld [vmem:[%s14750_s19 + $0x64] sm:$0xf] }
  0x96   : > { %12936 = vmatmul.mubr.bf16.gmra.mrb[16].mxu0 %v11457_v20  ;;  %v1389_v20 = vshrl.u32 %v1274_v54, 16  ;;  %v1384_v46 = vshll.u32 %v1273_v56, 16  ;;  %v1398_v59 = vshll.u32 %v1275_v26, 16  ;;  %v1402_v39 = vshrl.u32 %v1275_v26, 16 }
  0x97   : > { %12939 = vmatprep.mubr.bf16.mxu0 %v11458_v25  ;;  %v1360_v25 = vshll.u32 %v1270_v9, 16  ;;  %v1413_v60 = vshrl.u32 %v1277_v57, 16  ;;  %v1416_v61 = vshll.u32 %v1277_v57, 16  ;;  %v1422_v21 = vshll.u32 %v1278_v12, 16  ;;  %v1284_v57 = vld [vmem:[%s14750_s19 + $0x68] sm:$0xf] }
  0x98   : > { %v1426_v63 = vshrl.u32 %v1278_v12, 16  ;;  %v1324_v42 = vrot.slane %v1323_v15, 4  ;;  %v1334_v38 = vrot.slane %v1333_v28, 4  ;;  %v1391_v7 = vrot.slane %v1389_v20, 4 }
  0x99   : > { %v1394_v62 = vrot.slane %v1392_v45, 5  ;;  %v18217_v30 = vmov 0  ;;  %v1348_v16 = vrot.slane %v1347_v33, 4  ;;  %v1358_v41 = vrot.slane %v1357_v19, 4  ;;  %v1282_v45 = vld [vmem:[%s14750_s19 + $0x5c] sm:$0x1] }
  0x9a   : > { %v18218_v30 = vsel %vm15286_vm5, 4294967295, %v18217_v30  ;;  %v1362_v13 = vrot.slane %v1360_v25, 5  ;;  %v1372_v14 = vrot.slane %v1371_v43, 4  ;;  %v1382_v52 = vrot.slane %v1381_v24, 4  ;;  %v1286_v43 = vld [vmem:[%s14750_s19 + $0x74] sm:$0xf] }
  0x9b   : > { %18219 = vst [vmem:[#allocation7_spill] sm:$0xff] %v18218_v30  ;;  %v1386_v44 = vrot.slane %v1384_v46, 5  ;;  %v15291_v0 = vrot.slane %v1398_v59, 5  ;;  %v1404_v51 = vrot.slane %v1402_v39, 4  ;;  %v1415_v3 = vrot.slane %v1413_v60, 4 }
  0x9c   : > { %v1418_v4 = vrot.slane %v1416_v61, 5  ;;  %v15295_v34 = vrot.slane %v1422_v21, 5  ;;  %v1428_v58 = vrot.slane %v1426_v63, 4  ;;  %v653_v54 = vsel %vm14823_vm2, %v645_v27, %v652_v2  ;;  %v1287_v60 = vld [vmem:[%s14750_s19 + $0x78] sm:$0xf] }
  0x9d   : > { %v1395_v9 = vor.u32 %v1394_v62, %v1391_v7  ;;  %v1339_v50 = vsel %vm15286_vm5, %v1334_v38, %v15275_v22  ;;  %v1353_v31 = vsel %vm15286_vm5, %v1348_v16, %v15256_v8  ;;  %v1363_v17 = vsel %vm15286_vm5, %v1358_v41, %v1362_v13  ;;  %v1289_v7 = vld [vmem:[%s14750_s19 + $0x84] sm:$0xf] }
  0x9e   : > { %12940 = vmatmul.mubr.bf16.gmra.mrb[20].mxu0 %v15226_v18  ;;  %v644_v18 = vsel %vm14823_vm2, %v15273_v10, %v15264_v48  ;;  %v1408_v1 = vshll.u32 %v1276_v29, 16  ;;  %v1377_v27 = vsel %vm15286_vm5, %v1372_v14, %v15269_v32  ;;  %v1432_v48 = vshll.u32 %v1279_v53, 16  ;;  %v1290_v53 = vld [vmem:[%s14750_s19 + $0x88] sm:$0xf] }
  0x9f   : > { %12943 = vmatprep.mubr.bf16.mxu0 %v15233_v37  ;;  %v1329_v37 = vsel %vm15286_vm5, %v1324_v42, %v15252_v5  ;;  %v1405_v5 = vor.u32 %v1404_v51, %v15291_v0  ;;  %v1437_v6 = vshrl.u32 %v1280_v47, 16  ;;  %v1387_v36 = vsel %vm15286_vm5, %v1382_v52, %v1386_v44 }
  0xa0   : > { %v1419_v2 = vor.u32 %v1418_v4, %v1415_v3  ;;  %v1429_v8 = vor.u32 %v1428_v58, %v15295_v34  ;;  %v1440_v56 = vshll.u32 %v1280_v47, 16  ;;  %v1396_v10 = vrot.slane %v1395_v9, 4  ;;  %v1288_v58 = vld [vmem:[%s14750_s19 + $0x7c] sm:$0x1] }
  0xa1   : > { %v1446_v22 = vshll.u32 %v1281_v55, 16  ;;  %v1450_v26 = vshrl.u32 %v1281_v55, 16  ;;  %v11463_v15 = vcombine.low %v644_v18, %v653_v54  ;;  %v11488_v32 = vcombine.low %v1329_v37, %v1339_v50  ;;  %v1291_v50 = vld [vmem:[%s14750_s19 + $0x8c] sm:$0x1] }
  0xa2   : > { %v15326_v28 = vcombine.low %v1353_v31, %v1363_v17  ;;  %v1410_v20 = vrot.slane %v1408_v1, 5  ;;  %v15331_v12 = vcombine.low %v1377_v27, %v1387_v36  ;;  %v1406_v33 = vrot.slane %v1405_v5, 4  ;;  %v1292_v27 = vld [vmem:[%s14750_s19 + $0x94] sm:$0xf] }
  0xa3   : > { %v1434_v19 = vrot.slane %v1432_v48, 5  ;;  %v1439_v25 = vrot.slane %v1437_v6, 4  ;;  %v1420_v24 = vrot.slane %v1419_v2, 4  ;;  %v1430_v46 = vrot.slane %v1429_v8, 4  ;;  %v1293_v2 = vld [vmem:[%s14750_s19 + $0x98] sm:$0xf] }
  0xa4   : > { %v1442_v59 = vrot.slane %v1440_v56, 5  ;;  %v1461_v39 = vshrl.u32 %v1283_v35, 16  ;;  %v1401_v61 = vsel %vm15286_vm5, %v1396_v10, %v15291_v0  ;;  %v1452_v21 = vrot.slane %v1450_v26, 4  ;;  %v1285_v0 = vld [vmem:[%s14750_s19 + $0x6c] sm:$0x1] }
  0xa5   : > { %v1464_v63 = vshll.u32 %v1283_v35, 16  ;;  %v1470_v42 = vshll.u32 %v1284_v57, 16  ;;  %v1474_v38 = vshrl.u32 %v1284_v57, 16  ;;  %v1485_v29 = vshrl.u32 %v1286_v43, 16 }
  0xa6   : > { %12944 = vmatmul.mubr.bf16.gmra.mrb[24].mxu0 %v15259_v23  ;;  %v15339_v23 = vrot.slane %v1446_v22, 5  ;;  %v1411_v62 = vsel %vm15286_vm5, %v1406_v33, %v1410_v20  ;;  %v1456_v16 = vshll.u32 %v1282_v45, 16  ;;  %v1494_v41 = vshll.u32 %v1287_v60, 16 }
  0xa7   : > { %12947 = vmatprep.mubr.bf16.mxu0 %v15271_v49  ;;  %v1488_v49 = vshll.u32 %v1286_v43, 16  ;;  %v1498_v13 = vshrl.u32 %v1287_v60, 16  ;;  %v1425_v14 = vsel %vm15286_vm5, %v1420_v24, %v15295_v34  ;;  %v1435_v52 = vsel %vm15286_vm5, %v1430_v46, %v1434_v19 }
  0xa8   : > { %v1443_v44 = vor.u32 %v1442_v59, %v1439_v25  ;;  %v1463_v51 = vrot.slane %v1461_v39, 4  ;;  %v1453_v3 = vor.u32 %v1452_v21, %v15339_v23  ;;  %v1466_v4 = vrot.slane %v1464_v63, 5  ;;  %v1296_v25 = vld [vmem:[%s14750_s19 + $0xa8] sm:$0xf] }
  0xa9   : > { %v1509_v47 = vshrl.u32 %v1289_v7, 16  ;;  %v1512_v18 = vshll.u32 %v1289_v7, 16  ;;  %v15353_v54 = vrot.slane %v1470_v42, 5  ;;  %v1476_v37 = vrot.slane %v1474_v38, 4  ;;  %v14410_v39 = vld [vmem:[%s18177_s1 + $0x108] sm:$0xff]  }
  0xaa   : > { %v1487_v9 = vrot.slane %v1485_v29, 4  ;;  %v1490_v34 = vrot.slane %v1488_v49, 5  ;;  %v15356_v31 = vcombine.low %v1401_v61, %v1411_v62  ;;  %v15358_v17 = vrot.slane %v1456_v16, 5  ;;  %v1298_v42 = vld [vmem:[%s14750_s19 + $0xb4] sm:$0xf] }
  0xab   : > { %v15360_v1 = vrot.slane %v1494_v41, 5  ;;  %v1500_v55 = vrot.slane %v1498_v13, 4  ;;  %v15363_v5 = vcombine.low %v1425_v14, %v1435_v52  ;;  %v15365_v48 = vrot.slane %v1443_v44, 4  ;;  %v1294_v62 = vld [vmem:[%s14750_s19 + $0x9c] sm:$0x1] }
  0xac   : > { %v1518_v6 = vshll.u32 %v1290_v53, 16  ;;  %v1522_v36 = vshrl.u32 %v1290_v53, 16  ;;  %v15368_v8 = vrot.slane %v1453_v3, 4  ;;  %v1480_v56 = vshll.u32 %v1285_v0, 16  ;;  %v1299_v16 = vld [vmem:[%s14750_s19 + $0xb8] sm:$0xf] }
  0xad   : > { %v1511_v35 = vrot.slane %v1509_v47, 4  ;;  %v1514_v10 = vrot.slane %v1512_v18, 5  ;;  %v1467_v22 = vor.u32 %v1466_v4, %v1463_v51  ;;  %v1477_v26 = vor.u32 %v1476_v37, %v15353_v54  ;;  %v1301_v44 = vld [vmem:[%s14750_s19 + $0xc4] sm:$0xf]  ;;  %v14411_v0 = vld [vmem:[%s18177_s1 + $0x110] sm:$0xff]  }
  0xae   : > { %12948 = vmatmul.mubr.bf16.gmra.mrb[28].mxu0 %v11463_v15  ;;  %v1491_v15 = vor.u32 %v1490_v34, %v1487_v9  ;;  %v1504_v20 = vshll.u32 %v1288_v58, 16  ;;  %v1501_v45 = vor.u32 %v1500_v55, %v15360_v1  ;;  %v1528_v57 = vshll.u32 %v1291_v50, 16  ;;  %v1302_v4 = vld [vmem:[%s14750_s19 + $0xc8] sm:$0xf] }
  0xaf   : > { %12967 = vmatprep.mubr.bf16.mxu0 %v11488_v32  ;;  %v1295_v32 = vld [vmem:[%s14750_s19 + $0xa4] sm:$0xf]  ;;  %v1533_v33 = vshrl.u32 %v1292_v27, 16  ;;  %v1536_v19 = vshll.u32 %v1292_v27, 16  ;;  %v15374_v43 = vrot.slane %v1518_v6, 5  ;;  %v1524_v24 = vrot.slane %v1522_v36, 4 }
  0xb0   : > { %v1542_v46 = vshll.u32 %v1293_v2, 16  ;;  %v1546_v59 = vshrl.u32 %v1293_v2, 16  ;;  %v15379_v60 = vrot.slane %v1480_v56, 5  ;;  %v1515_v61 = vor.u32 %v1514_v10, %v1511_v35  ;;  %v1297_v27 = vld [vmem:[%s14750_s19 + $0xac] sm:$0x1] }
  0xb1   : > { %v1557_v21 = vshrl.u32 %v1295_v32, 16  ;;  %v1560_v63 = vshll.u32 %v1295_v32, 16  ;;  %v15382_v38 = vrot.slane %v1467_v22, 4  ;;  %v15384_v29 = vrot.slane %v1477_v26, 4  ;;  %v1300_v6 = vld [vmem:[%s14750_s19 + $0xbc] sm:$0x1] }
  0xb2   : > { %v15386_v49 = vrot.slane %v1491_v15, 4  ;;  %v15388_v7 = vrot.slane %v1504_v20, 5  ;;  %v15393_v41 = vrot.slane %v1501_v45, 4  ;;  %v15395_v13 = vrot.slane %v1528_v57, 5  ;;  %v14412_v26 = vld [vmem:[%s18177_s1 + $0x118] sm:$0xff]  }
  0xb3   : > { %v1535_v14 = vrot.slane %v1533_v33, 4  ;;  %v1538_v52 = vrot.slane %v1536_v19, 5  ;;  %v1525_v51 = vor.u32 %v1524_v24, %v15374_v43  ;;  %v15404_v53 = vrot.slane %v1542_v46, 5 }
  0xb4   : > { %v1566_v3 = vshll.u32 %v1296_v25, 16  ;;  %v15407_v58 = vrot.slane %v1515_v61, 4  ;;  %v1559_v47 = vrot.slane %v1557_v21, 4  ;;  %v1570_v18 = vshrl.u32 %v1296_v25, 16  ;;  %v1304_v25 = vld [vmem:[%s14750_s19 + $0xd4] sm:$0xf] }
  0xb5   : > { %v1584_v37 = vshll.u32 %v1298_v42, 16  ;;  %v1590_v9 = vshll.u32 %v1299_v16, 16  ;;  %v1594_v34 = vshrl.u32 %v1299_v16, 16  ;;  %v1539_v50 = vor.u32 %v1538_v52, %v1535_v14 }
  0xb6   : > { %12968 = vmatmul.mubr.bf16.vlgmr.msra.gmra.mrb[0].mxu0 %v15326_v28  ;;  %v1548_v28 = vrot.slane %v1546_v59, 4  ;;  %v1552_v55 = vshll.u32 %v1294_v62, 16  ;;  %v1605_v36 = vshrl.u32 %v1301_v44, 16  ;;  %v1608_v2 = vshll.u32 %v1301_v44, 16  ;;  %v14413_v59 = vld [vmem:[%s18177_s1 + $0x120] sm:$0xff]  }
  0xb7   : > { %13000 = vmatpush3.bf16.msra.mxu0 %v15240_v11  ;;  %12971 = vmatprep.mubr.bf16.mxu0 %v15331_v12  ;;  %v1562_v11 = vrot.slane %v1560_v63, 5  ;;  %v1581_v12 = vshrl.u32 %v1298_v42, 16  ;;  %v1449_v56 = vsel %vm15286_vm5, %v15365_v48, %v15339_v23  ;;  %v15415_v35 = vrot.slane %v1525_v51, 4  ;;  %v1303_v48 = vld [vmem:[%s14750_s19 + $0xcc] sm:$0x1] }
  0xb8   : > { %13001 = vmatprep.subr.bf16.mxu0 %v14410_v39  ;;  %v1549_v10 = vor.u32 %v1548_v28, %v15404_v53  ;;  %v15418_v22 = vrot.slane %v1566_v3, 5  ;;  %v1572_v20 = vrot.slane %v1570_v18, 4  ;;  %v1614_v32 = vshll.u32 %v1302_v4, 16 }
  0xb9   : > { %v1563_v15 = vor.u32 %v1562_v11, %v1559_v47  ;;  %v1618_v45 = vshrl.u32 %v1302_v4, 16  ;;  %v1583_v57 = vrot.slane %v1581_v12, 4  ;;  %v1586_v33 = vrot.slane %v1584_v37, 5  ;;  %v1307_v47 = vld [vmem:[%s14750_s19 + $0xe4] sm:$0xf] }
  0xba   : > { %v15423_v19 = vrot.slane %v1590_v9, 5  ;;  %v1596_v23 = vrot.slane %v1594_v34, 4  ;;  %v15428_v24 = vrot.slane %v1539_v50, 4  ;;  %v15430_v46 = vrot.slane %v1552_v55, 5  ;;  %v1308_v37 = vld [vmem:[%s14750_s19 + $0xe8] sm:$0xf] }
  0xbb   : > { %13002 = vmatpush3.bf16.msra.mxu0 %v14410_v39  ;;  %v1607_v39 = vrot.slane %v1605_v36, 4  ;;  %v1610_v61 = vrot.slane %v1608_v2, 5  ;;  %v1459_v21 = vsel %vm15286_vm5, %v15368_v8, %v15358_v17  ;;  %v1576_v63 = vshll.u32 %v1297_v27, 16  ;;  %v14415_v36 = vld [vmem:[%s18177_s1 + $0x130] sm:$0xff]  }
  0xbc   : > { %13003 = vmatprep.subr.bf16.mxu0 %v14411_v0  ;;  %v1600_v42 = vshll.u32 %v1300_v6, 16  ;;  %v1483_v62 = vsel %vm15286_vm5, %v15384_v29, %v15379_v60  ;;  %v15449_v16 = vrot.slane %v1614_v32, 5  ;;  %v1620_v17 = vrot.slane %v1618_v45, 4  ;;  %v14414_v60 = vld [vmem:[%s18177_s1 + $0x128] sm:$0xff]   ;;  %v1306_v32 = vld [vmem:[%s14750_s19 + $0xdc] sm:$0x1] }
  0xbd   : > { %v15451_v8 = vrot.slane %v1549_v10, 4  ;;  %v15453_v14 = vrot.slane %v1563_v15, 4  ;;  %v1587_v52 = vor.u32 %v1586_v33, %v1583_v57  ;;  %v11493_v44 = vcombine.low %v1449_v56, %v1459_v21  ;;  %v1309_v57 = vld [vmem:[%s14750_s19 + $0xec] sm:$0x1]  ;;  %v14416_v33 = vld [vmem:[%s18177_s1 + $0x138] sm:$0xff]  }
  0xbe   : > { %12972 = vmatmul.mubr.bf16.gmra.mrb[4].mxu0 %v15356_v31  ;;  %v1473_v31 = vsel %vm15286_vm5, %v15382_v38, %v15353_v54  ;;  %v1597_v54 = vor.u32 %v1596_v23, %v15423_v19  ;;  %v1305_v38 = vld [vmem:[%s14750_s19 + $0xd8] sm:$0xf]  ;;  %v1611_v29 = vor.u32 %v1610_v61, %v1607_v39  ;;  %v1629_v51 = vshrl.u32 %v1304_v25, 16  ;;  %v15506_v61 = vld [vmem:[%s18177_s1 + $0xc0] sm:$0xff]  }
  0xbf   : > { %12975 = vmatprep.mubr.bf16.mxu0 %v15363_v5  ;;  %13004 = vmatpush3.bf16.msra.mxu0 %v14411_v0  ;;  %v1573_v5 = vor.u32 %v1572_v20, %v15418_v22  ;;  %v1624_v0 = vshll.u32 %v1303_v48, 16  ;;  %v11494_v28 = vcombine.low %v1473_v31, %v1483_v62  ;;  %v15460_v3 = vrot.slane %v1576_v63, 5  ;;  %v1311_v39 = vld [vmem:[%s14750_s19 + $0xf8] sm:$0xf] }
  0xc0   : > { %13005 = vmatprep.subr.bf16.mxu0 %v14412_v26  ;;  %v1632_v4 = vshll.u32 %v1304_v25, 16  ;;  %v15463_v18 = vrot.slane %v1600_v42, 5  ;;  %v1621_v12 = vor.u32 %v1620_v17, %v15449_v16  ;;  %v15467_v9 = vrot.slane %v1587_v52, 4 }
  0xc1   : > { %v1574_v11 = vrot.slane %v1573_v5, 4  ;;  %v15469_v34 = vrot.slane %v1597_v54, 4  ;;  %v15471_v50 = vrot.slane %v1611_v29, 4  ;;  %v15473_v55 = vrot.slane %v1624_v0, 5 }
  0xc2   : > { %v1631_v27 = vrot.slane %v1629_v51, 4  ;;  %v1638_v6 = vshll.u32 %v1305_v38, 16  ;;  %v1497_v2 = vsel %vm15286_vm5, %v15386_v49, %v15360_v1  ;;  %v1507_v56 = vsel %vm15286_vm5, %v15393_v41, %v15388_v7 }
  0xc3   : > { %13006 = vmatpush3.bf16.msra.mxu0 %v14412_v26  ;;  %v1634_v10 = vrot.slane %v1632_v4, 5  ;;  %v1642_v26 = vshrl.u32 %v1305_v38, 16  ;;  %v1521_v15 = vsel %vm15286_vm5, %v15407_v58, %v15374_v43  ;;  %v1531_v20 = vsel %vm15286_vm5, %v15415_v35, %v15395_v13  ;;  %v1310_v43 = vld [vmem:[%s14750_s19 + $0xf4] sm:$0xf] }
  0xc4   : > { %13007 = vmatprep.subr.bf16.mxu0 %v14413_v59  ;;  %v1622_v1 = vrot.slane %v1621_v12, 4  ;;  %v1653_v49 = vshrl.u32 %v1307_v47, 16  ;;  %v1656_v45 = vshll.u32 %v1307_v47, 16  ;;  %v1662_v7 = vshll.u32 %v1308_v37, 16 }
  0xc5   : > { %v11495_v41 = vcombine.low %v1497_v2, %v1507_v56  ;;  %v11496_v23 = vcombine.low %v1521_v15, %v1531_v20  ;;  %v15500_v58 = vrot.slane %v1638_v6, 5  ;;  %v1666_v13 = vshrl.u32 %v1308_v37, 16 }
  0xc6   : > { %12976 = vmatmul.mubr.bf16.gmra.mrb[8].mxu0 %v11493_v44  ;;  %v1644_v35 = vrot.slane %v1642_v26, 4  ;;  %v1648_v48 = vshll.u32 %v1306_v32, 16  ;;  %v1655_v25 = vrot.slane %v1653_v49, 4  ;;  %v1545_v21 = vsel %vm15286_vm5, %v15428_v24, %v15404_v53 }
  0xc7   : > { %12979 = vmatprep.mubr.bf16.mxu0 %v11494_v28  ;;  %13008 = vmatpush3.bf16.msra.mxu0 %v14413_v59  ;;  %v1658_v59 = vrot.slane %v1656_v45, 5  ;;  %v1555_v31 = vsel %vm15286_vm5, %v15451_v8, %v15430_v46  ;;  %v1664_v63 = vrot.slane %v1662_v7, 5  ;;  %v1672_v42 = vshll.u32 %v1309_v57, 16  ;;  %v15555_v7 = vld [vmem:[%s14750_s19 + $0x14] sm:$0xf] }
  0xc8   : > { %13009 = vmatprep.subr.bf16.mxu0 %v14414_v60  ;;  %v1569_v62 = vsel %vm15286_vm5, %v15453_v14, %v15418_v22  ;;  %v1579_v5 = vsel %vm15286_vm5, %v1574_v11, %v15460_v3  ;;  %v1677_v17 = vshrl.u32 %v1310_v43, 16  ;;  %v1680_v52 = vshll.u32 %v1310_v43, 16  ;;  %v15566_v43 = vld [vmem:[%s14750_s19 + $0x28] sm:$0xf] }
  0xc9   : > { %v1668_v53 = vrot.slane %v1666_v13, 4  ;;  %v1686_v24 = vshll.u32 %v1311_v39, 16  ;;  %v11497_v54 = vcombine.low %v1545_v21, %v1555_v31  ;;  %v1635_v38 = vor.u32 %v1634_v10, %v1631_v27  ;;  %v1312_v27 = vld [vmem:[%s14750_s19 + $0xfc] sm:$0x1]  ;;  %v15572_v13 = vld [vmem:[%s14750_s19 + $0x38] sm:$0xf] }
  0xca   : > { %v1645_v46 = vor.u32 %v1644_v35, %v15500_v58  ;;  %v11498_v8 = vcombine.low %v1569_v62, %v1579_v5  ;;  %v1659_v44 = vor.u32 %v1658_v59, %v1655_v25  ;;  %v1690_v14 = vshrl.u32 %v1311_v39, 16  ;;  %v14422_v25 = vld [vmem:[%s18177_s1 + $0xc8] sm:$0xff]   ;;  %v15582_v59 = vld [vmem:[%s14750_s19 + $0x44] sm:$0xf]  ;;  %v14425_v21 = vld [vmem:[%s18177_s1 + $0xd0] sm:$0xff]  }
  0xcb   : > { %13010 = vmatpush3.bf16.msra.mxu0 %v14414_v60  ;;  %v1669_v22 = vor.u32 %v1668_v53, %v1664_v63  ;;  %v1636_v60 = vrot.slane %v1635_v38, 4  ;;  %v1650_v0 = vrot.slane %v1648_v48, 5  ;;  %v1674_v51 = vrot.slane %v1672_v42, 5  ;;  %v15585_v39 = vld [vmem:[%s14750_s19 + $0x48] sm:$0xf] }
  0xcc   : > { %13011 = vmatprep.subr.bf16.mxu0 %v14415_v36  ;;  %v1646_v29 = vrot.slane %v1645_v46, 4  ;;  %v1593_v28 = vsel %vm15286_vm5, %v15467_v9, %v15423_v19  ;;  %v1603_v3 = vsel %vm15286_vm5, %v15469_v34, %v15463_v18  ;;  %v1679_v4 = vrot.slane %v1677_v17, 4  ;;  %v15592_v31 = vld [vmem:[%s14750_s19 + $0x54] sm:$0xf]  ;;  %v15605_v5 = vld [vmem:[%s14750_s19 + $0x64] sm:$0xf] }
  0xcd   : > { %v1682_v47 = vrot.slane %v1680_v52, 5  ;;  %v1617_v11 = vsel %vm15286_vm5, %v15471_v50, %v15449_v16  ;;  %v1627_v12 = vsel %vm15286_vm5, %v1622_v1, %v15473_v55  ;;  %v1660_v37 = vrot.slane %v1659_v44, 4  ;;  %v15608_v17 = vld [vmem:[%s14750_s19 + $0x68] sm:$0xf]  ;;  %v15611_v52 = vld [vmem:[%s14750_s19 + $0x74] sm:$0xf] }
  0xce   : > { %12980 = vmatmul.mubr.bf16.gmra.mrb[12].mxu0 %v11495_v41  ;;  %v1688_v6 = vrot.slane %v1686_v24, 5  ;;  %v1670_v19 = vrot.slane %v1669_v22, 4  ;;  %v1692_v9 = vrot.slane %v1690_v14, 4  ;;  %v11500_v2 = vcombine.low %v1617_v11, %v1627_v12  ;;  %v15558_v41 = vld [vmem:[%s14750_s19 + $0x18] sm:$0xf]  ;;  %v14431_v24 = vld [vmem:[%s18177_s1 + $0xe0] sm:$0xff]  }
  0xcf   : > { %12983 = vmatprep.mubr.bf16.mxu0 %v11496_v23  ;;  %13012 = vmatpush3.bf16.msra.mxu0 %v14415_v36  ;;  %v11499_v36 = vcombine.low %v1593_v28, %v1603_v3  ;;  %v1683_v56 = vor.u32 %v1682_v47, %v1679_v4  ;;  %v1696_v34 = vshll.u32 %v1312_v27, 16  ;;  %v1641_v16 = vsel %vm15286_vm5, %v1636_v60, %v15500_v58  ;;  %v15563_v23 = vld [vmem:[%s14750_s19 + $0x24] sm:$0xf]  ;;  %v15569_v58 = vld [vmem:[%s14750_s19 + $0x34] sm:$0xf]  ;;  %v14434_v46 = vld [vmem:[%s18177_s1 + $0xe8] sm:$0xff]  }
  0xd0   : > { %13013 = vmatprep.subr.bf16.mxu0 %v14416_v33  ;;  %v1693_v18 = vor.u32 %v1692_v9, %v1688_v6  ;;  %v1651_v50 = vsel %vm15286_vm5, %v1646_v29, %v1650_v0  ;;  %v1665_v55 = vsel %vm15286_vm5, %v1660_v37, %v1664_v63  ;;  %v1675_v10 = vsel %vm15286_vm5, %v1670_v19, %v1674_v51  ;;  %v15595_v63 = vld [vmem:[%s14750_s19 + $0x58] sm:$0xf]  ;;  %v15630_v44 = vld [vmem:[%s14750_s19 + $0x88] sm:$0xf]  ;;  %v15633_v22 = vld [vmem:[%s14750_s19 + $0x94] sm:$0xf] }
  0xd1   : > { %v1684_v26 = vrot.slane %v1683_v56, 4  ;;  %v1698_v20 = vrot.slane %v1696_v34, 5  ;;  %v11501_v1 = vcombine.low %v1641_v16, %v1651_v50  ;;  %v11502_v49 = vcombine.low %v1665_v55, %v1675_v10  ;;  %v15614_v53 = vld [vmem:[%s14750_s19 + $0x78] sm:$0xf]  ;;  %18220 = vst [vmem:[#allocation8_spill] sm:$0xff] %v15630_v44  ;;  %18221 = vst [vmem:[#allocation9_spill] sm:$0xff] %v15633_v22 }
  0xd2   : > { %v1694_v15 = vrot.slane %v1693_v18, 4  ;;  %v11609_v35 = vcombine.low %v15563_v23, %v15566_v43  ;;  %v11610_v48 = vcombine.low %v15569_v58, %v15572_v13  ;;  %v11611_v42 = vcombine.low %v15582_v59, %v15585_v39  ;;  %v15636_v14 = vld [vmem:[%s14750_s19 + $0x98] sm:$0xf]  ;;  %v14437_v60 = vld [vmem:[%s18177_s1 + $0xf0] sm:$0xff]   ;;  %v15651_v4 = vld [vmem:[%s14750_s19 + $0xa4] sm:$0xf] }
  0xd3   : > { %13014 = vmatpush3.bf16.msra.mxu0 %v14416_v33  ;;  %v1689_v32 = vsel %vm15286_vm5, %v1684_v26, %v1688_v6  ;;  %v11608_v33 = vcombine.low %v15555_v7, %v15558_v41  ;;  %v11612_v62 = vcombine.low %v15592_v31, %v15595_v63  ;;  %v11614_v38 = vcombine.low %v15611_v52, %v15614_v53  ;;  %v14440_v51 = vld [vmem:[%s18177_s1 + $0xf8] sm:$0xff]   ;;  %v15654_v47 = vld [vmem:[%s14750_s19 + $0xa8] sm:$0xf]  ;;  %v15657_v11 = vld [vmem:[%s14750_s19 + $0xb4] sm:$0xf] }
  0xd4   : > { %13047 = vmatprep.subr.bf16.mxu0 %v15506_v61  ;;  %v1699_v45 = vsel %vm15286_vm5, %v1694_v15, %v1698_v20  ;;  %18222 = vst [vmem:[#allocation10_spill] sm:$0xff] %v15636_v14  ;;  %v11616_v0 = vcombine.low %v15633_v22, %v15636_v14  ;;  %v2109_v28 = vshrl.u32 %v15555_v7, 16  ;;  %v2118_v3 = vshrl.u32 %v15558_v41, 16  ;;  %18223 = vst [vmem:[#allocation11_spill] sm:$0xff] %v15651_v4  ;;  %v15660_v12 = vld [vmem:[%s14750_s19 + $0xb8] sm:$0xf] }
  0xd5   : > { %v11503_v57 = vcombine.low %v1689_v32, %v1699_v45  ;;  %18224 = vst [vmem:[#allocation12_spill] sm:$0xff] %v15654_v47  ;;  %18225 = vst [vmem:[#allocation13_spill] sm:$0xff] %v15657_v11  ;;  %v2131_v37 = vshrl.u32 %v15563_v23, 16  ;;  %v15666_v27 = vld [vmem:[%s18177_s1 + $0x140] sm:$0xff]   ;;  %v2140_v9 = vshrl.u32 %v15566_v43, 16  ;;  %v2162_v18 = vshrl.u32 %v15572_v13, 16 }
  0xd6   : > { %12984 = vmatmul.mubr.bf16.gmra.mrb[16].mxu0 %v11497_v54  ;;  %v11613_v54 = vcombine.low %v15605_v5, %v15608_v17  ;;  %18226 = vst [vmem:[#allocation14_spill] sm:$0xff] %v15660_v12  ;;  %v15668_v6 = vrot.slane %v2109_v28, 7  ;;  %v11617_v34 = vcombine.low %v15651_v4, %v15654_v47  ;;  %v2175_v50 = vshrl.u32 %v15582_v59, 16  ;;  %v11512_v45 = vld [vmem:[%s14750_s19 + $0x10] sm:$0x8] }
  0xd7   : > { %12987 = vmatprep.mubr.bf16.mxu0 %v11498_v8  ;;  %v15627_v8 = vld [vmem:[%s14750_s19 + $0x84] sm:$0xf]  ;;  %v2184_v55 = vshrl.u32 %v15585_v39, 16  ;;  %v11618_v10 = vcombine.low %v15657_v11, %v15660_v12  ;;  %v15684_v26 = vrot.slane %v2131_v37, 7  ;;  %v2241_v28 = vshrl.u32 %v15611_v52, 16 }
  0xd8   : > { %v11615_v29 = vcombine.low %v15627_v8, %v15630_v44  ;;  %v15765_v15 = vld [vmem:[%s14750_s19 + $0xf8] sm:$0xf] }
  0xde   : > { %12988 = vmatmul.mubr.bf16.gmra.mrb[20].mxu0 %v11499_v36  ;;  %v2153_v36 = vshrl.u32 %v15569_v58, 16 }
  0xdf   : > { %12991 = vmatprep.mubr.bf16.mxu0 %v11500_v2  ;;  %v15673_v2 = vrot.slane %v2118_v3, 7  ;;  %v2250_v3 = vshrl.u32 %v15614_v53, 16 }
  0xe0   : > { %v15692_v32 = vrot.slane %v2153_v36, 7  ;;  %v2263_v36 = vshrl.u32 %v15627_v8, 16 }
  0xe2   : > { %v15756_v20 = vrot.slane %v2263_v36, 7 }
  0xe6   : > { %12992 = vmatmul.mubr.bf16.gmra.mrb[24].mxu0 %v11501_v1  ;;  %v2197_v1 = vshrl.u32 %v15592_v31, 16 }
  0xe7   : > { %12995 = vmatprep.mubr.bf16.mxu0 %v11502_v49  ;;  %v15690_v49 = vrot.slane %v2140_v9, 7  ;;  %v2307_v9 = vshrl.u32 %v15651_v4, 16 }
  0xe9   : > { %v15774_v19 = vrot.slane %v2307_v9, 7 }
  0xee   : > { %12996 = vmatmul.mubr.bf16.gmra.mrb[28].mxu0 %v11503_v57  ;;  %v2206_v57 = vshrl.u32 %v15595_v63, 16 }
  0xef   : > { %13015 = vmatprep.mubr.bf16.mxu0 %v11608_v33  ;;  %v15697_v33 = vld [vmem:[%s14750_s19 + $0xc4] sm:$0xf] }
  0xf6   : > { %13016 = vmatmul.mubr.bf16.vlgmr.msra.gmra.mrb[0].mxu0 %v11609_v35  ;;  %v15700_v35 = vld [vmem:[%s14750_s19 + $0xc8] sm:$0xf] }
  0xf7   : > { %13048 = vmatpush3.bf16.msra.mxu0 %v15506_v61  ;;  %13019 = vmatprep.mubr.bf16.mxu0 %v11610_v48  ;;  %v14428_v61 = vld [vmem:[%s18177_s1 + $0xd8] sm:$0xff]   ;;  %v15702_v48 = vrot.slane %v2162_v18, 7  ;;  %v11619_v18 = vcombine.low %v15697_v33, %v15700_v35  ;;  %v2360_v9 = vshrl.u32 %v15700_v35, 16 }
  0xf8   : > { %13049 = vmatprep.subr.bf16.mxu0 %v14422_v25 }
  0xfb   : > { %13050 = vmatpush3.bf16.msra.mxu0 %v14422_v25  ;;  %v15750_v25 = vld [vmem:[%s14750_s19 + $0xe4] sm:$0xf] }
  0xfc   : > { %13051 = vmatprep.subr.bf16.mxu0 %v14425_v21  ;;  %18228 = vst [vmem:[#allocation16_spill] sm:$0xff] %v15750_v25 }
  0xfe   : > { %13020 = vmatmul.mubr.bf16.gmra.mrb[4].mxu0 %v11611_v42  ;;  %v2219_v42 = vshrl.u32 %v15605_v5, 16 }
  0xff   : > { %13023 = vmatprep.mubr.bf16.mxu0 %v11612_v62  ;;  %13052 = vmatpush3.bf16.msra.mxu0 %v14425_v21  ;;  %v15708_v62 = vld [vmem:[%s14750_s19 + $0xd4] sm:$0xf]  ;;  %v2316_v21 = vshrl.u32 %v15654_v47, 16 }
 0x100   : > { %13053 = vmatprep.subr.bf16.mxu0 %v14428_v61  ;;  %v15727_v37 = vrot.slane %v2219_v42, 7  ;;  %v18233_v42 = vshll.u32 %v15555_v7, 16  ;;  %v11518_v7 = vld [vmem:[%s14750_s19 + $0x30] sm:$0x8] }
 0x101   : > { %v15778_v30 = vrot.slane %v2316_v21, 7  ;;  %v2373_v21 = vshrl.u32 %v15708_v62, 16 }
 0x102   : > { %v2114_v36 = vor.u32 %v18233_v42, %v15668_v6  ;;  %v15813_v42 = vrot.slane %v2360_v9, 7 }
 0x103   : > { %13054 = vmatpush3.bf16.msra.mxu0 %v14428_v61  ;;  %v15711_v61 = vld [vmem:[%s14750_s19 + $0xd8] sm:$0xf]  ;;  %18232 = vst [vmem:[#allocation20_spill] sm:$0xff] %v15778_v30  ;;  %v11515_v30 = vld [vmem:[%s14750_s19 + $0x20] sm:$0x8] }
 0x104   : > { %13055 = vmatprep.subr.bf16.mxu0 %v14431_v24  ;;  %18227 = vst [vmem:[#allocation15_spill] sm:$0xff] %v15711_v61 }
 0x106   : > { %13024 = vmatmul.mubr.bf16.gmra.mrb[8].mxu0 %v11613_v54  ;;  %v15715_v54 = vrot.slane %v2184_v55, 7  ;;  %v2294_v55 = vshrl.u32 %v15636_v14, 16  ;;  %v2126_v14 = vshrl.u32 %v11515_v30, 16 }
 0x107   : > { %13027 = vmatprep.mubr.bf16.mxu0 %v11614_v38  ;;  %13056 = vmatpush3.bf16.msra.mxu0 %v14431_v24  ;;  %v15713_v24 = vrot.slane %v2175_v50, 7  ;;  %v2285_v50 = vshrl.u32 %v15633_v22, 16 }
 0x108   : > { %13057 = vmatprep.subr.bf16.mxu0 %v14434_v46  ;;  %v15771_v56 = vrot.slane %v2294_v55, 7 }
 0x109   : > { %v15769_v16 = vrot.slane %v2285_v50, 7  ;;  %v2338_v50 = vshrl.u32 %v15660_v12, 16  ;;  %v2116_v12 = vrot.slane %v15668_v6, 4 }
 0x10a   : > { %18231 = vst [vmem:[#allocation19_spill] sm:$0xff] %v15771_v56  ;;  %v2426_v56 = vshrl.u32 %v15765_v15, 16 }
 0x10b   : > { %13058 = vmatpush3.bf16.msra.mxu0 %v14434_v46  ;;  %v15745_v46 = vrot.slane %v2250_v3, 7  ;;  %v15762_v3 = vld [vmem:[%s14750_s19 + $0xf4] sm:$0xf]  ;;  %v15802_v4 = vrot.slane %v2338_v50, 7 }
 0x10c   : > { %13059 = vmatprep.subr.bf16.mxu0 %v14437_v60  ;;  %v11622_v55 = vcombine.low %v15762_v3, %v15765_v15 }
 0x10e   : > { %13028 = vmatmul.mubr.bf16.gmra.mrb[12].mxu0 %v11615_v29  ;;  %v2228_v29 = vshrl.u32 %v15608_v17, 16 }
 0x10f   : > { %13031 = vmatprep.mubr.bf16.mxu0 %v11616_v0  ;;  %13060 = vmatpush3.bf16.msra.mxu0 %v14437_v60  ;;  %v15719_v60 = vrot.slane %v2197_v1, 7  ;;  %v15722_v0 = vrot.slane %v2206_v57, 7  ;;  %v2382_v57 = vshrl.u32 %v15711_v61, 16 }
 0x110   : > { %13061 = vmatprep.subr.bf16.mxu0 %v14440_v51  ;;  %v15738_v1 = vrot.slane %v2228_v29, 7  ;;  %v15753_v29 = vld [vmem:[%s14750_s19 + $0xe8] sm:$0xf] }
 0x111   : > { %18229 = vst [vmem:[#allocation17_spill] sm:$0xff] %v15753_v29  ;;  %v15822_v50 = vrot.slane %v2382_v57, 7  ;;  %v2417_v57 = vshrl.u32 %v15762_v3, 16 }
 0x113   : > { %13062 = vmatpush3.bf16.msra.mxu0 %v14440_v51  ;;  %v15743_v51 = vrot.slane %v2241_v28, 7  ;;  %v2329_v28 = vshrl.u32 %v15657_v11, 16  ;;  %v18234_v11 = vshll.u32 %v15558_v41, 16  ;;  %18235 = vst [vmem:[#allocation21_spill] sm:$0xff] %v15822_v50  ;;  %v2160_v50 = vrot.slane %v15692_v32, 4 }
 0x114   : > { %13095 = vmatprep.subr.bf16.mxu0 %v15666_v27 }
 0x115   : > { %v15783_v22 = vrot.slane %v2329_v28, 7  ;;  %v2123_v47 = vor.u32 %v18234_v11, %v15673_v2  ;;  %v15818_v11 = vld [vmem:[%s14750_s19 + $0x108] sm:$0xf]  ;;  %v15820_v2 = vrot.slane %v2373_v21, 7  ;;  %v18238_v21 = vshll.u32 %v15566_v43, 16 }
 0x116   : > { %13032 = vmatmul.mubr.bf16.gmra.mrb[16].mxu0 %v11617_v34  ;;  %v2272_v34 = vshrl.u32 %v15630_v44, 16  ;;  %v15808_v44 = vld [vmem:[%s14750_s19 + $0x104] sm:$0xf]  ;;  %v2429_v43 = vshll.u32 %v15765_v15, 16 }
 0x117   : > { %13035 = vmatprep.mubr.bf16.mxu0 %v11618_v10  ;;  %v11620_v10 = vcombine.low %v15708_v62, %v15711_v61  ;;  %v2124_v41 = vsel %vm14823_vm2, %v2116_v12, %v2123_v47  ;;  %v2439_v30 = vshrl.u32 %v15808_v44, 16  ;;  %v18237_v47 = vshll.u32 %v15563_v23, 16 }
 0x118   : > { %v15767_v38 = vrot.slane %v2272_v34, 7  ;;  %v2395_v34 = vshrl.u32 %v15750_v25, 16  ;;  %v18240_v23 = vshll.u32 %v15572_v13, 16 }
 0x119   : > { %v2136_v12 = vor.u32 %v18237_v47, %v15684_v26 }
 0x11a   : > { %18230 = vst [vmem:[#allocation18_spill] sm:$0xff] %v15767_v38  ;;  %v2167_v47 = vor.u32 %v18240_v23, %v15702_v48  ;;  %v2451_v48 = vshll.u32 %v15818_v11, 16 }
 0x11e   : > { %13036 = vmatmul.mubr.bf16.gmra.mrb[20].mxu0 %v11619_v18  ;;  %v2104_v18 = vshrl.u32 %v11512_v45, 16  ;;  %v11621_v45 = vcombine.low %v15750_v25, %v15753_v29  ;;  %v18239_v25 = vshll.u32 %v15569_v58, 16  ;;  %v2442_v58 = vshll.u32 %v15808_v44, 16 }
 0x11f   : > { %13039 = vmatprep.mubr.bf16.mxu0 %v11620_v10  ;;  %v2351_v10 = vshrl.u32 %v15697_v33, 16 }
 0x120   : > { %v11560_v28 = vrot.slane %v2104_v18, 11  ;;  %v2404_v18 = vshrl.u32 %v15753_v29, 16  ;;  %v2145_v29 = vor.u32 %v18238_v21, %v15690_v49  ;;  %v2158_v61 = vor.u32 %v18239_v25, %v15692_v32 }
 0x121   : > { %v15811_v38 = vrot.slane %v2351_v10, 7  ;;  %v15825_v10 = vrot.slane %v2395_v34, 7  ;;  %v2448_v34 = vshrl.u32 %v15818_v11, 16 }
 0x122   : > { %v2115_v9 = vsel %vm14823_vm2, %v11560_v28, %v2114_v36  ;;  %v15831_v6 = vrot.slane %v2404_v18, 7  ;;  %v11623_v36 = vcombine.low %v15808_v44, %v15818_v11  ;;  %v11561_v18 = vrot.slane %v2126_v14, 11 }
 0x123   : > { %v11632_v28 = vcombine.low %v2115_v9, %v2124_v41  ;;  %v11524_v41 = vld [vmem:[%s14750_s19 + $0x50] sm:$0x8]  ;;  %v15856_v14 = vrot.slane %v2417_v57, 7  ;;  %v15860_v9 = vrot.slane %v2426_v56, 7  ;;  %v11527_v56 = vld [vmem:[%s14750_s19 + $0x60] sm:$0x8] }
 0x124   : > { %18236 = vst [vmem:[#allocation22_spill] sm:$0xff] %v15831_v6  ;;  %v2137_v13 = vsel %vm14823_vm2, %v11561_v18, %v2136_v12  ;;  %v2192_v21 = vshrl.u32 %v11524_v41, 16  ;;  %v15873_v57 = vrot.slane %v2439_v30, 7  ;;  %v2214_v23 = vshrl.u32 %v11527_v56, 16 }
 0x125   : > { %v18244_v41 = vshll.u32 %v15595_v63, 16  ;;  %v11542_v63 = vld [vmem:[%s14750_s19 + $0xb0] sm:$0x8]  ;;  %v2226_v56 = vrot.slane %v15727_v37, 4 }
 0x126   : > { %13040 = vmatmul.mubr.bf16.gmra.mrb[24].mxu0 %v11621_v45  ;;  %v2148_v45 = vshrl.u32 %v11518_v7, 16  ;;  %v2138_v7 = vrot.slane %v15684_v26, 4  ;;  %v2420_v26 = vshll.u32 %v15762_v3, 16 }
 0x127   : > { %13043 = vmatprep.mubr.bf16.mxu0 %v11622_v55  ;;  %v11521_v55 = vld [vmem:[%s14750_s19 + $0x40] sm:$0x8] }
 0x128   : > { %v11562_v6 = vrot.slane %v2148_v45, 11  ;;  %v2170_v49 = vshrl.u32 %v11521_v55, 16  ;;  %v2146_v32 = vsel %vm14823_vm2, %v2138_v7, %v2145_v29  ;;  %v2168_v45 = vsel %vm14823_vm2, %v2160_v50, %v2167_v47  ;;  %v11530_v55 = vld [vmem:[%s14750_s19 + $0x70] sm:$0x8] }
 0x129   : > { %v11633_v12 = vcombine.low %v2137_v13, %v2146_v32  ;;  %v18241_v29 = vshll.u32 %v15582_v59, 16  ;;  %v2182_v7 = vrot.slane %v15713_v24, 4  ;;  %v18242_v50 = vshll.u32 %v15585_v39, 16  ;;  %v11533_v32 = vld [vmem:[%s14750_s19 + $0x80] sm:$0x8] }
 0x12a   : > { %v2159_v25 = vsel %vm14823_vm2, %v11562_v6, %v2158_v61  ;;  %v14442_v61 = vld [vmem:[%s18177_s1 + $0x148] sm:$0xff]   ;;  %v11564_v47 = vrot.slane %v2192_v21, 11  ;;  %v18243_v59 = vshll.u32 %v15592_v31, 16  ;;  %v2236_v13 = vshrl.u32 %v11530_v55, 16  ;;  %v14443_v55 = vld [vmem:[%s18177_s1 + $0x150] sm:$0xff]  }
 0x12b   : > { %v2180_v18 = vor.u32 %v18241_v29, %v15713_v24  ;;  %v11634_v6 = vcombine.low %v2159_v25, %v2168_v45  ;;  %v2189_v30 = vor.u32 %v18242_v50, %v15715_v54  ;;  %v18245_v31 = vshll.u32 %v15605_v5, 16  ;;  %v11536_v25 = vld [vmem:[%s14750_s19 + $0x90] sm:$0x8]  ;;  %v11539_v45 = vld [vmem:[%s14750_s19 + $0xa0] sm:$0x8] }
 0x12c   : > { %v2202_v24 = vor.u32 %v18243_v59, %v15719_v60  ;;  %v11565_v21 = vrot.slane %v2214_v23, 11  ;;  %v18246_v5 = vshll.u32 %v15608_v17, 16  ;;  %v2248_v29 = vrot.slane %v15743_v51, 4  ;;  %v11545_v23 = vld [vmem:[%s14750_s19 + $0xc0] sm:$0x8] }
 0x12d   : > { %v2190_v54 = vsel %vm14823_vm2, %v2182_v7, %v2189_v30  ;;  %v2280_v50 = vshrl.u32 %v11536_v25, 16  ;;  %v2324_v30 = vshrl.u32 %v11542_v63, 16  ;;  %v18247_v17 = vshll.u32 %v15611_v52, 16  ;;  %v11657_v63 = vld [vmem:[%s14750_s19 + $0x18] sm:$0xf] }
 0x12e   : > { %13044 = vmatmul.mubr.bf16.gmra.mrb[28].mxu0 %v11623_v36  ;;  %v15875_v36 = vrot.slane %v2448_v34, 7  ;;  %v2204_v34 = vrot.slane %v15719_v60, 4  ;;  %v2224_v60 = vor.u32 %v18245_v31, %v15727_v37  ;;  %v2302_v37 = vshrl.u32 %v11539_v45, 16 }
 0x12f   : > { %13063 = vmatprep.mubr.bf16.mxu0 %v11632_v28  ;;  %v11563_v28 = vrot.slane %v2170_v49, 11  ;;  %v2211_v49 = vor.u32 %v18244_v41, %v15722_v0  ;;  %v2203_v0 = vsel %vm14823_vm2, %v11564_v47, %v2202_v24  ;;  %v18248_v47 = vshll.u32 %v15614_v53, 16 }
 0x130   : > { %v2225_v24 = vsel %vm14823_vm2, %v11565_v21, %v2224_v60  ;;  %v2314_v52 = vrot.slane %v15774_v19, 4  ;;  %v18249_v53 = vshll.u32 %v15627_v8, 16  ;;  %v2336_v31 = vrot.slane %v15783_v22, 4  ;;  %v11656_v60 = vld [vmem:[%s14750_s19 + $0x14] sm:$0xf] }
 0x131   : > { %v2181_v39 = vsel %vm14823_vm2, %v11563_v28, %v2180_v18  ;;  %v11566_v28 = vrot.slane %v2236_v13, 11  ;;  %v2258_v18 = vshrl.u32 %v11533_v32, 16  ;;  %v2255_v59 = vor.u32 %v18248_v47, %v15745_v46 }
 0x132   : > { %v11635_v7 = vcombine.low %v2181_v39, %v2190_v54  ;;  %v2292_v13 = vrot.slane %v15769_v16, 4  ;;  %v2268_v46 = vor.u32 %v18249_v53, %v15756_v20  ;;  %v11568_v32 = vrot.slane %v2280_v50, 11  ;;  %v14445_v54 = vld [vmem:[%s18177_s1 + $0x160] sm:$0xff]  }
 0x133   : > { %v15942_v39 = vrot.slane %v2302_v37, 11  ;;  %v2256_v8 = vsel %vm14823_vm2, %v2248_v29, %v2255_v59  ;;  %v2358_v45 = vrot.slane %v15811_v38, 4  ;;  %v14446_v29 = vld [vmem:[%s18177_s1 + $0x168] sm:$0xff]   ;;  %v18256_v59 = vld [vmem:[#allocation9_spill] sm:$0xff] }
 0x136   : > { %13064 = vmatmul.mubr.bf16.vlgmr.msra.gmra.mrb[0].mxu0 %v11633_v12  ;;  %v2233_v12 = vor.u32 %v18246_v5, %v15738_v1  ;;  %v2246_v1 = vor.u32 %v18247_v17, %v15743_v51  ;;  %v11548_v51 = vld [vmem:[%s14750_s19 + $0xd0] sm:$0x8]  ;;  %v18254_v5 = vld [vmem:[#allocation10_spill] sm:$0xff]  ;;  %v3116_v17 = vshrl.u32 %v11656_v60, 16 }
 0x137   : > { %13096 = vmatpush3.bf16.msra.mxu0 %v15666_v27  ;;  %13067 = vmatprep.mubr.bf16.mxu0 %v11634_v6  ;;  %v2212_v27 = vsel %vm14823_vm2, %v2204_v34, %v2211_v49  ;;  %v14444_v6 = vld [vmem:[%s18177_s1 + $0x158] sm:$0xff]   ;;  %v2270_v49 = vrot.slane %v15756_v20, 4  ;;  %v2346_v20 = vshrl.u32 %v11545_v23, 16  ;;  %v2368_v50 = vshrl.u32 %v11548_v51, 16  ;;  %v15971_v23 = vld [vmem:[%s14750_s19 + $0x100] sm:$0x8] }
 0x138   : > { %13097 = vmatprep.subr.bf16.mxu0 %v14442_v61  ;;  %v11636_v34 = vcombine.low %v2203_v0, %v2212_v27  ;;  %v2234_v41 = vsel %vm14823_vm2, %v2226_v56, %v2233_v12  ;;  %v2247_v25 = vsel %vm14823_vm2, %v11566_v28, %v2246_v1  ;;  %v18250_v0 = vld [vmem:[#allocation18_spill] sm:$0xff]  ;;  %v18251_v27 = vld [vmem:[#allocation8_spill] sm:$0xff]  ;;  %v18255_v12 = vshll.u32 %v18254_v5, 16  ;;  %v11551_v28 = vld [vmem:[%s14750_s19 + $0xe0] sm:$0x8] }
 0x139   : > { %v18252_v21 = vshll.u32 %v18251_v27, 16  ;;  %v11637_v37 = vcombine.low %v2225_v24, %v2234_v41  ;;  %v3119_v1 = vshll.u32 %v11656_v60, 16  ;;  %v11638_v47 = vcombine.low %v2247_v25, %v2256_v8  ;;  %v18258_v25 = vld [vmem:[#allocation11_spill] sm:$0xff]  ;;  %v18261_v27 = vld [vmem:[#allocation12_spill] sm:$0xff] }
 0x13a   : > { %v3125_v51 = vshll.u32 %v11657_v63, 16  ;;  %v15998_v5 = vrot.slane %v2368_v50, 11  ;;  %v3118_v50 = vrot.slane %v3116_v17, 4 }
 0x13b   : > { %13098 = vmatpush3.bf16.msra.mxu0 %v14442_v61  ;;  %v15933_v61 = vrot.slane %v2258_v18, 11  ;;  %v2277_v56 = vor.u32 %v18252_v21, %v18250_v0  ;;  %v3129_v0 = vshrl.u32 %v11657_v63, 16  ;;  %v18262_v63 = vshll.u32 %v18261_v27, 16 }
 0x13c   : > { %13099 = vmatprep.subr.bf16.mxu0 %v14443_v55 }
 0x13d   : > { %v2269_v24 = vsel %vm14823_vm2, %v15933_v61, %v2268_v46  ;;  %v2278_v41 = vsel %vm14823_vm2, %v2270_v49, %v2277_v56  ;;  %v2380_v61 = vrot.slane %v15820_v2, 4  ;;  %v2390_v49 = vshrl.u32 %v11551_v28, 16  ;;  %v18263_v28 = vld [vmem:[#allocation13_spill] sm:$0xff] }
 0x13e   : > { %13068 = vmatmul.mubr.bf16.gmra.mrb[4].mxu0 %v11635_v7  ;;  %v15961_v7 = vrot.slane %v2324_v30, 11  ;;  %v18257_v30 = vshll.u32 %v18256_v59, 16  ;;  %v2402_v46 = vrot.slane %v15825_v10, 4  ;;  %v18264_v59 = vshll.u32 %v18263_v28, 16 }
 0x13f   : > { %13071 = vmatprep.mubr.bf16.mxu0 %v11636_v34  ;;  %13100 = vmatpush3.bf16.msra.mxu0 %v14443_v55  ;;  %v18253_v55 = vld [vmem:[#allocation19_spill] sm:$0xff]  ;;  %v15968_v34 = vld [vmem:[%s14750_s19 + $0xf0] sm:$0x8] }
 0x140   : > { %13101 = vmatprep.subr.bf16.mxu0 %v14444_v6  ;;  %v2299_v18 = vor.u32 %v18255_v12, %v18253_v55  ;;  %v2290_v53 = vor.u32 %v18257_v30, %v15769_v16  ;;  %v18260_v16 = vld [vmem:[#allocation20_spill] sm:$0xff]  ;;  %v15991_v55 = vrot.slane %v2346_v20, 11  ;;  %v14447_v12 = vld [vmem:[%s18177_s1 + $0x170] sm:$0xff]   ;;  %v2412_v20 = vshrl.u32 %v15968_v34, 16 }
 0x141   : > { %v2321_v21 = vor.u32 %v18262_v63, %v18260_v16  ;;  %v2334_v30 = vor.u32 %v18264_v59, %v15783_v22  ;;  %v3131_v16 = vrot.slane %v3129_v0, 4  ;;  %v14448_v63 = vld [vmem:[%s18177_s1 + $0x178] sm:$0xff]  }
 0x142   : > { %v2300_v60 = vsel %vm14823_vm2, %v2292_v13, %v2299_v18  ;;  %v11659_v13 = vld [vmem:[%s14750_s19 + $0x24] sm:$0xf]  ;;  %v2291_v56 = vsel %vm14823_vm2, %v11568_v32, %v2290_v53  ;;  %v2434_v18 = vshrl.u32 %v15971_v23, 16  ;;  %v3121_v53 = vrot.slane %v3119_v1, 5  ;;  %v11661_v1 = vld [vmem:[%s14750_s19 + $0x2c] sm:$0x1] }
 0x143   : > { %13102 = vmatpush3.bf16.msra.mxu0 %v14444_v6  ;;  %v18259_v6 = vshll.u32 %v18258_v25, 16  ;;  %v3140_v34 = vshrl.u32 %v11659_v13, 16  ;;  %v3143_v27 = vshll.u32 %v11659_v13, 16  ;;  %v11639_v23 = vcombine.low %v2269_v24, %v2278_v41 }
 0x144   : > { %13103 = vmatprep.subr.bf16.mxu0 %v14445_v54  ;;  %v11640_v59 = vcombine.low %v2291_v56, %v2300_v60  ;;  %v18267_v24 = vshll.u32 %v15697_v33, 16  ;;  %v18269_v33 = vshll.u32 %v15708_v62, 16  ;;  %v11662_v56 = vld [vmem:[%s14750_s19 + $0x34] sm:$0xf]  ;;  %v16052_v22 = vrot.slane %v2412_v20, 11  ;;  %v16068_v20 = vld [vmem:[%s18177_s1 + $0x1c0] sm:$0xff]  }
 0x145   : > { %v15986_v8 = vor.u32 %v18259_v6, %v15774_v19  ;;  %v16013_v6 = vrot.slane %v3125_v51, 5  ;;  %v18268_v19 = vshll.u32 %v15700_v35, 16  ;;  %v3142_v13 = vrot.slane %v3140_v34, 4 }
 0x146   : > { %13072 = vmatmul.mubr.bf16.gmra.mrb[8].mxu0 %v11637_v37  ;;  %v11660_v37 = vld [vmem:[%s14750_s19 + $0x28] sm:$0xf]  ;;  %v16030_v41 = vor.u32 %v18267_v24, %v15811_v38  ;;  %v3164_v34 = vshrl.u32 %v11662_v56, 16 }
 0x147   : > { %13075 = vmatprep.mubr.bf16.mxu0 %v11638_v47  ;;  %13104 = vmatpush3.bf16.msra.mxu0 %v14445_v54  ;;  %v18265_v47 = vld [vmem:[#allocation14_spill] sm:$0xff]  ;;  %v3149_v28 = vshll.u32 %v11660_v37, 16  ;;  %v3153_v51 = vshrl.u32 %v11660_v37, 16  ;;  %v2313_v0 = vsel %vm14823_vm2, %v15942_v39, %v15986_v8  ;;  %v2365_v60 = vor.u32 %v18268_v19, %v15813_v42 }
 0x148   : > { %v18266_v25 = vshll.u32 %v18265_v47, 16  ;;  %13105 = vmatprep.subr.bf16.mxu0 %v14446_v29  ;;  %v11658_v54 = vld [vmem:[%s14750_s19 + $0x1c] sm:$0x1]  ;;  %v16045_v8 = vor.u32 %v18269_v33, %v15820_v2  ;;  %v3132_v35 = vor.u32 %v3131_v16, %v16013_v6  ;;  %v16048_v42 = vrot.slane %v2390_v49, 11  ;;  %v18270_v47 = vld [vmem:[#allocation21_spill] sm:$0xff] }
 0x149   : > { %v3135_v17 = vshll.u32 %v11658_v54, 16  ;;  %v16055_v37 = vrot.slane %v3149_v28, 5  ;;  %v3155_v62 = vrot.slane %v3153_v51, 4  ;;  %v16061_v54 = vrot.slane %v2434_v18, 11  ;;  %v11665_v51 = vld [vmem:[%s14750_s19 + $0x44] sm:$0xf] }
 0x14a   : > { %v2343_v32 = vor.u32 %v18266_v25, %v15802_v4  ;;  %v2322_v4 = vsel %vm14823_vm2, %v2314_v52, %v2321_v21  ;;  %v3122_v52 = vor.u32 %v3121_v53, %v3118_v50  ;;  %v2424_v21 = vrot.slane %v15856_v14, 4  ;;  %v18271_v25 = vld [vmem:[#allocation15_spill] sm:$0xff]  ;;  %v11664_v19 = vld [vmem:[%s14750_s19 + $0x3c] sm:$0x1]  ;;  %v11668_v2 = vld [vmem:[%s14750_s19 + $0x54] sm:$0xf] }
 0x14b   : > { %13106 = vmatpush3.bf16.msra.mxu0 %v14446_v29  ;;  %v2335_v29 = vsel %vm14823_vm2, %v15961_v7, %v2334_v30  ;;  %v3145_v7 = vrot.slane %v3143_v27, 5  ;;  %v11663_v30 = vld [vmem:[%s14750_s19 + $0x38] sm:$0xf]  ;;  %v18272_v49 = vshll.u32 %v18271_v25, 16  ;;  %v16070_v53 = vrot.slane %v3132_v35, 4 }
 0x14c   : > { %13107 = vmatprep.subr.bf16.mxu0 %v14447_v12  ;;  %v2344_v39 = vsel %vm14823_vm2, %v2336_v31, %v2343_v32  ;;  %v2446_v31 = vrot.slane %v15873_v57, 4  ;;  %v16063_v50 = vrot.slane %v3122_v52, 4  ;;  %v16072_v16 = vrot.slane %v3135_v17, 5  ;;  %v11666_v17 = vld [vmem:[%s14750_s19 + $0x48] sm:$0xf] }
 0x14d   : > { %v2387_v32 = vor.u32 %v18272_v49, %v18270_v47  ;;  %v3167_v27 = vshll.u32 %v11662_v56, 16  ;;  %v3146_v18 = vor.u32 %v3145_v7, %v3142_v13  ;;  %v3173_v28 = vshll.u32 %v11663_v30, 16 }
 0x14e   : > { %13076 = vmatmul.mubr.bf16.gmra.mrb[12].mxu0 %v11639_v23  ;;  %v11641_v23 = vcombine.low %v2313_v0, %v2322_v4  ;;  %v11642_v24 = vcombine.low %v2335_v29, %v2344_v39  ;;  %v2357_v52 = vsel %vm14823_vm2, %v15991_v55, %v16030_v41  ;;  %v2366_v4 = vsel %vm14823_vm2, %v2358_v45, %v2365_v60  ;;  %v18273_v55 = vld [vmem:[#allocation16_spill] sm:$0xff]  ;;  %v18275_v29 = vld [vmem:[#allocation22_spill] sm:$0xff]  ;;  %v18276_v45 = vld [vmem:[#allocation17_spill] sm:$0xff] }
 0x14f   : > { %13079 = vmatprep.mubr.bf16.mxu0 %v11640_v59  ;;  %13108 = vmatpush3.bf16.msra.mxu0 %v14447_v12  ;;  %v3159_v12 = vshll.u32 %v11661_v1, 16  ;;  %v3177_v59 = vshrl.u32 %v11663_v30, 16  ;;  %v3156_v1 = vor.u32 %v3155_v62, %v16055_v37  ;;  %v2388_v0 = vsel %vm14823_vm2, %v2380_v61, %v2387_v32  ;;  %v11669_v62 = vld [vmem:[%s14750_s19 + $0x58] sm:$0xf]  ;;  %v11671_v32 = vld [vmem:[%s14750_s19 + $0x64] sm:$0xf] }
 0x150   : > { %13109 = vmatprep.subr.bf16.mxu0 %v14448_v63  ;;  %v18274_v38 = vshll.u32 %v18273_v55, 16  ;;  %v18277_v60 = vshll.u32 %v18276_v45, 16  ;;  %v16101_v33 = vrot.slane %v3146_v18, 4  ;;  %v16108_v61 = vrot.slane %v3173_v28, 5  ;;  %v11670_v55 = vld [vmem:[%s14750_s19 + $0x5c] sm:$0x1] }
 0x151   : > { %v16103_v35 = vrot.slane %v3159_v12, 5  ;;  %v16106_v13 = vrot.slane %v3156_v1, 4  ;;  %v3179_v7 = vrot.slane %v3177_v59, 4  ;;  %v3188_v56 = vshrl.u32 %v11665_v51, 16  ;;  %v11667_v59 = vld [vmem:[%s14750_s19 + $0x4c] sm:$0x1] }
 0x152   : > { %v2400_v41 = vor.u32 %v18274_v38, %v15825_v10  ;;  %v2409_v39 = vor.u32 %v18277_v60, %v18275_v29  ;;  %v2422_v30 = vor.u32 %v2420_v26, %v15856_v14  ;;  %v2431_v47 = vor.u32 %v2429_v43, %v15860_v9 }
 0x153   : > { %13110 = vmatpush3.bf16.msra.mxu0 %v14448_v63  ;;  %v2379_v63 = vsel %vm14823_vm2, %v15998_v5, %v16045_v8  ;;  %v3166_v5 = vrot.slane %v3164_v34, 4  ;;  %v3169_v8 = vrot.slane %v3167_v27, 5  ;;  %v3183_v25 = vshll.u32 %v11664_v19, 16 }
 0x154   : > { %13143 = vmatprep.subr.bf16.mxu0 %v16068_v20  ;;  %v3191_v49 = vshll.u32 %v11665_v51, 16  ;;  %v3197_v12 = vshll.u32 %v11666_v17, 16  ;;  %v3201_v34 = vshrl.u32 %v11666_v17, 16  ;;  %v3212_v27 = vshrl.u32 %v11668_v2, 16 }
 0x155   : > { %v11643_v18 = vcombine.low %v2357_v52, %v2366_v4  ;;  %v3170_v28 = vor.u32 %v3169_v8, %v3166_v5  ;;  %v3225_v1 = vshrl.u32 %v11669_v62, 16  ;;  %v11644_v3 = vcombine.low %v2379_v63, %v2388_v0  ;;  %v11672_v4 = vld [vmem:[%s14750_s19 + $0x68] sm:$0xf]  ;;  %v11674_v5 = vld [vmem:[%s14750_s19 + $0x74] sm:$0xf] }
 0x156   : > { %13080 = vmatmul.mubr.bf16.gmra.mrb[16].mxu0 %v11641_v23  ;;  %v3215_v23 = vshll.u32 %v11668_v2, 16  ;;  %v3236_v26 = vshrl.u32 %v11671_v32, 16  ;;  %v3239_v38 = vshll.u32 %v11671_v32, 16  ;;  %v2401_v15 = vsel %vm14823_vm2, %v16048_v42, %v2400_v41 }
 0x157   : > { %13083 = vmatprep.mubr.bf16.mxu0 %v11642_v24  ;;  %v3221_v24 = vshll.u32 %v11669_v62, 16  ;;  %v2410_v43 = vsel %vm14823_vm2, %v2402_v46, %v2409_v39  ;;  %v2423_v9 = vsel %vm14823_vm2, %v16052_v22, %v2422_v30  ;;  %v2432_v51 = vsel %vm14823_vm2, %v2424_v21, %v2431_v47  ;;  %v11675_v62 = vld [vmem:[%s14750_s19 + $0x78] sm:$0xf] }
 0x158   : > { %v2444_v19 = vor.u32 %v2442_v58, %v15873_v57  ;;  %v2453_v10 = vor.u32 %v2451_v48, %v15875_v36  ;;  %v16140_v42 = vrot.slane %v3170_v28, 4  ;;  %v16142_v46 = vrot.slane %v3183_v25, 5 }
 0x159   : > { %v3190_v52 = vrot.slane %v3188_v56, 4  ;;  %v3193_v22 = vrot.slane %v3191_v49, 5  ;;  %v16145_v14 = vrot.slane %v3197_v12, 5  ;;  %v3203_v21 = vrot.slane %v3201_v34, 4  ;;  %v11673_v56 = vld [vmem:[%s14750_s19 + $0x6c] sm:$0x1] }
 0x15a   : > { %v3207_v17 = vshll.u32 %v11667_v59, 16  ;;  %v3214_v44 = vrot.slane %v3212_v27, 4  ;;  %v3217_v58 = vrot.slane %v3215_v23, 5  ;;  %v16147_v11 = vrot.slane %v3221_v24, 5 }
 0x15b   : > { %v3227_v48 = vrot.slane %v3225_v1, 4  ;;  %v3231_v36 = vshll.u32 %v11670_v55, 16  ;;  %v3238_v63 = vrot.slane %v3236_v26, 4  ;;  %v3241_v0 = vrot.slane %v3239_v38, 5  ;;  %v11677_v55 = vld [vmem:[%s14750_s19 + $0x84] sm:$0xf] }
 0x15c   : > { %v3245_v41 = vshll.u32 %v11672_v4, 16  ;;  %v3249_v29 = vshrl.u32 %v11672_v4, 16  ;;  %v11645_v45 = vcombine.low %v2401_v15, %v2410_v43  ;;  %v3180_v60 = vor.u32 %v3179_v7, %v16108_v61  ;;  %v11678_v43 = vld [vmem:[%s14750_s19 + $0x88] sm:$0xf] }
 0x15d   : > { %v3194_v39 = vor.u32 %v3193_v22, %v3190_v52  ;;  %v11646_v8 = vcombine.low %v2423_v9, %v2432_v51  ;;  %v3204_v2 = vor.u32 %v3203_v21, %v16145_v14  ;;  %v2445_v30 = vsel %vm14823_vm2, %v16061_v54, %v2444_v19  ;;  %v14494_v7 = vld [vmem:[%s18179_s3 + $0x68] sm:$0xff]  }
 0x15e   : > { %13084 = vmatmul.mubr.bf16.gmra.mrb[20].mxu0 %v11643_v18  ;;  %v2454_v47 = vsel %vm14823_vm2, %v2446_v31, %v2453_v10  ;;  %v3218_v25 = vor.u32 %v3217_v58, %v3214_v44  ;;  %v3128_v49 = vsel %vm15286_vm5, %v16063_v50, %v16013_v6  ;;  %v3138_v32 = vsel %vm15286_vm5, %v16070_v53, %v16072_v16  ;;  %v11680_v10 = vld [vmem:[%s14750_s19 + $0x94] sm:$0xf] }
 0x15f   : > { %13087 = vmatprep.mubr.bf16.mxu0 %v11644_v3  ;;  %v3228_v12 = vor.u32 %v3227_v48, %v16147_v11  ;;  %v3242_v34 = vor.u32 %v3241_v0, %v3238_v63  ;;  %v3181_v57 = vrot.slane %v3180_v60, 4  ;;  %v16170_v54 = vrot.slane %v3194_v39, 4  ;;  %v11676_v3 = vld [vmem:[%s14750_s19 + $0x7c] sm:$0x1] }
 0x160   : > { %v16172_v31 = vrot.slane %v3207_v17, 5  ;;  %v3260_v27 = vshrl.u32 %v11674_v5, 16  ;;  %v16174_v6 = vrot.slane %v3204_v2, 4  ;;  %v16176_v50 = vrot.slane %v3231_v36, 5  ;;  %v11681_v17 = vld [vmem:[%s14750_s19 + $0x98] sm:$0xf] }
 0x161   : > { %v3263_v23 = vshll.u32 %v11674_v5, 16  ;;  %v3269_v53 = vshll.u32 %v11675_v62, 16  ;;  %v16178_v16 = vrot.slane %v3218_v25, 4  ;;  %v16180_v18 = vrot.slane %v3245_v41, 5  ;;  %v11683_v2 = vld [vmem:[%s14750_s19 + $0xa4] sm:$0xf] }
 0x162   : > { %v3251_v28 = vrot.slane %v3249_v29, 4  ;;  %v3255_v59 = vshll.u32 %v11673_v56, 16  ;;  %v16182_v24 = vrot.slane %v3228_v12, 4  ;;  %v16184_v1 = vrot.slane %v3242_v34, 4  ;;  %v14451_v25 = vld [vmem:[%s18177_s1 + $0x1d0] sm:$0xff]  }
 0x163   : > { %v11647_v26 = vcombine.low %v2445_v30, %v2454_v47  ;;  %v3262_v38 = vrot.slane %v3260_v27, 4  ;;  %v3273_v15 = vshrl.u32 %v11675_v62, 16  ;;  %v11720_v9 = vcombine.low %v3128_v49, %v3138_v32 }
 0x164   : > { %v3265_v51 = vrot.slane %v3263_v23, 5  ;;  %v16189_v19 = vrot.slane %v3269_v53, 5  ;;  %v3279_v22 = vshll.u32 %v11676_v3, 16  ;;  %v3284_v4 = vshrl.u32 %v11677_v55, 16  ;;  %v11682_v23 = vld [vmem:[%s14750_s19 + $0x9c] sm:$0x1] }
 0x165   : > { %v3275_v52 = vrot.slane %v3273_v15, 4  ;;  %v3287_v21 = vshll.u32 %v11677_v55, 16  ;;  %v3152_v44 = vsel %vm15286_vm5, %v16101_v33, %v16055_v37  ;;  %v3162_v58 = vsel %vm15286_vm5, %v16106_v13, %v16103_v35  ;;  %v14450_v35 = vld [vmem:[%s18177_s1 + $0x1c8] sm:$0xff]  }
 0x166   : > { %13088 = vmatmul.mubr.bf16.gmra.mrb[24].mxu0 %v11645_v45  ;;  %v3293_v48 = vshll.u32 %v11678_v43, 16  ;;  %v3297_v36 = vshrl.u32 %v11678_v43, 16  ;;  %v3176_v63 = vsel %vm15286_vm5, %v16140_v42, %v16108_v61  ;;  %v3186_v0 = vsel %vm15286_vm5, %v3181_v57, %v16142_v46  ;;  %v11679_v57 = vld [vmem:[%s14750_s19 + $0x8c] sm:$0x1]  ;;  %v11686_v43 = vld [vmem:[%s14750_s19 + $0xb4] sm:$0xf] }
 0x167   : > { %13091 = vmatprep.mubr.bf16.mxu0 %v11646_v8  ;;  %v3308_v41 = vshrl.u32 %v11680_v10, 16  ;;  %v3311_v29 = vshll.u32 %v11680_v10, 16  ;;  %v3317_v37 = vshll.u32 %v11681_v17, 16  ;;  %v3321_v33 = vshrl.u32 %v11681_v17, 16 }
 0x168   : > { %v11721_v45 = vcombine.low %v3152_v44, %v3162_v58  ;;  %v3252_v13 = vor.u32 %v3251_v28, %v16180_v18  ;;  %v11722_v60 = vcombine.low %v3176_v63, %v3186_v0  ;;  %v3200_v61 = vsel %vm15286_vm5, %v16170_v54, %v16145_v14 }
 0x169   : > { %v3210_v42 = vsel %vm15286_vm5, %v16174_v6, %v16172_v31  ;;  %v3224_v46 = vsel %vm15286_vm5, %v16178_v16, %v16147_v11  ;;  %v3234_v39 = vsel %vm15286_vm5, %v16182_v24, %v16176_v50  ;;  %v16228_v5 = vrot.slane %v3255_v59, 5  ;;  %v11684_v11 = vld [vmem:[%s14750_s19 + $0xa8] sm:$0xf] }
 0x16a   : > { %v3266_v8 = vor.u32 %v3265_v51, %v3262_v38  ;;  %v3276_v14 = vor.u32 %v3275_v52, %v16189_v19  ;;  %v16232_v56 = vrot.slane %v3252_v13, 4  ;;  %v16234_v62 = vrot.slane %v3279_v22, 5  ;;  %v14452_v51 = vld [vmem:[%s18177_s1 + $0x1d8] sm:$0xff]   ;;  %v14453_v13 = vld [vmem:[%s18177_s1 + $0x1e0] sm:$0xff]  }
 0x16b   : > { %v3286_v30 = vrot.slane %v3284_v4, 4  ;;  %v3289_v47 = vrot.slane %v3287_v21, 5  ;;  %v16241_v49 = vrot.slane %v3293_v48, 5  ;;  %v3299_v32 = vrot.slane %v3297_v36, 4  ;;  %v11685_v21 = vld [vmem:[%s14750_s19 + $0xac] sm:$0x1] }
 0x16c   : > { %v3310_v12 = vrot.slane %v3308_v41, 4  ;;  %v3313_v34 = vrot.slane %v3311_v29, 5  ;;  %v16244_v54 = vrot.slane %v3317_v37, 5  ;;  %v3323_v31 = vrot.slane %v3321_v33, 4 }
 0x16d   : > { %v3332_v27 = vshrl.u32 %v11683_v2, 16  ;;  %v3335_v6 = vshll.u32 %v11683_v2, 16  ;;  %v3277_v50 = vrot.slane %v3276_v14, 4  ;;  %v3341_v53 = vshll.u32 %v11684_v11, 16 }
 0x16e   : > { %13092 = vmatmul.mubr.bf16.gmra.mrb[28].mxu0 %v11647_v26  ;;  %v3345_v16 = vshrl.u32 %v11684_v11, 16  ;;  %v11723_v28 = vcombine.low %v3200_v61, %v3210_v42  ;;  %v11724_v59 = vcombine.low %v3224_v46, %v3234_v39  ;;  %v3248_v24 = vsel %vm15286_vm5, %v16184_v1, %v16180_v18  ;;  %v11690_v39 = vld [vmem:[%s14750_s19 + $0xc8] sm:$0xf] }
 0x16f   : > { %13111 = vmatprep.mubr.bf16.mxu0 %v11720_v9  ;;  %v3258_v3 = vsel %vm15286_vm5, %v16232_v56, %v16228_v5  ;;  %v3290_v55 = vor.u32 %v3289_v47, %v3286_v30  ;;  %v3300_v26 = vor.u32 %v3299_v32, %v16241_v49  ;;  %v3303_v38 = vshll.u32 %v11679_v57, 16  ;;  %v11687_v9 = vld [vmem:[%s14750_s19 + $0xb8] sm:$0xf]  ;;  %v11688_v5 = vld [vmem:[%s14750_s19 + $0xbc] sm:$0x1] }
 0x170   : > { %v3314_v15 = vor.u32 %v3313_v34, %v3310_v12  ;;  %v3324_v18 = vor.u32 %v3323_v31, %v16244_v54  ;;  %v3327_v1 = vshll.u32 %v11682_v23, 16  ;;  %v3334_v10 = vrot.slane %v3332_v27, 4  ;;  %v11693_v32 = vld [vmem:[%s14750_s19 + $0xd8] sm:$0xf] }
 0x171   : > { %v3337_v52 = vrot.slane %v3335_v6, 5  ;;  %v3282_v4 = vsel %vm15286_vm5, %v3277_v50, %v16234_v62  ;;  %v16269_v17 = vrot.slane %v3341_v53, 5  ;;  %v3347_v44 = vrot.slane %v3345_v16, 4 }
 0x172   : > { %v3356_v58 = vshrl.u32 %v11686_v43, 16  ;;  %v3359_v48 = vshll.u32 %v11686_v43, 16  ;;  %v3365_v36 = vshll.u32 %v11687_v9, 16  ;;  %v3369_v63 = vshrl.u32 %v11687_v9, 16  ;;  %v14455_v43 = vld [vmem:[%s18177_s1 + $0x1f0] sm:$0xff]  }
 0x173   : > { %v3291_v0 = vrot.slane %v3290_v55, 4  ;;  %v3305_v41 = vrot.slane %v3303_v38, 5  ;;  %v3315_v29 = vrot.slane %v3314_v15, 4  ;;  %v3325_v37 = vrot.slane %v3324_v18, 4  ;;  %v11691_v15 = vld [vmem:[%s14750_s19 + $0xcc] sm:$0x1] }
 0x174   : > { %v3329_v33 = vrot.slane %v3327_v1, 5  ;;  %v11725_v61 = vcombine.low %v3248_v24, %v3258_v3  ;;  %v3348_v46 = vor.u32 %v3347_v44, %v16269_v17  ;;  %v3361_v14 = vrot.slane %v3359_v48, 5 }
 0x175   : > { %v16278_v2 = vrot.slane %v3365_v36, 5  ;;  %v3371_v56 = vrot.slane %v3369_v63, 4  ;;  %v3296_v62 = vsel %vm15286_vm5, %v3291_v0, %v16241_v49  ;;  %v3320_v12 = vsel %vm15286_vm5, %v3315_v29, %v16244_v54  ;;  %v14454_v49 = vld [vmem:[%s18177_s1 + $0x1e8] sm:$0xff]  }
 0x176   : > { %13112 = vmatmul.mubr.bf16.vlgmr.msra.gmra.mrb[0].mxu0 %v11721_v45  ;;  %v3338_v45 = vor.u32 %v3337_v52, %v3334_v10  ;;  %v3330_v34 = vsel %vm15286_vm5, %v3325_v37, %v3329_v33  ;;  %v3349_v27 = vrot.slane %v3348_v46, 4  ;;  %v3375_v6 = vshll.u32 %v11688_v5, 16  ;;  %v11694_v10 = vld [vmem:[%s14750_s19 + $0xdc] sm:$0x1]  ;;  %v11696_v63 = vld [vmem:[%s14750_s19 + $0xe8] sm:$0xf] }
 0x177   : > { %13144 = vmatpush3.bf16.msra.mxu0 %v16068_v20  ;;  %13115 = vmatprep.mubr.bf16.mxu0 %v11722_v60  ;;  %v3267_v20 = vrot.slane %v3266_v8, 4  ;;  %v11689_v60 = vld [vmem:[%s14750_s19 + $0xc4] sm:$0xf]  ;;  %v3358_v8 = vrot.slane %v3356_v58, 4  ;;  %v3393_v50 = vshrl.u32 %v11690_v39, 16  ;;  %v3413_v16 = vshll.u32 %v11693_v32, 16 }
 0x178   : > { %13145 = vmatprep.subr.bf16.mxu0 %v14450_v35  ;;  %v3380_v47 = vshrl.u32 %v11689_v60, 16  ;;  %v3383_v11 = vshll.u32 %v11689_v60, 16  ;;  %v3339_v57 = vrot.slane %v3338_v45, 4  ;;  %v3417_v54 = vshrl.u32 %v11693_v32, 16  ;;  %v11698_v45 = vld [vmem:[%s14750_s19 + $0xf4] sm:$0xf] }
 0x179   : > { %v3272_v22 = vsel %vm15286_vm5, %v3267_v20, %v16189_v19  ;;  %v3301_v19 = vrot.slane %v3300_v26, 4  ;;  %v3389_v20 = vshll.u32 %v11690_v39, 16  ;;  %v11728_v26 = vcombine.low %v3320_v12, %v3330_v34 }
 0x17a   : > { %v11726_v42 = vcombine.low %v3272_v22, %v3282_v4  ;;  %v3382_v24 = vrot.slane %v3380_v47, 4  ;;  %v3385_v3 = vrot.slane %v3383_v11, 5  ;;  %v3344_v38 = vsel %vm15286_vm5, %v3339_v57, %v16269_v17  ;;  %v11695_v17 = vld [vmem:[%s14750_s19 + $0xe4] sm:$0xf] }
 0x17b   : > { %13146 = vmatpush3.bf16.msra.mxu0 %v14450_v35  ;;  %v3351_v35 = vshll.u32 %v11685_v21, 16  ;;  %v3306_v30 = vsel %vm15286_vm5, %v3301_v19, %v3305_v41  ;;  %v16305_v18 = vrot.slane %v3389_v20, 5  ;;  %v3395_v1 = vrot.slane %v3393_v50, 4  ;;  %v14456_v19 = vld [vmem:[%s18177_s1 + $0x1f8] sm:$0xff]   ;;  %v16327_v47 = vld [vmem:[%s18177_s1 + $0x180] sm:$0xff]  }
 0x17c   : > { %13147 = vmatprep.subr.bf16.mxu0 %v14451_v25  ;;  %v11727_v55 = vcombine.low %v3296_v62, %v3306_v30  ;;  %v16308_v4 = vrot.slane %v3413_v16, 5  ;;  %v3419_v21 = vrot.slane %v3417_v54, 4  ;;  %v3386_v48 = vor.u32 %v3385_v3, %v3382_v24  ;;  %v11702_v16 = vld [vmem:[%s14750_s19 + $0x108] sm:$0xf]  ;;  %v11700_v24 = vld [vmem:[%s14750_s19 + $0xfc] sm:$0x1] }
 0x17d   : > { %v3353_v31 = vrot.slane %v3351_v35, 5  ;;  %v3399_v36 = vshll.u32 %v11691_v15, 16  ;;  %v3423_v0 = vshll.u32 %v11694_v10, 16  ;;  %v3396_v29 = vor.u32 %v3395_v1, %v16305_v18  ;;  %v11699_v35 = vld [vmem:[%s14750_s19 + $0xf8] sm:$0xf] }
 0x17e   : > { %13116 = vmatmul.mubr.bf16.gmra.mrb[4].mxu0 %v11723_v28  ;;  %v3362_v28 = vor.u32 %v3361_v14, %v3358_v8  ;;  %v3428_v37 = vshrl.u32 %v11695_v17, 16  ;;  %v3431_v33 = vshll.u32 %v11695_v17, 16  ;;  %v3420_v60 = vor.u32 %v3419_v21, %v16308_v4 }
 0x17f   : > { %13119 = vmatprep.mubr.bf16.mxu0 %v11724_v59  ;;  %13148 = vmatpush3.bf16.msra.mxu0 %v14451_v25  ;;  %v11692_v25 = vld [vmem:[%s14750_s19 + $0xd4] sm:$0xf]  ;;  %v3372_v59 = vor.u32 %v3371_v56, %v16278_v2  ;;  %v3354_v9 = vsel %vm15286_vm5, %v3349_v27, %v3353_v31  ;;  %v3387_v5 = vrot.slane %v3386_v48, 4  ;;  %v3401_v8 = vrot.slane %v3399_v36, 5  ;;  %v11697_v27 = vld [vmem:[%s14750_s19 + $0xec] sm:$0x1] }
 0x180   : > { %13149 = vmatprep.subr.bf16.mxu0 %v14452_v51  ;;  %v3404_v23 = vshrl.u32 %v11692_v25, 16  ;;  %v3407_v53 = vshll.u32 %v11692_v25, 16  ;;  %v3363_v44 = vrot.slane %v3362_v28, 4  ;;  %v11729_v41 = vcombine.low %v3344_v38, %v3354_v9 }
 0x181   : > { %v3373_v58 = vrot.slane %v3372_v59, 4  ;;  %v3452_v14 = vshrl.u32 %v11698_v45, 16  ;;  %v3455_v56 = vshll.u32 %v11698_v45, 16  ;;  %v3461_v62 = vshll.u32 %v11699_v35, 16 }
 0x182   : > { %v3406_v52 = vrot.slane %v3404_v23, 4  ;;  %v3409_v22 = vrot.slane %v3407_v53, 5  ;;  %v3368_v46 = vsel %vm15286_vm5, %v3363_v44, %v16278_v2  ;;  %v3465_v30 = vshrl.u32 %v11699_v35, 16 }
 0x183   : > { %13150 = vmatpush3.bf16.msra.mxu0 %v14452_v51  ;;  %v3377_v51 = vrot.slane %v3375_v6, 5  ;;  %v3397_v11 = vrot.slane %v3396_v29, 4  ;;  %v3425_v2 = vrot.slane %v3423_v0, 5  ;;  %v3430_v25 = vrot.slane %v3428_v37, 4  ;;  %v11701_v6 = vld [vmem:[%s14750_s19 + $0x104] sm:$0xf] }
 0x184   : > { %13151 = vmatprep.subr.bf16.mxu0 %v14453_v13  ;;  %v3433_v32 = vrot.slane %v3431_v33, 5  ;;  %v3421_v34 = vrot.slane %v3420_v60, 4  ;;  %v3454_v20 = vrot.slane %v3452_v14, 4  ;;  %v3457_v50 = vrot.slane %v3455_v56, 5  ;;  %v16358_v56 = vld [vmem:[%s14750_s19 + $0x24] sm:$0xf] }
 0x185   : > { %v3378_v39 = vsel %vm15286_vm5, %v3373_v58, %v3377_v51  ;;  %v3463_v23 = vrot.slane %v3461_v62, 5  ;;  %v3467_v53 = vrot.slane %v3465_v30, 4  ;;  %v3392_v54 = vsel %vm15286_vm5, %v3387_v5, %v16305_v18  ;;  %v16361_v62 = vld [vmem:[%s14750_s19 + $0x28] sm:$0xf] }
 0x186   : > { %13120 = vmatmul.mubr.bf16.gmra.mrb[8].mxu0 %v11725_v61  ;;  %v3437_v61 = vshll.u32 %v11696_v63, 16  ;;  %v3402_v28 = vsel %vm15286_vm5, %v3397_v11, %v3401_v8  ;;  %v3434_v59 = vor.u32 %v3433_v32, %v3430_v25  ;;  %v3447_v38 = vshll.u32 %v11697_v27, 16  ;;  %v16369_v25 = vld [vmem:[%s14750_s19 + $0x38] sm:$0xf]  ;;  %v16372_v32 = vld [vmem:[%s14750_s19 + $0x44] sm:$0xf] }
 0x187   : > { %13123 = vmatprep.mubr.bf16.mxu0 %v11726_v42  ;;  %13152 = vmatpush3.bf16.msra.mxu0 %v14453_v13  ;;  %v3410_v13 = vor.u32 %v3409_v22, %v3406_v52  ;;  %v3441_v42 = vshrl.u32 %v11696_v63, 16  ;;  %v3476_v15 = vshrl.u32 %v11701_v6, 16  ;;  %v3485_v9 = vshll.u32 %v11702_v16, 16  ;;  %v16389_v27 = vld [vmem:[%s14750_s19 + $0x58] sm:$0xf] }
 0x188   : > { %13153 = vmatprep.subr.bf16.mxu0 %v14454_v49  ;;  %v3439_v57 = vrot.slane %v3437_v61, 5  ;;  %v3489_v51 = vshrl.u32 %v11702_v16, 16  ;;  %v3458_v18 = vor.u32 %v3457_v50, %v3454_v20  ;;  %v3468_v1 = vor.u32 %v3467_v53, %v3463_v23  ;;  %v16395_v20 = vld [vmem:[%s14750_s19 + $0x68] sm:$0xf]  ;;  %v14465_v50 = vld [vmem:[%s18177_s1 + $0x190] sm:$0xff]   ;;  %v14468_v53 = vld [vmem:[%s18177_s1 + $0x198] sm:$0xff]  }
 0x189   : > { %v3411_v12 = vrot.slane %v3410_v13, 4  ;;  %v3443_v31 = vrot.slane %v3441_v42, 4  ;;  %v3471_v10 = vshll.u32 %v11700_v24, 16  ;;  %v11731_v52 = vcombine.low %v3392_v54, %v3402_v28  ;;  %v16408_v16 = vld [vmem:[%s14750_s19 + $0x74] sm:$0xf]  ;;  %v14471_v24 = vld [vmem:[%s18177_s1 + $0x1a0] sm:$0xff]  }
 0x18a   : > { %v3435_v21 = vrot.slane %v3434_v59, 4  ;;  %v3449_v44 = vrot.slane %v3447_v38, 5  ;;  %v3487_v48 = vrot.slane %v3485_v9, 5  ;;  %v3491_v36 = vrot.slane %v3489_v51, 4  ;;  %v16411_v54 = vld [vmem:[%s14750_s19 + $0x78] sm:$0xf] }
 0x18b   : > { %13154 = vmatpush3.bf16.msra.mxu0 %v14454_v49  ;;  %v11730_v49 = vcombine.low %v3368_v46, %v3378_v39  ;;  %v3416_v3 = vsel %vm15286_vm5, %v3411_v12, %v16308_v4  ;;  %v3478_v4 = vrot.slane %v3476_v15, 4  ;;  %v3459_v63 = vrot.slane %v3458_v18, 4  ;;  %v16375_v12 = vld [vmem:[%s14750_s19 + $0x48] sm:$0xf]  ;;  %v16414_v28 = vld [vmem:[%s14750_s19 + $0x84] sm:$0xf] }
 0x18c   : > { %13155 = vmatprep.subr.bf16.mxu0 %v14455_v43  ;;  %v3469_v0 = vrot.slane %v3468_v1, 4  ;;  %v3440_v29 = vsel %vm15286_vm5, %v3435_v21, %v3439_v57  ;;  %v3492_v45 = vor.u32 %v3491_v36, %v3487_v48  ;;  %v11840_v11 = vcombine.low %v16358_v56, %v16361_v62  ;;  %v16417_v59 = vld [vmem:[%s14750_s19 + $0x88] sm:$0xf]  ;;  %v16430_v38 = vld [vmem:[%s14750_s19 + $0x94] sm:$0xf] }
 0x18d   : > { %v3464_v13 = vsel %vm15286_vm5, %v3459_v63, %v3463_v23  ;;  %v16433_v15 = vld [vmem:[%s14750_s19 + $0x98] sm:$0xf]  ;;  %v16439_v9 = vld [vmem:[%s14750_s19 + $0xa8] sm:$0xf]  ;;  %v14477_v51 = vld [vmem:[%s18177_s1 + $0x1b0] sm:$0xff]  }
 0x18e   : > { %13124 = vmatmul.mubr.bf16.gmra.mrb[12].mxu0 %v11727_v55  ;;  %v3426_v55 = vsel %vm15286_vm5, %v3421_v34, %v3425_v2  ;;  %v3493_v39 = vrot.slane %v3492_v45, 4  ;;  %v16366_v2 = vld [vmem:[%s14750_s19 + $0x34] sm:$0xf]  ;;  %v11847_v18 = vcombine.low %v16430_v38, %v16433_v15  ;;  %v16458_v21 = vld [vmem:[%s14750_s19 + $0xc4] sm:$0xf]  ;;  %v3975_v45 = vshll.u32 %v16358_v56, 16 }
 0x18f   : > { %13127 = vmatprep.mubr.bf16.mxu0 %v11728_v26  ;;  %13156 = vmatpush3.bf16.msra.mxu0 %v14455_v43  ;;  %v3444_v26 = vor.u32 %v3443_v31, %v3439_v57  ;;  %v3479_v43 = vshll.u32 %v11701_v6, 16  ;;  %v11732_v22 = vcombine.low %v3416_v3, %v3426_v55  ;;  %v11841_v34 = vcombine.low %v16366_v2, %v16369_v25  ;;  %v14462_v31 = vld [vmem:[%s18177_s1 + $0x188] sm:$0xff]   ;;  %v16392_v6 = vld [vmem:[%s14750_s19 + $0x64] sm:$0xf]  ;;  %v16477_v36 = vld [vmem:[%s14750_s19 + $0xd8] sm:$0xf] }
 0x190   : > { %13157 = vmatprep.subr.bf16.mxu0 %v14456_v19  ;;  %v11842_v57 = vcombine.low %v16372_v32, %v16375_v12  ;;  %v11844_v23 = vcombine.low %v16392_v6, %v16395_v20  ;;  %v11845_v3 = vcombine.low %v16408_v16, %v16411_v54  ;;  %v11846_v55 = vcombine.low %v16414_v28, %v16417_v59  ;;  %v16480_v63 = vld [vmem:[%s14750_s19 + $0xe4] sm:$0xf] }
 0x191   : > { %v3445_v17 = vrot.slane %v3444_v26, 4  ;;  %v3481_v58 = vrot.slane %v3479_v43, 5  ;;  %v14474_v26 = vld [vmem:[%s18177_s1 + $0x1a8] sm:$0xff]   ;;  %v16436_v43 = vld [vmem:[%s14750_s19 + $0xa4] sm:$0xf] }
 0x192   : > { %v11848_v1 = vcombine.low %v16436_v43, %v16439_v9 }
 0x193   : > { %13158 = vmatpush3.bf16.msra.mxu0 %v14456_v19  ;;  %v3473_v19 = vrot.slane %v3471_v10, 5  ;;  %v3450_v37 = vsel %vm15286_vm5, %v3445_v17, %v3449_v44  ;;  %v3482_v33 = vor.u32 %v3481_v58, %v3478_v4  ;;  %v14480_v10 = vld [vmem:[%s18177_s1 + $0x1b8] sm:$0xff]   ;;  %v16461_v17 = vld [vmem:[%s14750_s19 + $0xc8] sm:$0xf]  ;;  %v16466_v44 = vld [vmem:[%s18177_s1 + $0x200] sm:$0xff]  }
 0x194   : > { %13191 = vmatprep.subr.bf16.mxu0 %v16327_v47  ;;  %v11733_v61 = vcombine.low %v3440_v29, %v3450_v37  ;;  %v11850_v58 = vcombine.low %v16458_v21, %v16461_v17  ;;  %v3981_v37 = vshrl.u32 %v16361_v62, 16 }
 0x195   : > { %v3474_v60 = vsel %vm15286_vm5, %v3469_v0, %v3473_v19  ;;  %v3483_v46 = vrot.slane %v3482_v33, 4  ;;  %v16483_v0 = vld [vmem:[%s14750_s19 + $0xe8] sm:$0xf]  ;;  %v11744_v33 = vld [vmem:[%s14750_s19 + $0x20] sm:$0x8] }
 0x196   : > { %13128 = vmatmul.mubr.bf16.gmra.mrb[16].mxu0 %v11729_v41  ;;  %v11703_v41 = vld [vmem:[%s14750_s19 + $0x10c] sm:$0x1]  ;;  %v11734_v42 = vcombine.low %v3464_v13, %v3474_v60  ;;  %v11852_v29 = vcombine.low %v16480_v63, %v16483_v0  ;;  %v3994_v13 = vshrl.u32 %v16366_v2, 16 }
 0x197   : > { %13131 = vmatprep.mubr.bf16.mxu0 %v11730_v49  ;;  %v3495_v35 = vshll.u32 %v11703_v41, 16  ;;  %v3488_v8 = vsel %vm15286_vm5, %v3483_v46, %v3487_v48  ;;  %v16386_v49 = vld [vmem:[%s14750_s19 + $0x54] sm:$0xf]  ;;  %v3972_v41 = vshrl.u32 %v16358_v56, 16  ;;  %v16500_v46 = vld [vmem:[%s14750_s19 + $0xf8] sm:$0xf] }
 0x198   : > { %v16474_v48 = vld [vmem:[%s14750_s19 + $0xd4] sm:$0xf]  ;;  %v3997_v56 = vshll.u32 %v16366_v2, 16 }
 0x199   : > { %v3497_v5 = vrot.slane %v3495_v35, 5  ;;  %v11851_v19 = vcombine.low %v16474_v48, %v16477_v36  ;;  %v3984_v35 = vshll.u32 %v16361_v62, 16  ;;  %v3974_v60 = vrot.slane %v3972_v41, 7 }
 0x19a   : > { %v4016_v62 = vshrl.u32 %v16372_v32, 16 }
 0x19b   : > { %v3498_v14 = vsel %vm15286_vm5, %v3493_v39, %v3497_v5  ;;  %v3983_v39 = vrot.slane %v3981_v37, 7  ;;  %v16503_v5 = vld [vmem:[%s14750_s19 + $0x104] sm:$0xf]  ;;  %v16533_v37 = vld [vmem:[%s14750_s19 + $0x118] sm:$0xf] }
 0x19c   : > { %v11735_v30 = vcombine.low %v3488_v8, %v3498_v14  ;;  %v16506_v8 = vld [vmem:[%s14750_s19 + $0x108] sm:$0xf]  ;;  %v3967_v14 = vshrl.u32 %v11744_v33, 16 }
 0x19d   : > { %v11854_v2 = vcombine.low %v16503_v5, %v16506_v8 }
 0x19e   : > { %13132 = vmatmul.mubr.bf16.gmra.mrb[20].mxu0 %v11731_v52  ;;  %v16452_v52 = vld [vmem:[%s14750_s19 + $0xb4] sm:$0xf] }
 0x19f   : > { %13135 = vmatprep.mubr.bf16.mxu0 %v11732_v22  ;;  %v16455_v22 = vld [vmem:[%s14750_s19 + $0xb8] sm:$0xf] }
 0x1a0   : > { %v11849_v4 = vcombine.low %v16452_v52, %v16455_v22 }
 0x1a6   : > { %13136 = vmatmul.mubr.bf16.gmra.mrb[24].mxu0 %v11733_v61  ;;  %v4003_v61 = vshrl.u32 %v16369_v25, 16 }
 0x1a7   : > { %13139 = vmatprep.mubr.bf16.mxu0 %v11734_v42  ;;  %v16497_v42 = vld [vmem:[%s14750_s19 + $0xf4] sm:$0xf] }
 0x1ae   : > { %13140 = vmatmul.mubr.bf16.gmra.mrb[28].mxu0 %v11735_v30  ;;  %v16510_v30 = vrot.slane %v3994_v13, 7  ;;  %v4069_v13 = vshrl.u32 %v16395_v20, 16 }
 0x1af   : > { %13159 = vmatprep.mubr.bf16.mxu0 %v11840_v11  ;;  %v4025_v11 = vshrl.u32 %v16375_v12, 16 }
 0x1b6   : > { %13160 = vmatmul.mubr.bf16.vlgmr.msra.gmra.mrb[0].mxu0 %v11841_v34  ;;  %v4038_v34 = vshrl.u32 %v16386_v49, 16 }
 0x1b7   : > { %13192 = vmatpush3.bf16.msra.mxu0 %v16327_v47  ;;  %13163 = vmatprep.mubr.bf16.mxu0 %v11842_v57  ;;  %v11843_v47 = vcombine.low %v16386_v49, %v16389_v27  ;;  %v11853_v57 = vcombine.low %v16497_v42, %v16500_v46 }
 0x1b8   : > { %13193 = vmatprep.subr.bf16.mxu0 %v14462_v31 }
 0x1bb   : > { %13194 = vmatpush3.bf16.msra.mxu0 %v14462_v31  ;;  %v4005_v31 = vrot.slane %v4003_v61, 7  ;;  %v4082_v61 = vshrl.u32 %v16408_v16, 16 }
 0x1bc   : > { %13195 = vmatprep.subr.bf16.mxu0 %v14465_v50 }
 0x1be   : > { %13164 = vmatmul.mubr.bf16.gmra.mrb[4].mxu0 %v11843_v47  ;;  %v4047_v47 = vshrl.u32 %v16389_v27, 16 }
 0x1bf   : > { %13167 = vmatprep.mubr.bf16.mxu0 %v11844_v23  ;;  %13196 = vmatpush3.bf16.msra.mxu0 %v14465_v50  ;;  %v4006_v50 = vshll.u32 %v16369_v25, 16  ;;  %v11792_v23 = vrot.slane %v3967_v14, 11  ;;  %v11750_v25 = vld [vmem:[%s14750_s19 + $0x40] sm:$0x8] }
 0x1c0   : > { %13197 = vmatprep.subr.bf16.mxu0 %v14468_v53  ;;  %v4049_v41 = vrot.slane %v4047_v47, 7  ;;  %v4001_v47 = vrot.slane %v16510_v30, 4 }
 0x1c3   : > { %13198 = vmatpush3.bf16.msra.mxu0 %v14468_v53  ;;  %v3977_v53 = vor.u32 %v3975_v45, %v3974_v60 }
 0x1c4   : > { %13199 = vmatprep.subr.bf16.mxu0 %v14471_v24 }
 0x1c5   : > { %v3978_v33 = vsel %vm14823_vm2, %v11792_v23, %v3977_v53 }
 0x1c6   : > { %13168 = vmatmul.mubr.bf16.gmra.mrb[8].mxu0 %v11845_v3  ;;  %v3986_v3 = vor.u32 %v3984_v35, %v3983_v39  ;;  %v4011_v35 = vshrl.u32 %v11750_v25, 16  ;;  %v4094_v25 = vshll.u32 %v16411_v54, 16  ;;  %v4113_v39 = vshrl.u32 %v16417_v59, 16 }
 0x1c7   : > { %13171 = vmatprep.mubr.bf16.mxu0 %v11846_v55  ;;  %13200 = vmatpush3.bf16.msra.mxu0 %v14471_v24  ;;  %v3979_v24 = vrot.slane %v3974_v60, 4  ;;  %v11747_v55 = vld [vmem:[%s14750_s19 + $0x30] sm:$0x8]  ;;  %v4072_v60 = vshll.u32 %v16395_v20, 16 }
 0x1c8   : > { %13201 = vmatprep.subr.bf16.mxu0 %v14474_v26  ;;  %v11794_v20 = vrot.slane %v4011_v35, 11 }
 0x1c9   : > { %v3987_v45 = vsel %vm14823_vm2, %v3979_v24, %v3986_v3  ;;  %v11753_v3 = vld [vmem:[%s14750_s19 + $0x50] sm:$0x8] }
 0x1cb   : > { %13202 = vmatpush3.bf16.msra.mxu0 %v14474_v26  ;;  %v4018_v26 = vrot.slane %v4016_v62, 7 }
 0x1cc   : > { %13203 = vmatprep.subr.bf16.mxu0 %v14477_v51 }
 0x1cd   : > { %v4023_v53 = vrot.slane %v4018_v26, 4 }
 0x1ce   : > { %13172 = vmatmul.mubr.bf16.gmra.mrb[12].mxu0 %v11847_v18  ;;  %v4028_v18 = vshll.u32 %v16375_v12, 16  ;;  %v4063_v12 = vshll.u32 %v16392_v6, 16 }
 0x1cf   : > { %13175 = vmatprep.mubr.bf16.mxu0 %v11848_v1  ;;  %13204 = vmatpush3.bf16.msra.mxu0 %v14477_v51  ;;  %v4019_v51 = vshll.u32 %v16372_v32, 16  ;;  %v3989_v32 = vshrl.u32 %v11747_v55, 16  ;;  %v4071_v55 = vrot.slane %v4069_v13, 7  ;;  %v16556_v1 = vrot.slane %v4082_v61, 7  ;;  %v16580_v13 = vld [vmem:[%s18179_s3 + $0x48] sm:$0xff]  }
 0x1d0   : > { %13205 = vmatprep.subr.bf16.mxu0 %v14480_v10 }
 0x1d1   : > { %v4021_v23 = vor.u32 %v4019_v51, %v4018_v26  ;;  %v4126_v26 = vshrl.u32 %v16430_v38, 16 }
 0x1d3   : > { %13206 = vmatpush3.bf16.msra.mxu0 %v14480_v10  ;;  %v4027_v10 = vrot.slane %v4025_v11, 7  ;;  %v3999_v11 = vor.u32 %v3997_v56, %v16510_v30  ;;  %v4107_v30 = vshll.u32 %v16414_v28, 16 }
 0x1d4   : > { %13239 = vmatprep.subr.bf16.mxu0 %v16466_v44 }
 0x1d5   : > { %v4030_v24 = vor.u32 %v4028_v18, %v4027_v10  ;;  %v4033_v10 = vshrl.u32 %v11753_v3, 16  ;;  %v14482_v3 = vld [vmem:[%s18177_s1 + $0x208] sm:$0xff]  }
 0x1d6   : > { %13176 = vmatmul.mubr.bf16.gmra.mrb[16].mxu0 %v11849_v4  ;;  %v16525_v4 = vrot.slane %v4038_v34, 7  ;;  %v11864_v34 = vcombine.low %v3978_v33, %v3987_v45  ;;  %v4022_v33 = vsel %vm14823_vm2, %v11794_v20, %v4021_v23 }
 0x1d7   : > { %13179 = vmatprep.mubr.bf16.mxu0 %v11850_v58  ;;  %v11756_v58 = vld [vmem:[%s14750_s19 + $0x60] sm:$0x8]  ;;  %v4031_v45 = vsel %vm14823_vm2, %v4023_v53, %v4030_v24  ;;  %v11795_v20 = vrot.slane %v4033_v10, 11  ;;  %v18280_v53 = vshll.u32 %v16389_v27, 16  ;;  %v16606_v10 = vld [vmem:[%s18179_s3 + $0x50] sm:$0xff]  }
 0x1d8   : > { %v4055_v35 = vshrl.u32 %v11756_v58, 16  ;;  %v4157_v58 = vshrl.u32 %v16439_v9, 16  ;;  %v4045_v23 = vrot.slane %v16525_v4, 4 }
 0x1d9   : > { %v4052_v24 = vor.u32 %v18280_v53, %v4049_v41  ;;  %v4170_v41 = vshrl.u32 %v16452_v52, 16 }
 0x1de   : > { %13180 = vmatmul.mubr.bf16.gmra.mrb[20].mxu0 %v11851_v19  ;;  %v4060_v19 = vshrl.u32 %v16392_v6, 16  ;;  %v4091_v6 = vshrl.u32 %v16411_v54, 16  ;;  %v4195_v54 = vshll.u32 %v16458_v21, 16 }
 0x1df   : > { %13183 = vmatprep.mubr.bf16.mxu0 %v11852_v29  ;;  %v16530_v29 = vld [vmem:[%s14750_s19 + $0x114] sm:$0xf] }
 0x1e0   : > { %v16544_v14 = vrot.slane %v4060_v19, 7  ;;  %v11855_v62 = vcombine.low %v16530_v29, %v16533_v37  ;;  %v4104_v19 = vshrl.u32 %v16414_v28, 16  ;;  %v16558_v56 = vrot.slane %v4091_v6, 7  ;;  %v11768_v28 = vld [vmem:[%s14750_s19 + $0xa0] sm:$0x8] }
 0x1e1   : > { %v4115_v6 = vrot.slane %v4113_v39, 7  ;;  %v11866_v39 = vcombine.low %v4022_v33, %v4031_v45  ;;  %v4179_v33 = vshrl.u32 %v16455_v22, 16  ;;  %v11762_v45 = vld [vmem:[%s14750_s19 + $0x80] sm:$0x8] }
 0x1e2   : > { %v16583_v61 = vrot.slane %v4104_v19, 7  ;;  %v11796_v19 = vrot.slane %v4055_v35, 11 }
 0x1e6   : > { %13184 = vmatmul.mubr.bf16.gmra.mrb[24].mxu0 %v11853_v57  ;;  %v11793_v57 = vrot.slane %v3989_v32, 11  ;;  %v4129_v32 = vshll.u32 %v16430_v38, 16  ;;  %v14486_v38 = vld [vmem:[%s18177_s1 + $0x228] sm:$0xff]  }
 0x1e7   : > { %13187 = vmatprep.mubr.bf16.mxu0 %v11854_v2  ;;  %v4008_v2 = vor.u32 %v4006_v50, %v4005_v31  ;;  %v4116_v31 = vshll.u32 %v16417_v59, 16  ;;  %v16565_v50 = vld [vmem:[%s18179_s3 + $0x40] sm:$0xff]  }
 0x1e8   : > { %v4000_v51 = vsel %vm14823_vm2, %v11793_v57, %v3999_v11  ;;  %13767 = vmatprep.subr.bf16.mxu1 %v16565_v50  ;;  %v4138_v11 = vshll.u32 %v16433_v15, 16 }
 0x1e9   : > { %v4009_v18 = vsel %vm14823_vm2, %v4001_v47, %v4008_v2  ;;  %13775 = vmatpush3.bf16.msra.mxu1 %v16565_v50  ;;  %v18279_v47 = vshll.u32 %v16386_v49, 16  ;;  %v4067_v49 = vrot.slane %v16544_v14, 4 }
 0x1ea   : > { %v11865_v57 = vcombine.low %v4000_v51, %v4009_v18  ;;  %13768 = vmatprep.subr.bf16.mxu1 %v16580_v13  ;;  %v4065_v51 = vor.u32 %v4063_v12, %v16544_v14  ;;  %v4074_v18 = vor.u32 %v4072_v60, %v4071_v55  ;;  %v4151_v60 = vshll.u32 %v16436_v43, 16 }
 0x1eb   : > { %v4043_v2 = vor.u32 %v18279_v47, %v16525_v4  ;;  %v11759_v47 = vld [vmem:[%s14750_s19 + $0x70] sm:$0x8]  ;;  %v16608_v4 = vrot.slane %v4126_v26, 7  ;;  %v4160_v14 = vshll.u32 %v16439_v9, 16  ;;  %v16622_v26 = vrot.slane %v4157_v58, 7 }
 0x1ec   : > { %v4075_v58 = vsel %vm14823_vm2, %v4067_v49, %v4074_v18  ;;  %v16637_v55 = vrot.slane %v4170_v41, 7  ;;  %v18281_v49 = vshll.u32 %v16408_v16, 16  ;;  %v4118_v16 = vor.u32 %v4116_v31, %v4115_v6 }
 0x1ed   : > { %13776 = vmatpush3.bf16.msra.mxu1 %v16580_v13  ;;  %v4044_v35 = vsel %vm14823_vm2, %v11795_v20, %v4043_v2  ;;  %v16639_v2 = vrot.slane %v4179_v33, 7  ;;  %v4192_v20 = vshrl.u32 %v16458_v21, 16  ;;  %v4089_v33 = vrot.slane %v16556_v1, 4 }
 0x1ee   : > { %13188 = vmatmul.mubr.bf16.gmra.mrb[28].mxu0 %v11855_v62  ;;  %v4135_v62 = vshrl.u32 %v16433_v15, 16  ;;  %13769 = vmatprep.subr.bf16.mxu1 %v16606_v10  ;;  %v4087_v18 = vor.u32 %v18281_v49, %v16556_v1  ;;  %v14484_v1 = vld [vmem:[%s18177_s1 + $0x218] sm:$0xff]   ;;  %v4226_v31 = vshll.u32 %v16477_v36, 16  ;;  %v4236_v6 = vshrl.u32 %v16480_v63, 16 }
 0x1ef   : > { %13207 = vmatprep.mubr.bf16.mxu0 %v11864_v34  ;;  %v4148_v34 = vshrl.u32 %v16436_v43, 16  ;;  %v4258_v49 = vshrl.u32 %v16497_v42, 16  ;;  %v4162_v15 = vor.u32 %v4160_v14, %v16622_v26  ;;  %v4270_v43 = vshll.u32 %v16500_v46, 16  ;;  %v11777_v14 = vld [vmem:[%s14750_s19 + $0xd0] sm:$0x8] }
 0x1f0   : > { %v16610_v27 = vrot.slane %v4135_v62, 7  ;;  %v4053_v62 = vsel %vm14823_vm2, %v4045_v23, %v4052_v24  ;;  %v4201_v23 = vshrl.u32 %v16461_v17, 16  ;;  %v4214_v24 = vshrl.u32 %v16474_v48, 16 }
 0x1f1   : > { %v16616_v12 = vrot.slane %v4148_v34, 7  ;;  %v4077_v34 = vshrl.u32 %v11759_v47, 16  ;;  %13777 = vmatpush3.bf16.msra.mxu1 %v16606_v10 }
 0x1f3   : > { %v11797_v41 = vrot.slane %v4077_v34, 11  ;;  %v16663_v34 = vrot.slane %v4192_v20, 7 }
 0x1f5   : > { %v4088_v21 = vsel %vm14823_vm2, %v11797_v41, %v4087_v18  ;;  %v4261_v18 = vshll.u32 %v16497_v42, 16  ;;  %v11889_v42 = vld [vmem:[%s14750_s19 + $0x28] sm:$0xf] }
 0x1f6   : > { %13208 = vmatmul.mubr.bf16.vlgmr.msra.gmra.mrb[0].mxu0 %v11865_v57  ;;  %v4066_v57 = vsel %vm14823_vm2, %v11796_v19, %v4065_v51  ;;  %v4223_v19 = vshrl.u32 %v16477_v36, 16  ;;  %v11867_v51 = vcombine.low %v4044_v35, %v4053_v62  ;;  %v4109_v35 = vor.u32 %v4107_v30, %v16583_v61 }
 0x1f7   : > { %13240 = vmatpush3.bf16.msra.mxu0 %v16466_v44  ;;  %13211 = vmatprep.mubr.bf16.mxu0 %v11866_v39  ;;  %v14483_v44 = vld [vmem:[%s18177_s1 + $0x210] sm:$0xff]   ;;  %v4099_v39 = vshrl.u32 %v11762_v45, 16  ;;  %v11868_v47 = vcombine.low %v4066_v57, %v4075_v58  ;;  %v4096_v45 = vor.u32 %v4094_v25, %v16558_v56  ;;  %v4111_v62 = vrot.slane %v16583_v61, 4 }
 0x1f8   : > { %13241 = vmatprep.subr.bf16.mxu0 %v14482_v3  ;;  %v4204_v25 = vshll.u32 %v16461_v17, 16  ;;  %v4217_v56 = vshll.u32 %v16474_v48, 16  ;;  %v16669_v30 = vrot.slane %v4201_v23, 7  ;;  %v16671_v61 = vrot.slane %v4214_v24, 7 }
 0x1f9   : > { %v11798_v53 = vrot.slane %v4099_v39, 11  ;;  %v16673_v59 = vrot.slane %v4223_v19, 7  ;;  %v4097_v57 = vsel %vm14823_vm2, %v4089_v33, %v4096_v45  ;;  %v4239_v39 = vshll.u32 %v16480_v63, 16  ;;  %v14485_v19 = vld [vmem:[%s18177_s1 + $0x220] sm:$0xff]  }
 0x1fa   : > { %v4119_v23 = vsel %vm14823_vm2, %v4111_v62, %v4118_v16  ;;  %v4143_v24 = vshrl.u32 %v11768_v28, 16  ;;  %v11869_v41 = vcombine.low %v4088_v21, %v4097_v57  ;;  %v4133_v33 = vrot.slane %v16608_v4, 4 }
 0x1fb   : > { %13242 = vmatpush3.bf16.msra.mxu0 %v14482_v3  ;;  %v11765_v3 = vld [vmem:[%s14750_s19 + $0x90] sm:$0x8]  ;;  %v4110_v20 = vsel %vm14823_vm2, %v11798_v53, %v4109_v35  ;;  %v4267_v53 = vshrl.u32 %v16500_v46, 16  ;;  %v4140_v45 = vor.u32 %v4138_v11, %v16610_v27  ;;  %v11774_v35 = vld [vmem:[%s14750_s19 + $0xc0] sm:$0x8]  ;;  %v4153_v28 = vor.u32 %v4151_v60, %v16616_v12 }
 0x1fc   : > { %13243 = vmatprep.subr.bf16.mxu0 %v14483_v44  ;;  %v4121_v58 = vshrl.u32 %v11765_v3, 16  ;;  %v11870_v62 = vcombine.low %v4110_v20, %v4119_v23  ;;  %v4131_v3 = vor.u32 %v4129_v32, %v16608_v4  ;;  %v11800_v21 = vrot.slane %v4143_v24, 11  ;;  %v11780_v24 = vld [vmem:[%s14750_s19 + $0xe0] sm:$0x8] }
 0x1fd   : > { %v4155_v57 = vrot.slane %v16616_v12, 4  ;;  %v16713_v32 = vrot.slane %v4236_v6, 7  ;;  %v4187_v27 = vshrl.u32 %v11774_v35, 16  ;;  %v16716_v60 = vrot.slane %v4258_v49, 7 }
 0x1fe   : > { %13212 = vmatmul.mubr.bf16.gmra.mrb[4].mxu0 %v11867_v51  ;;  %v4245_v51 = vshrl.u32 %v16483_v0, 16  ;;  %v11799_v16 = vrot.slane %v4121_v58, 11  ;;  %v4269_v12 = vrot.slane %v4267_v53, 7  ;;  %v4141_v9 = vsel %vm14823_vm2, %v4133_v33, %v4140_v45 }
 0x1ff   : > { %13215 = vmatprep.mubr.bf16.mxu0 %v11868_v47  ;;  %13244 = vmatpush3.bf16.msra.mxu0 %v14483_v44  ;;  %v4248_v44 = vshll.u32 %v16483_v0, 16  ;;  %v11771_v47 = vld [vmem:[%s14750_s19 + $0xb0] sm:$0x8]  ;;  %v18282_v6 = vshll.u32 %v16452_v52, 16  ;;  %v4177_v58 = vrot.slane %v16637_v55, 4  ;;  %v18283_v20 = vshll.u32 %v16455_v22, 16 }
 0x200   : > { %13245 = vmatprep.subr.bf16.mxu0 %v14484_v1  ;;  %v4165_v11 = vshrl.u32 %v11771_v47, 16  ;;  %v4247_v4 = vrot.slane %v4245_v51, 7  ;;  %v4132_v26 = vsel %vm14823_vm2, %v11799_v16, %v4131_v3  ;;  %v4154_v51 = vsel %vm14823_vm2, %v11800_v21, %v4153_v28  ;;  %v11783_v52 = vld [vmem:[%s14750_s19 + $0xf0] sm:$0x8] }
 0x201   : > { %v4175_v46 = vor.u32 %v18282_v6, %v16637_v55  ;;  %v4184_v23 = vor.u32 %v18283_v20, %v16639_v2  ;;  %v4163_v49 = vsel %vm14823_vm2, %v4155_v57, %v4162_v15  ;;  %v4197_v53 = vor.u32 %v4195_v54, %v16663_v34  ;;  %v14487_v55 = vld [vmem:[%s18177_s1 + $0x230] sm:$0xff]  }
 0x202   : > { %v11801_v47 = vrot.slane %v4165_v11, 11  ;;  %v4199_v22 = vrot.slane %v16663_v34, 4  ;;  %v4206_v2 = vor.u32 %v4204_v25, %v16669_v30  ;;  %v4283_v33 = vshll.u32 %v16503_v5, 16 }
 0x203   : > { %13246 = vmatpush3.bf16.msra.mxu0 %v14484_v1  ;;  %v4280_v1 = vshrl.u32 %v16503_v5, 16  ;;  %v4289_v45 = vshrl.u32 %v16506_v8, 16  ;;  %v11871_v35 = vcombine.low %v4132_v26, %v4141_v9  ;;  %v4231_v54 = vshrl.u32 %v11780_v24, 16  ;;  %v11789_v26 = vld [vmem:[%s14750_s19 + $0x110] sm:$0x8] }
 0x204   : > { %13247 = vmatprep.subr.bf16.mxu0 %v14485_v19  ;;  %v4302_v16 = vshrl.u32 %v16530_v29, 16  ;;  %v11872_v3 = vcombine.low %v4154_v51, %v4163_v49  ;;  %v4253_v28 = vshrl.u32 %v11783_v52, 16  ;;  %v4176_v34 = vsel %vm14823_vm2, %v11801_v47, %v4175_v46  ;;  %v11891_v24 = vld [vmem:[%s14750_s19 + $0x34] sm:$0xf] }
 0x205   : > { %v4185_v17 = vsel %vm14823_vm2, %v4177_v58, %v4184_v23  ;;  %v4219_v5 = vor.u32 %v4217_v56, %v16671_v61  ;;  %v4221_v25 = vrot.slane %v16671_v61, 4  ;;  %v4207_v21 = vsel %vm14823_vm2, %v4199_v22, %v4206_v2  ;;  %v11894_v2 = vld [vmem:[%s14750_s19 + $0x44] sm:$0xf] }
 0x206   : > { %13216 = vmatmul.mubr.bf16.gmra.mrb[8].mxu0 %v11869_v41  ;;  %v11802_v41 = vrot.slane %v4187_v27, 11  ;;  %v4228_v48 = vor.u32 %v4226_v31, %v16673_v59  ;;  %v11804_v56 = vrot.slane %v4231_v54, 11  ;;  %v4241_v61 = vor.u32 %v4239_v39, %v16713_v32  ;;  %v11786_v39 = vld [vmem:[%s14750_s19 + $0x100] sm:$0x8] }
 0x207   : > { %13219 = vmatprep.mubr.bf16.mxu0 %v11870_v62  ;;  %13248 = vmatpush3.bf16.msra.mxu0 %v14485_v19  ;;  %v4209_v19 = vshrl.u32 %v11777_v14, 16  ;;  %v4292_v62 = vshll.u32 %v16506_v8, 16  ;;  %v14488_v8 = vld [vmem:[%s18177_s1 + $0x238] sm:$0xff]   ;;  %v4243_v15 = vrot.slane %v16713_v32, 4  ;;  %v4250_v11 = vor.u32 %v4248_v44, %v4247_v4  ;;  %v11888_v32 = vld [vmem:[%s14750_s19 + $0x24] sm:$0xf] }
 0x208   : > { %13249 = vmatprep.subr.bf16.mxu0 %v14486_v38  ;;  %v4198_v30 = vsel %vm14823_vm2, %v11802_v41, %v4197_v53  ;;  %v4263_v36 = vor.u32 %v4261_v18, %v16716_v60  ;;  %v4265_v59 = vrot.slane %v16716_v60, 4  ;;  %v4272_v31 = vor.u32 %v4270_v43, %v4269_v12 }
 0x209   : > { %v11803_v57 = vrot.slane %v4209_v19, 11  ;;  %v4282_v27 = vrot.slane %v4280_v1, 7  ;;  %v4305_v63 = vshll.u32 %v16530_v29, 16  ;;  %v4291_v0 = vrot.slane %v4289_v45, 7 }
 0x20a   : > { %v4311_v44 = vshrl.u32 %v16533_v37, 16  ;;  %v11873_v4 = vcombine.low %v4176_v34, %v4185_v17  ;;  %v4229_v9 = vsel %vm14823_vm2, %v4221_v25, %v4228_v48  ;;  %v11874_v18 = vcombine.low %v4198_v30, %v4207_v21 }
 0x20b   : > { %13250 = vmatpush3.bf16.msra.mxu0 %v14486_v38  ;;  %v11805_v38 = vrot.slane %v4253_v28, 11  ;;  %v4220_v43 = vsel %vm14823_vm2, %v11803_v57, %v4219_v5  ;;  %v4242_v29 = vsel %vm14823_vm2, %v11804_v56, %v4241_v61  ;;  %v4251_v60 = vsel %vm14823_vm2, %v4243_v15, %v4250_v11  ;;  %v11890_v5 = vld [vmem:[%s14750_s19 + $0x2c] sm:$0x1] }
 0x20c   : > { %13251 = vmatprep.subr.bf16.mxu0 %v14487_v55  ;;  %v4273_v1 = vsel %vm14823_vm2, %v4265_v59, %v4272_v31  ;;  %v4275_v14 = vshrl.u32 %v11786_v39, 16  ;;  %v4979_v6 = vshrl.u32 %v11888_v32, 16  ;;  %v4314_v46 = vshll.u32 %v16533_v37, 16  ;;  %v11892_v37 = vld [vmem:[%s14750_s19 + $0x38] sm:$0xf] }
 0x20d   : > { %v4264_v12 = vsel %vm14823_vm2, %v11805_v38, %v4263_v36  ;;  %v4982_v58 = vshll.u32 %v11888_v32, 16  ;;  %v4988_v20 = vshll.u32 %v11889_v42, 16  ;;  %v4992_v23 = vshrl.u32 %v11889_v42, 16  ;;  %v11897_v38 = vld [vmem:[%s14750_s19 + $0x54] sm:$0xf] }
 0x20e   : > { %13220 = vmatmul.mubr.bf16.gmra.mrb[12].mxu0 %v11871_v35  ;;  %v4304_v51 = vrot.slane %v4302_v16, 7  ;;  %v4313_v49 = vrot.slane %v4311_v44, 7  ;;  %v11875_v47 = vcombine.low %v4220_v43, %v4229_v9  ;;  %v11876_v53 = vcombine.low %v4242_v29, %v4251_v60  ;;  %v11893_v39 = vld [vmem:[%s14750_s19 + $0x3c] sm:$0x1] }
 0x20f   : > { %13223 = vmatprep.mubr.bf16.mxu0 %v11872_v3  ;;  %13252 = vmatpush3.bf16.msra.mxu0 %v14487_v55  ;;  %v16798_v52 = vcombine.low %v4264_v12, %v4273_v1  ;;  %v4285_v55 = vor.u32 %v4283_v33, %v4282_v27  ;;  %v4287_v41 = vrot.slane %v4282_v27, 4  ;;  %v4294_v22 = vor.u32 %v4292_v62, %v4291_v0  ;;  %v11895_v3 = vld [vmem:[%s14750_s19 + $0x48] sm:$0xf]  ;;  %v11896_v12 = vld [vmem:[%s14750_s19 + $0x4c] sm:$0x1] }
 0x210   : > { %13253 = vmatprep.subr.bf16.mxu0 %v14488_v8  ;;  %v11806_v19 = vrot.slane %v4275_v14, 11  ;;  %v4297_v45 = vshrl.u32 %v11789_v26, 16  ;;  %v4981_v35 = vrot.slane %v4979_v6, 4  ;;  %v5003_v54 = vshrl.u32 %v11891_v24, 16 }
 0x211   : > { %v4984_v16 = vrot.slane %v4982_v58, 5  ;;  %v16803_v28 = vrot.slane %v4988_v20, 5  ;;  %v4994_v34 = vrot.slane %v4992_v23, 4  ;;  %v5006_v17 = vshll.u32 %v11891_v24, 16  ;;  %v11900_v20 = vld [vmem:[%s14750_s19 + $0x64] sm:$0xf] }
 0x212   : > { %v5012_v25 = vshll.u32 %v11892_v37, 16  ;;  %v5027_v33 = vshrl.u32 %v11894_v2, 16  ;;  %v5030_v62 = vshll.u32 %v11894_v2, 16  ;;  %v16806_v30 = vor.u32 %v4305_v63, %v4304_v51  ;;  %v11898_v63 = vld [vmem:[%s14750_s19 + $0x58] sm:$0xf] }
 0x213   : > { %13254 = vmatpush3.bf16.msra.mxu0 %v14488_v8  ;;  %v5016_v8 = vshrl.u32 %v11892_v37, 16  ;;  %v4309_v21 = vrot.slane %v4304_v51, 4  ;;  %v5036_v57 = vshll.u32 %v11895_v3, 16  ;;  %v5040_v48 = vshrl.u32 %v11895_v3, 16  ;;  %v11899_v37 = vld [vmem:[%s14750_s19 + $0x5c] sm:$0x1] }
 0x214   : > { %13287 = vmatprep.subr.bf16.mxu0 %v16565_v50  ;;  %v4286_v56 = vsel %vm14823_vm2, %v11806_v19, %v4285_v55  ;;  %v4295_v61 = vsel %vm14823_vm2, %v4287_v41, %v4294_v22  ;;  %v4316_v15 = vor.u32 %v4314_v46, %v4313_v49  ;;  %v5005_v11 = vrot.slane %v5003_v54, 4 }
 0x215   : > { %v4985_v36 = vor.u32 %v4984_v16, %v4981_v35  ;;  %v4995_v59 = vor.u32 %v4994_v34, %v16803_v28  ;;  %v4998_v31 = vshll.u32 %v11890_v5, 16  ;;  %v5008_v27 = vrot.slane %v5006_v17, 5 }
 0x216   : > { %13224 = vmatmul.mubr.bf16.gmra.mrb[16].mxu0 %v11873_v4  ;;  %v16816_v32 = vrot.slane %v5012_v25, 5  ;;  %v5018_v0 = vrot.slane %v5016_v8, 4  ;;  %v5029_v44 = vrot.slane %v5027_v33, 4  ;;  %v5032_v4 = vrot.slane %v5030_v62, 5  ;;  %v11903_v33 = vld [vmem:[%s14750_s19 + $0x74] sm:$0xf] }
 0x217   : > { %13227 = vmatprep.mubr.bf16.mxu0 %v11874_v18  ;;  %v16818_v9 = vrot.slane %v5036_v57, 5  ;;  %v5042_v42 = vrot.slane %v5040_v48, 4  ;;  %v5051_v18 = vshrl.u32 %v11897_v38, 16  ;;  %v5054_v43 = vshll.u32 %v11897_v38, 16 }
 0x218   : > { %v11807_v29 = vrot.slane %v4297_v45, 11  ;;  %v4317_v60 = vsel %vm14823_vm2, %v4309_v21, %v4316_v15  ;;  %v5060_v1 = vshll.u32 %v11898_v63, 16  ;;  %v5064_v14 = vshrl.u32 %v11898_v63, 16  ;;  %v11902_v15 = vld [vmem:[%s14750_s19 + $0x6c] sm:$0x1] }
 0x219   : > { %v11878_v26 = vcombine.low %v4286_v56, %v4295_v61  ;;  %v4986_v6 = vrot.slane %v4985_v36, 4  ;;  %v5000_v46 = vrot.slane %v4998_v31, 5  ;;  %v5022_v58 = vshll.u32 %v11893_v39, 16  ;;  %v11904_v61 = vld [vmem:[%s14750_s19 + $0x78] sm:$0xf] }
 0x21a   : > { %v4996_v23 = vrot.slane %v4995_v59, 4  ;;  %v5009_v24 = vor.u32 %v5008_v27, %v5005_v11  ;;  %v5019_v51 = vor.u32 %v5018_v0, %v16816_v32  ;;  %v5033_v49 = vor.u32 %v5032_v4, %v5029_v44 }
 0x21b   : > { %v5046_v55 = vshll.u32 %v11896_v12, 16  ;;  %v5053_v41 = vrot.slane %v5051_v18, 4  ;;  %v5056_v22 = vrot.slane %v5054_v43, 5  ;;  %v16828_v2 = vrot.slane %v5060_v1, 5  ;;  %v11907_v18 = vld [vmem:[%s14750_s19 + $0x88] sm:$0xf] }
 0x21c   : > { %v5066_v19 = vrot.slane %v5064_v14, 4  ;;  %v5075_v45 = vshrl.u32 %v11900_v20, 16  ;;  %v5078_v35 = vshll.u32 %v11900_v20, 16  ;;  %v4308_v54 = vsel %vm14823_vm2, %v11807_v29, %v16806_v30 }
 0x21d   : > { %v5024_v3 = vrot.slane %v5022_v58, 5  ;;  %v4991_v17 = vsel %vm15286_vm5, %v4986_v6, %v16803_v28  ;;  %v5001_v5 = vsel %vm15286_vm5, %v4996_v23, %v5000_v46  ;;  %v5010_v25 = vrot.slane %v5009_v24, 4 }
 0x21e   : > { %13228 = vmatmul.mubr.bf16.gmra.mrb[20].mxu0 %v11875_v47  ;;  %v11901_v47 = vld [vmem:[%s14750_s19 + $0x68] sm:$0xf]  ;;  %v5020_v8 = vrot.slane %v5019_v51, 4  ;;  %v5034_v62 = vrot.slane %v5033_v49, 4  ;;  %v5048_v30 = vrot.slane %v5046_v55, 5  ;;  %v5070_v21 = vshll.u32 %v11899_v37, 16 }
 0x21f   : > { %13231 = vmatprep.mubr.bf16.mxu0 %v11876_v53  ;;  %v5043_v53 = vor.u32 %v5042_v42, %v16818_v9  ;;  %v5084_v16 = vshll.u32 %v11901_v47, 16  ;;  %v5088_v34 = vshrl.u32 %v11901_v47, 16  ;;  %v5057_v57 = vor.u32 %v5056_v22, %v5053_v41  ;;  %v11906_v42 = vld [vmem:[%s14750_s19 + $0x84] sm:$0xf]  ;;  %v11908_v41 = vld [vmem:[%s14750_s19 + $0x8c] sm:$0x1] }
 0x220   : > { %v5067_v48 = vor.u32 %v5066_v19, %v16828_v2  ;;  %v5077_v56 = vrot.slane %v5075_v45, 4  ;;  %v5080_v28 = vrot.slane %v5078_v35, 5  ;;  %v5099_v36 = vshrl.u32 %v11903_v33, 16  ;;  %v11909_v22 = vld [vmem:[%s14750_s19 + $0x94] sm:$0xf] }
 0x221   : > { %v5044_v40 = vrot.slane %v5043_v53, 4  ;;  %v16843_v11 = vrot.slane %v5084_v16, 5  ;;  %v5090_v38 = vrot.slane %v5088_v34, 4  ;;  %v5102_v59 = vshll.u32 %v11903_v33, 16 }
 0x222   : > { %v11952_v31 = vcombine.low %v4991_v17, %v5001_v5  ;;  %v5015_v27 = vsel %vm15286_vm5, %v5010_v25, %v16816_v32  ;;  %v5025_v63 = vsel %vm15286_vm5, %v5020_v8, %v5024_v3  ;;  %v5039_v39 = vsel %vm15286_vm5, %v5034_v62, %v16818_v9  ;;  %v11912_v3 = vld [vmem:[%s14750_s19 + $0xa4] sm:$0xf] }
 0x223   : > { %v5049_v0 = vsel %vm15286_vm5, %v5044_v40, %v5048_v30  ;;  %v5108_v44 = vshll.u32 %v11904_v61, 16  ;;  %v5112_v4 = vshrl.u32 %v11904_v61, 16  ;;  %v16857_v43 = vrot.slane %v5057_v57, 4 }
 0x224   : > { %v16859_v29 = vrot.slane %v5070_v21, 5  ;;  %v5081_v32 = vor.u32 %v5080_v28, %v5077_v56  ;;  %v16861_v12 = vrot.slane %v5067_v48, 4  ;;  %v5091_v1 = vor.u32 %v5090_v38, %v16843_v11 }
 0x225   : > { %v5101_v14 = vrot.slane %v5099_v36, 4  ;;  %v5104_v9 = vrot.slane %v5102_v59, 5  ;;  %v5123_v6 = vshrl.u32 %v11906_v42, 16  ;;  %v5126_v46 = vshll.u32 %v11906_v42, 16 }
 0x226   : > { %13232 = vmatmul.mubr.bf16.gmra.mrb[24].mxu0 %v16798_v52  ;;  %v11879_v52 = vcombine.low %v4308_v54, %v4317_v60  ;;  %v5094_v60 = vshll.u32 %v11902_v15, 16  ;;  %v5132_v58 = vshll.u32 %v11907_v18, 16  ;;  %v5136_v20 = vshrl.u32 %v11907_v18, 16  ;;  %v11910_v54 = vld [vmem:[%s14750_s19 + $0x98] sm:$0xf] }
 0x227   : > { %13235 = vmatprep.mubr.bf16.mxu0 %v11878_v26  ;;  %v11905_v26 = vld [vmem:[%s14750_s19 + $0x7c] sm:$0x1]  ;;  %v11953_v23 = vcombine.low %v5015_v27, %v5025_v63  ;;  %v16865_v24 = vrot.slane %v5108_v44, 5  ;;  %v5114_v51 = vrot.slane %v5112_v4, 4  ;;  %v11954_v49 = vcombine.low %v5039_v39, %v5049_v0 }
 0x228   : > { %v5063_v47 = vsel %vm15286_vm5, %v16857_v43, %v16828_v2  ;;  %v5082_v53 = vrot.slane %v5081_v32, 4  ;;  %v5096_v55 = vrot.slane %v5094_v60, 5  ;;  %v5073_v37 = vsel %vm15286_vm5, %v16861_v12, %v16859_v29  ;;  %v11913_v2 = vld [vmem:[%s14750_s19 + $0xa8] sm:$0xf]  ;;  %v11911_v18 = vld [vmem:[%s14750_s19 + $0x9c] sm:$0x1] }
 0x229   : > { %v5092_v19 = vrot.slane %v5091_v1, 4  ;;  %v5105_v45 = vor.u32 %v5104_v9, %v5101_v14  ;;  %v5118_v35 = vshll.u32 %v11905_v26, 16  ;;  %v5125_v16 = vrot.slane %v5123_v6, 4  ;;  %v11914_v14 = vld [vmem:[%s14750_s19 + $0xac] sm:$0x1] }
 0x22a   : > { %v5128_v34 = vrot.slane %v5126_v46, 5  ;;  %v16879_v17 = vrot.slane %v5132_v58, 5  ;;  %v5138_v5 = vrot.slane %v5136_v20, 4  ;;  %v5115_v25 = vor.u32 %v5114_v51, %v16865_v24 }
 0x22b   : > { %v5142_v8 = vshll.u32 %v11908_v41, 16  ;;  %v5147_v33 = vshrl.u32 %v11909_v22, 16  ;;  %v5150_v62 = vshll.u32 %v11909_v22, 16  ;;  %v5156_v40 = vshll.u32 %v11910_v54, 16 }
 0x22c   : > { %v5160_v30 = vshrl.u32 %v11910_v54, 16  ;;  %v5171_v21 = vshrl.u32 %v11912_v3, 16  ;;  %v5174_v57 = vshll.u32 %v11912_v3, 16  ;;  %v5087_v48 = vsel %vm15286_vm5, %v5082_v53, %v16843_v11  ;;  %v11916_v11 = vld [vmem:[%s14750_s19 + $0xb8] sm:$0xf] }
 0x22d   : > { %v16886_v56 = vrot.slane %v5105_v45, 4  ;;  %v5180_v28 = vshll.u32 %v11913_v2, 16  ;;  %v5184_v61 = vshrl.u32 %v11913_v2, 16  ;;  %v5097_v15 = vsel %vm15286_vm5, %v5092_v19, %v5096_v55  ;;  %v11918_v53 = vld [vmem:[%s14750_s19 + $0xc4] sm:$0xf] }
 0x22e   : > { %13236 = vmatmul.mubr.bf16.gmra.mrb[28].mxu0 %v11879_v52  ;;  %v16890_v38 = vrot.slane %v5118_v35, 5  ;;  %v5129_v36 = vor.u32 %v5128_v34, %v5125_v16  ;;  %v5139_v59 = vor.u32 %v5138_v5, %v16879_v17  ;;  %v11915_v52 = vld [vmem:[%s14750_s19 + $0xb4] sm:$0xf]  ;;  %v5144_v27 = vrot.slane %v5142_v8, 5  ;;  %v11919_v55 = vld [vmem:[%s14750_s19 + $0xc8] sm:$0xf] }
 0x22f   : > { %13255 = vmatprep.mubr.bf16.mxu0 %v11952_v31  ;;  %v5116_v31 = vrot.slane %v5115_v25, 4  ;;  %v5149_v63 = vrot.slane %v5147_v33, 4  ;;  %v5152_v39 = vrot.slane %v5150_v62, 5  ;;  %v16895_v0 = vrot.slane %v5156_v40, 5  ;;  %v11917_v45 = vld [vmem:[%s14750_s19 + $0xbc] sm:$0x1] }
 0x230   : > { %v5162_v44 = vrot.slane %v5160_v30, 4  ;;  %v5173_v4 = vrot.slane %v5171_v21, 4  ;;  %v5176_v42 = vrot.slane %v5174_v57, 5  ;;  %v16899_v43 = vrot.slane %v5180_v28, 5  ;;  %v11921_v30 = vld [vmem:[%s14750_s19 + $0xd4] sm:$0xf] }
 0x231   : > { %v5186_v29 = vrot.slane %v5184_v61, 4  ;;  %v5195_v32 = vshrl.u32 %v11915_v52, 16  ;;  %v5198_v60 = vshll.u32 %v11915_v52, 16  ;;  %v5130_v12 = vrot.slane %v5129_v36, 4  ;;  %v11920_v28 = vld [vmem:[%s14750_s19 + $0xcc] sm:$0x1] }
 0x232   : > { %v5140_v1 = vrot.slane %v5139_v59, 4  ;;  %v5204_v9 = vshll.u32 %v11916_v11, 16  ;;  %v5208_v26 = vshrl.u32 %v11916_v11, 16  ;;  %v11955_v6 = vcombine.low %v5063_v47, %v5073_v37 }
 0x233   : > { %v11956_v46 = vcombine.low %v5087_v48, %v5097_v15  ;;  %v5121_v58 = vsel %vm15286_vm5, %v5116_v31, %v16890_v38  ;;  %v5153_v20 = vor.u32 %v5152_v39, %v5149_v63  ;;  %v5166_v51 = vshll.u32 %v11911_v18, 16  ;;  %v11925_v63 = vld [vmem:[%s14750_s19 + $0xe8] sm:$0xf] }
 0x234   : > { %v5187_v47 = vor.u32 %v5186_v29, %v16899_v43  ;;  %v5190_v41 = vshll.u32 %v11914_v14, 16  ;;  %v5197_v22 = vrot.slane %v5195_v32, 4  ;;  %v5200_v37 = vrot.slane %v5198_v60, 5 }
 0x235   : > { %v5145_v19 = vsel %vm15286_vm5, %v5140_v1, %v5144_v27  ;;  %v16922_v35 = vrot.slane %v5204_v9, 5  ;;  %v5210_v54 = vrot.slane %v5208_v26, 4  ;;  %v5222_v3 = vshll.u32 %v11918_v53, 16  ;;  %v11924_v27 = vld [vmem:[%s14750_s19 + $0xe4] sm:$0xf] }
 0x236   : > { %13256 = vmatmul.mubr.bf16.vlgmr.msra.gmra.mrb[0].mxu0 %v11953_v23  ;;  %v5163_v23 = vor.u32 %v5162_v44, %v16895_v0  ;;  %v5228_v16 = vshll.u32 %v11919_v55, 16  ;;  %v5232_v34 = vshrl.u32 %v11919_v55, 16  ;;  %v5154_v5 = vrot.slane %v5153_v20, 4 }
 0x237   : > { %13259 = vmatprep.mubr.bf16.mxu0 %v11954_v49  ;;  %13288 = vmatpush3.bf16.msra.mxu0 %v16565_v50  ;;  %v5111_v50 = vsel %vm15286_vm5, %v16886_v56, %v16865_v24  ;;  %v5177_v49 = vor.u32 %v5176_v42, %v5173_v4  ;;  %v5135_v24 = vsel %vm15286_vm5, %v5130_v12, %v16879_v17  ;;  %v5168_v25 = vrot.slane %v5166_v51, 5  ;;  %v11922_v56 = vld [vmem:[%s14750_s19 + $0xd8] sm:$0xf] }
 0x238   : > { %13289 = vmatprep.subr.bf16.mxu0 %v16580_v13  ;;  %v5164_v2 = vrot.slane %v5163_v23, 4  ;;  %v5188_v8 = vrot.slane %v5187_v47, 4  ;;  %v5192_v33 = vrot.slane %v5190_v41, 5  ;;  %v5201_v62 = vor.u32 %v5200_v37, %v5197_v22  ;;  %v11927_v37 = vld [vmem:[%s14750_s19 + $0xf4] sm:$0xf] }
 0x239   : > { %v5178_v17 = vrot.slane %v5177_v49, 4  ;;  %v5214_v40 = vshll.u32 %v11917_v45, 16  ;;  %v11957_v21 = vcombine.low %v5111_v50, %v5121_v58  ;;  %v11958_v57 = vcombine.low %v5135_v24, %v5145_v19  ;;  %v11923_v58 = vld [vmem:[%s14750_s19 + $0xdc] sm:$0x1] }
 0x23a   : > { %v5211_v48 = vor.u32 %v5210_v54, %v16922_v35  ;;  %v5224_v15 = vrot.slane %v5222_v3, 5  ;;  %v16929_v38 = vrot.slane %v5228_v16, 5  ;;  %v5234_v36 = vrot.slane %v5232_v34, 4  ;;  %v11928_v54 = vld [vmem:[%s14750_s19 + $0xf8] sm:$0xf] }
 0x23b   : > { %13290 = vmatpush3.bf16.msra.mxu0 %v16580_v13  ;;  %v5219_v13 = vshrl.u32 %v11918_v53, 16  ;;  %v5169_v59 = vsel %vm15286_vm5, %v5164_v2, %v5168_v25  ;;  %v5243_v52 = vshrl.u32 %v11921_v30, 16  ;;  %v5246_v31 = vshll.u32 %v11921_v30, 16  ;;  %v11926_v53 = vld [vmem:[%s14750_s19 + $0xec] sm:$0x1] }
 0x23c   : > { %13291 = vmatprep.subr.bf16.mxu0 %v16606_v10  ;;  %v5183_v39 = vsel %vm15286_vm5, %v5178_v17, %v16899_v43  ;;  %v5193_v11 = vsel %vm15286_vm5, %v5188_v8, %v5192_v33  ;;  %v5202_v44 = vrot.slane %v5201_v62, 4  ;;  %v5216_v4 = vrot.slane %v5214_v40, 5  ;;  %v11930_v2 = vld [vmem:[%s14750_s19 + $0x104] sm:$0xf]  ;;  %v11931_v25 = vld [vmem:[%s14750_s19 + $0x108] sm:$0xf] }
 0x23d   : > { %v5221_v61 = vrot.slane %v5219_v13, 4  ;;  %v5212_v42 = vrot.slane %v5211_v48, 4  ;;  %v5238_v18 = vshll.u32 %v11920_v28, 16  ;;  %v5256_v29 = vshrl.u32 %v11922_v56, 16 }
 0x23e   : > { %13260 = vmatmul.mubr.bf16.gmra.mrb[4].mxu0 %v11955_v6  ;;  %v5267_v32 = vshrl.u32 %v11924_v27, 16  ;;  %v5270_v60 = vshll.u32 %v11924_v27, 16  ;;  %v5276_v12 = vshll.u32 %v11925_v63, 16  ;;  %v5280_v1 = vshrl.u32 %v11925_v63, 16 }
 0x23f   : > { %13263 = vmatprep.mubr.bf16.mxu0 %v11956_v46  ;;  %13292 = vmatpush3.bf16.msra.mxu0 %v16606_v10  ;;  %v5159_v10 = vsel %vm15286_vm5, %v5154_v5, %v16895_v0  ;;  %v5252_v0 = vshll.u32 %v11922_v56, 16  ;;  %v5225_v14 = vor.u32 %v5224_v15, %v5221_v61  ;;  %v5235_v43 = vor.u32 %v5234_v36, %v16929_v38 }
 0x240   : > { %v5245_v9 = vrot.slane %v5243_v52, 4  ;;  %v5248_v26 = vrot.slane %v5246_v31, 5  ;;  %v11959_v6 = vcombine.low %v5159_v10, %v5169_v59  ;;  %v11960_v46 = vcombine.low %v5183_v39, %v5193_v11  ;;  %v11929_v39 = vld [vmem:[%s14750_s19 + $0xfc] sm:$0x1]  ;;  %v11933_v11 = vld [vmem:[%s14750_s19 + $0x114] sm:$0xf] }
 0x241   : > { %v5207_v50 = vsel %vm15286_vm5, %v5202_v44, %v16922_v35  ;;  %v5217_v20 = vsel %vm15286_vm5, %v5212_v42, %v5216_v4  ;;  %v5240_v23 = vrot.slane %v5238_v18, 5  ;;  %v16950_v51 = vrot.slane %v5252_v0, 5  ;;  %v11934_v0 = vld [vmem:[%s14750_s19 + $0x118] sm:$0xf] }
 0x242   : > { %v5258_v49 = vrot.slane %v5256_v29, 4  ;;  %v5269_v55 = vrot.slane %v5267_v32, 4  ;;  %v5272_v47 = vrot.slane %v5270_v60, 5  ;;  %v16953_v41 = vrot.slane %v5276_v12, 5  ;;  %v11932_v12 = vld [vmem:[%s14750_s19 + $0x10c] sm:$0x1] }
 0x243   : > { %v5282_v22 = vrot.slane %v5280_v1, 4  ;;  %v5226_v24 = vrot.slane %v5225_v14, 4  ;;  %v5236_v19 = vrot.slane %v5235_v43, 4  ;;  %v5249_v45 = vor.u32 %v5248_v26, %v5245_v9 }
 0x244   : > { %v5262_v35 = vshll.u32 %v11923_v58, 16  ;;  %v5286_v13 = vshll.u32 %v11926_v53, 16  ;;  %v11961_v3 = vcombine.low %v5207_v50, %v5217_v20  ;;  %v5259_v16 = vor.u32 %v5258_v49, %v16950_v51 }
 0x245   : > { %v5291_v34 = vshrl.u32 %v11927_v37, 16  ;;  %v5294_v5 = vshll.u32 %v11927_v37, 16  ;;  %v5273_v17 = vor.u32 %v5272_v47, %v5269_v55  ;;  %v5283_v8 = vor.u32 %v5282_v22, %v16953_v41 }
 0x246   : > { %13264 = vmatmul.mubr.bf16.gmra.mrb[8].mxu0 %v11957_v21  ;;  %v5300_v33 = vshll.u32 %v11928_v54, 16  ;;  %v5304_v62 = vshrl.u32 %v11928_v54, 16  ;;  %v5231_v40 = vsel %vm15286_vm5, %v5226_v24, %v16929_v38  ;;  %v5241_v30 = vsel %vm15286_vm5, %v5236_v19, %v5240_v23  ;;  %v11935_v54 = vld [vmem:[%s14750_s19 + $0x11c] sm:$0x1] }
 0x247   : > { %13267 = vmatprep.mubr.bf16.mxu0 %v11958_v57  ;;  %v5250_v21 = vrot.slane %v5249_v45, 4  ;;  %v5264_v57 = vrot.slane %v5262_v35, 5  ;;  %v5315_v48 = vshrl.u32 %v11930_v2, 16  ;;  %v5318_v56 = vshll.u32 %v11930_v2, 16 }
 0x248   : > { %v5324_v28 = vshll.u32 %v11931_v25, 16  ;;  %v5328_v61 = vshrl.u32 %v11931_v25, 16  ;;  %v5260_v15 = vrot.slane %v5259_v16, 4  ;;  %v5288_v36 = vrot.slane %v5286_v13, 5 }
 0x249   : > { %v5293_v10 = vrot.slane %v5291_v34, 4  ;;  %v5296_v59 = vrot.slane %v5294_v5, 5  ;;  %v5274_v52 = vrot.slane %v5273_v17, 4  ;;  %v5284_v31 = vrot.slane %v5283_v8, 4 }
 0x24a   : > { %v5302_v38 = vrot.slane %v5300_v33, 5  ;;  %v5306_v27 = vrot.slane %v5304_v62, 4  ;;  %v11962_v63 = vcombine.low %v5231_v40, %v5241_v30  ;;  %v5317_v44 = vrot.slane %v5315_v48, 4  ;;  %v14492_v48 = vld [vmem:[%s18179_s3 + $0x58] sm:$0xff]  }
 0x24b   : > { %v5320_v4 = vrot.slane %v5318_v56, 5  ;;  %v5326_v42 = vrot.slane %v5324_v28, 5  ;;  %v5330_v18 = vrot.slane %v5328_v61, 4  ;;  %v5255_v29 = vsel %vm15286_vm5, %v5250_v21, %v16950_v51  ;;  %13293 = vmatprep.subr.bf16.mxu0 %v14492_v48  ;;  %13770 = vmatprep.subr.bf16.mxu1 %v14492_v48  ;;  %v14493_v56 = vld [vmem:[%s18179_s3 + $0x60] sm:$0xff]  }
 0x24c   : > { %v5265_v32 = vsel %vm15286_vm5, %v5260_v15, %v5264_v57  ;;  %v5297_v60 = vor.u32 %v5296_v59, %v5293_v10  ;;  %v5279_v1 = vsel %vm15286_vm5, %v5274_v52, %v16953_v41  ;;  %v5289_v14 = vsel %vm15286_vm5, %v5284_v31, %v5288_v36  ;;  %13294 = vmatpush3.bf16.msra.mxu0 %v14492_v48  ;;  %v6004_v61 = vld [vmem:[#allocation3] sm:$0xf8]  ;;  %v6009_v36 = vld [vmem:[#allocation3 + $0x8] sm:$0x1f]  ;;  %v5903_v31 = vld [vmem:[#allocation3 + $0x10] sm:$0x8] }
 0x24d   : > { %v5307_v43 = vor.u32 %v5306_v27, %v5302_v38  ;;  %v5310_v9 = vshll.u32 %v11929_v39, 16  ;;  %v5339_v26 = vshrl.u32 %v11933_v11, 16  ;;  %v5352_v50 = vshrl.u32 %v11934_v0, 16  ;;  %13778 = vmatpush3.bf16.msra.mxu1 %v14492_v48  ;;  %13295 = vmatprep.subr.bf16.mxu0 %v14493_v56  ;;  %v14495_v27 = vld [vmem:[%s18179_s3 + $0x70] sm:$0xff]  }
 0x24e   : > { %13268 = vmatmul.mubr.bf16.gmra.mrb[12].mxu0 %v11959_v6  ;;  %v5342_v6 = vshll.u32 %v11933_v11, 16  ;;  %v5321_v58 = vor.u32 %v5320_v4, %v5317_v44  ;;  %v5331_v20 = vor.u32 %v5330_v18, %v5326_v42  ;;  %v5334_v23 = vshll.u32 %v11932_v12, 16  ;;  %13771 = vmatprep.subr.bf16.mxu1 %v14493_v56  ;;  %v14496_v11 = vld [vmem:[%s18179_s3 + $0x78] sm:$0xff]  }
 0x24f   : > { %13271 = vmatprep.mubr.bf16.mxu0 %v11960_v46  ;;  %v5348_v46 = vshll.u32 %v11934_v0, 16  ;;  %v11963_v51 = vcombine.low %v5255_v29, %v5265_v32  ;;  %v11964_v49 = vcombine.low %v5279_v1, %v5289_v14  ;;  %v5298_v53 = vrot.slane %v5297_v60, 4  ;;  %v5912_v29 = vld [vmem:[#allocation3 + $0x40] sm:$0x8]  ;;  %v5909_v32 = vld [vmem:[#allocation3 + $0x30] sm:$0x8] }
 0x250   : > { %v5308_v55 = vrot.slane %v5307_v43, 4  ;;  %v5312_v47 = vrot.slane %v5310_v9, 5  ;;  %v5341_v41 = vrot.slane %v5339_v26, 4  ;;  %v5344_v22 = vrot.slane %v5342_v6, 5  ;;  %13296 = vmatpush3.bf16.msra.mxu0 %v14493_v56  ;;  %v5954_v14 = vld [vmem:[#allocation3 + $0x18] sm:$0x10] }
 0x251   : > { %v5350_v37 = vrot.slane %v5348_v46, 5  ;;  %v5354_v24 = vrot.slane %v5352_v50, 4  ;;  %v5322_v19 = vrot.slane %v5321_v58, 4  ;;  %v5332_v45 = vrot.slane %v5331_v20, 4  ;;  %13779 = vmatpush3.bf16.msra.mxu1 %v14493_v56  ;;  %13297 = vmatprep.subr.bf16.mxu0 %v14494_v7  ;;  %v5918_v9 = vld [vmem:[#allocation3 + $0x60] sm:$0x8] }
 0x252   : > { %v5336_v35 = vrot.slane %v5334_v23, 5  ;;  %v5303_v13 = vsel %vm15286_vm5, %v5298_v53, %v5302_v38  ;;  %v5345_v16 = vor.u32 %v5344_v22, %v5341_v41  ;;  %v5358_v5 = vshll.u32 %v11935_v54, 16  ;;  %13772 = vmatprep.subr.bf16.mxu1 %v14494_v7  ;;  %v5906_v38 = vld [vmem:[#allocation3 + $0x20] sm:$0x8]  ;;  %v5915_v26 = vld [vmem:[#allocation3 + $0x50] sm:$0x8] }
 0x253   : > { %v5355_v34 = vor.u32 %v5354_v24, %v5350_v37  ;;  %v5327_v2 = vsel %vm15286_vm5, %v5322_v19, %v5326_v42  ;;  %v6005_v10 = vsel %vm17006_vm12, 0, %v6004_v61  ;;  %v6010_v52 = vsel %vm17013_vm13, 0, %v6009_v36  ;;  %v17051_v50 = vld [vmem:[%s18179_s3] sm:$0xff]   ;;  %v5921_v20 = vld [vmem:[#allocation3 + $0x70] sm:$0x8] }
 0x254   : > { %v5337_v25 = vsel %vm15286_vm5, %v5332_v45, %v5336_v35  ;;  %v5346_v33 = vrot.slane %v5345_v16, 4  ;;  %v5360_v40 = vrot.slane %v5358_v5, 5  ;;  %13298 = vmatpush3.bf16.msra.mxu0 %v14494_v7  ;;  %6006 = vst [vmem:[#allocation3] sm:$0xf8] %v6005_v10  ;;  %6011 = vst [vmem:[#allocation3 + $0x8] sm:$0x1f] %v6010_v52 }
 0x255   : > { %v11966_v8 = vcombine.low %v5327_v2, %v5337_v25  ;;  %v5356_v62 = vrot.slane %v5355_v34, 4  ;;  %13780 = vmatpush3.bf16.msra.mxu1 %v14494_v7  ;;  %v5907_v39 = vsel %vm17002_vm10, 0, %v5906_v38  ;;  %13299 = vmatprep.subr.bf16.mxu0 %v14495_v27  ;;  %v5913_v60 = vsel %vm17002_vm10, 0, %v5912_v29  ;;  %v5924_v58 = vld [vmem:[#allocation3 + $0x80] sm:$0x8] }
 0x256   : > { %13272 = vmatmul.mubr.bf16.gmra.mrb[16].mxu0 %v11961_v3  ;;  %v5313_v3 = vsel %vm15286_vm5, %v5308_v55, %v5312_v47  ;;  %v5351_v30 = vsel %vm15286_vm5, %v5346_v33, %v5350_v37  ;;  %5908 = vst [vmem:[#allocation3 + $0x20] sm:$0x8] %v5907_v39  ;;  %13773 = vmatprep.subr.bf16.mxu1 %v14495_v27  ;;  %v5910_v12 = vsel %vm17002_vm10, 0, %v5909_v32  ;;  %5914 = vst [vmem:[#allocation3 + $0x40] sm:$0x8] %v5913_v60 }
 0x257   : > { %13275 = vmatprep.mubr.bf16.mxu0 %v11962_v63  ;;  %v11965_v17 = vcombine.low %v5303_v13, %v5313_v3  ;;  %v5361_v21 = vsel %vm15286_vm5, %v5356_v62, %v5360_v40  ;;  %v5904_v63 = vsel %vm17002_vm10, 0, %v5903_v31  ;;  %5911 = vst [vmem:[#allocation3 + $0x30] sm:$0x8] %v5910_v12  ;;  %v5955_v43 = vsel %vm17038_vm0, 0, %v5954_v14  ;;  %v5927_v53 = vld [vmem:[#allocation3 + $0x90] sm:$0x8] }
 0x258   : > { %v11967_v57 = vcombine.low %v5351_v30, %v5361_v21  ;;  %5905 = vst [vmem:[#allocation3 + $0x10] sm:$0x8] %v5904_v63  ;;  %13300 = vmatpush3.bf16.msra.mxu0 %v14495_v27  ;;  %5956 = vst [vmem:[#allocation3 + $0x18] sm:$0x10] %v5955_v43  ;;  %v5919_v6 = vsel %vm17002_vm10, 0, %v5918_v9  ;;  %v5916_v46 = vsel %vm17002_vm10, 0, %v5915_v26 }
 0x259   : > { %13781 = vmatpush3.bf16.msra.mxu1 %v14495_v27  ;;  %13301 = vmatprep.subr.bf16.mxu0 %v14496_v11  ;;  %5920 = vst [vmem:[#allocation3 + $0x60] sm:$0x8] %v5919_v6  ;;  %5917 = vst [vmem:[#allocation3 + $0x50] sm:$0x8] %v5916_v46  ;;  %v5925_v23 = vsel %vm17002_vm10, 0, %v5924_v58  ;;  %v5928_v47 = vsel %vm17002_vm10, 0, %v5927_v53 }
 0x25a   : > { %13774 = vmatprep.subr.bf16.mxu1 %v14496_v11  ;;  %5926 = vst [vmem:[#allocation3 + $0x80] sm:$0x8] %v5925_v23  ;;  %5929 = vst [vmem:[#allocation3 + $0x90] sm:$0x8] %v5928_v47  ;;  %v5936_v41 = vld [vmem:[#allocation3 + $0xc0] sm:$0x8] }
 0x25b   : > { %v6435_v44 = vld [vmem:[#allocation3] sm:$0xf0]  ;;  %v17029_v4 = vld [vmem:[#allocation3 + $0x8] sm:$0xf]  ;;  %v5933_v22 = vld [vmem:[#allocation3 + $0xb0] sm:$0x8] }
 0x25c   : > { %13302 = vmatpush3.bf16.msra.mxu0 %v14496_v11  ;;  %v6484_v42 = vrot.slane %v6435_v44, 4  ;;  %v6485_v18 = vrot.slane %v17029_v4, 4  ;;  %v5937_v37 = vsel %vm17002_vm10, 0, %v5936_v41  ;;  %v5934_v24 = vsel %vm17002_vm10, 0, %v5933_v22  ;;  %v5957_v19 = vld [vmem:[#allocation3 + $0x28] sm:$0x10] }
 0x25d   : > { %13782 = vmatpush3.bf16.msra.mxu1 %v14496_v11  ;;  %5938 = vst [vmem:[#allocation3 + $0xc0] sm:$0x8] %v5937_v37  ;;  %5935 = vst [vmem:[#allocation3 + $0xb0] sm:$0x8] %v5934_v24  ;;  %v5958_v45 = vsel %vm17038_vm0, 0, %v5957_v19 }
 0x25e   : > { %13276 = vmatmul.mubr.bf16.gmra.mrb[20].mxu0 %v11963_v51  ;;  %v6486_v0 = vsel %vm6483_vm14, %v6484_v42, %v6485_v18  ;;  %13335 = vmatprep.subr.bf16.mxu1 %v17051_v50  ;;  %v5922_v51 = vsel %vm17002_vm10, 0, %v5921_v20  ;;  %v5942_v35 = vld [vmem:[#allocation3 + $0xe0] sm:$0x8]  ;;  %5959 = vst [vmem:[#allocation3 + $0x28] sm:$0x10] %v5958_v45 }
 0x25f   : > { %13279 = vmatprep.mubr.bf16.mxu0 %v11964_v49  ;;  %5923 = vst [vmem:[#allocation3 + $0x70] sm:$0x8] %v5922_v51  ;;  %v5930_v49 = vld [vmem:[#allocation3 + $0xa0] sm:$0x8]  ;;  %v5939_v54 = vld [vmem:[#allocation3 + $0xd0] sm:$0x8] }
 0x260   : > { %v5931_v55 = vsel %vm17002_vm10, 0, %v5930_v49  ;;  %v5943_v13 = vsel %vm17002_vm10, 0, %v5942_v35  ;;  %v5940_v3 = vsel %vm17002_vm10, 0, %v5939_v54  ;;  %v5945_v16 = vld [vmem:[#allocation3 + $0xf0] sm:$0x8] }
 0x261   : > { %5932 = vst [vmem:[#allocation3 + $0xa0] sm:$0x8] %v5931_v55  ;;  %5944 = vst [vmem:[#allocation3 + $0xe0] sm:$0x8] %v5943_v13  ;;  %v5946_v34 = vsel %vm17002_vm10, 0, %v5945_v16 }
 0x262   : > { %5941 = vst [vmem:[#allocation3 + $0xd0] sm:$0x8] %v5940_v3  ;;  %v5963_v5 = vld [vmem:[#allocation3 + $0x48] sm:$0x10]  ;;  %5947 = vst [vmem:[#allocation3 + $0xf0] sm:$0x8] %v5946_v34 }
 0x263   : > { %v5960_v2 = vld [vmem:[#allocation3 + $0x38] sm:$0x10]  ;;  %v5964_v25 = vsel %vm17038_vm0, 0, %v5963_v5  ;;  %v5975_v30 = vld [vmem:[#allocation3 + $0x88] sm:$0x10] }
 0x264   : > { %5965 = vst [vmem:[#allocation3 + $0x48] sm:$0x10] %v5964_v25  ;;  %v5966_v33 = vld [vmem:[#allocation3 + $0x58] sm:$0x10]  ;;  %v5981_v56 = vld [vmem:[#allocation3 + $0xa8] sm:$0x10] }
 0x265   : > { %v5967_v40 = vsel %vm17038_vm0, 0, %v5966_v33  ;;  %v5972_v21 = vld [vmem:[#allocation3 + $0x78] sm:$0x10]  ;;  %v5982_v61 = vsel %vm17038_vm0, 0, %v5981_v56  ;;  %v17093_v10 = vld [vmem:[%s18178_s2] ss:$0 sm:$0xff] }
 0x266   : > { %13280 = vmatmul.mubr.bf16.gmra.mrb[24].mxu0 %v11965_v17  ;;  %v5961_v17 = vsel %vm17038_vm0, 0, %v5960_v2  ;;  %5968 = vst [vmem:[#allocation3 + $0x58] sm:$0x10] %v5967_v40  ;;  %v5973_v48 = vsel %vm17038_vm0, 0, %v5972_v21  ;;  %v5978_v7 = vld [vmem:[#allocation3 + $0x98] sm:$0x10] }
 0x267   : > { %13283 = vmatprep.mubr.bf16.mxu0 %v11966_v8  ;;  %5962 = vst [vmem:[#allocation3 + $0x38] sm:$0x10] %v5961_v17  ;;  %v5969_v8 = vld [vmem:[#allocation3 + $0x68] sm:$0x10]  ;;  %5974 = vst [vmem:[#allocation3 + $0x78] sm:$0x10] %v5973_v48 }
 0x268   : > { %v5970_v62 = vsel %vm17038_vm0, 0, %v5969_v8  ;;  %v5979_v36 = vsel %vm17038_vm0, 0, %v5978_v7  ;;  %5983 = vst [vmem:[#allocation3 + $0xa8] sm:$0x10] %v5982_v61  ;;  %v5987_v52 = vld [vmem:[#allocation3 + $0xc8] sm:$0x10] }
 0x269   : > { %5971 = vst [vmem:[#allocation3 + $0x68] sm:$0x10] %v5970_v62  ;;  %5980 = vst [vmem:[#allocation3 + $0x98] sm:$0x10] %v5979_v36  ;;  %v5984_v38 = vld [vmem:[#allocation3 + $0xb8] sm:$0x10] }
 0x26a   : > { %v5988_v27 = vsel %vm17038_vm0, 0, %v5987_v52  ;;  %v5985_v11 = vsel %vm17038_vm0, 0, %v5984_v38  ;;  %v5993_v9 = vld [vmem:[#allocation3 + $0xe8] sm:$0x10]  ;;  %v5990_v46 = vld [vmem:[#allocation3 + $0xd8] sm:$0x10] }
 0x26b   : > { %5989 = vst [vmem:[#allocation3 + $0xc8] sm:$0x10] %v5988_v27  ;;  %5986 = vst [vmem:[#allocation3 + $0xb8] sm:$0x10] %v5985_v11  ;;  %v5994_v58 = vsel %vm17038_vm0, 0, %v5993_v9  ;;  %v5991_v49 = vsel %vm17038_vm0, 0, %v5990_v46 }
 0x26c   : > { %5995 = vst [vmem:[#allocation3 + $0xe8] sm:$0x10] %v5994_v58  ;;  %5992 = vst [vmem:[#allocation3 + $0xd8] sm:$0x10] %v5991_v49 }
 0x26e   : > { %13284 = vmatmul.mubr.bf16.gmra.mrb[28].mxu0 %v11967_v57  ;;  %v5976_v57 = vsel %vm17038_vm0, 0, %v5975_v30 }
 0x26f   : > { %13303 = vmatprep.mubr.bf16.mxu0 %v6486_v0  ;;  %5977 = vst [vmem:[#allocation3 + $0x88] sm:$0x10] %v5976_v57 }
 0x309   : > { %v13257_v31 = vpop.f32.mrb[0].mxu0 }
 0x30a   : > { %v5821_v63 = vadd.f32 %v13257_v31, %v17093_v10  ;;  %v5525_v39 = vpop.f32.mrb[1].mxu0 }
 0x30b   : > { %v5819_v44 = vadd.f32 %v17093_v10, %v5525_v39  ;;  %v13258_v42 = vpop.f32.mrb[2].mxu0 }
 0x30c   : > { %v5822_v18 = vadd.f32 %v13258_v42, %v17093_v10  ;;  %v5528_v0 = vpop.f32.mrb[3].mxu0  ;;  %v5853_v32 = vmax.f32 %v5821_v63, 0.0 }
 0x30d   : > { %v5820_v29 = vadd.f32 %v17093_v10, %v5528_v0  ;;  %v5851_v12 = vmax.f32 %v5819_v44, 0.0 }
 0x30e   : > { %v5854_v60 = vmax.f32 %v5822_v18, 0.0 }
 0x30f   : > { %v5852_v14 = vmax.f32 %v5820_v29, 0.0 }
 0x310   : > { %v5884_v43 = vpack.c.bf16 %v5854_v60, %v5853_v32 }
 0x311   : > { %v5883_v26 = vpack.c.bf16 %v5852_v14, %v5851_v12  ;;  %v13261_v6 = vpop.f32.mrb[4].mxu0 }
 0x312   : > { %v6036_v20 = vrot.slane %v5884_v43, 4  ;;  %v5825_v23 = vadd.f32 %v13261_v6, %v17093_v10  ;;  %v5541_v51 = vpop.f32.mrb[5].mxu0 }
 0x313   : > { %v6035_v53 = vrot.slane %v5883_v26, 4  ;;  %v5823_v55 = vadd.f32 %v17093_v10, %v5541_v51  ;;  %v13262_v47 = vpop.f32.mrb[6].mxu0 }
 0x314   : > { %6069 = vst [vmem:[#allocation3 + $0x28] ss:$-4 sps:$4 sm:$0xff] %v6036_v20   ;;  %v5826_v41 = vadd.f32 %v13262_v47, %v17093_v10  ;;  %v5544_v22 = vpop.f32.mrb[7].mxu0  ;;  %v5857_v24 = vmax.f32 %v5825_v23, 0.0 }
 0x315   : > { %6067 = vst [vmem:[#allocation3 + $0x18] ss:$-4 sps:$4 sm:$0xff] %v6035_v53   ;;  %v5824_v37 = vadd.f32 %v17093_v10, %v5544_v22  ;;  %v5855_v45 = vmax.f32 %v5823_v55, 0.0 }
 0x316   : > { %v5858_v19 = vmax.f32 %v5826_v41, 0.0 }
 0x317   : > { %v5856_v35 = vmax.f32 %v5824_v37, 0.0 }
 0x318   : > { %v5886_v54 = vpack.c.bf16 %v5858_v19, %v5857_v24 }
 0x319   : > { %v5885_v13 = vpack.c.bf16 %v5856_v35, %v5855_v45  ;;  %v13265_v3 = vpop.f32.mrb[8].mxu0 }
 0x31a   : > { %v6038_v16 = vrot.slane %v5886_v54, 4  ;;  %v5829_v34 = vadd.f32 %v13265_v3, %v17093_v10  ;;  %v5557_v5 = vpop.f32.mrb[9].mxu0 }
 0x31b   : > { %v6037_v2 = vrot.slane %v5885_v13, 4  ;;  %v5827_v25 = vadd.f32 %v17093_v10, %v5557_v5  ;;  %v13266_v17 = vpop.f32.mrb[10].mxu0  ;;  %v17113_v8 = vld [vmem:[#allocation3 + $0x28] sm:$0xf]  ;;  %v17115_v33 = vld [vmem:[#allocation3 + $0x20] sm:$0xf0] }
 0x31c   : > { %6073 = vst [vmem:[#allocation3 + $0x48] ss:$-4 sps:$4 sm:$0xff] %v6038_v16   ;;  %v5830_v62 = vadd.f32 %v13266_v17, %v17093_v10  ;;  %v5560_v40 = vpop.f32.mrb[11].mxu0  ;;  %v17118_v30 = vld [vmem:[#allocation3 + $0x18] sm:$0xf]  ;;  %v5861_v7 = vmax.f32 %v5829_v34, 0.0 }
 0x31d   : > { %v17120_v21 = vld [vmem:[#allocation3 + $0x10] sm:$0xf0]  ;;  %6071 = vst [vmem:[#allocation3 + $0x38] ss:$-4 sps:$4 sm:$0xff] %v6037_v2   ;;  %v5828_v57 = vadd.f32 %v17093_v10, %v5560_v40  ;;  %v6488_v56 = vrot.slane %v17118_v30, 4  ;;  %v6490_v36 = vrot.slane %v17115_v33, 4 }
 0x31e   : > { %v6487_v48 = vrot.slane %v17120_v21, 4  ;;  %v5862_v61 = vmax.f32 %v5830_v62, 0.0  ;;  %v6491_v52 = vrot.slane %v17113_v8, 4  ;;  %v5859_v31 = vmax.f32 %v5827_v25, 0.0 }
 0x31f   : > { %v5860_v38 = vmax.f32 %v5828_v57, 0.0 }
 0x320   : > { %v6489_v27 = vsel %vm6483_vm14, %v6487_v48, %v6488_v56  ;;  %v5888_v63 = vpack.c.bf16 %v5862_v61, %v5861_v7  ;;  %v6492_v39 = vsel %vm6483_vm14, %v6490_v36, %v6491_v52 }
 0x321   : > { %13304 = vmatmul.mubr.bf16.vlgmr.msra.gmra.mrb[32].mxu0 %v6489_v27  ;;  %v5887_v11 = vpack.c.bf16 %v5860_v38, %v5859_v31  ;;  %v13269_v44 = vpop.f32.mrb[12].mxu0 }
 0x322   : > { %13307 = vmatprep.mubr.bf16.mxu0 %v6492_v39  ;;  %v6040_v42 = vrot.slane %v5888_v63, 4  ;;  %v5833_v18 = vadd.f32 %v13269_v44, %v17093_v10  ;;  %v5573_v0 = vpop.f32.mrb[13].mxu0 }
 0x323   : > { %v6039_v29 = vrot.slane %v5887_v11, 4  ;;  %v5831_v32 = vadd.f32 %v17093_v10, %v5573_v0  ;;  %v13270_v60 = vpop.f32.mrb[14].mxu0  ;;  %v17131_v12 = vld [vmem:[#allocation3 + $0x48] sm:$0xf]  ;;  %v17133_v14 = vld [vmem:[#allocation3 + $0x40] sm:$0xf0] }
 0x324   : > { %6077 = vst [vmem:[#allocation3 + $0x68] ss:$-4 sps:$4 sm:$0xff] %v6040_v42   ;;  %v5834_v43 = vadd.f32 %v13270_v60, %v17093_v10  ;;  %v5576_v9 = vpop.f32.mrb[15].mxu0  ;;  %v17136_v26 = vld [vmem:[#allocation3 + $0x38] sm:$0xf]  ;;  %v5865_v23 = vmax.f32 %v5833_v18, 0.0 }
 0x325   : > { %v17138_v6 = vld [vmem:[#allocation3 + $0x30] sm:$0xf0]  ;;  %6075 = vst [vmem:[#allocation3 + $0x58] ss:$-4 sps:$4 sm:$0xff] %v6039_v29   ;;  %v5832_v46 = vadd.f32 %v17093_v10, %v5576_v9  ;;  %v6494_v20 = vrot.slane %v17136_v26, 4  ;;  %v6496_v49 = vrot.slane %v17133_v14, 4 }
 0x326   : > { %v6493_v58 = vrot.slane %v17138_v6, 4  ;;  %v5866_v51 = vmax.f32 %v5834_v43, 0.0  ;;  %v6497_v53 = vrot.slane %v17131_v12, 4  ;;  %v5863_v55 = vmax.f32 %v5831_v32, 0.0 }
 0x327   : > { %v5864_v47 = vmax.f32 %v5832_v46, 0.0 }
 0x328   : > { %v6495_v41 = vsel %vm6483_vm14, %v6493_v58, %v6494_v20  ;;  %v5890_v22 = vpack.c.bf16 %v5866_v51, %v5865_v23  ;;  %v6498_v37 = vsel %vm6483_vm14, %v6496_v49, %v6497_v53 }
 0x329   : > { %13308 = vmatmul.mubr.bf16.gmra.mrb[36].mxu0 %v6495_v41  ;;  %v5889_v24 = vpack.c.bf16 %v5864_v47, %v5863_v55  ;;  %v13273_v19 = vpop.f32.mrb[16].mxu0 }
 0x32a   : > { %13311 = vmatprep.mubr.bf16.mxu0 %v6498_v37  ;;  %v6042_v45 = vrot.slane %v5890_v22, 4  ;;  %v5837_v35 = vadd.f32 %v13273_v19, %v17093_v10  ;;  %v5589_v54 = vpop.f32.mrb[17].mxu0 }
 0x32b   : > { %v6041_v13 = vrot.slane %v5889_v24, 4  ;;  %v5835_v3 = vadd.f32 %v17093_v10, %v5589_v54  ;;  %v13274_v16 = vpop.f32.mrb[18].mxu0  ;;  %v17149_v34 = vld [vmem:[#allocation3 + $0x68] sm:$0xf]  ;;  %v17151_v5 = vld [vmem:[#allocation3 + $0x60] sm:$0xf0] }
 0x32c   : > { %6081 = vst [vmem:[#allocation3 + $0x88] ss:$-4 sps:$4 sm:$0xff] %v6042_v45   ;;  %v5838_v2 = vadd.f32 %v13274_v16, %v17093_v10  ;;  %v5592_v25 = vpop.f32.mrb[19].mxu0  ;;  %v17154_v17 = vld [vmem:[#allocation3 + $0x58] sm:$0xf]  ;;  %v5869_v56 = vmax.f32 %v5837_v35, 0.0 }
 0x32d   : > { %v17156_v62 = vld [vmem:[#allocation3 + $0x50] sm:$0xf0]  ;;  %6079 = vst [vmem:[#allocation3 + $0x78] ss:$-4 sps:$4 sm:$0xff] %v6041_v13   ;;  %v5836_v40 = vadd.f32 %v17093_v10, %v5592_v25  ;;  %v6500_v48 = vrot.slane %v17154_v17, 4  ;;  %v6502_v61 = vrot.slane %v17151_v5, 4 }
 0x32e   : > { %v6499_v57 = vrot.slane %v17156_v62, 4  ;;  %v5870_v7 = vmax.f32 %v5838_v2, 0.0  ;;  %v6503_v36 = vrot.slane %v17149_v34, 4  ;;  %v5867_v52 = vmax.f32 %v5835_v3, 0.0 }
 0x32f   : > { %v5868_v31 = vmax.f32 %v5836_v40, 0.0 }
 0x330   : > { %v6501_v38 = vsel %vm6483_vm14, %v6499_v57, %v6500_v48  ;;  %v5892_v27 = vpack.c.bf16 %v5870_v7, %v5869_v56  ;;  %v6504_v63 = vsel %vm6483_vm14, %v6502_v61, %v6503_v36 }
 0x331   : > { %13312 = vmatmul.mubr.bf16.gmra.mrb[40].mxu0 %v6501_v38  ;;  %v5891_v39 = vpack.c.bf16 %v5868_v31, %v5867_v52  ;;  %v13277_v11 = vpop.f32.mrb[20].mxu0 }
 0x332   : > { %13315 = vmatprep.mubr.bf16.mxu0 %v6504_v63  ;;  %v6044_v44 = vrot.slane %v5892_v27, 4  ;;  %v5841_v42 = vadd.f32 %v13277_v11, %v17093_v10  ;;  %v5605_v18 = vpop.f32.mrb[21].mxu0 }
 0x333   : > { %v6043_v0 = vrot.slane %v5891_v39, 4  ;;  %v5839_v29 = vadd.f32 %v17093_v10, %v5605_v18  ;;  %v13278_v32 = vpop.f32.mrb[22].mxu0  ;;  %v17167_v60 = vld [vmem:[#allocation3 + $0x88] sm:$0xf]  ;;  %v17169_v43 = vld [vmem:[#allocation3 + $0x80] sm:$0xf0] }
 0x334   : > { %6085 = vst [vmem:[#allocation3 + $0xa8] ss:$-4 sps:$4 sm:$0xff] %v6044_v44   ;;  %v5842_v9 = vadd.f32 %v13278_v32, %v17093_v10  ;;  %v5608_v46 = vpop.f32.mrb[23].mxu0  ;;  %v6508_v58 = vrot.slane %v17169_v43, 4  ;;  %v6509_v20 = vrot.slane %v17167_v60, 4  ;;  %v5873_v55 = vmax.f32 %v5841_v42, 0.0 }
 0x335   : > { %v17174_v23 = vld [vmem:[#allocation3 + $0x78] sm:$0xf]  ;;  %6083 = vst [vmem:[#allocation3 + $0x98] ss:$-4 sps:$4 sm:$0xff] %v6043_v0   ;;  %v5840_v51 = vadd.f32 %v17093_v10, %v5608_v46  ;;  %v17177_v49 = vld [vmem:[#allocation3 + $0x70] sm:$0xf0] }
 0x336   : > { %v6506_v53 = vrot.slane %v17174_v23, 4  ;;  %v5874_v47 = vmax.f32 %v5842_v9, 0.0  ;;  %v6510_v41 = vsel %vm6483_vm14, %v6508_v58, %v6509_v20  ;;  %v6505_v22 = vrot.slane %v17177_v49, 4  ;;  %v14498_v44 = vld [vmem:[%s18179_s3 + $0x8] sm:$0xff]  }
 0x337   : > { %v5871_v37 = vmax.f32 %v5839_v29, 0.0  ;;  %v5872_v24 = vmax.f32 %v5840_v51, 0.0  ;;  %13319 = vmatprep.mubr.bf16.mxu1 %v6510_v41 }
 0x338   : > { %v5894_v19 = vpack.c.bf16 %v5874_v47, %v5873_v55  ;;  %v6507_v45 = vsel %vm6483_vm14, %v6505_v22, %v6506_v53  ;;  %v14499_v53 = vld [vmem:[%s18179_s3 + $0x10] sm:$0xff]  }
 0x339   : > { %v5893_v35 = vpack.c.bf16 %v5872_v24, %v5871_v37  ;;  %13316 = vmatmul.mubr.bf16.gmra.mrb[44].mxu0 %v6507_v45  ;;  %v13281_v54 = vpop.f32.mrb[24].mxu0 }
 0x33a   : > { %v6046_v13 = vrot.slane %v5894_v19, 4  ;;  %v5845_v3 = vadd.f32 %v13281_v54, %v17093_v10  ;;  %v5621_v16 = vpop.f32.mrb[25].mxu0 }
 0x33b   : > { %v6045_v2 = vrot.slane %v5893_v35, 4  ;;  %v5843_v25 = vadd.f32 %v17093_v10, %v5621_v16  ;;  %v13282_v40 = vpop.f32.mrb[26].mxu0  ;;  %v17185_v57 = vld [vmem:[#allocation3 + $0xa8] sm:$0xf]  ;;  %v17187_v48 = vld [vmem:[#allocation3 + $0xa0] sm:$0xf0] }
 0x33c   : > { %6089 = vst [vmem:[#allocation3 + $0xc8] ss:$-4 sps:$4 sm:$0xff] %v6046_v13   ;;  %v5846_v56 = vadd.f32 %v13282_v40, %v17093_v10  ;;  %v5624_v7 = vpop.f32.mrb[27].mxu0  ;;  %v17190_v61 = vld [vmem:[#allocation3 + $0x98] sm:$0xf]  ;;  %v5877_v27 = vmax.f32 %v5845_v3, 0.0 }
 0x33d   : > { %v17192_v36 = vld [vmem:[#allocation3 + $0x90] sm:$0xf0]  ;;  %6087 = vst [vmem:[#allocation3 + $0xb8] ss:$-4 sps:$4 sm:$0xff] %v6045_v2   ;;  %v5844_v52 = vadd.f32 %v17093_v10, %v5624_v7  ;;  %v6512_v38 = vrot.slane %v17190_v61, 4  ;;  %v6514_v39 = vrot.slane %v17187_v48, 4 }
 0x33e   : > { %v6511_v31 = vrot.slane %v17192_v36, 4  ;;  %v5878_v63 = vmax.f32 %v5846_v56, 0.0  ;;  %v6515_v11 = vrot.slane %v17185_v57, 4  ;;  %v5875_v42 = vmax.f32 %v5843_v25, 0.0  ;;  %v14500_v3 = vld [vmem:[%s18179_s3 + $0x18] sm:$0xff]  }
 0x33f   : > { %v5876_v18 = vmax.f32 %v5844_v52, 0.0  ;;  %v6099_v56 = vld [vmem:[#allocation3] sm:$0xf8] }
 0x340   : > { %v6513_v0 = vsel %vm6483_vm14, %v6511_v31, %v6512_v38  ;;  %v5896_v29 = vpack.c.bf16 %v5878_v63, %v5877_v27  ;;  %v6516_v32 = vsel %vm6483_vm14, %v6514_v39, %v6515_v11  ;;  %v14501_v63 = vld [vmem:[%s18179_s3 + $0x20] sm:$0xff]   ;;  %v6132_v39 = vshrl.u32 %v6099_v56, 16 }
 0x341   : > { %13320 = vmatmul.mubr.bf16.vlgmr.msra.gmra.mrb[0].mxu1 %v6513_v0  ;;  %v5895_v9 = vpack.c.bf16 %v5876_v18, %v5875_v42  ;;  %v13285_v46 = vpop.f32.mrb[28].mxu0  ;;  %v6140_v42 = vshrl.u32 %v17029_v4, 16  ;;  %v6143_v18 = vshll.u32 %v17029_v4, 16  ;;  %v6101_v0 = vld [vmem:[#allocation3 + $0x10] sm:$0xf8] }
 0x342   : > { %13323 = vmatprep.mubr.bf16.mxu1 %v6516_v32  ;;  %13336 = vmatpush3.bf16.msra.mxu1 %v17051_v50  ;;  %v6048_v58 = vrot.slane %v5896_v29, 4  ;;  %v5849_v20 = vadd.f32 %v13285_v46, %v17093_v10  ;;  %v5637_v51 = vpop.f32.mrb[29].mxu0 }
 0x343   : > { %13337 = vmatprep.subr.bf16.mxu1 %v14498_v44  ;;  %v6047_v55 = vrot.slane %v5895_v9, 4  ;;  %v5847_v47 = vadd.f32 %v17093_v10, %v5637_v51  ;;  %v13286_v41 = vpop.f32.mrb[30].mxu0  ;;  %v17210_v22 = vld [vmem:[#allocation3 + $0xc8] sm:$0xf]  ;;  %v17212_v37 = vld [vmem:[#allocation3 + $0xc0] sm:$0xf0] }
 0x344   : > { %6093 = vst [vmem:[#allocation3 + $0xe8] ss:$-4 sps:$4 sm:$0xff] %v6048_v58   ;;  %v5850_v50 = vadd.f32 %v13286_v41, %v17093_v10  ;;  %v5640_v24 = vpop.f32.mrb[31].mxu0  ;;  %v17215_v19 = vld [vmem:[#allocation3 + $0xb8] sm:$0xf]  ;;  %v5881_v16 = vmax.f32 %v5849_v20, 0.0 }
 0x345   : > { %v17217_v45 = vld [vmem:[#allocation3 + $0xb0] sm:$0xf0]  ;;  %6091 = vst [vmem:[#allocation3 + $0xd8] ss:$-4 sps:$4 sm:$0xff] %v6047_v55   ;;  %v5848_v35 = vadd.f32 %v17093_v10, %v5640_v24  ;;  %v6518_v13 = vrot.slane %v17215_v19, 4  ;;  %v6520_v25 = vrot.slane %v17212_v37, 4 }
 0x346   : > { %13338 = vmatpush3.bf16.msra.mxu1 %v14498_v44  ;;  %v6517_v54 = vrot.slane %v17217_v45, 4  ;;  %v5882_v2 = vmax.f32 %v5850_v50, 0.0  ;;  %v6521_v40 = vrot.slane %v17210_v22, 4  ;;  %v5879_v7 = vmax.f32 %v5847_v47, 0.0  ;;  %v14502_v55 = vld [vmem:[%s18179_s3 + $0x28] sm:$0xff]  }
 0x347   : > { %13339 = vmatprep.subr.bf16.mxu1 %v14499_v53  ;;  %v5880_v52 = vmax.f32 %v5848_v35, 0.0  ;;  %v6135_v44 = vshll.u32 %v6099_v56, 16  ;;  %v6134_v47 = vrot.slane %v6132_v39, 3  ;;  %v6142_v50 = vrot.slane %v6140_v42, 3 }
 0x348   : > { %v6519_v10 = vsel %vm6483_vm14, %v6517_v54, %v6518_v13  ;;  %v5898_v31 = vpack.c.bf16 %v5882_v2, %v5881_v16  ;;  %v6522_v38 = vsel %vm6483_vm14, %v6520_v25, %v6521_v40  ;;  %v6145_v24 = vrot.slane %v6143_v18, 4  ;;  %v6103_v16 = vld [vmem:[#allocation3 + $0x20] sm:$0xf8]  ;;  %v14503_v40 = vld [vmem:[%s18179_s3 + $0x30] sm:$0xff]  }
 0x349   : > { %13324 = vmatmul.mubr.bf16.gmra.mrb[4].mxu1 %v6519_v10  ;;  %v5897_v27 = vpack.c.bf16 %v5880_v52, %v5879_v7  ;;  %v6137_v41 = vrot.slane %v6135_v44, 4  ;;  %v6149_v54 = vshrl.u32 %v6101_v0, 16  ;;  %v6152_v13 = vshll.u32 %v6101_v0, 16  ;;  %v14504_v0 = vld [vmem:[%s18179_s3 + $0x38] sm:$0xff]  }
 0x34a   : > { %13327 = vmatprep.mubr.bf16.mxu1 %v6522_v38  ;;  %13340 = vmatpush3.bf16.msra.mxu1 %v14499_v53  ;;  %v6050_v11 = vrot.slane %v5898_v31, 4  ;;  %v6157_v2 = vshrl.u32 %v17118_v30, 16  ;;  %v6160_v25 = vshll.u32 %v17118_v30, 16  ;;  %v6146_v7 = vor.u32 %v6145_v24, %v6142_v50  ;;  %v14505_v24 = vld [vmem:[%s18179_s3 + $0x80] sm:$0xff]  }
 0x34b   : > { %13341 = vmatprep.subr.bf16.mxu1 %v14500_v3  ;;  %v6049_v29 = vrot.slane %v5897_v27, 4  ;;  %v17234_v32 = vld [vmem:[#allocation3 + $0xe8] sm:$0xf]  ;;  %v17236_v9 = vld [vmem:[#allocation3 + $0xe0] sm:$0xf0]  ;;  %v6138_v56 = vor.u32 %v6137_v41, %v6134_v47  ;;  %v6151_v52 = vrot.slane %v6149_v54, 3 }
 0x34c   : > { %6097 = vst [vmem:[#allocation3 + $0x108] ss:$-4 sps:$4 sm:$0xff] %v6050_v11   ;;  %v17238_v46 = vld [vmem:[#allocation3 + $0xd8] sm:$0xf]  ;;  %v17240_v58 = vld [vmem:[#allocation3 + $0xd0] sm:$0xf0] }
 0x34d   : > { %v6526_v20 = vrot.slane %v17236_v9, 4  ;;  %v6527_v51 = vrot.slane %v17234_v32, 4  ;;  %6095 = vst [vmem:[#allocation3 + $0xf8] ss:$-4 sps:$4 sm:$0xff] %v6049_v29   ;;  %v6523_v53 = vrot.slane %v17240_v58, 4  ;;  %v6524_v4 = vrot.slane %v17238_v46, 4 }
 0x34e   : > { %13342 = vmatpush3.bf16.msra.mxu1 %v14500_v3  ;;  %v6154_v10 = vrot.slane %v6152_v13, 4  ;;  %v6166_v31 = vshrl.u32 %v6103_v16, 16  ;;  %v6169_v38 = vshll.u32 %v6103_v16, 16  ;;  %v6177_v11 = vshll.u32 %v17113_v8, 16  ;;  %v6107_v47 = vld [vmem:[#allocation3 + $0x40] sm:$0xf8] }
 0x34f   : > { %13343 = vmatprep.subr.bf16.mxu1 %v14501_v63  ;;  %v6525_v35 = vsel %vm6483_vm14, %v6523_v53, %v6524_v4  ;;  %v6528_v3 = vsel %vm6483_vm14, %v6526_v20, %v6527_v51  ;;  %v6159_v42 = vrot.slane %v6157_v2, 3  ;;  %v6162_v18 = vrot.slane %v6160_v25, 4  ;;  %v6105_v51 = vld [vmem:[#allocation3 + $0x30] sm:$0xf8] }
 0x350   : > { %v6147_v29 = vsel %vm5952_vm8, %v6138_v56, %v6146_v7  ;;  %v6168_v53 = vrot.slane %v6166_v31, 3  ;;  %v6155_v41 = vor.u32 %v6154_v10, %v6151_v52  ;;  %v6186_v54 = vshll.u32 %v6105_v51, 16  ;;  %v14506_v10 = vld [vmem:[%s18179_s3 + $0x88] sm:$0xff]  }
 0x351   : > { %13328 = vmatmul.mubr.bf16.gmra.mrb[8].mxu1 %v6525_v35  ;;  %v6163_v50 = vor.u32 %v6162_v18, %v6159_v42  ;;  %v6183_v35 = vshrl.u32 %v6105_v51, 16  ;;  %v6191_v13 = vshrl.u32 %v17136_v26, 16  ;;  %v6200_v16 = vshrl.u32 %v6107_v47, 16 }
 0x352   : > { %13331 = vmatprep.mubr.bf16.mxu1 %v6528_v3  ;;  %13344 = vmatpush3.bf16.msra.mxu1 %v14501_v63  ;;  %v6174_v63 = vshrl.u32 %v17113_v8, 16  ;;  %v6171_v8 = vrot.slane %v6169_v38, 4  ;;  %v6194_v3 = vshll.u32 %v17136_v26, 16  ;;  %v6203_v2 = vshll.u32 %v6107_v47, 16 }
 0x353   : > { %13345 = vmatprep.subr.bf16.mxu1 %v14502_v55  ;;  %v6208_v25 = vshrl.u32 %v17131_v12, 16  ;;  %v6164_v52 = vsel %vm5952_vm8, %v6155_v41, %v6163_v50  ;;  %v6185_v31 = vrot.slane %v6183_v35, 3  ;;  %v6188_v38 = vrot.slane %v6186_v54, 4 }
 0x354   : > { %v17256_v27 = vld [vmem:[#allocation3 + $0xf8] sm:$0xf]  ;;  %v17258_v39 = vld [vmem:[#allocation3 + $0xf0] sm:$0xf0]  ;;  %v6176_v4 = vrot.slane %v6174_v63, 3  ;;  %v6172_v56 = vor.u32 %v6171_v8, %v6168_v53  ;;  %v6193_v63 = vrot.slane %v6191_v13, 3 }
 0x355   : > { %v6529_v30 = vrot.slane %v17258_v39, 4  ;;  %v6530_v44 = vrot.slane %v17256_v27, 4  ;;  %v6196_v26 = vrot.slane %v6194_v3, 4  ;;  %v6210_v42 = vrot.slane %v6208_v25, 3  ;;  %v6111_v53 = vld [vmem:[#allocation3 + $0x60] sm:$0xf8] }
 0x356   : > { %13346 = vmatpush3.bf16.msra.mxu1 %v14502_v55  ;;  %v6179_v55 = vrot.slane %v6177_v11, 4  ;;  %v6109_v11 = vld [vmem:[#allocation3 + $0x50] sm:$0xf8]  ;;  %v6228_v51 = vshll.u32 %v17154_v17, 16  ;;  %v6234_v50 = vshrl.u32 %v6111_v53, 16  ;;  %v6237_v35 = vshll.u32 %v6111_v53, 16 }
 0x357   : > { %13347 = vmatprep.subr.bf16.mxu1 %v14503_v40  ;;  %v6531_v20 = vsel %vm6483_vm14, %v6529_v30, %v6530_v44  ;;  %v6202_v30 = vrot.slane %v6200_v16, 3  ;;  %v6205_v44 = vrot.slane %v6203_v2, 4  ;;  %v14507_v8 = vld [vmem:[%s18179_s3 + $0x90] sm:$0xff]   ;;  %v6245_v54 = vshll.u32 %v17149_v34, 16  ;;  %v14508_v2 = vld [vmem:[%s18179_s3 + $0x98] sm:$0xff]  }
 0x358   : > { %v6180_v7 = vor.u32 %v6179_v55, %v6176_v4  ;;  %v6189_v4 = vor.u32 %v6188_v38, %v6185_v31  ;;  %v6197_v55 = vor.u32 %v6196_v26, %v6193_v63  ;;  %v6230_v16 = vrot.slane %v6228_v51, 4 }
 0x359   : > { %13332 = vmatmul.mubr.bf16.gmra.mrb[12].mxu1 %v6531_v20  ;;  %v6225_v20 = vshrl.u32 %v17154_v17, 16  ;;  %v6206_v47 = vor.u32 %v6205_v44, %v6202_v30  ;;  %v6259_v30 = vshrl.u32 %v17174_v23, 16  ;;  %v6262_v44 = vshll.u32 %v17174_v23, 16 }
 0x35a   : > { %13348 = vmatpush3.bf16.msra.mxu1 %v14503_v40  ;;  %13351 = vmatprep.mubr.bf16.mxu1 %v6147_v29  ;;  %v6211_v40 = vshll.u32 %v17131_v12, 16  ;;  %v6181_v12 = vsel %vm5952_vm8, %v6172_v56, %v6180_v7  ;;  %v6220_v29 = vshll.u32 %v6109_v11, 16  ;;  %v6198_v25 = vsel %vm5952_vm8, %v6189_v4, %v6197_v55  ;;  %v6113_v56 = vld [vmem:[#allocation3 + $0x70] sm:$0xf8] }
 0x35b   : > { %13349 = vmatprep.subr.bf16.mxu1 %v14504_v0  ;;  %v6227_v17 = vrot.slane %v6225_v20, 3  ;;  %v6236_v7 = vrot.slane %v6234_v50, 3  ;;  %v6251_v26 = vshrl.u32 %v6113_v56, 16  ;;  %v6261_v55 = vrot.slane %v6259_v30, 3  ;;  %v14512_v30 = vld [vmem:[%s18179_s3 + $0xb8] sm:$0xff]  }
 0x35c   : > { %v6213_v18 = vrot.slane %v6211_v40, 4  ;;  %v6222_v3 = vrot.slane %v6220_v29, 4  ;;  %v6279_v29 = vshll.u32 %v17167_v60, 16  ;;  %v6264_v23 = vrot.slane %v6262_v44, 4 }
 0x35d   : > { %v6231_v63 = vor.u32 %v6230_v16, %v6227_v17  ;;  %v6293_v16 = vshrl.u32 %v17190_v61, 16  ;;  %v7255_v28 = vshrl.u32 %v17258_v39, 16 }
 0x35e   : > { %13350 = vmatpush3.bf16.msra.mxu1 %v14504_v0  ;;  %v6217_v0 = vshrl.u32 %v6109_v11, 16  ;;  %v6214_v41 = vor.u32 %v6213_v18, %v6210_v42  ;;  %v6254_v11 = vshll.u32 %v6113_v56, 16  ;;  %v14509_v42 = vld [vmem:[%s18179_s3 + $0xa0] sm:$0xff]   ;;  %v6265_v56 = vor.u32 %v6264_v23, %v6261_v55 }
 0x35f   : > { %13383 = vmatprep.subr.bf16.mxu1 %v14505_v24  ;;  %v17320_v55 = vld [vmem:[%s18179_s3 + $0x100] sm:$0xff]   ;;  %v6327_v23 = vshrl.u32 %v17215_v19, 16 }
 0x360   : > { %v6219_v13 = vrot.slane %v6217_v0, 3  ;;  %v6215_v40 = vsel %vm5952_vm8, %v6206_v47, %v6214_v41  ;;  %v6276_v0 = vshrl.u32 %v17167_v60, 16  ;;  %v6256_v4 = vrot.slane %v6254_v11, 4  ;;  %v14510_v47 = vld [vmem:[%s18179_s3 + $0xa8] sm:$0xff]  }
 0x361   : > { %13352 = vmatmul.mubr.bf16.vlgmr.msra.gmra.mrb[16].mxu1 %v6164_v52  ;;  %v6239_v52 = vrot.slane %v6237_v35, 4  ;;  %v6295_v11 = vrot.slane %v6293_v16, 3  ;;  %v6329_v16 = vrot.slane %v6327_v23, 3 }
 0x362   : > { %13355 = vmatprep.mubr.bf16.mxu1 %v6181_v12  ;;  %13384 = vmatpush3.bf16.msra.mxu1 %v14505_v24  ;;  %v6242_v24 = vshrl.u32 %v17149_v34, 16  ;;  %v6247_v34 = vrot.slane %v6245_v54, 4  ;;  %v6223_v38 = vor.u32 %v6222_v3, %v6219_v13  ;;  %v6278_v35 = vrot.slane %v6276_v0, 3  ;;  %v6117_v54 = vld [vmem:[#allocation3 + $0x90] sm:$0xf8] }
 0x363   : > { %13385 = vmatprep.subr.bf16.mxu1 %v14506_v10  ;;  %v6240_v20 = vor.u32 %v6239_v52, %v6236_v7  ;;  %v6119_v13 = vld [vmem:[#allocation3 + $0xa0] sm:$0xf8]  ;;  %v6285_v3 = vshrl.u32 %v6117_v54, 16  ;;  %v6288_v17 = vshll.u32 %v6117_v54, 16  ;;  %v6344_v54 = vshrl.u32 %v17210_v22, 16 }
 0x364   : > { %v6244_v31 = vrot.slane %v6242_v24, 3  ;;  %v6232_v53 = vsel %vm5952_vm8, %v6223_v38, %v6231_v63  ;;  %v6281_v24 = vrot.slane %v6279_v29, 4  ;;  %v6313_v38 = vshll.u32 %v17185_v57, 16 }
 0x365   : > { %v6287_v63 = vrot.slane %v6285_v3, 3 }
 0x366   : > { %13386 = vmatpush3.bf16.msra.mxu1 %v14506_v10  ;;  %v6115_v10 = vld [vmem:[#allocation3 + $0x80] sm:$0xf8]  ;;  %v6248_v51 = vor.u32 %v6247_v34, %v6244_v31  ;;  %v6282_v52 = vor.u32 %v6281_v24, %v6278_v35  ;;  %v6302_v31 = vshrl.u32 %v6119_v13, 16  ;;  %v6305_v34 = vshll.u32 %v6119_v13, 16 }
 0x367   : > { %13387 = vmatprep.subr.bf16.mxu1 %v14507_v8  ;;  %v6268_v18 = vshrl.u32 %v6115_v10, 16  ;;  %v6271_v12 = vshll.u32 %v6115_v10, 16  ;;  %v6310_v10 = vshrl.u32 %v17185_v57, 16  ;;  %v6315_v57 = vrot.slane %v6313_v38, 4 }
 0x368   : > { %v6249_v60 = vsel %vm5952_vm8, %v6240_v20, %v6248_v51  ;;  %v6307_v0 = vrot.slane %v6305_v34, 4  ;;  %v6123_v20 = vld [vmem:[#allocation3 + $0xc0] sm:$0xf8]  ;;  %v6364_v38 = vshll.u32 %v17238_v46, 16 }
 0x369   : > { %13356 = vmatmul.mubr.bf16.gmra.mrb[20].mxu1 %v6198_v25  ;;  %v6270_v41 = vrot.slane %v6268_v18, 3  ;;  %v6273_v50 = vrot.slane %v6271_v12, 4  ;;  %v14511_v25 = vld [vmem:[%s18179_s3 + $0xb0] sm:$0xff]   ;;  %v6304_v12 = vrot.slane %v6302_v31, 3  ;;  %v6312_v29 = vrot.slane %v6310_v10, 3 }
 0x36a   : > { %13359 = vmatprep.mubr.bf16.mxu1 %v6215_v40  ;;  %13388 = vmatpush3.bf16.msra.mxu1 %v14507_v8  ;;  %v6253_v8 = vrot.slane %v6251_v26, 3  ;;  %v6290_v26 = vrot.slane %v6288_v17, 4  ;;  %v6121_v18 = vld [vmem:[#allocation3 + $0xb0] sm:$0xf8]  ;;  %v6127_v31 = vld [vmem:[#allocation3 + $0xe0] sm:$0xf8] }
 0x36b   : > { %13389 = vmatprep.subr.bf16.mxu1 %v14508_v2  ;;  %v6274_v7 = vor.u32 %v6273_v50, %v6270_v41  ;;  %v6336_v41 = vshrl.u32 %v6123_v20, 16  ;;  %v6339_v50 = vshll.u32 %v6123_v20, 16  ;;  %v6308_v35 = vor.u32 %v6307_v0, %v6304_v12 }
 0x36c   : > { %v6257_v40 = vor.u32 %v6256_v4, %v6253_v8  ;;  %v6291_v51 = vor.u32 %v6290_v26, %v6287_v63  ;;  %v6319_v8 = vshrl.u32 %v6121_v18, 16  ;;  %v6322_v4 = vshll.u32 %v6121_v18, 16 }
 0x36d   : > { %v6316_v24 = vor.u32 %v6315_v57, %v6312_v29  ;;  %v6361_v10 = vshrl.u32 %v17238_v46, 16  ;;  %v6381_v18 = vshll.u32 %v17234_v32, 16  ;;  %v6366_v57 = vrot.slane %v6364_v38, 4 }
 0x36e   : > { %13390 = vmatpush3.bf16.msra.mxu1 %v14508_v2  ;;  %v6296_v2 = vshll.u32 %v17190_v61, 16  ;;  %v6266_v44 = vsel %vm5952_vm8, %v6257_v40, %v6265_v56  ;;  %v6321_v3 = vrot.slane %v6319_v8, 3  ;;  %v6324_v17 = vrot.slane %v6322_v4, 4 }
 0x36f   : > { %13391 = vmatprep.subr.bf16.mxu1 %v14509_v42  ;;  %v6341_v40 = vrot.slane %v6339_v50, 4  ;;  %v6317_v56 = vsel %vm5952_vm8, %v6308_v35, %v6316_v24  ;;  %v6363_v29 = vrot.slane %v6361_v10, 3  ;;  %v6383_v23 = vrot.slane %v6381_v18, 4 }
 0x370   : > { %v6298_v61 = vrot.slane %v6296_v2, 4  ;;  %v6325_v63 = vor.u32 %v6324_v17, %v6321_v3 }
 0x371   : > { %13360 = vmatmul.mubr.bf16.gmra.mrb[24].mxu1 %v6232_v53 }
 0x372   : > { %13363 = vmatprep.mubr.bf16.mxu1 %v6249_v60  ;;  %13392 = vmatpush3.bf16.msra.mxu1 %v14509_v42  ;;  %v6283_v42 = vsel %vm5952_vm8, %v6274_v7, %v6282_v52  ;;  %v6299_v53 = vor.u32 %v6298_v61, %v6295_v11  ;;  %v6347_v60 = vshll.u32 %v17210_v22, 16  ;;  %v6346_v7 = vrot.slane %v6344_v54, 3 }
 0x373   : > { %13393 = vmatprep.subr.bf16.mxu1 %v14510_v47  ;;  %v6370_v61 = vshrl.u32 %v6127_v31, 16  ;;  %v6367_v54 = vor.u32 %v6366_v57, %v6363_v29  ;;  %v7034_v57 = vshrl.u32 %v17115_v33, 16 }
 0x374   : > { %v6300_v13 = vsel %vm5952_vm8, %v6291_v51, %v6299_v53  ;;  %v6349_v52 = vrot.slane %v6347_v60, 4  ;;  %v6983_v53 = vld [vmem:[#allocation3 + $0x8] sm:$0x1f] }
 0x375   : > { %v6372_v51 = vrot.slane %v6370_v61, 3  ;;  %v7008_v60 = vshrl.u32 %v6983_v53, 16  ;;  %v7020_v61 = vshll.u32 %v17120_v21, 16 }
 0x376   : > { %13394 = vmatpush3.bf16.msra.mxu1 %v14510_v47  ;;  %v6330_v47 = vshll.u32 %v17215_v19, 16  ;;  %v6125_v19 = vld [vmem:[#allocation3 + $0xd0] sm:$0xf8] }
 0x377   : > { %13395 = vmatprep.subr.bf16.mxu1 %v14511_v25  ;;  %v6353_v22 = vshrl.u32 %v6125_v19, 16  ;;  %v6356_v34 = vshll.u32 %v6125_v19, 16 }
 0x378   : > { %v6332_v2 = vrot.slane %v6330_v47, 4  ;;  %v6129_v47 = vld [vmem:[#allocation3 + $0xf0] sm:$0xf8] }
 0x379   : > { %13364 = vmatmul.mubr.bf16.gmra.mrb[28].mxu1 %v6266_v44  ;;  %v6373_v44 = vshll.u32 %v6127_v31, 16  ;;  %v6355_v12 = vrot.slane %v6353_v22, 3  ;;  %v6358_v0 = vrot.slane %v6356_v34, 4  ;;  %v6387_v3 = vshrl.u32 %v6129_v47, 16  ;;  %v6984_v34 = vld [vmem:[#allocation3 + $0x18] sm:$0x1f] }
 0x37a   : > { %13367 = vmatprep.mubr.bf16.mxu1 %v6283_v42  ;;  %13396 = vmatpush3.bf16.msra.mxu1 %v14511_v25  ;;  %v6338_v25 = vrot.slane %v6336_v41, 3  ;;  %v6333_v26 = vor.u32 %v6332_v2, %v6329_v16  ;;  %v6378_v42 = vshrl.u32 %v17234_v32, 16  ;;  %v14585_v41 = vld [vmem:[#allocation3] sm:$0xf0]  ;;  %v5996_v32 = vld [vmem:[#allocation3 + $0xf8] sm:$0x10] }
 0x37b   : > { %13397 = vmatprep.subr.bf16.mxu1 %v14512_v30  ;;  %v6375_v8 = vrot.slane %v6373_v44, 4  ;;  %v7000_v50 = vshrl.u32 %v14585_v41, 16  ;;  %v7003_v35 = vshll.u32 %v14585_v41, 16  ;;  %v6359_v24 = vor.u32 %v6358_v0, %v6355_v12  ;;  %v6986_v41 = vld [vmem:[#allocation3 + $0x38] sm:$0x1f] }
 0x37c   : > { %v6342_v11 = vor.u32 %v6341_v40, %v6338_v25  ;;  %v6334_v20 = vsel %vm5952_vm8, %v6325_v63, %v6333_v26  ;;  %v6380_v4 = vrot.slane %v6378_v42, 3  ;;  %v6390_v17 = vshll.u32 %v6129_v47, 16  ;;  %v6985_v42 = vld [vmem:[#allocation3 + $0x28] sm:$0x1f] }
 0x37d   : > { %v6395_v16 = vshrl.u32 %v17256_v27, 16  ;;  %v6398_v2 = vshll.u32 %v17256_v27, 16  ;;  %v6376_v25 = vor.u32 %v6375_v8, %v6372_v51  ;;  %v5997_v19 = vsel %vm17038_vm0, 0, %v5996_v32 }
 0x37e   : > { %13398 = vmatpush3.bf16.msra.mxu1 %v14512_v30  ;;  %v6350_v30 = vor.u32 %v6349_v52, %v6346_v7  ;;  %v6384_v40 = vor.u32 %v6383_v23, %v6380_v4  ;;  %5998 = vst [vmem:[#allocation3 + $0xf8] sm:$0x10] %v5997_v19  ;;  %v6368_v7 = vsel %vm5952_vm8, %v6359_v24, %v6367_v54  ;;  %v7005_v52 = vrot.slane %v7003_v35, 5  ;;  %v6987_v54 = vld [vmem:[#allocation3 + $0x48] sm:$0x1f] }
 0x37f   : > { %13431 = vmatprep.subr.bf16.mxu1 %v17320_v55  ;;  %v7010_v31 = vrot.slane %v7008_v60, 4  ;;  %v6389_v10 = vrot.slane %v6387_v3, 3  ;;  %v6392_v38 = vrot.slane %v6390_v17, 4  ;;  %v6397_v63 = vrot.slane %v6395_v16, 3 }
 0x380   : > { %v6351_v46 = vsel %vm5952_vm8, %v6342_v11, %v6350_v30  ;;  %v6400_v26 = vrot.slane %v6398_v2, 4  ;;  %v6385_v27 = vsel %vm5952_vm8, %v6376_v25, %v6384_v40  ;;  %v7017_v11 = vshrl.u32 %v17120_v21, 16 }
 0x381   : > { %13368 = vmatmul.mubr.bf16.gmra.mrb[0].mxu1 %v6300_v13  ;;  %v7011_v13 = vshll.u32 %v6983_v53, 16  ;;  %v7025_v30 = vshrl.u32 %v6984_v34, 16  ;;  %v7028_v44 = vshll.u32 %v6984_v34, 16  ;;  %v6393_v0 = vor.u32 %v6392_v38, %v6389_v10  ;;  %v6988_v38 = vld [vmem:[#allocation3 + $0x58] sm:$0x1f] }
 0x382   : > { %13371 = vmatprep.mubr.bf16.mxu1 %v6317_v56  ;;  %v7002_v56 = vrot.slane %v7000_v50, 4  ;;  %v6401_v29 = vor.u32 %v6400_v26, %v6397_v63  ;;  %v7042_v51 = vshrl.u32 %v6985_v42, 16  ;;  %v7045_v53 = vshll.u32 %v6985_v42, 16 }
 0x383   : > { %v7013_v22 = vrot.slane %v7011_v13, 5  ;;  %v7022_v8 = vrot.slane %v7020_v61, 5  ;;  %v7027_v4 = vrot.slane %v7025_v30, 4  ;;  %v7030_v23 = vrot.slane %v7028_v44, 5 }
 0x384   : > { %v7006_v18 = vor.u32 %v7005_v52, %v7002_v56  ;;  %v6402_v21 = vsel %vm5952_vm8, %v6393_v0, %v6401_v29  ;;  %v7036_v50 = vrot.slane %v7034_v57, 4  ;;  %v7044_v32 = vrot.slane %v7042_v51, 4 }
 0x385   : > { %v7014_v12 = vor.u32 %v7013_v22, %v7010_v31  ;;  %v7047_v24 = vrot.slane %v7045_v53, 5  ;;  %v7051_v13 = vshrl.u32 %v17138_v6, 16  ;;  %v7054_v3 = vshll.u32 %v17138_v6, 16  ;;  %v14514_v31 = vld [vmem:[%s18179_s3 + $0x108] sm:$0xff]  }
 0x386   : > { %v7059_v17 = vshrl.u32 %v6986_v41, 16  ;;  %v7062_v16 = vshll.u32 %v6986_v41, 16  ;;  %v7068_v2 = vshrl.u32 %v17133_v14, 16  ;;  %v7071_v25 = vshll.u32 %v17133_v14, 16 }
 0x387   : > { %v7015_v47 = vsel %vm1313_vm3, %v7006_v18, %v7014_v12  ;;  %v7076_v40 = vshrl.u32 %v6987_v54, 16  ;;  %v7079_v19 = vshll.u32 %v6987_v54, 16  ;;  %v7053_v22 = vrot.slane %v7051_v13, 4  ;;  %v6989_v18 = vld [vmem:[#allocation3 + $0x68] sm:$0x1f]  ;;  %v14515_v12 = vld [vmem:[%s18179_s3 + $0x110] sm:$0xff]  }
 0x388   : > { %v7056_v34 = vrot.slane %v7054_v3, 5  ;;  %v7061_v10 = vrot.slane %v7059_v17, 4  ;;  %v7064_v6 = vrot.slane %v7062_v16, 5  ;;  %v7070_v63 = vrot.slane %v7068_v2, 4  ;;  %v6991_v54 = vld [vmem:[#allocation3 + $0x88] sm:$0x1f] }
 0x389   : > { %13372 = vmatmul.mubr.bf16.gmra.mrb[4].mxu1 %v6334_v20  ;;  %v7037_v20 = vshll.u32 %v17115_v33, 16  ;;  %v7031_v33 = vor.u32 %v7030_v23, %v7027_v4  ;;  %v7073_v26 = vrot.slane %v7071_v25, 5  ;;  %v7085_v61 = vshrl.u32 %v17156_v62, 16  ;;  %v14517_v2 = vld [vmem:[%s18179_s3 + $0x120] sm:$0xff]  }
 0x38a   : > { %13375 = vmatprep.mubr.bf16.mxu1 %v6351_v46  ;;  %v7019_v46 = vrot.slane %v7017_v11, 4  ;;  %v7081_v11 = vrot.slane %v7079_v19, 5  ;;  %v7088_v30 = vshll.u32 %v17156_v62, 16  ;;  %v7093_v44 = vshrl.u32 %v6988_v38, 16 }
 0x38b   : > { %v7039_v35 = vrot.slane %v7037_v20, 5  ;;  %v7096_v42 = vshll.u32 %v6988_v38, 16  ;;  %v7057_v0 = vor.u32 %v7056_v34, %v7053_v22  ;;  %v7065_v29 = vor.u32 %v7064_v6, %v7061_v10  ;;  %v14518_v6 = vld [vmem:[%s18179_s3 + $0x128] sm:$0xff]  }
 0x38c   : > { %v7023_v60 = vor.u32 %v7022_v8, %v7019_v46  ;;  %v7074_v57 = vor.u32 %v7073_v26, %v7070_v63  ;;  %v7102_v51 = vshrl.u32 %v17151_v5, 16  ;;  %v7110_v53 = vshrl.u32 %v6989_v18, 16 }
 0x38d   : > { %v7040_v56 = vor.u32 %v7039_v35, %v7036_v50  ;;  %v7113_v46 = vshll.u32 %v6989_v18, 16  ;;  %v7087_v62 = vrot.slane %v7085_v61, 4  ;;  %v7090_v8 = vrot.slane %v7088_v30, 5  ;;  %v6990_v50 = vld [vmem:[#allocation3 + $0x78] sm:$0x1f]  ;;  %v14519_v18 = vld [vmem:[%s18179_s3 + $0x130] sm:$0xff]  }
 0x38e   : > { %v7032_v52 = vsel %vm1313_vm3, %v7023_v60, %v7031_v33  ;;  %v7095_v4 = vrot.slane %v7093_v44, 4  ;;  %v7098_v23 = vrot.slane %v7096_v42, 5  ;;  %v7104_v35 = vrot.slane %v7102_v51, 4 }
 0x38f   : > { %v7091_v60 = vor.u32 %v7090_v8, %v7087_v62  ;;  %v7119_v13 = vshrl.u32 %v17177_v49, 16  ;;  %v7122_v3 = vshll.u32 %v17177_v49, 16  ;;  %v7127_v17 = vshrl.u32 %v6990_v50, 16 }
 0x390   : > { %v7099_v33 = vor.u32 %v7098_v23, %v7095_v4  ;;  %v7130_v16 = vshll.u32 %v6990_v50, 16  ;;  %v7136_v25 = vshrl.u32 %v17169_v43, 16  ;;  %v7144_v19 = vshrl.u32 %v6991_v54, 16  ;;  %v14520_v4 = vld [vmem:[%s18179_s3 + $0x138] sm:$0xff]  }
 0x391   : > { %13376 = vmatmul.mubr.bf16.gmra.mrb[8].mxu1 %v6368_v7  ;;  %v7048_v7 = vor.u32 %v7047_v24, %v7044_v32  ;;  %v7112_v32 = vrot.slane %v7110_v53, 4  ;;  %v7115_v24 = vrot.slane %v7113_v46, 5  ;;  %v7121_v22 = vrot.slane %v7119_v13, 4 }
 0x392   : > { %13379 = vmatprep.mubr.bf16.mxu1 %v6385_v27  ;;  %v7078_v27 = vrot.slane %v7076_v40, 4  ;;  %v7139_v40 = vshll.u32 %v17169_v43, 16  ;;  %v7124_v49 = vrot.slane %v7122_v3, 5  ;;  %v7129_v34 = vrot.slane %v7127_v17, 4  ;;  %v17398_v3 = vld [vmem:[%s18179_s3 + $0xc0] sm:$0xff]  }
 0x393   : > { %v7049_v14 = vsel %vm1313_vm3, %v7040_v56, %v7048_v7  ;;  %v7147_v56 = vshll.u32 %v6991_v54, 16  ;;  %v7132_v10 = vrot.slane %v7130_v16, 5  ;;  %v7138_v38 = vrot.slane %v7136_v25, 4 }
 0x394   : > { %v7082_v20 = vor.u32 %v7081_v11, %v7078_v27  ;;  %v7141_v63 = vrot.slane %v7139_v40, 5  ;;  %v7146_v26 = vrot.slane %v7144_v19, 4  ;;  %v6992_v27 = vld [vmem:[#allocation3 + $0x98] sm:$0x1f]  ;;  %v7153_v61 = vshrl.u32 %v17192_v36, 16 }
 0x395   : > { %v7149_v43 = vrot.slane %v7147_v56, 5  ;;  %v7156_v30 = vshll.u32 %v17192_v36, 16  ;;  %v7161_v44 = vshrl.u32 %v6992_v27, 16  ;;  %v7164_v42 = vshll.u32 %v6992_v27, 16 }
 0x396   : > { %v7083_v41 = vsel %vm1313_vm3, %v7074_v57, %v7082_v20  ;;  %v7170_v20 = vshrl.u32 %v17187_v48, 16  ;;  %v7173_v51 = vshll.u32 %v17187_v48, 16  ;;  %v7155_v46 = vrot.slane %v7153_v61, 4 }
 0x397   : > { %v7150_v57 = vor.u32 %v7149_v43, %v7146_v26  ;;  %v7158_v36 = vrot.slane %v7156_v30, 5  ;;  %v7163_v62 = vrot.slane %v7161_v44, 4  ;;  %v7166_v8 = vrot.slane %v7164_v42, 5  ;;  %v5948_v26 = vld [vmem:[#allocation3 + $0x100] sm:$0x8] }
 0x398   : > { %v7175_v48 = vrot.slane %v7173_v51, 5  ;;  %v7204_v17 = vshrl.u32 %v17212_v37, 16  ;;  %v7207_v16 = vshll.u32 %v17212_v37, 16  ;;  %v7221_v43 = vshrl.u32 %v17240_v58, 16 }
 0x399   : > { %13380 = vmatmul.mubr.bf16.gmra.mrb[12].mxu1 %v6402_v21  ;;  %v7066_v21 = vsel %vm1313_vm3, %v7057_v0, %v7065_v29  ;;  %v7133_v0 = vor.u32 %v7132_v10, %v7129_v34  ;;  %v7142_v29 = vor.u32 %v7141_v63, %v7138_v38  ;;  %v7159_v54 = vor.u32 %v7158_v36, %v7155_v46  ;;  %v6997_v63 = vld [vmem:[#allocation3 + $0xe8] sm:$0x1f] }
 0x39a   : > { %13399 = vmatprep.mubr.bf16.mxu1 %v7015_v47  ;;  %v14516_v47 = vld [vmem:[%s18179_s3 + $0x118] sm:$0xff]   ;;  %v7224_v27 = vshll.u32 %v17240_v58, 16  ;;  %v7238_v42 = vshrl.u32 %v17236_v9, 16 }
 0x39c   : > { %v7240_v46 = vrot.slane %v7238_v42, 4  ;;  %v17463_v42 = vld [vmem:[#allocation3 + $0x68] sm:$0xf] }
 0x3a1   : > { %13400 = vmatmul.mubr.bf16.vlgmr.msra.gmra.mrb[16].mxu1 %v7032_v52  ;;  %v7116_v52 = vor.u32 %v7115_v24, %v7112_v32  ;;  %v7187_v32 = vshrl.u32 %v17217_v45, 16  ;;  %v7190_v24 = vshll.u32 %v17217_v45, 16 }
 0x3a2   : > { %13403 = vmatprep.mubr.bf16.mxu1 %v7049_v14  ;;  %13432 = vmatpush3.bf16.msra.mxu1 %v17320_v55  ;;  %v7105_v55 = vshll.u32 %v17151_v5, 16  ;;  %v6993_v14 = vld [vmem:[#allocation3 + $0xa8] sm:$0x1f] }
 0x3a3   : > { %13433 = vmatprep.subr.bf16.mxu1 %v14514_v31  ;;  %v7181_v53 = vshll.u32 %v6993_v14, 16  ;;  %v7189_v45 = vrot.slane %v7187_v32, 4  ;;  %v7192_v56 = vrot.slane %v7190_v24, 5 }
 0x3a4   : > { %v7107_v5 = vrot.slane %v7105_v55, 5  ;;  %v7178_v55 = vshrl.u32 %v6993_v14, 16 }
 0x3a5   : > { %v7193_v38 = vor.u32 %v7192_v56, %v7189_v45  ;;  %v17427_v45 = vld [vmem:[#allocation3 + $0x20] sm:$0xf0]  ;;  %v17429_v56 = vld [vmem:[#allocation3 + $0x38] sm:$0xf] }
 0x3a6   : > { %13434 = vmatpush3.bf16.msra.mxu1 %v14514_v31  ;;  %v7108_v7 = vor.u32 %v7107_v5, %v7104_v35  ;;  %v7100_v31 = vsel %vm1313_vm3, %v7091_v60, %v7099_v33  ;;  %v7180_v50 = vrot.slane %v7178_v55, 4  ;;  %v7183_v35 = vrot.slane %v7181_v53, 5  ;;  %v6995_v5 = vld [vmem:[#allocation3 + $0xc8] sm:$0x1f] }
 0x3a7   : > { %13435 = vmatprep.subr.bf16.mxu1 %v14515_v12  ;;  %v7167_v60 = vor.u32 %v7166_v8, %v7163_v62  ;;  %v7215_v25 = vshll.u32 %v6995_v5, 16 }
 0x3a8   : > { %v7117_v11 = vsel %vm1313_vm3, %v7108_v7, %v7116_v52  ;;  %v7184_v19 = vor.u32 %v7183_v35, %v7180_v50 }
 0x3a9   : > { %13404 = vmatmul.mubr.bf16.gmra.mrb[20].mxu1 %v7066_v21  ;;  %v6994_v21 = vld [vmem:[#allocation3 + $0xb8] sm:$0x1f]  ;;  %v7168_v7 = vsel %vm1313_vm3, %v7159_v54, %v7167_v60  ;;  %v7217_v10 = vrot.slane %v7215_v25, 5 }
 0x3aa   : > { %13407 = vmatprep.mubr.bf16.mxu1 %v7083_v41  ;;  %13436 = vmatpush3.bf16.msra.mxu1 %v14515_v12  ;;  %v7125_v12 = vor.u32 %v7124_v49, %v7121_v22  ;;  %v7172_v41 = vrot.slane %v7170_v20, 4  ;;  %v7195_v33 = vshrl.u32 %v6994_v21, 16  ;;  %v7198_v13 = vshll.u32 %v6994_v21, 16 }
 0x3ab   : > { %13437 = vmatprep.subr.bf16.mxu1 %v14516_v47  ;;  %v7206_v22 = vrot.slane %v7204_v17, 4  ;;  %v7209_v49 = vrot.slane %v7207_v16, 5  ;;  %v7226_v20 = vrot.slane %v7224_v27, 5 }
 0x3ac   : > { %v7134_v23 = vsel %vm1313_vm3, %v7125_v12, %v7133_v0  ;;  %v7176_v40 = vor.u32 %v7175_v48, %v7172_v41  ;;  %v7197_v52 = vrot.slane %v7195_v33, 4  ;;  %v7246_v12 = vshrl.u32 %v6997_v63, 16  ;;  %v17417_v33 = vld [vmem:[#allocation3 + $0x18] sm:$0xf] }
 0x3ad   : > { %v7210_v30 = vor.u32 %v7209_v49, %v7206_v22  ;;  %v7249_v0 = vshll.u32 %v6997_v63, 16  ;;  %v7969_v49 = vrot.slane %v17429_v56, 4  ;;  %v17447_v63 = vld [vmem:[#allocation3 + $0x58] sm:$0xf] }
 0x3ae   : > { %13438 = vmatpush3.bf16.msra.mxu1 %v14516_v47  ;;  %v7151_v47 = vsel %vm1313_vm3, %v7142_v29, %v7150_v57  ;;  %v7185_v37 = vsel %vm1313_vm3, %v7176_v40, %v7184_v19  ;;  %v5949_v29 = vsel %vm17002_vm10, 0, %v5948_v26  ;;  %v7223_v57 = vrot.slane %v7221_v43, 4  ;;  %v17425_v19 = vld [vmem:[#allocation3 + $0x28] sm:$0xf]  ;;  %v17449_v26 = vld [vmem:[#allocation3 + $0x50] sm:$0xf0] }
 0x3af   : > { %13439 = vmatprep.subr.bf16.mxu1 %v14517_v2  ;;  %5950 = vst [vmem:[#allocation3 + $0x100] sm:$0x8] %v5949_v29  ;;  %v7248_v62 = vrot.slane %v7246_v12, 4  ;;  %v7251_v8 = vrot.slane %v7249_v0, 5  ;;  %v14523_v43 = vld [vmem:[%s18179_s3 + $0xd0] sm:$0xff]   ;;  %v14525_v29 = vld [vmem:[%s18179_s3 + $0xe0] sm:$0xff]  }
 0x3b0   : > { %v17467_v12 = vld [vmem:[#allocation3 + $0x78] sm:$0xf]  ;;  %v17469_v0 = vld [vmem:[#allocation3 + $0x70] sm:$0xf0] }
 0x3b1   : > { %13408 = vmatmul.mubr.bf16.gmra.mrb[24].mxu1 %v7100_v31  ;;  %v7200_v31 = vrot.slane %v7198_v13, 5  ;;  %v7252_v50 = vor.u32 %v7251_v8, %v7248_v62  ;;  %v17419_v13 = vld [vmem:[#allocation3 + $0x10] sm:$0xf0]  ;;  %v17483_v62 = vld [vmem:[#allocation3 + $0x88] sm:$0xf] }
 0x3b2   : > { %13411 = vmatprep.mubr.bf16.mxu1 %v7117_v11  ;;  %13440 = vmatpush3.bf16.msra.mxu1 %v14517_v2  ;;  %v7212_v2 = vshrl.u32 %v6995_v5, 16  ;;  %v7257_v5 = vrot.slane %v7255_v28, 4  ;;  %v7962_v16 = vrot.slane %v17419_v13, 4  ;;  %v17485_v8 = vld [vmem:[#allocation3 + $0x80] sm:$0xf0]  ;;  %v14527_v28 = vld [vmem:[%s18179_s3 + $0xf0] sm:$0xff]  }
 0x3b3   : > { %13441 = vmatprep.subr.bf16.mxu1 %v14518_v6  ;;  %v7201_v61 = vor.u32 %v7200_v31, %v7197_v52  ;;  %v7965_v52 = vrot.slane %v17427_v45, 4  ;;  %v7966_v31 = vrot.slane %v17425_v19, 4 }
 0x3b4   : > { %v7214_v34 = vrot.slane %v7212_v2, 4  ;;  %v7963_v2 = vrot.slane %v17417_v33, 4 }
 0x3b5   : > { %v7202_v58 = vsel %vm1313_vm3, %v7193_v38, %v7201_v61  ;;  %v17444_v38 = vld [vmem:[#allocation3 + $0x40] sm:$0xf0]  ;;  %v7975_v61 = vrot.slane %v17447_v63, 4 }
 0x3b6   : > { %13442 = vmatpush3.bf16.msra.mxu1 %v14518_v6  ;;  %v6996_v6 = vld [vmem:[#allocation3 + $0xd8] sm:$0x1f]  ;;  %v7218_v44 = vor.u32 %v7217_v10, %v7214_v34  ;;  %v7964_v40 = vsel %vm6483_vm14, %v7962_v16, %v7963_v2  ;;  %v14522_v34 = vld [vmem:[%s18179_s3 + $0xc8] sm:$0xff]   ;;  %v7967_v10 = vsel %vm6483_vm14, %v7965_v52, %v7966_v31  ;;  %v7971_v27 = vrot.slane %v17444_v38, 4  ;;  %v17519_v16 = vld [vmem:[#allocation3 + $0xb0] sm:$0xf0] }
 0x3b7   : > { %13443 = vmatprep.subr.bf16.mxu1 %v14519_v18  ;;  %v7229_v11 = vshrl.u32 %v6996_v6, 16  ;;  %v7232_v14 = vshll.u32 %v6996_v6, 16  ;;  %v17524_v2 = vld [vmem:[%s18179_s3 + $0x140] sm:$0xff]  }
 0x3b8   : > { %v7219_v53 = vsel %vm1313_vm3, %v7210_v30, %v7218_v44 }
 0x3b9   : > { %13412 = vmatmul.mubr.bf16.gmra.mrb[28].mxu1 %v7134_v23  ;;  %v7231_v51 = vrot.slane %v7229_v11, 4  ;;  %v7234_v55 = vrot.slane %v7232_v14, 5  ;;  %v7974_v14 = vrot.slane %v17449_v26, 4 }
 0x3ba   : > { %13415 = vmatprep.mubr.bf16.mxu1 %v7151_v47  ;;  %13444 = vmatpush3.bf16.msra.mxu1 %v14519_v18  ;;  %v7241_v18 = vshll.u32 %v17236_v9, 16  ;;  %v6998_v9 = vld [vmem:[#allocation3 + $0xf8] sm:$0x1f]  ;;  %v7258_v47 = vshll.u32 %v17258_v39, 16 }
 0x3bb   : > { %13445 = vmatprep.subr.bf16.mxu1 %v14520_v4  ;;  %v7235_v23 = vor.u32 %v7234_v55, %v7231_v51  ;;  %v7263_v21 = vshrl.u32 %v6998_v9, 16  ;;  %v7266_v41 = vshll.u32 %v6998_v9, 16  ;;  %v7976_v44 = vsel %vm6483_vm14, %v7974_v14, %v7975_v61  ;;  %v17545_v14 = vld [vmem:[#allocation3 + $0xd8] sm:$0xf]  ;;  %v17547_v61 = vld [vmem:[#allocation3 + $0xd0] sm:$0xf0] }
 0x3bc   : > { %v7243_v36 = vrot.slane %v7241_v18, 5  ;;  %v7260_v32 = vrot.slane %v7258_v47, 5  ;;  %v17465_v18 = vld [vmem:[#allocation3 + $0x60] sm:$0xf0]  ;;  %v7980_v51 = vrot.slane %v17469_v0, 4  ;;  %v7981_v55 = vrot.slane %v17467_v12, 4 }
 0x3bd   : > { %v7265_v24 = vrot.slane %v7263_v21, 4  ;;  %v7268_v54 = vrot.slane %v7266_v41, 5  ;;  %v7983_v21 = vrot.slane %v17485_v8, 4  ;;  %v7984_v41 = vrot.slane %v17483_v62, 4 }
 0x3be   : > { %13446 = vmatpush3.bf16.msra.mxu1 %v14520_v4  ;;  %v7227_v4 = vor.u32 %v7226_v20, %v7223_v57  ;;  %v7244_v48 = vor.u32 %v7243_v36, %v7240_v46  ;;  %v7261_v17 = vor.u32 %v7260_v32, %v7257_v5  ;;  %v7977_v57 = vrot.slane %v17465_v18, 4  ;;  %v14528_v32 = vld [vmem:[%s18179_s3 + $0xf8] sm:$0xff]  }
 0x3bf   : > { %13479 = vmatprep.subr.bf16.mxu1 %v17398_v3  ;;  %v7269_v39 = vor.u32 %v7268_v54, %v7265_v24  ;;  %v7978_v20 = vrot.slane %v17463_v42, 4  ;;  %v7982_v36 = vsel %vm6483_vm14, %v7980_v51, %v7981_v55  ;;  %v7985_v24 = vsel %vm6483_vm14, %v7983_v21, %v7984_v41  ;;  %v17569_v21 = vld [vmem:[#allocation3 + $0xf0] sm:$0xf0] }
 0x3c0   : > { %v7236_v35 = vsel %vm1313_vm3, %v7227_v4, %v7235_v23  ;;  %v7253_v60 = vsel %vm1313_vm3, %v7244_v48, %v7252_v50  ;;  %v17489_v4 = vld [vmem:[#allocation3 + $0x98] sm:$0xf]  ;;  %v17491_v23 = vld [vmem:[#allocation3 + $0x90] sm:$0xf0] }
 0x3c1   : > { %13416 = vmatmul.mubr.bf16.gmra.mrb[0].mxu1 %v7168_v7  ;;  %v7270_v25 = vsel %vm1313_vm3, %v7261_v17, %v7269_v39  ;;  %v17431_v7 = vld [vmem:[#allocation3 + $0x30] sm:$0xf0]  ;;  %v7979_v46 = vsel %vm6483_vm14, %v7977_v57, %v7978_v20  ;;  %v7986_v48 = vrot.slane %v17491_v23, 4  ;;  %v7987_v50 = vrot.slane %v17489_v4, 4  ;;  %v17515_v17 = vld [vmem:[#allocation3 + $0xa0] sm:$0xf0] }
 0x3c2   : > { %13419 = vmatprep.mubr.bf16.mxu1 %v7185_v37  ;;  %v7968_v22 = vrot.slane %v17431_v7, 4  ;;  %v17442_v37 = vld [vmem:[#allocation3 + $0x48] sm:$0xf]  ;;  %v17517_v39 = vld [vmem:[#allocation3 + $0xb8] sm:$0xf]  ;;  %v7998_v57 = vrot.slane %v17547_v61, 4 }
 0x3c3   : > { %v7972_v11 = vrot.slane %v17442_v37, 4  ;;  %v7988_v54 = vsel %vm6483_vm14, %v7986_v48, %v7987_v50  ;;  %v7999_v20 = vrot.slane %v17545_v14, 4 }
 0x3c4   : > { %v7970_v6 = vsel %vm6483_vm14, %v7968_v22, %v7969_v49  ;;  %v7992_v22 = vrot.slane %v17519_v16, 4  ;;  %v7993_v49 = vrot.slane %v17517_v39, 4 }
 0x3c5   : > { %v7973_v30 = vsel %vm6483_vm14, %v7971_v27, %v7972_v11  ;;  %v17541_v27 = vld [vmem:[#allocation3 + $0xc8] sm:$0xf]  ;;  %v17543_v11 = vld [vmem:[#allocation3 + $0xc0] sm:$0xf0] }
 0x3c9   : > { %13420 = vmatmul.mubr.bf16.gmra.mrb[4].mxu1 %v7202_v58  ;;  %v5999_v58 = vld [vmem:[#allocation3 + $0x108] sm:$0x10] }
 0x3ca   : > { %13423 = vmatprep.mubr.bf16.mxu1 %v7219_v53  ;;  %v14526_v53 = vld [vmem:[%s18179_s3 + $0xe8] sm:$0xff]   ;;  %v6000_v9 = vsel %vm17038_vm0, 0, %v5999_v58 }
 0x3cb   : > { %6001 = vst [vmem:[#allocation3 + $0x108] sm:$0x10] %v6000_v9  ;;  %v7577_v9 = vld [vmem:[#allocation3 + $0x10] sm:$0xf8] }
 0x3cc   : > { %v7610_v50 = vshrl.u32 %v7577_v9, 16 }
 0x3d1   : > { %13424 = vmatmul.mubr.bf16.gmra.mrb[8].mxu1 %v7236_v35 }
 0x3d2   : > { %13427 = vmatprep.mubr.bf16.mxu1 %v7253_v60  ;;  %v17513_v60 = vld [vmem:[#allocation3 + $0xa8] sm:$0xf] }
 0x3d3   : > { %v7990_v52 = vrot.slane %v17513_v60, 4 }
 0x3d9   : > { %13428 = vmatmul.mubr.bf16.gmra.mrb[12].mxu1 %v7270_v25 }
 0x3da   : > { %13447 = vmatprep.mubr.bf16.mxu1 %v7964_v40  ;;  %v7989_v40 = vrot.slane %v17515_v17, 4 }
 0x3e1   : > { %13448 = vmatmul.mubr.bf16.vlgmr.msra.gmra.mrb[16].mxu1 %v7967_v10 }
 0x3e2   : > { %13451 = vmatprep.mubr.bf16.mxu1 %v7970_v6  ;;  %13480 = vmatpush3.bf16.msra.mxu1 %v17398_v3  ;;  %v14524_v3 = vld [vmem:[%s18179_s3 + $0xd8] sm:$0xff]   ;;  %v7991_v6 = vsel %vm6483_vm14, %v7989_v40, %v7990_v52  ;;  %v7618_v52 = vshrl.u32 %v17417_v33, 16 }
 0x3e3   : > { %13481 = vmatprep.subr.bf16.mxu1 %v14522_v34 }
 0x3e6   : > { %13482 = vmatpush3.bf16.msra.mxu1 %v14522_v34 }
 0x3e7   : > { %13483 = vmatprep.subr.bf16.mxu1 %v14523_v43 }
 0x3e9   : > { %13452 = vmatmul.mubr.bf16.gmra.mrb[20].mxu1 %v7973_v30  ;;  %v7995_v30 = vrot.slane %v17543_v11, 4 }
 0x3ea   : > { %13455 = vmatprep.mubr.bf16.mxu1 %v7976_v44  ;;  %13484 = vmatpush3.bf16.msra.mxu1 %v14523_v43  ;;  %v7994_v43 = vsel %vm6483_vm14, %v7992_v22, %v7993_v49  ;;  %v7996_v44 = vrot.slane %v17541_v27, 4  ;;  %v7621_v22 = vshll.u32 %v17417_v33, 16 }
 0x3eb   : > { %13485 = vmatprep.subr.bf16.mxu1 %v14524_v3 }
 0x3ec   : > { %v7997_v58 = vsel %vm6483_vm14, %v7995_v30, %v7996_v44  ;;  %v7623_v33 = vrot.slane %v7621_v22, 4 }
 0x3ee   : > { %13486 = vmatpush3.bf16.msra.mxu1 %v14524_v3 }
 0x3ef   : > { %13487 = vmatprep.subr.bf16.mxu1 %v14525_v29 }
 0x3f1   : > { %13456 = vmatmul.mubr.bf16.gmra.mrb[24].mxu1 %v7979_v46  ;;  %v17563_v46 = vld [vmem:[#allocation3 + $0xe8] sm:$0xf] }
 0x3f2   : > { %13459 = vmatprep.mubr.bf16.mxu1 %v7982_v36  ;;  %13488 = vmatpush3.bf16.msra.mxu1 %v14525_v29  ;;  %v17565_v36 = vld [vmem:[#allocation3 + $0xe0] sm:$0xf0]  ;;  %v8002_v48 = vrot.slane %v17563_v46, 4 }
 0x3f3   : > { %13489 = vmatprep.subr.bf16.mxu1 %v14526_v53  ;;  %v8001_v41 = vrot.slane %v17565_v36, 4 }
 0x3f4   : > { %v17496_v47 = vpop.f32.mrb[32].mxu0 }
 0x3f5   : > { %v17500_v1 = vpop.f32.mrb[33].mxu0  ;;  %v8003_v44 = vsel %vm6483_vm14, %v8001_v41, %v8002_v48 }
 0x3f6   : > { %v17504_v35 = vpop.f32.mrb[34].mxu0  ;;  %13490 = vmatpush3.bf16.msra.mxu1 %v14526_v53  ;;  %v8000_v53 = vsel %vm6483_vm14, %v7998_v57, %v7999_v20  ;;  %v7612_v57 = vrot.slane %v7610_v50, 3 }
 0x3f7   : > { %v17506_v5 = vpop.f32.mrb[35].mxu0  ;;  %13491 = vmatprep.subr.bf16.mxu1 %v14527_v28 }
 0x3f9   : > { %13460 = vmatmul.mubr.bf16.gmra.mrb[28].mxu1 %v7985_v24 }
 0x3fa   : > { %13463 = vmatprep.mubr.bf16.mxu1 %v7988_v54  ;;  %13492 = vmatpush3.bf16.msra.mxu1 %v14527_v28  ;;  %v17567_v28 = vld [vmem:[#allocation3 + $0xf8] sm:$0xf]  ;;  %v8004_v54 = vrot.slane %v17569_v21, 4 }
 0x3fb   : > { %13493 = vmatprep.subr.bf16.mxu1 %v14528_v32  ;;  %v8005_v40 = vrot.slane %v17567_v28, 4 }
 0x3fc   : > { %v17526_v25 = vpop.f32.mrb[36].mxu0 }
 0x3fd   : > { %18292 = vst [vmem:[#allocation18_spill] sm:$0xff] %v17526_v25  ;;  %v17530_v31 = vpop.f32.mrb[37].mxu0 }
 0x3fe   : > { %18293 = vst [vmem:[#allocation8_spill] sm:$0xff] %v17530_v31  ;;  %v17534_v34 = vpop.f32.mrb[38].mxu0  ;;  %13494 = vmatpush3.bf16.msra.mxu1 %v14528_v32  ;;  %v7613_v32 = vshll.u32 %v7577_v9, 16  ;;  %v17589_v9 = vld [vmem:[#allocation3 + $0x100] sm:$0xf0] }
 0x3ff   : > { %18294 = vst [vmem:[#allocation19_spill] sm:$0xff] %v17534_v34  ;;  %v17536_v10 = vpop.f32.mrb[39].mxu0  ;;  %13527 = vmatprep.subr.bf16.mxu1 %v17524_v2  ;;  %v8007_v41 = vrot.slane %v17589_v9, 4 }
 0x400   : > { %18295 = vst [vmem:[#allocation10_spill] sm:$0xff] %v17536_v10  ;;  %v7615_v20 = vrot.slane %v7613_v32, 4 }
 0x401   : > { %13464 = vmatmul.mubr.bf16.gmra.mrb[0].mxu1 %v7991_v6 }
 0x402   : > { %13467 = vmatprep.mubr.bf16.mxu1 %v7994_v43  ;;  %v17583_v43 = vld [vmem:[#allocation3 + $0x108] sm:$0xf]  ;;  %v7616_v50 = vor.u32 %v7615_v20, %v7612_v57 }
 0x403   : > { %v8008_v48 = vrot.slane %v17583_v43, 4 }
 0x404   : > { %v17549_v3 = vpop.f32.mrb[40].mxu0 }
 0x405   : > { %18296 = vst [vmem:[#allocation9_spill] sm:$0xff] %v17549_v3  ;;  %v17553_v29 = vpop.f32.mrb[41].mxu0  ;;  %v8009_v3 = vsel %vm6483_vm14, %v8007_v41, %v8008_v48 }
 0x406   : > { %18297 = vst [vmem:[#allocation11_spill] sm:$0xff] %v17553_v29  ;;  %v17557_v51 = vpop.f32.mrb[42].mxu0 }
 0x407   : > { %18298 = vst [vmem:[#allocation20_spill] sm:$0xff] %v17557_v51  ;;  %v17559_v55 = vpop.f32.mrb[43].mxu0  ;;  %v7635_v51 = vshrl.u32 %v17425_v19, 16 }
 0x408   : > { %18299 = vst [vmem:[#allocation12_spill] sm:$0xff] %v17559_v55  ;;  %v7581_v55 = vld [vmem:[#allocation3 + $0x30] sm:$0xf8] }
 0x409   : > { %13468 = vmatmul.mubr.bf16.gmra.mrb[4].mxu1 %v7997_v58  ;;  %v7579_v58 = vld [vmem:[#allocation3 + $0x20] sm:$0xf8]  ;;  %v7644_v32 = vshrl.u32 %v7581_v55, 16  ;;  %v7637_v29 = vrot.slane %v7635_v51, 3  ;;  %v7672_v51 = vshll.u32 %v17442_v37, 16 }
 0x40a   : > { %13471 = vmatprep.mubr.bf16.mxu1 %v8000_v53  ;;  %v8006_v53 = vsel %vm6483_vm14, %v8004_v54, %v8005_v40  ;;  %v7647_v54 = vshll.u32 %v7581_v55, 16  ;;  %v7652_v40 = vshrl.u32 %v17429_v56, 16 }
 0x40b   : > { %v7646_v10 = vrot.slane %v7644_v32, 3 }
 0x40c   : > { %v17573_v24 = vpop.f32.mrb[44].mxu0  ;;  %v7649_v31 = vrot.slane %v7647_v54, 4  ;;  %v7654_v57 = vrot.slane %v7652_v40, 3  ;;  %v7587_v54 = vld [vmem:[#allocation3 + $0x60] sm:$0xf8] }
 0x40d   : > { %18300 = vst [vmem:[#allocation13_spill] sm:$0xff] %v17573_v24  ;;  %v17579_v49 = vpop.f32.mrb[45].mxu0  ;;  %v7620_v24 = vrot.slane %v7618_v52, 3  ;;  %v7655_v52 = vshll.u32 %v17429_v56, 16 }
 0x40e   : > { %18301 = vst [vmem:[#allocation14_spill] sm:$0xff] %v17579_v49  ;;  %v17581_v6 = vpop.f32.mrb[46].mxu0  ;;  %v7627_v49 = vshrl.u32 %v7579_v58, 16  ;;  %v7650_v41 = vor.u32 %v7649_v31, %v7646_v10 }
 0x40f   : > { %18302 = vst [vmem:[#allocation21_spill] sm:$0xff] %v17581_v6  ;;  %v17585_v30 = vpop.f32.mrb[47].mxu0  ;;  %v7630_v6 = vshll.u32 %v7579_v58, 16  ;;  %v7657_v20 = vrot.slane %v7655_v52, 4  ;;  %v7674_v52 = vrot.slane %v7672_v51, 4 }
 0x410   : > { %18303 = vst [vmem:[#allocation15_spill] sm:$0xff] %v17585_v30  ;;  %v7638_v30 = vshll.u32 %v17425_v19, 16  ;;  %v7629_v22 = vrot.slane %v7627_v49, 3  ;;  %v7583_v19 = vld [vmem:[#allocation3 + $0x40] sm:$0xf8]  ;;  %v7669_v49 = vshrl.u32 %v17442_v37, 16 }
 0x411   : > { %13472 = vmatmul.mubr.bf16.gmra.mrb[8].mxu1 %v8003_v44  ;;  %v7624_v44 = vor.u32 %v7623_v33, %v7620_v24  ;;  %v7585_v24 = vld [vmem:[#allocation3 + $0x50] sm:$0xf8]  ;;  %v7661_v25 = vshrl.u32 %v7583_v19, 16  ;;  %v7664_v56 = vshll.u32 %v7583_v19, 16  ;;  %v7658_v48 = vor.u32 %v7657_v20, %v7654_v57 }
 0x412   : > { %13475 = vmatprep.mubr.bf16.mxu1 %v8006_v53  ;;  %v7632_v53 = vrot.slane %v7630_v6, 4  ;;  %v7640_v58 = vrot.slane %v7638_v30, 4  ;;  %v7678_v6 = vshrl.u32 %v7585_v24, 16  ;;  %v7681_v30 = vshll.u32 %v7585_v24, 16  ;;  %v14531_v20 = vld [vmem:[%s18179_s3 + $0x150] sm:$0xff]  }
 0x413   : > { %v7625_v34 = vsel %vm5952_vm8, %v7616_v50, %v7624_v44  ;;  %v7689_v50 = vshll.u32 %v17447_v63, 16  ;;  %v7663_v44 = vrot.slane %v7661_v25, 3  ;;  %v7671_v40 = vrot.slane %v7669_v49, 3 }
 0x414   : > { %v7633_v55 = vor.u32 %v7632_v53, %v7629_v22  ;;  %v7641_v33 = vor.u32 %v7640_v58, %v7637_v29  ;;  %v14530_v29 = vld [vmem:[%s18179_s3 + $0x148] sm:$0xff]   ;;  %v7680_v37 = vrot.slane %v7678_v6, 3  ;;  %v7683_v22 = vrot.slane %v7681_v30, 4  ;;  %v7589_v58 = vld [vmem:[#allocation3 + $0x70] sm:$0xf8] }
 0x415   : > { %v7659_v31 = vsel %vm5952_vm8, %v7650_v41, %v7658_v48  ;;  %v7691_v53 = vrot.slane %v7689_v50, 4  ;;  %v7698_v25 = vshll.u32 %v7587_v54, 16  ;;  %v7703_v19 = vshrl.u32 %v17463_v42, 16 }
 0x416   : > { %v7642_v32 = vsel %vm5952_vm8, %v7633_v55, %v7641_v33  ;;  %v7706_v57 = vshll.u32 %v17463_v42, 16  ;;  %v7675_v55 = vor.u32 %v7674_v52, %v7671_v40  ;;  %v7684_v33 = vor.u32 %v7683_v22, %v7680_v37 }
 0x417   : > { %v7715_v51 = vshll.u32 %v7589_v58, 16  ;;  %v7720_v6 = vshrl.u32 %v17467_v12, 16  ;;  %v7700_v41 = vrot.slane %v7698_v25, 4  ;;  %v7705_v48 = vrot.slane %v7703_v19, 3 }
 0x418   : > { %v7708_v42 = vrot.slane %v7706_v57, 4  ;;  %v7754_v19 = vshrl.u32 %v17489_v4, 16  ;;  %v7757_v57 = vshll.u32 %v17489_v4, 16 }
 0x419   : > { %13476 = vmatmul.mubr.bf16.gmra.mrb[12].mxu1 %v8009_v3  ;;  %v7686_v3 = vshrl.u32 %v17447_v63, 16  ;;  %v7695_v63 = vshrl.u32 %v7587_v54, 16  ;;  %v7717_v54 = vrot.slane %v7715_v51, 4  ;;  %v7722_v40 = vrot.slane %v7720_v6, 3  ;;  %v14534_v6 = vld [vmem:[%s18179_s3 + $0x168] sm:$0xff]  }
 0x41a   : > { %13495 = vmatprep.mubr.bf16.mxu1 %v7625_v34  ;;  %v7666_v34 = vrot.slane %v7664_v56, 4  ;;  %v7712_v56 = vshrl.u32 %v7589_v58, 16  ;;  %v7709_v37 = vor.u32 %v7708_v42, %v7705_v48  ;;  %v14533_v58 = vld [vmem:[%s18179_s3 + $0x160] sm:$0xff]   ;;  %v7759_v48 = vrot.slane %v7757_v57, 4 }
 0x41b   : > { %v7688_v10 = vrot.slane %v7686_v3, 3  ;;  %v7697_v30 = vrot.slane %v7695_v63, 3  ;;  %v14532_v3 = vld [vmem:[%s18179_s3 + $0x158] sm:$0xff]   ;;  %v7599_v57 = vld [vmem:[#allocation3 + $0xc0] sm:$0xf8] }
 0x41c   : > { %v7667_v24 = vor.u32 %v7666_v34, %v7663_v44  ;;  %v7591_v44 = vld [vmem:[#allocation3 + $0x80] sm:$0xf8] }
 0x41d   : > { %v7692_v49 = vor.u32 %v7691_v53, %v7688_v10  ;;  %v7701_v52 = vor.u32 %v7700_v41, %v7697_v30  ;;  %v7729_v22 = vshrl.u32 %v7591_v44, 16  ;;  %v7737_v10 = vshrl.u32 %v17483_v62, 16 }
 0x41e   : > { %v7676_v50 = vsel %vm5952_vm8, %v7667_v24, %v7675_v55  ;;  %v7740_v53 = vshll.u32 %v17483_v62, 16  ;;  %v7756_v41 = vrot.slane %v7754_v19, 3 }
 0x41f   : > { %v7693_v34 = vsel %vm5952_vm8, %v7684_v33, %v7692_v49  ;;  %v7595_v33 = vld [vmem:[#allocation3 + $0xa0] sm:$0xf8]  ;;  %v7739_v62 = vrot.slane %v7737_v10, 3 }
 0x420   : > { %v7742_v51 = vrot.slane %v7740_v53, 4  ;;  %v7763_v42 = vshrl.u32 %v7595_v33, 16 }
 0x421   : > { %13496 = vmatmul.mubr.bf16.vlgmr.msra.gmra.mrb[16].mxu1 %v7642_v32  ;;  %v7714_v32 = vrot.slane %v7712_v56, 3  ;;  %v7731_v56 = vrot.slane %v7729_v22, 3  ;;  %v7788_v22 = vshrl.u32 %v17517_v39, 16 }
 0x422   : > { %13499 = vmatprep.mubr.bf16.mxu1 %v7659_v31  ;;  %13528 = vmatpush3.bf16.msra.mxu1 %v17524_v2  ;;  %v7723_v2 = vshll.u32 %v17467_v12, 16  ;;  %v7732_v31 = vshll.u32 %v7591_v44, 16  ;;  %v7597_v44 = vld [vmem:[#allocation3 + $0xb0] sm:$0xf8]  ;;  %v7765_v10 = vrot.slane %v7763_v42, 3  ;;  %v7825_v42 = vshll.u32 %v17545_v14, 16 }
 0x423   : > { %13529 = vmatprep.subr.bf16.mxu1 %v14530_v29  ;;  %v7718_v24 = vor.u32 %v7717_v54, %v7714_v32  ;;  %v7774_v32 = vshll.u32 %v17513_v60, 16 }
 0x424   : > { %v7725_v12 = vrot.slane %v7723_v2, 4  ;;  %v7734_v49 = vrot.slane %v7732_v31, 4  ;;  %v7791_v31 = vshll.u32 %v17517_v39, 16 }
 0x426   : > { %13530 = vmatpush3.bf16.msra.mxu1 %v14530_v29  ;;  %v7593_v29 = vld [vmem:[#allocation3 + $0x90] sm:$0xf8]  ;;  %v7726_v55 = vor.u32 %v7725_v12, %v7722_v40  ;;  %v7735_v54 = vor.u32 %v7734_v49, %v7731_v56  ;;  %v7743_v40 = vor.u32 %v7742_v51, %v7739_v62  ;;  %v7793_v39 = vrot.slane %v7791_v31, 4 }
 0x427   : > { %13531 = vmatprep.subr.bf16.mxu1 %v14531_v20  ;;  %v7746_v63 = vshrl.u32 %v7593_v29, 16  ;;  %v7749_v25 = vshll.u32 %v7593_v29, 16  ;;  %v7760_v29 = vor.u32 %v7759_v48, %v7756_v41  ;;  %v7797_v62 = vshrl.u32 %v7599_v57, 16 }
 0x428   : > { %v7727_v4 = vsel %vm5952_vm8, %v7718_v24, %v7726_v55  ;;  %v7800_v51 = vshll.u32 %v7599_v57, 16 }
 0x429   : > { %13500 = vmatmul.mubr.bf16.gmra.mrb[20].mxu1 %v7676_v50  ;;  %v7748_v2 = vrot.slane %v7746_v63, 3  ;;  %v7751_v30 = vrot.slane %v7749_v25, 4  ;;  %v7771_v50 = vshrl.u32 %v17513_v60, 16  ;;  %v7776_v63 = vrot.slane %v7774_v32, 4 }
 0x42a   : > { %13503 = vmatprep.mubr.bf16.mxu1 %v7693_v34  ;;  %13532 = vmatpush3.bf16.msra.mxu1 %v14531_v20  ;;  %v7710_v20 = vsel %vm5952_vm8, %v7701_v52, %v7709_v37  ;;  %v14535_v34 = vld [vmem:[%s18179_s3 + $0x170] sm:$0xff]   ;;  %v7780_v52 = vshrl.u32 %v7597_v44, 16  ;;  %v7783_v37 = vshll.u32 %v7597_v44, 16  ;;  %v7744_v25 = vsel %vm5952_vm8, %v7735_v54, %v7743_v40  ;;  %v7603_v40 = vld [vmem:[#allocation3 + $0xe0] sm:$0xf8] }
 0x42b   : > { %13533 = vmatprep.subr.bf16.mxu1 %v14532_v3  ;;  %v7752_v12 = vor.u32 %v7751_v30, %v7748_v2  ;;  %v7773_v60 = vrot.slane %v7771_v50, 3  ;;  %v7808_v2 = vshll.u32 %v17541_v27, 16  ;;  %v17650_v30 = vld [vmem:[%s18179_s3 + $0x1c0] sm:$0xff]   ;;  %v7799_v44 = vrot.slane %v7797_v62, 3 }
 0x42c   : > { %v7782_v24 = vrot.slane %v7780_v52, 3  ;;  %v7785_v55 = vrot.slane %v7783_v37, 4  ;;  %v7827_v37 = vrot.slane %v7825_v42, 4  ;;  %v7834_v31 = vshll.u32 %v7603_v40, 16 }
 0x42d   : > { %v7761_v19 = vsel %vm5952_vm8, %v7752_v12, %v7760_v29  ;;  %v7777_v49 = vor.u32 %v7776_v63, %v7773_v60  ;;  %v7810_v54 = vrot.slane %v7808_v2, 4  ;;  %v7605_v60 = vld [vmem:[#allocation3 + $0xf0] sm:$0xf8] }
 0x42e   : > { %13534 = vmatpush3.bf16.msra.mxu1 %v14532_v3  ;;  %v7766_v3 = vshll.u32 %v7595_v33, 16  ;;  %v7601_v33 = vld [vmem:[#allocation3 + $0xd0] sm:$0xf8]  ;;  %v7848_v57 = vshrl.u32 %v7605_v60, 16 }
 0x42f   : > { %13535 = vmatprep.subr.bf16.mxu1 %v14533_v58  ;;  %v7814_v41 = vshrl.u32 %v7601_v33, 16  ;;  %v7817_v48 = vshll.u32 %v7601_v33, 16  ;;  %v7836_v33 = vrot.slane %v7834_v31, 4 }
 0x430   : > { %v7768_v53 = vrot.slane %v7766_v3, 4  ;;  %v7786_v3 = vor.u32 %v7785_v55, %v7782_v24  ;;  %v7851_v24 = vshll.u32 %v7605_v60, 16  ;;  %v7856_v55 = vshrl.u32 %v17567_v28, 16 }
 0x431   : > { %13504 = vmatmul.mubr.bf16.gmra.mrb[24].mxu1 %v7710_v20  ;;  %v7790_v20 = vrot.slane %v7788_v22, 3  ;;  %v7816_v12 = vrot.slane %v7814_v41, 3  ;;  %v7819_v29 = vrot.slane %v7817_v48, 4 }
 0x432   : > { %13507 = vmatprep.mubr.bf16.mxu1 %v7727_v4  ;;  %13536 = vmatpush3.bf16.msra.mxu1 %v14533_v58  ;;  %v14536_v58 = vld [vmem:[%s18179_s3 + $0x178] sm:$0xff]   ;;  %v7769_v56 = vor.u32 %v7768_v53, %v7765_v10  ;;  %v7822_v4 = vshrl.u32 %v17545_v14, 16  ;;  %v7831_v14 = vshrl.u32 %v7603_v40, 16  ;;  %v7839_v10 = vshrl.u32 %v17563_v46, 16 }
 0x433   : > { %13537 = vmatprep.subr.bf16.mxu1 %v14534_v6  ;;  %v7794_v50 = vor.u32 %v7793_v39, %v7790_v20  ;;  %v7842_v53 = vshll.u32 %v17563_v46, 16  ;;  %v7859_v20 = vshll.u32 %v17567_v28, 16  ;;  %v8461_v46 = vld [vmem:[#allocation3 + $0x18] sm:$0x1f]  ;;  %v7853_v2 = vrot.slane %v7851_v24, 4 }
 0x434   : > { %v7778_v32 = vsel %vm5952_vm8, %v7769_v56, %v7777_v49  ;;  %v7824_v52 = vrot.slane %v7822_v4, 3  ;;  %v7833_v39 = vrot.slane %v7831_v14, 3  ;;  %v7841_v56 = vrot.slane %v7839_v10, 3  ;;  %v7607_v4 = vld [vmem:[#allocation3 + $0x100] sm:$0xf8] }
 0x435   : > { %v7795_v22 = vsel %vm5952_vm8, %v7786_v3, %v7794_v50  ;;  %v7844_v49 = vrot.slane %v7842_v53, 4  ;;  %v7858_v41 = vrot.slane %v7856_v55, 3  ;;  %v7861_v48 = vrot.slane %v7859_v20, 4  ;;  %v8462_v10 = vld [vmem:[#allocation3 + $0x28] sm:$0x1f] }
 0x436   : > { %13538 = vmatpush3.bf16.msra.mxu1 %v14534_v6  ;;  %v7805_v6 = vshrl.u32 %v17541_v27, 16  ;;  %v7837_v42 = vor.u32 %v7836_v33, %v7833_v39  ;;  %v7873_v28 = vshrl.u32 %v17583_v43, 16  ;;  %v7876_v50 = vshll.u32 %v17583_v43, 16  ;;  %v6013_v55 = vld [vmem:[#allocation3 + $0x110] sm:$0xf8] }
 0x437   : > { %13539 = vmatprep.subr.bf16.mxu1 %v14535_v34  ;;  %v7845_v3 = vor.u32 %v7844_v49, %v7841_v56  ;;  %v8489_v40 = vshll.u32 %v8461_v46, 16  ;;  %v8506_v24 = vshll.u32 %v8462_v10, 16  ;;  %v6016_v20 = vld [vmem:[#allocation3 + $0x118] sm:$0x1f]  ;;  %v6014_v39 = vsel %vm17006_vm12, 0, %v6013_v55 }
 0x438   : > { %v7807_v27 = vrot.slane %v7805_v6, 3  ;;  %v7850_v6 = vrot.slane %v7848_v57, 3  ;;  %v8503_v57 = vshrl.u32 %v8462_v10, 16  ;;  %v6017_v33 = vsel %vm17013_vm13, 0, %v6016_v20  ;;  %6015 = vst [vmem:[#allocation3 + $0x110] sm:$0xf8] %v6014_v39 }
 0x439   : > { %13508 = vmatmul.mubr.bf16.gmra.mrb[28].mxu1 %v7744_v25  ;;  %v7820_v25 = vor.u32 %v7819_v29, %v7816_v12  ;;  %v7862_v29 = vor.u32 %v7861_v48, %v7858_v41  ;;  %6018 = vst [vmem:[#allocation3 + $0x118] sm:$0x1f] %v6017_v33  ;;  %v8508_v15 = vrot.slane %v8506_v24, 5  ;;  %v8466_v24 = vld [vmem:[#allocation3 + $0x68] sm:$0x1f]  ;;  %v8563_v20 = vshrl.u32 %v17465_v18, 16 }
 0x43a   : > { %13511 = vmatprep.mubr.bf16.mxu1 %v7761_v19  ;;  %13540 = vmatpush3.bf16.msra.mxu1 %v14535_v34  ;;  %v7802_v34 = vrot.slane %v7800_v51, 4  ;;  %v7828_v19 = vor.u32 %v7827_v37, %v7824_v52  ;;  %v7854_v12 = vor.u32 %v7853_v2, %v7850_v6  ;;  %v7846_v52 = vsel %vm5952_vm8, %v7837_v42, %v7845_v3  ;;  %v8464_v3 = vld [vmem:[#allocation3 + $0x48] sm:$0x1f]  ;;  %v8467_v55 = vld [vmem:[#allocation3 + $0x78] sm:$0x1f] }
 0x43b   : > { %13541 = vmatprep.subr.bf16.mxu1 %v14536_v58  ;;  %v7875_v37 = vrot.slane %v7873_v28, 3  ;;  %v8566_v39 = vshll.u32 %v17465_v18, 16  ;;  %v8571_v33 = vshrl.u32 %v8466_v24, 16 }
 0x43c   : > { %v7803_v63 = vor.u32 %v7802_v34, %v7799_v44  ;;  %v7829_v51 = vsel %vm5952_vm8, %v7820_v25, %v7828_v19  ;;  %v8481_v44 = vshll.u32 %v17419_v13, 16  ;;  %v7865_v34 = vshrl.u32 %v7607_v4, 16  ;;  %v8463_v19 = vld [vmem:[#allocation3 + $0x38] sm:$0x1f] }
 0x43d   : > { %v8498_v25 = vshll.u32 %v17427_v45, 16  ;;  %v8520_v6 = vshrl.u32 %v8463_v19, 16  ;;  %v8523_v2 = vshll.u32 %v8463_v19, 16  ;;  %v8573_v18 = vrot.slane %v8571_v33, 4 }
 0x43e   : > { %13542 = vmatpush3.bf16.msra.mxu1 %v14536_v58  ;;  %v7811_v58 = vor.u32 %v7810_v54, %v7807_v27  ;;  %v7868_v27 = vshll.u32 %v7607_v4, 16  ;;  %v8486_v54 = vshrl.u32 %v8461_v46, 16  ;;  %v8483_v31 = vrot.slane %v8481_v44, 5 }
 0x43f   : > { %13575 = vmatprep.subr.bf16.mxu1 %v17650_v30  ;;  %v7867_v53 = vrot.slane %v7865_v34, 3  ;;  %v8515_v46 = vshll.u32 %v17431_v7, 16  ;;  %v8500_v48 = vrot.slane %v8498_v25, 5  ;;  %v8505_v4 = vrot.slane %v8503_v57, 4  ;;  %v8465_v34 = vld [vmem:[#allocation3 + $0x58] sm:$0x1f] }
 0x440   : > { %v7812_v62 = vsel %vm5952_vm8, %v7803_v63, %v7811_v58  ;;  %v7870_v60 = vrot.slane %v7868_v27, 4  ;;  %v8488_v43 = vrot.slane %v8486_v54, 4  ;;  %v8491_v63 = vrot.slane %v8489_v40, 5 }
 0x441   : > { %13512 = vmatmul.mubr.bf16.gmra.mrb[0].mxu1 %v7778_v32  ;;  %v8478_v32 = vshrl.u32 %v17419_v13, 16  ;;  %v7863_v13 = vsel %vm5952_vm8, %v7854_v12, %v7862_v29  ;;  %v8495_v58 = vshrl.u32 %v17427_v45, 16  ;;  %v8512_v45 = vshrl.u32 %v17431_v7, 16 }
 0x442   : > { %13515 = vmatprep.mubr.bf16.mxu1 %v7795_v22  ;;  %v7878_v22 = vrot.slane %v7876_v50, 4  ;;  %v7871_v56 = vor.u32 %v7870_v60, %v7867_v53  ;;  %v8517_v50 = vrot.slane %v8515_v46, 5  ;;  %v8525_v44 = vrot.slane %v8523_v2, 5 }
 0x443   : > { %v8480_v14 = vrot.slane %v8478_v32, 4  ;;  %v8497_v41 = vrot.slane %v8495_v58, 4  ;;  %v8514_v28 = vrot.slane %v8512_v45, 4  ;;  %v8522_v32 = vrot.slane %v8520_v6, 4 }
 0x444   : > { %v7879_v49 = vor.u32 %v7878_v22, %v7875_v37  ;;  %v8509_v7 = vor.u32 %v8508_v15, %v8505_v4  ;;  %v8529_v54 = vshrl.u32 %v17444_v38, 16  ;;  %v8532_v40 = vshll.u32 %v17444_v38, 16  ;;  %v14538_v38 = vld [vmem:[%s18179_s3 + $0x1c8] sm:$0xff]  }
 0x445   : > { %v8501_v27 = vor.u32 %v8500_v48, %v8497_v41  ;;  %v8537_v12 = vshrl.u32 %v8464_v3, 16  ;;  %v8540_v29 = vshll.u32 %v8464_v3, 16  ;;  %v8549_v37 = vshll.u32 %v17449_v26, 16 }
 0x446   : > { %v7880_v42 = vsel %vm5952_vm8, %v7871_v56, %v7879_v49  ;;  %v8554_v22 = vshrl.u32 %v8465_v34, 16  ;;  %v8526_v10 = vor.u32 %v8525_v44, %v8522_v32  ;;  %v8531_v60 = vrot.slane %v8529_v54, 4  ;;  %v14539_v49 = vld [vmem:[%s18179_s3 + $0x1d0] sm:$0xff]   ;;  %v8468_v44 = vld [vmem:[#allocation3 + $0x88] sm:$0x1f] }
 0x447   : > { %v8510_v53 = vsel %vm1313_vm3, %v8501_v27, %v8509_v7  ;;  %v8551_v25 = vrot.slane %v8549_v37, 5  ;;  %v8574_v56 = vshll.u32 %v8466_v24, 16  ;;  %v8580_v6 = vshrl.u32 %v17469_v0, 16 }
 0x448   : > { %v8556_v19 = vrot.slane %v8554_v22, 4  ;;  %v8588_v2 = vshrl.u32 %v8467_v55, 16  ;;  %v8591_v41 = vshll.u32 %v8467_v55, 16  ;;  %v8565_v48 = vrot.slane %v8563_v20, 4 }
 0x449   : > { %13516 = vmatmul.mubr.bf16.gmra.mrb[4].mxu1 %v7812_v62  ;;  %v8484_v62 = vor.u32 %v8483_v31, %v8480_v14  ;;  %v8557_v14 = vshll.u32 %v8465_v34, 16  ;;  %v8518_v31 = vor.u32 %v8517_v50, %v8514_v28  ;;  %v8568_v4 = vrot.slane %v8566_v39, 5  ;;  %v8469_v34 = vld [vmem:[#allocation3 + $0x98] sm:$0x1f] }
 0x44a   : > { %13519 = vmatprep.mubr.bf16.mxu1 %v7829_v51  ;;  %v8492_v51 = vor.u32 %v8491_v63, %v8488_v43  ;;  %v8534_v43 = vrot.slane %v8532_v40, 5  ;;  %v8539_v63 = vrot.slane %v8537_v12, 4  ;;  %v8576_v15 = vrot.slane %v8574_v56, 5  ;;  %v14541_v12 = vld [vmem:[%s18179_s3 + $0x1e0] sm:$0xff]   ;;  %v14543_v56 = vld [vmem:[%s18179_s3 + $0x1f0] sm:$0xff]  }
 0x44b   : > { %v8559_v57 = vrot.slane %v8557_v14, 5  ;;  %v8582_v28 = vrot.slane %v8580_v6, 4  ;;  %v8593_v32 = vrot.slane %v8591_v41, 5  ;;  %v8569_v27 = vor.u32 %v8568_v4, %v8565_v48 }
 0x44c   : > { %v8493_v59 = vsel %vm1313_vm3, %v8484_v62, %v8492_v51  ;;  %v8535_v62 = vor.u32 %v8534_v43, %v8531_v60  ;;  %v8577_v7 = vor.u32 %v8576_v15, %v8573_v18  ;;  %v8597_v54 = vshrl.u32 %v17485_v8, 16  ;;  %v14544_v18 = vld [vmem:[%s18179_s3 + $0x1f8] sm:$0xff]  }
 0x44d   : > { %v8560_v46 = vor.u32 %v8559_v57, %v8556_v19  ;;  %v8600_v40 = vshll.u32 %v17485_v8, 16  ;;  %v8614_v37 = vshrl.u32 %v17491_v23, 16  ;;  %v8617_v22 = vshll.u32 %v17491_v23, 16  ;;  %v8470_v19 = vld [vmem:[#allocation3 + $0xa8] sm:$0x1f] }
 0x44e   : > { %v8578_v60 = vsel %vm1313_vm3, %v8569_v27, %v8577_v7  ;;  %v8599_v43 = vrot.slane %v8597_v54, 4  ;;  %v8631_v55 = vshrl.u32 %v17515_v17, 16  ;;  %v8634_v20 = vshll.u32 %v17515_v17, 16  ;;  %v17730_v7 = vld [vmem:[%s18179_s3 + $0x180] sm:$0xff]  }
 0x44f   : > { %v8602_v8 = vrot.slane %v8600_v40, 5  ;;  %v8639_v39 = vshrl.u32 %v8470_v19, 16  ;;  %v8642_v33 = vshll.u32 %v8470_v19, 16  ;;  %v8651_v6 = vshll.u32 %v17519_v16, 16 }
 0x450   : > { %v8633_v41 = vrot.slane %v8631_v55, 4  ;;  %v8636_v17 = vrot.slane %v8634_v20, 5  ;;  %v8668_v27 = vshll.u32 %v17543_v11, 16  ;;  %v8702_v19 = vshll.u32 %v17565_v36, 16 }
 0x451   : > { %13520 = vmatmul.mubr.bf16.gmra.mrb[8].mxu1 %v7846_v52  ;;  %v8546_v52 = vshrl.u32 %v17449_v26, 16  ;;  %v8527_v26 = vsel %vm1313_vm3, %v8518_v31, %v8526_v10  ;;  %v8622_v10 = vshrl.u32 %v8469_v34, 16  ;;  %v8641_v48 = vrot.slane %v8639_v39, 4 }
 0x452   : > { %13523 = vmatprep.mubr.bf16.mxu1 %v7863_v13  ;;  %v8542_v13 = vrot.slane %v8540_v29, 5  ;;  %v8605_v29 = vshrl.u32 %v8468_v44, 16  ;;  %v8644_v4 = vrot.slane %v8642_v33, 5  ;;  %v8716_v20 = vshrl.u32 %v17569_v21, 16 }
 0x453   : > { %v8548_v58 = vrot.slane %v8546_v52, 4  ;;  %v8608_v52 = vshll.u32 %v8468_v44, 16  ;;  %v8624_v57 = vrot.slane %v8622_v10, 4  ;;  %v8670_v10 = vrot.slane %v8668_v27, 5  ;;  %v17747_v27 = vld [vmem:[#allocation3 + $0x28] sm:$0xf] }
 0x454   : > { %v8543_v51 = vor.u32 %v8542_v13, %v8539_v63  ;;  %v14542_v63 = vld [vmem:[%s18179_s3 + $0x1e8] sm:$0xff]   ;;  %v8607_v13 = vrot.slane %v8605_v29, 4  ;;  %v8645_v44 = vor.u32 %v8644_v4, %v8641_v48  ;;  %v8685_v29 = vshll.u32 %v17547_v61, 16 }
 0x455   : > { %v8552_v45 = vor.u32 %v8551_v25, %v8548_v58  ;;  %v8616_v58 = vrot.slane %v8614_v37, 4  ;;  %v8619_v25 = vrot.slane %v8617_v22, 5  ;;  %v8719_v33 = vshll.u32 %v17569_v21, 16  ;;  %v8476_v48 = vld [vmem:[#allocation3 + $0x108] sm:$0x1f] }
 0x456   : > { %v8733_v21 = vshrl.u32 %v17589_v9, 16 }
 0x457   : > { %v8561_v3 = vsel %vm1313_vm3, %v8552_v45, %v8560_v46  ;;  %v8648_v45 = vshrl.u32 %v17519_v16, 16 }
 0x459   : > { %13524 = vmatmul.mubr.bf16.gmra.mrb[12].mxu1 %v7880_v42  ;;  %v14540_v42 = vld [vmem:[%s18179_s3 + $0x1d8] sm:$0xff]  }
 0x45a   : > { %13543 = vmatprep.mubr.bf16.mxu1 %v8493_v59  ;;  %v8544_v59 = vsel %vm1313_vm3, %v8535_v62, %v8543_v51  ;;  %v8620_v51 = vor.u32 %v8619_v25, %v8616_v58  ;;  %v8475_v58 = vld [vmem:[#allocation3 + $0xf8] sm:$0x1f]  ;;  %v8699_v25 = vshrl.u32 %v17565_v36, 16 }
 0x461   : > { %13544 = vmatmul.mubr.bf16.vlgmr.msra.gmra.mrb[16].mxu1 %v8510_v53  ;;  %v8625_v53 = vshll.u32 %v8469_v34, 16  ;;  %v8665_v34 = vshrl.u32 %v17543_v11, 16 }
 0x462   : > { %13547 = vmatprep.mubr.bf16.mxu1 %v8527_v26  ;;  %13576 = vmatpush3.bf16.msra.mxu1 %v17650_v30  ;;  %v8583_v30 = vshll.u32 %v17469_v0, 16  ;;  %v8590_v0 = vrot.slane %v8588_v2, 4  ;;  %v8471_v26 = vld [vmem:[#allocation3 + $0xb8] sm:$0x1f] }
 0x463   : > { %13577 = vmatprep.subr.bf16.mxu1 %v14538_v38  ;;  %v8627_v24 = vrot.slane %v8625_v53, 5  ;;  %v8659_v2 = vshll.u32 %v8471_v26, 16  ;;  %v8667_v11 = vrot.slane %v8665_v34, 4 }
 0x464   : > { %v8585_v50 = vrot.slane %v8583_v30, 5  ;;  %v8594_v31 = vor.u32 %v8593_v32, %v8590_v0  ;;  %v8656_v30 = vshrl.u32 %v8471_v26, 16  ;;  %v8473_v0 = vld [vmem:[#allocation3 + $0xd8] sm:$0x1f]  ;;  %v8637_v32 = vor.u32 %v8636_v17, %v8633_v41 }
 0x465   : > { %v8628_v46 = vor.u32 %v8627_v24, %v8624_v57  ;;  %v8690_v22 = vshrl.u32 %v8473_v0, 16  ;;  %v8671_v24 = vor.u32 %v8670_v10, %v8667_v11  ;;  %v17761_v11 = vld [vmem:[#allocation3 + $0x40] sm:$0xf0] }
 0x466   : > { %13578 = vmatpush3.bf16.msra.mxu1 %v14538_v38  ;;  %v8586_v14 = vor.u32 %v8585_v50, %v8582_v28  ;;  %v8610_v38 = vrot.slane %v8608_v52, 5  ;;  %v8658_v16 = vrot.slane %v8656_v30, 4  ;;  %v8661_v28 = vrot.slane %v8659_v2, 5  ;;  %v8472_v50 = vld [vmem:[#allocation3 + $0xc8] sm:$0x1f] }
 0x467   : > { %13579 = vmatprep.subr.bf16.mxu1 %v14539_v49  ;;  %v8673_v54 = vshrl.u32 %v8472_v50, 16  ;;  %v8676_v40 = vshll.u32 %v8472_v50, 16  ;;  %v8718_v30 = vrot.slane %v8716_v20, 4  ;;  %v8721_v2 = vrot.slane %v8719_v33, 5  ;;  %v17795_v33 = vld [vmem:[#allocation3 + $0x70] sm:$0xf0] }
 0x468   : > { %v8595_v23 = vsel %vm1313_vm3, %v8586_v14, %v8594_v31  ;;  %v8611_v62 = vor.u32 %v8610_v38, %v8607_v13  ;;  %v8662_v37 = vor.u32 %v8661_v28, %v8658_v16  ;;  %v8693_v14 = vshll.u32 %v8473_v0, 16 }
 0x469   : > { %13548 = vmatmul.mubr.bf16.gmra.mrb[20].mxu1 %v8544_v59  ;;  %v8629_v59 = vsel %vm1313_vm3, %v8620_v51, %v8628_v46  ;;  %v8646_v31 = vsel %vm1313_vm3, %v8637_v32, %v8645_v44  ;;  %v8675_v53 = vrot.slane %v8673_v54, 4  ;;  %v8704_v51 = vrot.slane %v8702_v19, 5  ;;  %v17749_v54 = vld [vmem:[#allocation3 + $0x20] sm:$0xf0]  ;;  %v14547_v19 = vld [vmem:[%s18179_s3 + $0x190] sm:$0xff]  }
 0x46a   : > { %13551 = vmatprep.mubr.bf16.mxu1 %v8561_v3  ;;  %13580 = vmatpush3.bf16.msra.mxu1 %v14539_v49  ;;  %v8603_v49 = vor.u32 %v8602_v8, %v8599_v43  ;;  %v8653_v3 = vrot.slane %v8651_v6, 5  ;;  %v8687_v8 = vrot.slane %v8685_v29, 5  ;;  %v8695_v38 = vrot.slane %v8693_v14, 5  ;;  %v17757_v14 = vld [vmem:[#allocation3 + $0x30] sm:$0xf0] }
 0x46b   : > { %13581 = vmatprep.subr.bf16.mxu1 %v14540_v42  ;;  %v8735_v50 = vrot.slane %v8733_v21, 4  ;;  %v9506_v29 = vrot.slane %v17747_v27, 4  ;;  %v9508_v10 = vrot.slane %v17757_v14, 4 }
 0x46c   : > { %v8612_v15 = vsel %vm1313_vm3, %v8603_v49, %v8611_v62  ;;  %v8727_v49 = vshll.u32 %v8475_v58, 16  ;;  %v8701_v62 = vrot.slane %v8699_v25, 4  ;;  %v17779_v25 = vld [vmem:[#allocation3 + $0x60] sm:$0xf0] }
 0x46e   : > { %13582 = vmatpush3.bf16.msra.mxu1 %v14540_v42  ;;  %v8650_v42 = vrot.slane %v8648_v45, 4  ;;  %v8729_v17 = vrot.slane %v8727_v49, 5  ;;  %v8705_v4 = vor.u32 %v8704_v51, %v8701_v62  ;;  %v17799_v49 = vld [vmem:[#allocation3 + $0x80] sm:$0xf0]  ;;  %v9520_v51 = vrot.slane %v17795_v33, 4 }
 0x46f   : > { %13583 = vmatprep.subr.bf16.mxu1 %v14541_v12  ;;  %v14549_v62 = vld [vmem:[%s18179_s3 + $0x1a0] sm:$0xff]  }
 0x470   : > { %v8654_v52 = vor.u32 %v8653_v3, %v8650_v42  ;;  %v8741_v42 = vshrl.u32 %v8476_v48, 16  ;;  %v8722_v3 = vor.u32 %v8721_v2, %v8718_v30  ;;  %v14550_v30 = vld [vmem:[%s18179_s3 + $0x1a8] sm:$0xff]  }
 0x471   : > { %13552 = vmatmul.mubr.bf16.gmra.mrb[24].mxu1 %v8578_v60  ;;  %v8678_v60 = vrot.slane %v8676_v40, 5 }
 0x472   : > { %13555 = vmatprep.mubr.bf16.mxu1 %v8595_v23  ;;  %13584 = vmatpush3.bf16.msra.mxu1 %v14541_v12  ;;  %v8682_v12 = vshrl.u32 %v17547_v61, 16  ;;  %v8663_v13 = vsel %vm1313_vm3, %v8654_v52, %v8662_v37  ;;  %v8692_v61 = vrot.slane %v8690_v22, 4  ;;  %v8743_v32 = vrot.slane %v8741_v42, 4  ;;  %v17755_v22 = vld [vmem:[#allocation3 + $0x38] sm:$0xf] }
 0x473   : > { %13585 = vmatprep.subr.bf16.mxu1 %v14542_v63  ;;  %v8679_v26 = vor.u32 %v8678_v60, %v8675_v53  ;;  %v9509_v53 = vrot.slane %v17755_v22, 4  ;;  %v9511_v60 = vrot.slane %v17761_v11, 4 }
 0x474   : > { %v8684_v43 = vrot.slane %v8682_v12, 4  ;;  %v8696_v39 = vor.u32 %v8695_v38, %v8692_v61  ;;  %v9505_v12 = vrot.slane %v17749_v54, 4  ;;  %v17772_v61 = vld [vmem:[#allocation3 + $0x58] sm:$0xf]  ;;  %v17774_v38 = vld [vmem:[#allocation3 + $0x50] sm:$0xf0] }
 0x475   : > { %v8680_v6 = vsel %vm1313_vm3, %v8671_v24, %v8679_v26  ;;  %v9517_v24 = vrot.slane %v17779_v25, 4 }
 0x476   : > { %13586 = vmatpush3.bf16.msra.mxu1 %v14542_v63  ;;  %v8474_v63 = vld [vmem:[#allocation3 + $0xe8] sm:$0x1f]  ;;  %v8688_v55 = vor.u32 %v8687_v8, %v8684_v43  ;;  %v9507_v37 = vsel %vm6483_vm14, %v9505_v12, %v9506_v29 }
 0x477   : > { %13587 = vmatprep.subr.bf16.mxu1 %v14543_v56  ;;  %v8707_v23 = vshrl.u32 %v8474_v63, 16  ;;  %v8710_v57 = vshll.u32 %v8474_v63, 16  ;;  %v14546_v8 = vld [vmem:[%s18179_s3 + $0x188] sm:$0xff]   ;;  %v9510_v63 = vsel %vm6483_vm14, %v9508_v10, %v9509_v53  ;;  %v17853_v10 = vld [vmem:[#allocation3 + $0xd8] sm:$0xf] }
 0x478   : > { %v8697_v36 = vsel %vm1313_vm3, %v8688_v55, %v8696_v39  ;;  %v17793_v39 = vld [vmem:[#allocation3 + $0x78] sm:$0xf]  ;;  %v17855_v53 = vld [vmem:[#allocation3 + $0xd0] sm:$0xf0] }
 0x479   : > { %13556 = vmatmul.mubr.bf16.gmra.mrb[28].mxu1 %v8612_v15  ;;  %v8709_v45 = vrot.slane %v8707_v23, 4  ;;  %v8712_v46 = vrot.slane %v8710_v57, 5  ;;  %v8736_v15 = vshll.u32 %v17589_v9, 16  ;;  %v9514_v23 = vrot.slane %v17774_v38, 4 }
 0x47a   : > { %13559 = vmatprep.mubr.bf16.mxu1 %v8629_v59  ;;  %13588 = vmatpush3.bf16.msra.mxu1 %v14543_v56  ;;  %v8724_v56 = vshrl.u32 %v8475_v58, 16  ;;  %v8744_v59 = vshll.u32 %v8476_v48, 16  ;;  %v17777_v58 = vld [vmem:[#allocation3 + $0x68] sm:$0xf]  ;;  %v9515_v57 = vrot.slane %v17772_v61, 4 }
 0x47b   : > { %13589 = vmatprep.subr.bf16.mxu1 %v14544_v18  ;;  %v8738_v0 = vrot.slane %v8736_v15, 5  ;;  %v9518_v26 = vrot.slane %v17777_v58, 4  ;;  %v17817_v48 = vld [vmem:[#allocation3 + $0xa8] sm:$0xf] }
 0x47c   : > { %v8726_v41 = vrot.slane %v8724_v56, 4  ;;  %v8746_v44 = vrot.slane %v8744_v59, 5  ;;  %v9516_v55 = vsel %vm6483_vm14, %v9514_v23, %v9515_v57  ;;  %v17797_v56 = vld [vmem:[#allocation3 + $0x88] sm:$0xf]  ;;  %v9530_v59 = vrot.slane %v17817_v48, 4 }
 0x47d   : > { %v8739_v40 = vor.u32 %v8738_v0, %v8735_v50  ;;  %v9519_v20 = vsel %vm6483_vm14, %v9517_v24, %v9518_v26  ;;  %v17833_v50 = vld [vmem:[#allocation3 + $0xb8] sm:$0xf]  ;;  %v17835_v0 = vld [vmem:[#allocation3 + $0xb0] sm:$0xf0] }
 0x47e   : > { %13590 = vmatpush3.bf16.msra.mxu1 %v14544_v18  ;;  %v8713_v18 = vor.u32 %v8712_v46, %v8709_v45  ;;  %v8730_v16 = vor.u32 %v8729_v17, %v8726_v41  ;;  %v8747_v9 = vor.u32 %v8746_v44, %v8743_v32  ;;  %v9521_v45 = vrot.slane %v17793_v39, 4  ;;  %v17813_v41 = vld [vmem:[#allocation3 + $0x98] sm:$0xf]  ;;  %v17815_v17 = vld [vmem:[#allocation3 + $0x90] sm:$0xf0] }
 0x47f   : > { %13623 = vmatprep.subr.bf16.mxu1 %v17730_v7  ;;  %v9523_v46 = vrot.slane %v17799_v49, 4  ;;  %v9526_v21 = vrot.slane %v17815_v17, 4  ;;  %v9527_v15 = vrot.slane %v17813_v41, 4  ;;  %v17837_v32 = vld [vmem:[#allocation3 + $0xc8] sm:$0xf] }
 0x480   : > { %v8714_v28 = vsel %vm1313_vm3, %v8705_v4, %v8713_v18  ;;  %v8731_v34 = vsel %vm1313_vm3, %v8722_v3, %v8730_v16  ;;  %v8748_v52 = vsel %vm1313_vm3, %v8739_v40, %v8747_v9  ;;  %v17819_v4 = vld [vmem:[#allocation3 + $0xa0] sm:$0xf0]  ;;  %v14551_v18 = vld [vmem:[%s18179_s3 + $0x1b0] sm:$0xff]   ;;  %v14552_v3 = vld [vmem:[%s18179_s3 + $0x1b8] sm:$0xff]   ;;  %v9532_v40 = vrot.slane %v17835_v0, 4 }
 0x481   : > { %13560 = vmatmul.mubr.bf16.gmra.mrb[0].mxu1 %v8646_v31  ;;  %v17759_v31 = vld [vmem:[#allocation3 + $0x48] sm:$0xf]  ;;  %v9529_v42 = vrot.slane %v17819_v4, 4  ;;  %v9528_v16 = vsel %vm6483_vm14, %v9526_v21, %v9527_v15  ;;  %v17839_v44 = vld [vmem:[#allocation3 + $0xc0] sm:$0xf0]  ;;  %v9533_v9 = vrot.slane %v17833_v50, 4 }
 0x482   : > { %13563 = vmatprep.mubr.bf16.mxu1 %v8663_v13  ;;  %v9512_v43 = vrot.slane %v17759_v31, 4  ;;  %v9535_v12 = vrot.slane %v17839_v44, 4  ;;  %v9536_v29 = vrot.slane %v17837_v32, 4  ;;  %v17867_v24 = vld [vmem:[#allocation3 + $0xf8] sm:$0xf] }
 0x483   : > { %v17869_v26 = vld [vmem:[#allocation3 + $0xf0] sm:$0xf0] }
 0x484   : > { %v9513_v13 = vsel %vm6483_vm14, %v9511_v60, %v9512_v43  ;;  %v17857_v60 = vld [vmem:[#allocation3 + $0xe8] sm:$0xf]  ;;  %v17859_v43 = vld [vmem:[#allocation3 + $0xe0] sm:$0xf0]  ;;  %v17883_v21 = vld [vmem:[#allocation3 + $0x110] sm:$0xf0] }
 0x485   : > { %v9122_v15 = vld [vmem:[#allocation3 + $0x30] sm:$0xf8] }
 0x489   : > { %13564 = vmatmul.mubr.bf16.gmra.mrb[4].mxu1 %v8680_v6  ;;  %v9524_v6 = vrot.slane %v17797_v56, 4 }
 0x48a   : > { %13567 = vmatprep.mubr.bf16.mxu1 %v8697_v36  ;;  %v9522_v36 = vsel %vm6483_vm14, %v9520_v51, %v9521_v45  ;;  %v9545_v51 = vrot.slane %v17867_v24, 4 }
 0x48b   : > { %v9525_v2 = vsel %vm6483_vm14, %v9523_v46, %v9524_v6 }
 0x491   : > { %13568 = vmatmul.mubr.bf16.gmra.mrb[8].mxu1 %v8714_v28  ;;  %v9531_v28 = vsel %vm6483_vm14, %v9529_v42, %v9530_v59 }
 0x492   : > { %13571 = vmatprep.mubr.bf16.mxu1 %v8731_v34  ;;  %v17844_v34 = vld [vmem:[%s18179_s3 + $0x200] sm:$0xff]  }
 0x499   : > { %13572 = vmatmul.mubr.bf16.gmra.mrb[12].mxu1 %v8748_v52  ;;  %v9534_v52 = vsel %vm6483_vm14, %v9532_v40, %v9533_v9  ;;  %v9124_v9 = vld [vmem:[#allocation3 + $0x40] sm:$0xf8] }
 0x49a   : > { %13591 = vmatprep.mubr.bf16.mxu1 %v9507_v37  ;;  %v9537_v37 = vsel %vm6483_vm14, %v9535_v12, %v9536_v29  ;;  %v9550_v12 = vrot.slane %v17883_v21, 4  ;;  %v9170_v29 = vshrl.u32 %v9122_v15, 16 }
 0x4a1   : > { %13592 = vmatmul.mubr.bf16.vlgmr.msra.gmra.mrb[16].mxu1 %v9510_v63  ;;  %v9539_v63 = vrot.slane %v17853_v10, 4 }
 0x4a2   : > { %13595 = vmatprep.mubr.bf16.mxu1 %v9513_v13  ;;  %13624 = vmatpush3.bf16.msra.mxu1 %v17730_v7  ;;  %v14548_v7 = vld [vmem:[%s18179_s3 + $0x198] sm:$0xff]   ;;  %v9541_v13 = vrot.slane %v17859_v43, 4 }
 0x4a3   : > { %13625 = vmatprep.subr.bf16.mxu1 %v14546_v8 }
 0x4a6   : > { %13626 = vmatpush3.bf16.msra.mxu1 %v14546_v8  ;;  %v9538_v8 = vrot.slane %v17855_v53, 4 }
 0x4a7   : > { %13627 = vmatprep.subr.bf16.mxu1 %v14547_v19 }
 0x4a8   : > { %v9540_v23 = vsel %vm6483_vm14, %v9538_v8, %v9539_v63  ;;  %v9181_v8 = vshll.u32 %v17755_v22, 16 }
 0x4a9   : > { %13596 = vmatmul.mubr.bf16.gmra.mrb[20].mxu1 %v9516_v55  ;;  %v17871_v55 = vld [vmem:[#allocation3 + $0x108] sm:$0xf] }
 0x4aa   : > { %13599 = vmatprep.mubr.bf16.mxu1 %v9519_v20  ;;  %13628 = vmatpush3.bf16.msra.mxu1 %v14547_v19  ;;  %v9542_v19 = vrot.slane %v17857_v60, 4  ;;  %v17873_v20 = vld [vmem:[#allocation3 + $0x100] sm:$0xf0] }
 0x4ab   : > { %13629 = vmatprep.subr.bf16.mxu1 %v14548_v7  ;;  %v9547_v6 = vrot.slane %v17873_v20, 4 }
 0x4ac   : > { %v9543_v57 = vsel %vm6483_vm14, %v9541_v13, %v9542_v19  ;;  %v9187_v13 = vshrl.u32 %v9124_v9, 16 }
 0x4ae   : > { %13630 = vmatpush3.bf16.msra.mxu1 %v14548_v7  ;;  %v9120_v7 = vld [vmem:[#allocation3 + $0x20] sm:$0xf8] }
 0x4af   : > { %13631 = vmatprep.subr.bf16.mxu1 %v14549_v62  ;;  %v9153_v45 = vshrl.u32 %v9120_v7, 16  ;;  %v9156_v46 = vshll.u32 %v9120_v7, 16  ;;  %v9198_v7 = vshll.u32 %v17759_v31, 16 }
 0x4b1   : > { %13600 = vmatmul.mubr.bf16.gmra.mrb[24].mxu1 %v9522_v36  ;;  %v9161_v36 = vshrl.u32 %v17747_v27, 16  ;;  %v9155_v59 = vrot.slane %v9153_v45, 3 }
 0x4b2   : > { %13603 = vmatprep.mubr.bf16.mxu1 %v9525_v2  ;;  %13632 = vmatpush3.bf16.msra.mxu1 %v14549_v62  ;;  %v9544_v62 = vrot.slane %v17869_v26, 4  ;;  %v9164_v2 = vshll.u32 %v17747_v27, 16 }
 0x4b3   : > { %13633 = vmatprep.subr.bf16.mxu1 %v14550_v30 }
 0x4b4   : > { %v9546_v42 = vsel %vm6483_vm14, %v9544_v62, %v9545_v51  ;;  %v9166_v40 = vrot.slane %v9164_v2, 4  ;;  %v9172_v51 = vrot.slane %v9170_v29, 3  ;;  %v9229_v29 = vshrl.u32 %v17777_v58, 16 }
 0x4b6   : > { %13634 = vmatpush3.bf16.msra.mxu1 %v14550_v30  ;;  %v9548_v30 = vrot.slane %v17871_v55, 4 }
 0x4b7   : > { %13635 = vmatprep.subr.bf16.mxu1 %v14551_v18 }
 0x4b9   : > { %13604 = vmatmul.mubr.bf16.gmra.mrb[28].mxu1 %v9528_v16  ;;  %v9549_v16 = vsel %vm6483_vm14, %v9547_v6, %v9548_v30  ;;  %v9183_v6 = vrot.slane %v9181_v8, 4  ;;  %v9126_v30 = vld [vmem:[#allocation3 + $0x50] sm:$0xf8] }
 0x4ba   : > { %13607 = vmatprep.mubr.bf16.mxu1 %v9531_v28  ;;  %13636 = vmatpush3.bf16.msra.mxu1 %v14551_v18  ;;  %v17881_v18 = vld [vmem:[#allocation3 + $0x118] sm:$0xf]  ;;  %v9163_v28 = vrot.slane %v9161_v36, 3  ;;  %v9189_v36 = vrot.slane %v9187_v13, 3 }
 0x4bb   : > { %13637 = vmatprep.subr.bf16.mxu1 %v14552_v3  ;;  %v9551_v27 = vrot.slane %v17881_v18, 4 }
 0x4bc   : > { %v9167_v19 = vor.u32 %v9166_v40, %v9163_v28  ;;  %v9212_v40 = vshrl.u32 %v17772_v61, 16 }
 0x4bd   : > { %v9552_v62 = vsel %vm6483_vm14, %v9550_v12, %v9551_v27 }
 0x4be   : > { %13638 = vmatpush3.bf16.msra.mxu1 %v14552_v3  ;;  %v9158_v3 = vrot.slane %v9156_v46, 4 }
 0x4bf   : > { %13671 = vmatprep.subr.bf16.mxu1 %v17844_v34 }
 0x4c0   : > { %v9159_v63 = vor.u32 %v9158_v3, %v9155_v59  ;;  %v9128_v59 = vld [vmem:[#allocation3 + $0x60] sm:$0xf8] }
 0x4c1   : > { %13608 = vmatmul.mubr.bf16.gmra.mrb[0].mxu1 %v9534_v52  ;;  %v9173_v52 = vshll.u32 %v9122_v15, 16  ;;  %v9221_v12 = vshrl.u32 %v9128_v59, 16  ;;  %v9224_v27 = vshll.u32 %v9128_v59, 16 }
 0x4c2   : > { %13611 = vmatprep.mubr.bf16.mxu1 %v9537_v37  ;;  %v9178_v37 = vshrl.u32 %v17755_v22, 16  ;;  %v9168_v2 = vsel %vm5952_vm8, %v9159_v63, %v9167_v19 }
 0x4c3   : > { %v9175_v45 = vrot.slane %v9173_v52, 4  ;;  %v9232_v52 = vshll.u32 %v17777_v58, 16 }
 0x4c4   : > { %v9180_v46 = vrot.slane %v9178_v37, 3 }
 0x4c5   : > { %v9176_v3 = vor.u32 %v9175_v45, %v9172_v51  ;;  %v9226_v51 = vrot.slane %v9224_v27, 4  ;;  %v9231_v45 = vrot.slane %v9229_v29, 3  ;;  %v14556_v29 = vld [vmem:[%s18179_s3 + $0x218] sm:$0xff]  }
 0x4c6   : > { %v9184_v28 = vor.u32 %v9183_v6, %v9180_v46  ;;  %v9234_v46 = vrot.slane %v9232_v52, 4 }
 0x4c8   : > { %v9185_v13 = vsel %vm5952_vm8, %v9176_v3, %v9184_v28 }
 0x4c9   : > { %13612 = vmatmul.mubr.bf16.gmra.mrb[4].mxu1 %v9540_v23  ;;  %v9190_v23 = vshll.u32 %v9124_v9, 16  ;;  %v9215_v9 = vshll.u32 %v17772_v61, 16  ;;  %v9223_v61 = vrot.slane %v9221_v12, 3 }
 0x4ca   : > { %13615 = vmatprep.mubr.bf16.mxu1 %v9543_v57  ;;  %v9195_v57 = vshrl.u32 %v17759_v31, 16  ;;  %v9207_v31 = vshll.u32 %v9126_v30, 16 }
 0x4cb   : > { %v9192_v22 = vrot.slane %v9190_v23, 4  ;;  %v9214_v23 = vrot.slane %v9212_v40, 3  ;;  %v9227_v3 = vor.u32 %v9226_v51, %v9223_v61  ;;  %v9266_v40 = vshll.u32 %v17797_v56, 16 }
 0x4cc   : > { %v9197_v15 = vrot.slane %v9195_v57, 3  ;;  %v9209_v19 = vrot.slane %v9207_v31, 4  ;;  %v9217_v57 = vrot.slane %v9215_v9, 4  ;;  %v9280_v51 = vshrl.u32 %v17813_v41, 16 }
 0x4cd   : > { %v9193_v37 = vor.u32 %v9192_v22, %v9189_v36  ;;  %v9246_v36 = vshrl.u32 %v17793_v39, 16  ;;  %v9132_v22 = vld [vmem:[#allocation3 + $0x80] sm:$0xf8] }
 0x4ce   : > { %v9218_v59 = vor.u32 %v9217_v57, %v9214_v23  ;;  %v9255_v28 = vshrl.u32 %v9132_v22, 16  ;;  %v9258_v31 = vshll.u32 %v9132_v22, 16  ;;  %v9136_v23 = vld [vmem:[#allocation3 + $0xa0] sm:$0xf8] }
 0x4d1   : > { %13616 = vmatmul.mubr.bf16.gmra.mrb[8].mxu1 %v9546_v42  ;;  %v9200_v42 = vrot.slane %v9198_v7, 4  ;;  %v14554_v7 = vld [vmem:[%s18179_s3 + $0x208] sm:$0xff]  }
 0x4d2   : > { %13619 = vmatprep.mubr.bf16.mxu1 %v9549_v16  ;;  %v9204_v16 = vshrl.u32 %v9126_v30, 16 }
 0x4d3   : > { %v9201_v8 = vor.u32 %v9200_v42, %v9197_v15  ;;  %v14555_v15 = vld [vmem:[%s18179_s3 + $0x210] sm:$0xff]  }
 0x4d4   : > { %v9206_v63 = vrot.slane %v9204_v16, 3  ;;  %v9235_v16 = vor.u32 %v9234_v46, %v9231_v45  ;;  %v9283_v45 = vshll.u32 %v17813_v41, 16  ;;  %v14557_v46 = vld [vmem:[%s18179_s3 + $0x220] sm:$0xff]   ;;  %v9282_v41 = vrot.slane %v9280_v51, 3 }
 0x4d5   : > { %v9202_v58 = vsel %vm5952_vm8, %v9193_v37, %v9201_v8  ;;  %v9134_v8 = vld [vmem:[#allocation3 + $0x90] sm:$0xf8] }
 0x4d6   : > { %v9210_v42 = vor.u32 %v9209_v19, %v9206_v63  ;;  %v9236_v37 = vsel %vm5952_vm8, %v9227_v3, %v9235_v16  ;;  %v9257_v63 = vrot.slane %v9255_v28, 3  ;;  %v9275_v61 = vshll.u32 %v9134_v8, 16  ;;  %v14558_v28 = vld [vmem:[%s18179_s3 + $0x228] sm:$0xff]  }
 0x4d7   : > { %v9285_v16 = vrot.slane %v9283_v45, 4  ;;  %v14560_v45 = vld [vmem:[%s18179_s3 + $0x238] sm:$0xff]  }
 0x4d8   : > { %v9219_v52 = vsel %vm5952_vm8, %v9210_v42, %v9218_v59  ;;  %v9138_v42 = vld [vmem:[#allocation3 + $0xb0] sm:$0xf8]  ;;  %v9277_v3 = vrot.slane %v9275_v61, 4 }
 0x4d9   : > { %13620 = vmatmul.mubr.bf16.gmra.mrb[12].mxu1 %v9552_v62  ;;  %v9130_v62 = vld [vmem:[#allocation3 + $0x70] sm:$0xf8] }
 0x4da   : > { %13639 = vmatprep.mubr.bf16.mxu1 %v9168_v2  ;;  %v9238_v6 = vshrl.u32 %v9130_v62, 16  ;;  %v9241_v30 = vshll.u32 %v9130_v62, 16  ;;  %v9249_v2 = vshll.u32 %v17793_v39, 16  ;;  %v9248_v39 = vrot.slane %v9246_v36, 3 }
 0x4db   : > { %v9272_v62 = vshrl.u32 %v9134_v8, 16  ;;  %v9300_v36 = vshll.u32 %v17817_v48, 16 }
 0x4dc   : > { %v9240_v9 = vrot.slane %v9238_v6, 3  ;;  %v9243_v12 = vrot.slane %v9241_v30, 4  ;;  %v9251_v27 = vrot.slane %v9249_v2, 4  ;;  %v9292_v6 = vshll.u32 %v9136_v23, 16 }
 0x4dd   : > { %v9297_v30 = vshrl.u32 %v17817_v48, 16  ;;  %v9274_v59 = vrot.slane %v9272_v62, 3 }
 0x4de   : > { %v9244_v57 = vor.u32 %v9243_v12, %v9240_v9  ;;  %v9302_v9 = vrot.slane %v9300_v36, 4  ;;  %v9306_v12 = vshrl.u32 %v9138_v42, 16 }
 0x4df   : > { %v9278_v8 = vor.u32 %v9277_v3, %v9274_v59 }
 0x4e0   : > { %v9308_v62 = vrot.slane %v9306_v12, 3 }
 0x4e1   : > { %13640 = vmatmul.mubr.bf16.vlgmr.msra.gmra.mrb[16].mxu1 %v9185_v13  ;;  %v9260_v13 = vrot.slane %v9258_v31, 4 }
 0x4e2   : > { %13643 = vmatprep.mubr.bf16.mxu1 %v9202_v58  ;;  %13672 = vmatpush3.bf16.msra.mxu1 %v17844_v34  ;;  %v9263_v34 = vshrl.u32 %v17797_v56, 16  ;;  %v9268_v56 = vrot.slane %v9266_v40, 4  ;;  %v9289_v58 = vshrl.u32 %v9136_v23, 16  ;;  %v9299_v40 = vrot.slane %v9297_v30, 3 }
 0x4e3   : > { %13673 = vmatprep.subr.bf16.mxu1 %v14554_v7  ;;  %v9261_v2 = vor.u32 %v9260_v13, %v9257_v63  ;;  %v9286_v63 = vor.u32 %v9285_v16, %v9282_v41  ;;  %v9348_v41 = vshrl.u32 %v17853_v10, 16  ;;  %v9351_v16 = vshll.u32 %v17853_v10, 16 }
 0x4e4   : > { %v9265_v19 = vrot.slane %v9263_v34, 3  ;;  %v9291_v31 = vrot.slane %v9289_v58, 3  ;;  %v9294_v34 = vrot.slane %v9292_v6, 4  ;;  %v9142_v6 = vld [vmem:[#allocation3 + $0xd0] sm:$0xf8] }
 0x4e5   : > { %v9340_v59 = vshrl.u32 %v9142_v6, 16  ;;  %v9343_v3 = vshll.u32 %v9142_v6, 16  ;;  %v9350_v10 = vrot.slane %v9348_v41, 3  ;;  %v9399_v6 = vshrl.u32 %v17871_v55, 16 }
 0x4e6   : > { %13674 = vmatpush3.bf16.msra.mxu1 %v14554_v7  ;;  %v9252_v7 = vor.u32 %v9251_v27, %v9248_v39  ;;  %v9269_v22 = vor.u32 %v9268_v56, %v9265_v19  ;;  %v9309_v39 = vshll.u32 %v9138_v42, 16  ;;  %v9314_v27 = vshrl.u32 %v17833_v50, 16 }
 0x4e7   : > { %13675 = vmatprep.subr.bf16.mxu1 %v14555_v15  ;;  %v9295_v13 = vor.u32 %v9294_v34, %v9291_v31  ;;  %v9303_v19 = vor.u32 %v9302_v9, %v9299_v40  ;;  %v9365_v40 = vshrl.u32 %v17857_v60, 16  ;;  %v9368_v9 = vshll.u32 %v17857_v60, 16  ;;  %v9148_v60 = vld [vmem:[#allocation3 + $0x100] sm:$0xf8] }
 0x4e8   : > { %v9270_v48 = vsel %vm5952_vm8, %v9261_v2, %v9269_v22  ;;  %v9311_v61 = vrot.slane %v9309_v39, 4  ;;  %v9144_v22 = vld [vmem:[#allocation3 + $0xe0] sm:$0xf8]  ;;  %v9401_v41 = vrot.slane %v9399_v6, 3 }
 0x4e9   : > { %13644 = vmatmul.mubr.bf16.gmra.mrb[20].mxu1 %v9219_v52  ;;  %v9140_v52 = vld [vmem:[#allocation3 + $0xc0] sm:$0xf8]  ;;  %v9304_v58 = vsel %vm5952_vm8, %v9295_v13, %v9303_v19  ;;  %v9357_v31 = vshrl.u32 %v9144_v22, 16  ;;  %v9360_v34 = vshll.u32 %v9144_v22, 16  ;;  %v9370_v13 = vrot.slane %v9368_v9, 4 }
 0x4ea   : > { %13647 = vmatprep.mubr.bf16.mxu1 %v9236_v37  ;;  %13676 = vmatpush3.bf16.msra.mxu1 %v14555_v15  ;;  %v9253_v15 = vsel %vm5952_vm8, %v9244_v57, %v9252_v7  ;;  %v14559_v37 = vld [vmem:[%s18179_s3 + $0x230] sm:$0xff]   ;;  %v9323_v56 = vshrl.u32 %v9140_v52, 16  ;;  %v9326_v23 = vshll.u32 %v9140_v52, 16  ;;  %v9331_v57 = vshrl.u32 %v17837_v32, 16 }
 0x4eb   : > { %13677 = vmatprep.subr.bf16.mxu1 %v14556_v29  ;;  %v9334_v7 = vshll.u32 %v17837_v32, 16  ;;  %v9353_v52 = vrot.slane %v9351_v16, 4  ;;  %v9146_v19 = vld [vmem:[#allocation3 + $0xf0] sm:$0xf8]  ;;  %v9419_v9 = vshll.u32 %v17881_v18, 16 }
 0x4ec   : > { %v9325_v30 = vrot.slane %v9323_v56, 3  ;;  %v9328_v36 = vrot.slane %v9326_v23, 4  ;;  %v9333_v2 = vrot.slane %v9331_v57, 3  ;;  %v9374_v23 = vshrl.u32 %v9146_v19, 16 }
 0x4ed   : > { %v9336_v32 = vrot.slane %v9334_v7, 4  ;;  %v9377_v57 = vshll.u32 %v9146_v19, 16  ;;  %v9382_v7 = vshrl.u32 %v17867_v24, 16  ;;  %v9421_v19 = vrot.slane %v9419_v9, 4 }
 0x4ee   : > { %13678 = vmatpush3.bf16.msra.mxu1 %v14556_v29  ;;  %v9317_v29 = vshll.u32 %v17833_v50, 16  ;;  %v9316_v50 = vrot.slane %v9314_v27, 3  ;;  %v9342_v27 = vrot.slane %v9340_v59, 3 }
 0x4ef   : > { %13679 = vmatprep.subr.bf16.mxu1 %v14557_v46  ;;  %v9337_v12 = vor.u32 %v9336_v32, %v9333_v2  ;;  %v9379_v2 = vrot.slane %v9377_v57, 4  ;;  %v9384_v32 = vrot.slane %v9382_v7, 3 }
 0x4f0   : > { %v9319_v51 = vrot.slane %v9317_v29, 4  ;;  %v9345_v29 = vrot.slane %v9343_v3, 4 }
 0x4f1   : > { %13648 = vmatmul.mubr.bf16.gmra.mrb[24].mxu1 %v9253_v15  ;;  %v9312_v15 = vor.u32 %v9311_v61, %v9308_v62  ;;  %v9385_v62 = vshll.u32 %v17867_v24, 16 }
 0x4f2   : > { %13651 = vmatprep.mubr.bf16.mxu1 %v9270_v48  ;;  %13680 = vmatpush3.bf16.msra.mxu1 %v14557_v46  ;;  %v9287_v46 = vsel %vm5952_vm8, %v9278_v8, %v9286_v63  ;;  %v9320_v42 = vor.u32 %v9319_v51, %v9316_v50  ;;  %v9329_v48 = vor.u32 %v9328_v36, %v9325_v30  ;;  %v9362_v8 = vrot.slane %v9360_v34, 4 }
 0x4f3   : > { %13681 = vmatprep.subr.bf16.mxu1 %v14558_v28  ;;  %v9367_v63 = vrot.slane %v9365_v40, 3  ;;  %v9346_v61 = vor.u32 %v9345_v29, %v9342_v27  ;;  %v9354_v50 = vor.u32 %v9353_v52, %v9350_v10  ;;  %v9402_v30 = vshll.u32 %v17871_v55, 16 }
 0x4f4   : > { %v9321_v39 = vsel %vm5952_vm8, %v9312_v15, %v9320_v42  ;;  %v9338_v56 = vsel %vm5952_vm8, %v9329_v48, %v9337_v12  ;;  %v9376_v36 = vrot.slane %v9374_v23, 3  ;;  %v9387_v22 = vrot.slane %v9385_v62, 4  ;;  %v9150_v15 = vld [vmem:[#allocation3 + $0x110] sm:$0xf8]  ;;  %v10005_v23 = vld [vmem:[#allocation3 + $0x38] sm:$0x1f] }
 0x4f5   : > { %v9355_v42 = vsel %vm5952_vm8, %v9346_v61, %v9354_v50  ;;  %v9404_v16 = vrot.slane %v9402_v30, 4  ;;  %v9408_v34 = vshrl.u32 %v9150_v15, 16  ;;  %v9411_v40 = vshll.u32 %v9150_v15, 16 }
 0x4f6   : > { %13682 = vmatpush3.bf16.msra.mxu1 %v14558_v28  ;;  %v17946_v28 = vld [vmem:[%s18180_s4] sm:$0xff]   ;;  %v9416_v55 = vshrl.u32 %v17881_v18, 16  ;;  %v9380_v48 = vor.u32 %v9379_v2, %v9376_v36  ;;  %v9388_v12 = vor.u32 %v9387_v22, %v9384_v32  ;;  %v10024_v27 = vshll.u32 %v17749_v54, 16 }
 0x4f7   : > { %13683 = vmatprep.subr.bf16.mxu1 %v14559_v37  ;;  %v10038_v62 = vshrl.u32 %v17757_v14, 16  ;;  %v10041_v61 = vshll.u32 %v17757_v14, 16  ;;  %v10055_v2 = vshrl.u32 %v17761_v11, 16  ;;  %v10058_v32 = vshll.u32 %v17761_v11, 16 }
 0x4f8   : > { %v10026_v57 = vrot.slane %v10024_v27, 5  ;;  %v10072_v11 = vshrl.u32 %v17774_v38, 16 }
 0x4f9   : > { %13652 = vmatmul.mubr.bf16.gmra.mrb[28].mxu1 %v9287_v46  ;;  %v9391_v46 = vshrl.u32 %v9148_v60, 16  ;;  %v10040_v36 = vrot.slane %v10038_v62, 4 }
 0x4fa   : > { %13655 = vmatprep.mubr.bf16.mxu1 %v9304_v58  ;;  %13684 = vmatpush3.bf16.msra.mxu1 %v14559_v37  ;;  %v9359_v37 = vrot.slane %v9357_v31, 3  ;;  %v9394_v58 = vshll.u32 %v9148_v60, 16  ;;  %v10004_v31 = vld [vmem:[#allocation3 + $0x28] sm:$0x1f] }
 0x4fb   : > { %13685 = vmatprep.subr.bf16.mxu1 %v14560_v45  ;;  %v9393_v24 = vrot.slane %v9391_v46, 3  ;;  %v10029_v29 = vshrl.u32 %v10004_v31, 16  ;;  %v10032_v10 = vshll.u32 %v10004_v31, 16  ;;  %v10049_v46 = vshll.u32 %v10005_v23, 16 }
 0x4fc   : > { %v9363_v51 = vor.u32 %v9362_v8, %v9359_v37  ;;  %v9396_v3 = vrot.slane %v9394_v58, 4  ;;  %v9405_v37 = vor.u32 %v9404_v16, %v9401_v41  ;;  %v9410_v8 = vrot.slane %v9408_v34, 3  ;;  %v10006_v58 = vld [vmem:[#allocation3 + $0x48] sm:$0x1f]  ;;  %v10007_v41 = vld [vmem:[#allocation3 + $0x58] sm:$0x1f] }
 0x4fd   : > { %v10031_v18 = vrot.slane %v10029_v29, 4  ;;  %v10034_v7 = vrot.slane %v10032_v10, 5  ;;  %v10063_v22 = vshrl.u32 %v10006_v58, 16  ;;  %v10066_v15 = vshll.u32 %v10006_v58, 16  ;;  %v14563_v58 = vld [vmem:[%s18180_s4 + $0x10] sm:$0xff]  }
 0x4fe   : > { %13686 = vmatpush3.bf16.msra.mxu1 %v14560_v45  ;;  %v9371_v45 = vor.u32 %v9370_v13, %v9367_v63  ;;  %v9397_v52 = vor.u32 %v9396_v3, %v9393_v24  ;;  %v9413_v63 = vrot.slane %v9411_v40, 4  ;;  %v9418_v13 = vrot.slane %v9416_v55, 3  ;;  %v10008_v55 = vld [vmem:[#allocation3 + $0x68] sm:$0x1f] }
 0x4ff   : > { %13719 = vmatprep.subr.bf16.mxu1 %v17946_v28  ;;  %v10035_v30 = vor.u32 %v10034_v7, %v10031_v18  ;;  %v10051_v14 = vrot.slane %v10049_v46, 5  ;;  %v10057_v16 = vrot.slane %v10055_v2, 4  ;;  %v10060_v31 = vrot.slane %v10058_v32, 5  ;;  %v10010_v46 = vld [vmem:[#allocation3 + $0x88] sm:$0x1f] }
 0x500   : > { %v9372_v59 = vsel %vm5952_vm8, %v9363_v51, %v9371_v45  ;;  %v9414_v50 = vor.u32 %v9413_v63, %v9410_v8  ;;  %v9422_v51 = vor.u32 %v9421_v19, %v9418_v13  ;;  %v10046_v45 = vshrl.u32 %v10005_v23, 16  ;;  %v10009_v19 = vld [vmem:[#allocation3 + $0x78] sm:$0x1f] }
 0x501   : > { %13656 = vmatmul.mubr.bf16.gmra.mrb[0].mxu1 %v9321_v39  ;;  %v10021_v39 = vshrl.u32 %v17749_v54, 16  ;;  %v9406_v54 = vsel %vm5952_vm8, %v9397_v52, %v9405_v37  ;;  %v10065_v34 = vrot.slane %v10063_v22, 4  ;;  %v10068_v40 = vrot.slane %v10066_v15, 5 }
 0x502   : > { %13659 = vmatprep.mubr.bf16.mxu1 %v9338_v56  ;;  %v9389_v56 = vsel %vm5952_vm8, %v9380_v48, %v9388_v12  ;;  %v10048_v24 = vrot.slane %v10046_v45, 4  ;;  %v10075_v12 = vshll.u32 %v17774_v38, 16  ;;  %v10083_v27 = vshll.u32 %v10007_v41, 16  ;;  %v14562_v38 = vld [vmem:[%s18180_s4 + $0x8] sm:$0xff]  }
 0x503   : > { %v10023_v60 = vrot.slane %v10021_v39, 4  ;;  %v10080_v39 = vshrl.u32 %v10007_v41, 16  ;;  %v10089_v29 = vshrl.u32 %v17779_v25, 16  ;;  %v10092_v10 = vshll.u32 %v17779_v25, 16 }
 0x504   : > { %v10052_v48 = vor.u32 %v10051_v14, %v10048_v24  ;;  %v10097_v52 = vshrl.u32 %v10008_v55, 16  ;;  %v10100_v37 = vshll.u32 %v10008_v55, 16  ;;  %v10061_v8 = vor.u32 %v10060_v31, %v10057_v16  ;;  %v14564_v14 = vld [vmem:[%s18180_s4 + $0x18] sm:$0xff]   ;;  %v10012_v55 = vld [vmem:[#allocation3 + $0xa8] sm:$0x1f] }
 0x505   : > { %v10027_v6 = vor.u32 %v10026_v57, %v10023_v60  ;;  %v10069_v63 = vor.u32 %v10068_v40, %v10065_v34  ;;  %v10077_v60 = vrot.slane %v10075_v12, 5  ;;  %v10082_v23 = vrot.slane %v10080_v39, 4  ;;  %v10011_v16 = vld [vmem:[#allocation3 + $0x98] sm:$0x1f] }
 0x506   : > { %v10085_v57 = vrot.slane %v10083_v27, 5  ;;  %v10091_v18 = vrot.slane %v10089_v29, 4  ;;  %v10094_v7 = vrot.slane %v10092_v10, 5  ;;  %v10099_v62 = vrot.slane %v10097_v52, 4  ;;  %v14565_v29 = vld [vmem:[%s18180_s4 + $0x20] sm:$0xff]  }
 0x507   : > { %v10036_v3 = vsel %vm1313_vm3, %v10027_v6, %v10035_v30  ;;  %v10070_v25 = vsel %vm1313_vm3, %v10061_v8, %v10069_v63  ;;  %v10117_v45 = vshll.u32 %v10009_v19, 16  ;;  %v10123_v32 = vshrl.u32 %v17799_v49, 16 }
 0x508   : > { %v10086_v30 = vor.u32 %v10085_v57, %v10082_v23  ;;  %v10131_v22 = vshrl.u32 %v10010_v46, 16  ;;  %v10134_v15 = vshll.u32 %v10010_v46, 16  ;;  %v10143_v12 = vshll.u32 %v17815_v17, 16  ;;  %v14567_v46 = vld [vmem:[%s18180_s4 + $0x30] sm:$0xff]  }
 0x509   : > { %13660 = vmatmul.mubr.bf16.gmra.mrb[4].mxu1 %v9355_v42  ;;  %v9423_v42 = vsel %vm5952_vm8, %v9414_v50, %v9422_v51  ;;  %v10109_v50 = vshll.u32 %v17795_v33, 16  ;;  %v10114_v51 = vshrl.u32 %v10009_v19, 16  ;;  %v10119_v24 = vrot.slane %v10117_v45, 5  ;;  %v10014_v45 = vld [vmem:[#allocation3 + $0xc8] sm:$0x1f] }
 0x50a   : > { %13663 = vmatprep.mubr.bf16.mxu1 %v9372_v59  ;;  %v10043_v59 = vrot.slane %v10041_v61, 5  ;;  %v10106_v61 = vshrl.u32 %v17795_v33, 16  ;;  %v10125_v31 = vrot.slane %v10123_v32, 4  ;;  %v10133_v34 = vrot.slane %v10131_v22, 4 }
 0x50b   : > { %v10136_v40 = vrot.slane %v10134_v15, 5  ;;  %v10148_v39 = vshrl.u32 %v10011_v16, 16  ;;  %v10151_v27 = vshll.u32 %v10011_v16, 16  ;;  %v10157_v10 = vshrl.u32 %v17819_v4, 16 }
 0x50c   : > { %v10044_v9 = vor.u32 %v10043_v59, %v10040_v36  ;;  %v10095_v36 = vor.u32 %v10094_v7, %v10091_v18  ;;  %v10108_v33 = vrot.slane %v10106_v61, 4  ;;  %v10116_v59 = vrot.slane %v10114_v51, 4 }
 0x50d   : > { %v10160_v52 = vshll.u32 %v17819_v4, 16  ;;  %v10168_v8 = vshll.u32 %v10012_v55, 16  ;;  %v10150_v23 = vrot.slane %v10148_v39, 4  ;;  %v10153_v57 = vrot.slane %v10151_v27, 5 }
 0x50e   : > { %v10053_v13 = vsel %vm1313_vm3, %v10044_v9, %v10052_v48  ;;  %v10120_v48 = vor.u32 %v10119_v24, %v10116_v59  ;;  %v10159_v18 = vrot.slane %v10157_v10, 4  ;;  %v10177_v61 = vshll.u32 %v17835_v0, 16  ;;  %v14568_v59 = vld [vmem:[%s18180_s4 + $0x38] sm:$0xff]  }
 0x50f   : > { %v10162_v7 = vrot.slane %v10160_v52, 5  ;;  %v10194_v32 = vshll.u32 %v17839_v44, 16  ;;  %v10202_v22 = vshll.u32 %v10014_v45, 16  ;;  %v10228_v39 = vshll.u32 %v17859_v43, 16 }
 0x510   : > { %v10179_v15 = vrot.slane %v10177_v61, 5 }
 0x511   : > { %13664 = vmatmul.mubr.bf16.gmra.mrb[8].mxu1 %v9389_v56  ;;  %v10074_v56 = vrot.slane %v10072_v11, 4  ;;  %v10140_v11 = vshrl.u32 %v17815_v17, 16 }
 0x512   : > { %13667 = vmatprep.mubr.bf16.mxu1 %v9406_v54  ;;  %v10102_v54 = vrot.slane %v10100_v37, 5  ;;  %v10165_v37 = vshrl.u32 %v10012_v55, 16  ;;  %v10208_v55 = vshrl.u32 %v17855_v53, 16 }
 0x513   : > { %v10078_v6 = vor.u32 %v10077_v60, %v10074_v56  ;;  %v10013_v56 = vld [vmem:[#allocation3 + $0xb8] sm:$0x1f]  ;;  %v10142_v17 = vrot.slane %v10140_v11, 4  ;;  %v10145_v60 = vrot.slane %v10143_v12, 5  ;;  %v10225_v12 = vshrl.u32 %v17859_v43, 16 }
 0x514   : > { %v10103_v2 = vor.u32 %v10102_v54, %v10099_v62  ;;  %v10167_v4 = vrot.slane %v10165_v37, 4  ;;  %v10170_v62 = vrot.slane %v10168_v8, 5  ;;  %v10185_v51 = vshll.u32 %v10013_v56, 16  ;;  %v10018_v43 = vld [vmem:[#allocation3 + $0x108] sm:$0x1f] }
 0x515   : > { %v10210_v8 = vrot.slane %v10208_v55, 4 }
 0x516   : > { %v10104_v41 = vsel %vm1313_vm3, %v10095_v36, %v10103_v2  ;;  %v10171_v36 = vor.u32 %v10170_v62, %v10167_v4  ;;  %v10191_v2 = vshrl.u32 %v17839_v44, 16  ;;  %v10196_v44 = vrot.slane %v10194_v32, 5 }
 0x517   : > { %v10245_v4 = vshll.u32 %v17869_v26, 16 }
 0x519   : > { %13668 = vmatmul.mubr.bf16.gmra.mrb[12].mxu1 %v9423_v42  ;;  %v10111_v42 = vrot.slane %v10109_v50, 5  ;;  %v10182_v50 = vshrl.u32 %v10013_v56, 16  ;;  %v10227_v56 = vrot.slane %v10225_v12, 4  ;;  %v14571_v12 = vld [vmem:[%s14750_s19 + $0x34] sm:$0xff]  }
 0x51a   : > { %13687 = vmatprep.mubr.bf16.mxu1 %v10036_v3  ;;  %v10087_v3 = vsel %vm1313_vm3, %v10078_v6, %v10086_v30  ;;  %v10154_v6 = vor.u32 %v10153_v57, %v10150_v23  ;;  %v10163_v30 = vor.u32 %v10162_v7, %v10159_v18  ;;  %v10017_v57 = vld [vmem:[#allocation3 + $0xf8] sm:$0x1f]  ;;  %v10242_v7 = vshrl.u32 %v17869_v26, 16 }
 0x51b   : > { %v10112_v9 = vor.u32 %v10111_v42, %v10108_v33  ;;  %v10184_v33 = vrot.slane %v10182_v50, 4  ;;  %v10187_v42 = vrot.slane %v10185_v51, 5  ;;  %v10253_v61 = vshll.u32 %v10017_v57, 16 }
 0x51c   : > { %v10259_v50 = vshrl.u32 %v17873_v20, 16  ;;  %v10262_v51 = vshll.u32 %v17873_v20, 16  ;;  %v10279_v20 = vshll.u32 %v17883_v21, 16 }
 0x51d   : > { %v10121_v19 = vsel %vm1313_vm3, %v10112_v9, %v10120_v48  ;;  %v10211_v9 = vshll.u32 %v17855_v53, 16  ;;  %v10230_v53 = vrot.slane %v10228_v39, 5  ;;  %v14572_v39 = vld [vmem:[%s14750_s19 + $0x44] sm:$0xff]  }
 0x51e   : > { %v10261_v26 = vrot.slane %v10259_v50, 4 }
 0x51f   : > { %v10231_v62 = vor.u32 %v10230_v53, %v10227_v56  ;;  %v14582_v56 = vld [vmem:[%s14750_s19 + $0xe4] sm:$0xff]   ;;  %v14583_v53 = vld [vmem:[%s14750_s19 + $0xf4] sm:$0xff]  }
 0x521   : > { %13688 = vmatmul.mubr.bf16.vlgmr.msra.gmra.mrb[16].mxu1 %v10053_v13  ;;  %v10137_v13 = vor.u32 %v10136_v40, %v10133_v34  ;;  %v10188_v40 = vor.u32 %v10187_v42, %v10184_v33  ;;  %v10276_v33 = vshrl.u32 %v17883_v21, 16 }
 0x522   : > { %13691 = vmatprep.mubr.bf16.mxu1 %v10070_v25  ;;  %13720 = vmatpush3.bf16.msra.mxu1 %v17946_v28  ;;  %v10126_v28 = vshll.u32 %v17799_v49, 16  ;;  %v10174_v25 = vshrl.u32 %v17835_v0, 16 }
 0x523   : > { %13721 = vmatprep.subr.bf16.mxu1 %v14562_v38 }
 0x524   : > { %v10128_v49 = vrot.slane %v10126_v28, 5  ;;  %v10199_v28 = vshrl.u32 %v10014_v45, 16  ;;  %v10176_v0 = vrot.slane %v10174_v25, 4  ;;  %v10250_v25 = vshrl.u32 %v10017_v57, 16 }
 0x525   : > { %v10267_v45 = vshrl.u32 %v10018_v43, 16 }
 0x526   : > { %13722 = vmatpush3.bf16.msra.mxu1 %v14562_v38  ;;  %v10129_v63 = vor.u32 %v10128_v49, %v10125_v31  ;;  %v14566_v38 = vld [vmem:[%s18180_s4 + $0x28] sm:$0xff]   ;;  %v10201_v16 = vrot.slane %v10199_v28, 4  ;;  %v10204_v31 = vrot.slane %v10202_v22, 5  ;;  %v10180_v34 = vor.u32 %v10179_v15, %v10176_v0 }
 0x527   : > { %13723 = vmatprep.subr.bf16.mxu1 %v14563_v58  ;;  %v10016_v49 = vld [vmem:[#allocation3 + $0xe8] sm:$0x1f]  ;;  %v10252_v32 = vrot.slane %v10250_v25, 4  ;;  %v10255_v28 = vrot.slane %v10253_v61, 5  ;;  %v10264_v22 = vrot.slane %v10262_v51, 5  ;;  %v10269_v0 = vrot.slane %v10267_v45, 4 }
 0x528   : > { %v10138_v54 = vsel %vm1313_vm3, %v10129_v63, %v10137_v13  ;;  %v10233_v27 = vshrl.u32 %v10016_v49, 16  ;;  %v10205_v52 = vor.u32 %v10204_v31, %v10201_v16  ;;  %v10189_v37 = vsel %vm1313_vm3, %v10180_v34, %v10188_v40 }
 0x529   : > { %13692 = vmatmul.mubr.bf16.gmra.mrb[20].mxu1 %v10087_v3  ;;  %v10015_v3 = vld [vmem:[#allocation3 + $0xd8] sm:$0x1f]  ;;  %v10213_v63 = vrot.slane %v10211_v9, 5  ;;  %v10281_v16 = vrot.slane %v10279_v20, 5 }
 0x52a   : > { %13695 = vmatprep.mubr.bf16.mxu1 %v10104_v41  ;;  %13724 = vmatpush3.bf16.msra.mxu1 %v14563_v58  ;;  %v10146_v58 = vor.u32 %v10145_v60, %v10142_v17  ;;  %v10193_v41 = vrot.slane %v10191_v2, 4  ;;  %v10216_v48 = vshrl.u32 %v10015_v3, 16  ;;  %v10219_v11 = vshll.u32 %v10015_v3, 16 }
 0x52b   : > { %13725 = vmatprep.subr.bf16.mxu1 %v14564_v14  ;;  %v10235_v17 = vrot.slane %v10233_v27, 4  ;;  %v10247_v2 = vrot.slane %v10245_v4, 5  ;;  %v10265_v3 = vor.u32 %v10264_v22, %v10261_v26  ;;  %v14573_v27 = vld [vmem:[%s14750_s19 + $0x54] sm:$0xff]   ;;  %v18306_v26 = vld [vmem:[#allocation19_spill] sm:$0xff] }
 0x52c   : > { %v10155_v24 = vsel %vm1313_vm3, %v10146_v58, %v10154_v6  ;;  %v10197_v10 = vor.u32 %v10196_v44, %v10193_v41  ;;  %v10218_v13 = vrot.slane %v10216_v48, 4  ;;  %v10244_v6 = vrot.slane %v10242_v7, 4  ;;  %v14569_v48 = vld [vmem:[%s14750_s19 + $0x14] sm:$0xff]  }
 0x52d   : > { %v10278_v44 = vrot.slane %v10276_v33, 4  ;;  %v18307_v33 = vld [vmem:[#allocation10_spill] sm:$0xff] }
 0x52e   : > { %13726 = vmatpush3.bf16.msra.mxu1 %v14564_v14  ;;  %v10172_v14 = vsel %vm1313_vm3, %v10163_v30, %v10171_v36  ;;  %v10206_v23 = vsel %vm1313_vm3, %v10197_v10, %v10205_v52  ;;  %v10019_v30 = vld [vmem:[#allocation3 + $0x118] sm:$0x1f]  ;;  %v14576_v52 = vld [vmem:[%s14750_s19 + $0x84] sm:$0xff]  }
 0x52f   : > { %13727 = vmatprep.subr.bf16.mxu1 %v14565_v29  ;;  %v10284_v42 = vshrl.u32 %v10019_v30, 16  ;;  %v10282_v40 = vor.u32 %v10281_v16, %v10278_v44  ;;  %v14575_v10 = vld [vmem:[%s14750_s19 + $0x74] sm:$0xff]  }
 0x531   : > { %13696 = vmatmul.mubr.bf16.gmra.mrb[24].mxu1 %v10121_v19  ;;  %v10221_v19 = vrot.slane %v10219_v11, 5  ;;  %v10286_v31 = vrot.slane %v10284_v42, 4  ;;  %v14570_v11 = vld [vmem:[%s14750_s19 + $0x24] sm:$0xff]  }
 0x532   : > { %13699 = vmatprep.mubr.bf16.mxu1 %v10138_v54  ;;  %13728 = vmatpush3.bf16.msra.mxu1 %v14565_v29  ;;  %v10236_v29 = vshll.u32 %v10016_v49, 16 }
 0x533   : > { %13729 = vmatprep.subr.bf16.mxu1 %v14566_v38  ;;  %v10222_v18 = vor.u32 %v10221_v19, %v10218_v13  ;;  %v14580_v13 = vld [vmem:[%s14750_s19 + $0xc4] sm:$0xff]   ;;  %v14581_v19 = vld [vmem:[%s14750_s19 + $0xd4] sm:$0xff]  }
 0x534   : > { %v10238_v60 = vrot.slane %v10236_v29, 5  ;;  %v14574_v29 = vld [vmem:[%s14750_s19 + $0x64] sm:$0xff]  }
 0x536   : > { %13730 = vmatpush3.bf16.msra.mxu1 %v14566_v38  ;;  %v10214_v38 = vor.u32 %v10213_v63, %v10210_v8  ;;  %v10239_v54 = vor.u32 %v10238_v60, %v10235_v17  ;;  %v14578_v8 = vld [vmem:[%s14750_s19 + $0xa4] sm:$0xff]   ;;  %v14579_v63 = vld [vmem:[%s14750_s19 + $0xb4] sm:$0xff]  }
 0x537   : > { %13731 = vmatprep.subr.bf16.mxu1 %v14567_v46  ;;  %v14584_v17 = vld [vmem:[%s14750_s19 + $0x104] sm:$0xff]  }
 0x538   : > { %v10223_v58 = vsel %vm1313_vm3, %v10214_v38, %v10222_v18  ;;  %v10240_v36 = vsel %vm1313_vm3, %v10231_v62, %v10239_v54 }
 0x539   : > { %13700 = vmatmul.mubr.bf16.gmra.mrb[28].mxu1 %v10155_v24  ;;  %v10248_v24 = vor.u32 %v10247_v2, %v10244_v6  ;;  %v18304_v6 = vld [vmem:[#allocation18_spill] sm:$0xff]  ;;  %v18305_v2 = vld [vmem:[#allocation8_spill] sm:$0xff] }
 0x53a   : > { %13703 = vmatprep.mubr.bf16.mxu1 %v10172_v14  ;;  %13732 = vmatpush3.bf16.msra.mxu1 %v14567_v46  ;;  %v10270_v46 = vshll.u32 %v10018_v43, 16  ;;  %v10256_v14 = vor.u32 %v10255_v28, %v10252_v32 }
 0x53b   : > { %13733 = vmatprep.subr.bf16.mxu1 %v14568_v59 }
 0x53c   : > { %v10272_v15 = vrot.slane %v10270_v46, 5  ;;  %v10257_v34 = vsel %vm1313_vm3, %v10248_v24, %v10256_v14 }
 0x53e   : > { %13734 = vmatpush3.bf16.msra.mxu1 %v14568_v59  ;;  %v10287_v59 = vshll.u32 %v10019_v30, 16  ;;  %v10273_v41 = vor.u32 %v10272_v15, %v10269_v0 }
 0x540   : > { %v10289_v49 = vrot.slane %v10287_v59, 5  ;;  %v10274_v21 = vsel %vm1313_vm3, %v10265_v3, %v10273_v41 }
 0x541   : > { %13704 = vmatmul.mubr.bf16.gmra.mrb[0].mxu1 %v10189_v37  ;;  %v14577_v37 = vld [vmem:[%s14750_s19 + $0x94] sm:$0xff]   ;;  %s11390_s19 = sshll.u32 %s242_s13, 7 }
 0x542   : > { %13707 = vmatprep.mubr.bf16.mxu1 %v10206_v23  ;;  %v10290_v55 = vor.u32 %v10289_v49, %v10286_v31  ;;  %v18053_v23 = vld [vmem:[%s18181_s5] ss:$0 sm:$0xff]  ;;  %s18068_s14 = scalar_lea.vmem [#allocation4], %s11390_s19  ;;  %v18308_v31 = vld [vmem:[#allocation9_spill] sm:$0xff] }
 0x543   : > { %s11324_s16 = sshll.u32 %s18068_s14, 4  ;;  %s18129_s16 = int_to_ptr.vmem [resolvable:$true] %s11324_s16 }
 0x544   : > { %v10291_v9 = vsel %vm1313_vm3, %v10282_v40, %v10290_v55  ;;  %v18309_v40 = vld [vmem:[#allocation11_spill] sm:$0xff]  ;;  %s14586_s26 = scalar_lea.vmem %s18129_s16, 2048  ;;  %p14593_p0 = scmp.lt.s32.totalorder %s18129_s16, %s14591_s29 }
 0x545   : > { %p14587_p11 = scmp.ne.s32.totalorder %s18129_s16, %s14586_s26  ;;  %p14594_p1 = scmp.lt.s32.totalorder %s14592_s9, %s14586_s26 }
 0x547   : > { %p14588_p12 = pnand %p14587_p11, %p14726_p5  ;;  %p14595_p2 = por %p14594_p1, %p14593_p0 }
 0x549   : > { %13708 = vmatmul.mubr.bf16.gmra.mrb[4].mxu1 %v10223_v58  ;;  %p14589_p13 = pneg %p14588_p12 }
 0x54a   : > { %13711 = vmatprep.mubr.bf16.mxu1 %v10240_v36 }
 0x54b   : > { %p14596_p3 = pnand %p14595_p2, %p14589_p13 }
 0x551   : > { %13712 = vmatmul.mubr.bf16.gmra.mrb[8].mxu1 %v10257_v34 }
 0x552   : > { %13715 = vmatprep.mubr.bf16.mxu1 %v10274_v21 }
 0x559   : > { %13716 = vmatmul.mubr.bf16.gmra.mrb[12].mxu1 %v10291_v9 }
 0x55a   : > { %13735 = vmatprep.mubr.bf16.mxu1 %v14569_v48 }
 0x561   : > { %13736 = vmatmul.mubr.bf16.vlgmr.msra.gmra.mrb[16].mxu1 %v14570_v11  ;;  %v18310_v11 = vld [vmem:[#allocation20_spill] sm:$0xff] }
 0x562   : > { %13739 = vmatprep.mubr.bf16.mxu1 %v14571_v12 }
 0x569   : > { %13740 = vmatmul.mubr.bf16.gmra.mrb[20].mxu1 %v14572_v39 }
 0x56a   : > { %13743 = vmatprep.mubr.bf16.mxu1 %v14573_v27 }
 0x571   : > { %13744 = vmatmul.mubr.bf16.gmra.mrb[24].mxu1 %v14574_v29  ;;  %v18311_v29 = vld [vmem:[#allocation12_spill] sm:$0xff] }
 0x572   : > { %13747 = vmatprep.mubr.bf16.mxu1 %v14575_v10 }
 0x579   : > { %13748 = vmatmul.mubr.bf16.gmra.mrb[28].mxu1 %v14576_v52 }
 0x57a   : > { %13751 = vmatprep.mubr.bf16.mxu1 %v14577_v37 }
 0x581   : > { %13752 = vmatmul.mubr.bf16.gmra.mrb[0].mxu1 %v14578_v8 }
 0x582   : > { %13755 = vmatprep.mubr.bf16.mxu1 %v14579_v63 }
 0x589   : > { %13756 = vmatmul.mubr.bf16.gmra.mrb[4].mxu1 %v14580_v13 }
 0x58a   : > { %13759 = vmatprep.mubr.bf16.mxu1 %v14581_v19 }
 0x591   : > { %13760 = vmatmul.mubr.bf16.gmra.mrb[8].mxu1 %v14582_v56 }
 0x592   : > { %13763 = vmatprep.mubr.bf16.mxu1 %v14583_v53 }
 0x599   : > { %13764 = vmatmul.mubr.bf16.gmra.mrb[12].mxu1 %v14584_v17  ;;  %v18312_v17 = vld [vmem:[#allocation13_spill] sm:$0xff] }
 0x634   : > { %v13737_v60 = vpop.f32.mrb[16].mxu1 }
 0x635   : > { %v13783_v57 = vadd.f32 %v13737_v60, %v17496_v47  ;;  %v10792_v43 = vpop.f32.mrb[17].mxu1 }
 0x636   : > { %v13784_v38 = vadd.f32 %v10792_v43, %v17500_v1  ;;  %v13738_v18 = vpop.f32.mrb[18].mxu1 }
 0x637   : > { %v11088_v7 = vadd.f32 %v13783_v57, %v18053_v23  ;;  %v13785_v4 = vadd.f32 %v13738_v18, %v17504_v35  ;;  %v10795_v62 = vpop.f32.mrb[19].mxu1 }
 0x638   : > { %v11086_v54 = vadd.f32 %v13784_v38, %v18053_v23  ;;  %v13786_v25 = vadd.f32 %v10795_v62, %v17506_v5  ;;  %v18313_v38 = vld [vmem:[#allocation14_spill] sm:$0xff]  ;;  %v18314_v62 = vld [vmem:[#allocation21_spill] sm:$0xff] }
 0x639   : > { %v11089_v61 = vadd.f32 %v13785_v4, %v18053_v23  ;;  %v11120_v50 = vmax.f32 %v11088_v7, 0.0 }
 0x63a   : > { %v11087_v47 = vadd.f32 %v13786_v25, %v18053_v23  ;;  %v11118_v1 = vmax.f32 %v11086_v54, 0.0 }
 0x63b   : > { %v11121_v51 = vmax.f32 %v11089_v61, 0.0 }
 0x63c   : > { %v11119_v45 = vmax.f32 %v11087_v47, 0.0  ;;  %v13741_v46 = vpop.f32.mrb[20].mxu1  ;;  %v18315_v47 = vld [vmem:[#allocation15_spill] sm:$0xff] }
 0x63d   : > { %v12312_v58 = vpack.c.bf16 %v11121_v51, %v11120_v50  ;;  %v13787_v30 = vadd.f32 %v13741_v46, %v18304_v6  ;;  %v10808_v35 = vpop.f32.mrb[21].mxu1 }
 0x63e   : > { %v12307_v36 = vpack.c.bf16 %v11119_v45, %v11118_v1  ;;  %v13788_v32 = vadd.f32 %v10808_v35, %v18305_v2  ;;  %v13742_v28 = vpop.f32.mrb[22].mxu1 }
 0x63f   : > { %12384 = vst [vmem:[%s18068_s14 + $0x8] sm:$0xff] %v12312_v58   ;;  %v11092_v5 = vadd.f32 %v13787_v30, %v18053_v23  ;;  %v13789_v22 = vadd.f32 %v13742_v28, %v18306_v26  ;;  %v10811_v0 = vpop.f32.mrb[23].mxu1 }
 0x640   : > { %12308 = vst [vmem:[%s18068_s14] sm:$0xff] %v12307_v36   ;;  %v11090_v15 = vadd.f32 %v13788_v32, %v18053_v23  ;;  %v13790_v20 = vadd.f32 %v10811_v0, %v18307_v33 }
 0x641   : > { %v11093_v42 = vadd.f32 %v13789_v22, %v18053_v23  ;;  %v11124_v24 = vmax.f32 %v11092_v5, 0.0 }
 0x642   : > { %v11091_v59 = vadd.f32 %v13790_v20, %v18053_v23  ;;  %v11122_v3 = vmax.f32 %v11090_v15, 0.0 }
 0x643   : > { %v11125_v14 = vmax.f32 %v11093_v42, 0.0 }
 0x644   : > { %v11123_v41 = vmax.f32 %v11091_v59, 0.0  ;;  %v13745_v44 = vpop.f32.mrb[24].mxu1 }
 0x645   : > { %v12322_v16 = vpack.c.bf16 %v11125_v14, %v11124_v24  ;;  %v13791_v49 = vadd.f32 %v13745_v44, %v18308_v31  ;;  %v10824_v34 = vpop.f32.mrb[25].mxu1 }
 0x646   : > { %v12317_v21 = vpack.c.bf16 %v11123_v41, %v11122_v3  ;;  %v13792_v55 = vadd.f32 %v10824_v34, %v18309_v40  ;;  %v13746_v9 = vpop.f32.mrb[26].mxu1 }
 0x647   : > { %12386 = vst [vmem:[%s18068_s14 + $0x18] sm:$0xff] %v12322_v16   ;;  %v11096_v48 = vadd.f32 %v13791_v49, %v18053_v23  ;;  %v13793_v12 = vadd.f32 %v13746_v9, %v18310_v11  ;;  %v10827_v39 = vpop.f32.mrb[27].mxu1 }
 0x648   : > { %12385 = vst [vmem:[%s18068_s14 + $0x10] sm:$0xff] %v12317_v21   ;;  %v11094_v27 = vadd.f32 %v13792_v55, %v18053_v23  ;;  %v13794_v10 = vadd.f32 %v10827_v39, %v18311_v29 }
 0x649   : > { %v11097_v52 = vadd.f32 %v13793_v12, %v18053_v23  ;;  %v11128_v8 = vmax.f32 %v11096_v48, 0.0 }
 0x64a   : > { %v11095_v37 = vadd.f32 %v13794_v10, %v18053_v23  ;;  %v11126_v13 = vmax.f32 %v11094_v27, 0.0 }
 0x64b   : > { %v11129_v63 = vmax.f32 %v11097_v52, 0.0 }
 0x64c   : > { %v11127_v19 = vmax.f32 %v11095_v37, 0.0  ;;  %v13749_v56 = vpop.f32.mrb[28].mxu1 }
 0x64d   : > { %v12332_v53 = vpack.c.bf16 %v11129_v63, %v11128_v8  ;;  %v13795_v60 = vadd.f32 %v13749_v56, %v18312_v17  ;;  %v10840_v57 = vpop.f32.mrb[29].mxu1 }
 0x64e   : > { %v12327_v43 = vpack.c.bf16 %v11127_v19, %v11126_v13  ;;  %v13796_v18 = vadd.f32 %v10840_v57, %v18313_v38  ;;  %v13750_v7 = vpop.f32.mrb[30].mxu1 }
 0x64f   : > { %12388 = vst [vmem:[%s18068_s14 + $0x28] sm:$0xff] %v12332_v53   ;;  %v11100_v4 = vadd.f32 %v13795_v60, %v18053_v23  ;;  %v13797_v54 = vadd.f32 %v13750_v7, %v18314_v62  ;;  %v10843_v25 = vpop.f32.mrb[31].mxu1 }
 0x650   : > { %12387 = vst [vmem:[%s18068_s14 + $0x20] sm:$0xff] %v12327_v43   ;;  %v11098_v61 = vadd.f32 %v13796_v18, %v18053_v23  ;;  %v13798_v50 = vadd.f32 %v10843_v25, %v18315_v47 }
 0x651   : > { %v11101_v51 = vadd.f32 %v13797_v54, %v18053_v23  ;;  %v11132_v45 = vmax.f32 %v11100_v4, 0.0 }
 0x652   : > { %v11099_v1 = vadd.f32 %v13798_v50, %v18053_v23  ;;  %v11130_v58 = vmax.f32 %v11098_v61, 0.0 }
 0x653   : > { %v11133_v46 = vmax.f32 %v11101_v51, 0.0 }
 0x654   : > { %v11131_v6 = vmax.f32 %v11099_v1, 0.0  ;;  %v13753_v30 = vpop.f32.mrb[0].mxu1 }
 0x655   : > { %v12342_v35 = vpack.c.bf16 %v11133_v46, %v11132_v45  ;;  %v11104_v36 = vadd.f32 %v13753_v30, %v18053_v23  ;;  %v10856_v2 = vpop.f32.mrb[1].mxu1 }
 0x656   : > { %v12337_v32 = vpack.c.bf16 %v11131_v6, %v11130_v58  ;;  %v11102_v28 = vadd.f32 %v18053_v23, %v10856_v2  ;;  %v13754_v5 = vpop.f32.mrb[2].mxu1 }
 0x657   : > { %12390 = vst [vmem:[%s18068_s14 + $0x38] sm:$0xff] %v12342_v35   ;;  %v11105_v26 = vadd.f32 %v13754_v5, %v18053_v23  ;;  %v10859_v22 = vpop.f32.mrb[3].mxu1  ;;  %v11136_v15 = vmax.f32 %v11104_v36, 0.0 }
 0x658   : > { %12389 = vst [vmem:[%s18068_s14 + $0x30] sm:$0xff] %v12337_v32   ;;  %v11103_v0 = vadd.f32 %v18053_v23, %v10859_v22  ;;  %v11134_v20 = vmax.f32 %v11102_v28, 0.0 }
 0x659   : > { %v11137_v33 = vmax.f32 %v11105_v26, 0.0 }
 0x65a   : > { %v11135_v42 = vmax.f32 %v11103_v0, 0.0 }
 0x65b   : > { %v12352_v59 = vpack.c.bf16 %v11137_v33, %v11136_v15 }
 0x65c   : > { %v12347_v24 = vpack.c.bf16 %v11135_v42, %v11134_v20  ;;  %v13757_v14 = vpop.f32.mrb[4].mxu1 }
 0x65d   : > { %12392 = vst [vmem:[%s18068_s14 + $0x48] sm:$0xff] %v12352_v59   ;;  %v11108_v3 = vadd.f32 %v13757_v14, %v18053_v23  ;;  %v10872_v41 = vpop.f32.mrb[5].mxu1 }
 0x65e   : > { %12391 = vst [vmem:[%s18068_s14 + $0x40] sm:$0xff] %v12347_v24   ;;  %v11106_v44 = vadd.f32 %v18053_v23, %v10872_v41  ;;  %v13758_v16 = vpop.f32.mrb[6].mxu1 }
 0x65f   : > { %v11109_v31 = vadd.f32 %v13758_v16, %v18053_v23  ;;  %v10875_v49 = vpop.f32.mrb[7].mxu1  ;;  %v11140_v21 = vmax.f32 %v11108_v3, 0.0 }
 0x660   : > { %v11107_v34 = vadd.f32 %v18053_v23, %v10875_v49  ;;  %v11138_v55 = vmax.f32 %v11106_v44, 0.0 }
 0x661   : > { %v11141_v40 = vmax.f32 %v11109_v31, 0.0 }
 0x662   : > { %v11139_v9 = vmax.f32 %v11107_v34, 0.0 }
 0x663   : > { %v12362_v48 = vpack.c.bf16 %v11141_v40, %v11140_v21 }
 0x664   : > { %v12357_v11 = vpack.c.bf16 %v11139_v9, %v11138_v55  ;;  %v13761_v12 = vpop.f32.mrb[8].mxu1 }
 0x665   : > { %12394 = vst [vmem:[%s18068_s14 + $0x58] sm:$0xff] %v12362_v48   ;;  %v11112_v39 = vadd.f32 %v13761_v12, %v18053_v23  ;;  %v10888_v27 = vpop.f32.mrb[9].mxu1 }
 0x666   : > { %12393 = vst [vmem:[%s18068_s14 + $0x50] sm:$0xff] %v12357_v11   ;;  %v11110_v29 = vadd.f32 %v18053_v23, %v10888_v27  ;;  %v13762_v10 = vpop.f32.mrb[10].mxu1 }
 0x667   : > { %v11113_v52 = vadd.f32 %v13762_v10, %v18053_v23  ;;  %v10891_v37 = vpop.f32.mrb[11].mxu1  ;;  %v11144_v63 = vmax.f32 %v11112_v39, 0.0 }
 0x668   : > { %v11111_v8 = vadd.f32 %v18053_v23, %v10891_v37  ;;  %v11142_v19 = vmax.f32 %v11110_v29, 0.0 }
 0x669   : > { %v11145_v13 = vmax.f32 %v11113_v52, 0.0 }
 0x66a   : > { %v11143_v56 = vmax.f32 %v11111_v8, 0.0 }
 0x66b   : > { %v12372_v53 = vpack.c.bf16 %v11145_v13, %v11144_v63 }
 0x66c   : > { %v12367_v17 = vpack.c.bf16 %v11143_v56, %v11142_v19  ;;  %v13765_v60 = vpop.f32.mrb[12].mxu1 }
 0x66d   : > { %12396 = vst [vmem:[%s18068_s14 + $0x68] sm:$0xff] %v12372_v53   ;;  %v11116_v57 = vadd.f32 %v13765_v60, %v18053_v23  ;;  %v10904_v43 = vpop.f32.mrb[13].mxu1 }
 0x66e   : > { %12395 = vst [vmem:[%s18068_s14 + $0x60] sm:$0xff] %v12367_v17   ;;  %v11114_v38 = vadd.f32 %v18053_v23, %v10904_v43  ;;  %v13766_v18 = vpop.f32.mrb[14].mxu1 }
 0x66f   : > { %v11117_v7 = vadd.f32 %v13766_v18, %v18053_v23  ;;  %v10907_v4 = vpop.f32.mrb[15].mxu1  ;;  %v11148_v54 = vmax.f32 %v11116_v57, 0.0 }
 0x670   : > { %v11115_v62 = vadd.f32 %v18053_v23, %v10907_v4  ;;  %v11146_v61 = vmax.f32 %v11114_v38, 0.0 }
 0x671   : > { %v11149_v25 = vmax.f32 %v11117_v7, 0.0 }
 0x672   : > { %v11147_v47 = vmax.f32 %v11115_v62, 0.0 }
 0x673   : > { %v12382_v50 = vpack.c.bf16 %v11149_v25, %v11148_v54 }
 0x674   : > { %v12377_v51 = vpack.c.bf16 %v11147_v47, %v11146_v61 }
 0x675   : > { %12398 = vst [vmem:[%s18068_s14 + $0x78] sm:$0xff] %v12382_v50  }
 0x676   : > { %12397 = vst [vmem:[%s18068_s14 + $0x70] sm:$0xff] %v12377_v51  }
 0x677   : > { %14599 = shalt.err (!%p14596_p3)
}
 0x678   : > { %s14600_s10 = scalar_lea.hbm %s18127_s20, 2048  ;;  %s14604_s13 = scalar_lea.hbm %s18182_s6, 4096 }
 0x679   : > { %p14601_p4 = scmp.ne.s32.totalorder %s18127_s20, %s14600_s10  ;;  %p14605_p9 = scmp.lt.u32.totalorder %s18127_s20, %s18182_s6 }
 0x67a   : > { %p14606_p10 = scmp.lt.u32.totalorder %s14604_s13, %s14600_s10  ;;  %p14608_p12 = scmp.lt.u32.totalorder %s14600_s10, %s18127_s20 }
 0x67b   : > { %p14602_p7 = pnand %p14601_p4, %p14726_p5 }
 0x67c   : > { %p14607_p11 = por %p14606_p10, %p14605_p9 }
 0x67d   : > { %p14603_p8 = pneg %p14602_p7 }
 0x67e   : > { %p14609_p13 = por %p14608_p12, %p14607_p11 }
 0x680   : > { %p14610_p0 = pnand %p14609_p13, %p14603_p8 }
 0x682   : > { %14613 = shalt.err (!%p14610_p0)
}
 0x683   : > { %s14651_s15 = smov 64   ;;  %s14652_s17 = smov 4  }
 0x684   : > { %14328 = dma.vmem_to_hbm [thread:$0]  (%p14726_p5), %s18129_s16, 2048, %s18127_s20, %s18135_s25, %s14651_s15, %s14651_s15, %s14652_s17  }
 0x685 PF: > { %p14334_p1 = scmp.ge.s32.totalorder %s14648_s24, 2  ;;  %s11339_s18 = sand.u32 1, %s14636_s21  }
 0x686   : > { %s11340_s26 = scalar_lea.sflag [#allocation5], %s11339_s18 }
 0x687   : > { %p14331_p2 = pnand %p14334_p1, %p14730_p6 }
 0x689   : > { %14631 = dma.done.wait (!%p14331_p2), %s11340_s26, 2048  }
 0x68a   : > { %14633 = vsyncadd (!%p14331_p2), %s11340_s26, 4294965248  ;;  %p16_p3 = scmp.ge.s32.totalorder %s14713_s27, 4   ;;  %s18316_s21 = smov %s14640_s22 }
 0x68b   : > { %s18317_s22 = smov %s14644_s23  ;;  %s18318_s23 = smov %s14724_s30 }
 0x68c   : > { %s18319_s24 = smov %s14713_s27  ;;  %18 = sbr.rel (!%p16_p3) target bundleno = 3 (0x3), region = 100 }
 0x693   :  { %11345 = vsyncpa [#allocation5], 1 }
 0x694   :  { %11347 = vsyncpa [#allocation5 + $0x1], 1 }

</bundles_post_ra>
